<compile_context>
chip_gen: v7x
topology: tpu7x:2x2x1
jax: 0.10.0
libtpu: 0.0.40
codegen_flags: <defaults>
</compile_context>

<pallas_src>
import jax
import jax.numpy as jnp
from jax.experimental import pallas as pl
from jax.experimental.pallas import tpu as pltpu

S1 = 1024  # model input / output features
S2 = 512   # hidden features


def mlp_kernel(x_ref, w1_ref, b1_ref, w2_ref, b2_ref, o_ref):
    # layer1: [tb, S1](bf16) @ [S1, S2](bf16) -> f32 accumulate on the MXU
    h = jnp.dot(x_ref[...], w1_ref[...], preferred_element_type=jnp.float32)
    # bias + ReLU epilogue in f32 (portable: v5e VPU has no bf16 path)
    h = jnp.maximum(h + b1_ref[...], 0.0)
    # layer2: feed the MXU in bf16 again, accumulate in f32
    y = jnp.dot(h.astype(jnp.bfloat16), w2_ref[...],
                preferred_element_type=jnp.float32)
    y = y + b2_ref[...]
    o_ref[...] = y.astype(o_ref.dtype)


def _pick_tb(B):
    """Largest batch tile that divides B; prefer >= 2 grid steps (v7x megacore)."""
    for cand in (256, 128, 64, 32, 16, 8):
        if B % cand == 0 and B // cand >= 2:
            return cand
    for cand in (256, 128, 64, 32, 16, 8):
        if B % cand == 0:
            return cand
    return B


def _build_mlp_call(B, tb, single_buffer_weights):
    # Grid-invariant operands (weights / biases) don't need double buffering.
    w_kwargs = {"pipeline_mode": pl.Buffered(1)} if single_buffer_weights else {}
    return pl.pallas_call(
        mlp_kernel,
        out_shape=jax.ShapeDtypeStruct((B, S1), jnp.float32),
        grid_spec=pltpu.PrefetchScalarGridSpec(
            num_scalar_prefetch=0,
            grid=(B // tb,),
            in_specs=[
                pl.BlockSpec((tb, S1), lambda i: (i, 0)),                 # x tile (bf16)
                pl.BlockSpec((S1, S2), lambda i: (0, 0), **w_kwargs),     # W1^T (bf16, resident)
                pl.BlockSpec((1, S2), lambda i: (0, 0), **w_kwargs),      # b1 (f32)
                pl.BlockSpec((S2, S1), lambda i: (0, 0), **w_kwargs),     # W2^T (bf16, resident)
                pl.BlockSpec((1, S1), lambda i: (0, 0), **w_kwargs),      # b2 (f32)
            ],
            out_specs=pl.BlockSpec((tb, S1), lambda i: (i, 0)),
        ),
        compiler_params=pltpu.CompilerParams(
            dimension_semantics=("parallel",),
            vmem_limit_bytes=32 * 1024 * 1024,
        ),
        cost_estimate=pl.CostEstimate(
            flops=4 * B * S1 * S2,  # two matmuls: 2*B*S1*S2 + 2*B*S2*S1
            transcendentals=0,
            bytes_accessed=(B * S1 * 2            # x (bf16)
                            + 2 * S1 * S2 * 2     # W1^T + W2^T (bf16)
                            + (S1 + S2) * 4       # biases (f32)
                            + B * S1 * 4),        # output (f32)
        ),
    )


def mlp_forward(x, w1_t, b1, w2_t, b2, *, tb=None):
    """x: [B, S1]; w1_t: [S1, S2]; b1: [1, S2]; w2_t: [S2, S1]; b2: [1, S1].

    Casts x / weights to bf16 for the MXU; f32 accumulate + f32 output.
    """
    B, F = x.shape
    assert F == S1
    if tb is None:
        tb = _pick_tb(B)
    assert B % tb == 0

    x_bf = x.astype(jnp.bfloat16)
    w1_bf = w1_t.astype(jnp.bfloat16)
    w2_bf = w2_t.astype(jnp.bfloat16)
    b1_f = b1.astype(jnp.float32)
    b2_f = b2.astype(jnp.float32)
    args = (x_bf, w1_bf, b1_f, w2_bf, b2_f)

    try:
        return _build_mlp_call(B, tb, single_buffer_weights=True)(*args)
    except Exception:
        # Fallback for JAX versions that reject single-buffered BlockSpecs.
        return _build_mlp_call(B, tb, single_buffer_weights=False)(*args)


def init_params(key):
    """Deterministic init mimicking nn.Linear's uniform(-1/sqrt(fan_in), 1/sqrt(fan_in))."""
    k1, k2, k3, k4 = jax.random.split(key, 4)
    bound1 = 1.0 / jnp.sqrt(jnp.float32(S1))
    bound2 = 1.0 / jnp.sqrt(jnp.float32(S2))
    # PyTorch stores weight as [out, in]; we build [out, in] then transpose for the kernel.
    w1 = jax.random.uniform(k1, (S2, S1), jnp.float32, -bound1, bound1)
    b1 = jax.random.uniform(k2, (S2,), jnp.float32, -bound1, bound1)
    w2 = jax.random.uniform(k3, (S1, S2), jnp.float32, -bound2, bound2)
    b2 = jax.random.uniform(k4, (S1,), jnp.float32, -bound2, bound2)
    return w1, b1, w2, b2


if __name__ == "__main__":
    key = jax.random.PRNGKey(0)
    kx, kp = jax.random.split(key)

    B = 256  # 2 tiles of 128 -> keeps both TensorCores busy on v7x
    x = jax.random.normal(kx, (B, S1), jnp.float32)

    w1, b1, w2, b2 = init_params(kp)

    # Pre-transpose weights for the kernel layout; biases as [1, F] rows.
    w1_t = w1.T                      # [S1, S2]
    w2_t = w2.T                      # [S2, S1]
    b1_r = b1.reshape(1, S2)
    b2_r = b2.reshape(1, S1)

    out = mlp_forward(x, w1_t, b1_r, w2_t, b2_r)
    out = jax.block_until_ready(out)

    # Pure-JAX f32 reference (same math as the PyTorch module). Tolerance is
    # loosened because the kernel uses bf16 inputs/weights with f32 accumulate.
    ref = jnp.maximum(x @ w1.T + b1, 0.0) @ w2.T + b2
    assert out.shape == (B, S1)
    max_err = float(jnp.max(jnp.abs(out - ref)))
    assert jnp.allclose(out, ref, atol=5e-2, rtol=5e-2), (
        f"mismatch vs reference, max abs err {max_err}")

    print("KERNEL_OK")
</pallas_src>

<mosaic_0001>
module attributes {stable_mosaic.version = 11 : i64} {
  func.func @mlp_kernel(%arg0: i32, %arg1: memref<128x1024xbf16, #tpu.memory_space<vmem>>, %arg2: memref<1024x512xbf16, #tpu.memory_space<vmem>>, %arg3: memref<1x512xf32, #tpu.memory_space<vmem>>, %arg4: memref<512x1024xbf16, #tpu.memory_space<vmem>>, %arg5: memref<1x1024xf32, #tpu.memory_space<vmem>>, %arg6: memref<128x1024xf32, #tpu.memory_space<vmem>>) attributes {dimension_semantics = [#tpu.dimension_semantics<parallel>], iteration_bounds = array<i64: 2>, scalar_prefetch = 0 : i64, scratch_operands = 0 : i64, tpu.core_type = #tpu.core_type<tc>, window_params = [{transform_indices = @transform_0, window_bounds = array<i64: 128, 1024>}, {pipeline_mode = #tpu.pipeline_mode<synchronous>, transform_indices = @transform_1, window_bounds = array<i64: 1024, 512>}, {pipeline_mode = #tpu.pipeline_mode<synchronous>, transform_indices = @transform_2, window_bounds = array<i64: 1, 512>}, {pipeline_mode = #tpu.pipeline_mode<synchronous>, transform_indices = @transform_3, window_bounds = array<i64: 512, 1024>}, {pipeline_mode = #tpu.pipeline_mode<synchronous>, transform_indices = @transform_4, window_bounds = array<i64: 1, 1024>}, {transform_indices = @transform_5, window_bounds = array<i64: 128, 1024>}]} {
    %c0 = arith.constant 0 : index
    %c0_0 = arith.constant 0 : index
    %0 = vector.load %arg1[%c0, %c0_0] : memref<128x1024xbf16, #tpu.memory_space<vmem>>, vector<128x1024xbf16>
    %c0_1 = arith.constant 0 : index
    %c0_2 = arith.constant 0 : index
    %1 = vector.load %arg2[%c0_1, %c0_2] : memref<1024x512xbf16, #tpu.memory_space<vmem>>, vector<1024x512xbf16>
    %cst = arith.constant dense<0.000000e+00> : vector<128x512xf32>
    %2 = tpu.matmul %0, %1, %cst {dimension_numbers = #tpu.dot_dimension_numbers<[1], [0], [0], [1], [0, 0, 1, 1], [], []>} : vector<128x1024xbf16>, vector<1024x512xbf16>, vector<128x512xf32> -> vector<128x512xf32>
    %c0_3 = arith.constant 0 : index
    %c0_4 = arith.constant 0 : index
    %3 = vector.load %arg3[%c0_3, %c0_4] : memref<1x512xf32, #tpu.memory_space<vmem>>, vector<1x512xf32>
    %4 = vector.broadcast %3 : vector<1x512xf32> to vector<128x512xf32>
    %5 = arith.addf %2, %4 : vector<128x512xf32>
    %cst_5 = arith.constant 0.000000e+00 : f32
    %6 = vector.broadcast %cst_5 : f32 to vector<128x512xf32>
    %7 = arith.maximumf %5, %6 : vector<128x512xf32>
    %8 = arith.truncf %7 : vector<128x512xf32> to vector<128x512xbf16>
    %c0_6 = arith.constant 0 : index
    %c0_7 = arith.constant 0 : index
    %9 = vector.load %arg4[%c0_6, %c0_7] : memref<512x1024xbf16, #tpu.memory_space<vmem>>, vector<512x1024xbf16>
    %cst_8 = arith.constant dense<0.000000e+00> : vector<128x1024xf32>
    %10 = tpu.matmul %8, %9, %cst_8 {dimension_numbers = #tpu.dot_dimension_numbers<[1], [0], [0], [1], [0, 0, 1, 1], [], []>} : vector<128x512xbf16>, vector<512x1024xbf16>, vector<128x1024xf32> -> vector<128x1024xf32>
    %c0_9 = arith.constant 0 : index
    %c0_10 = arith.constant 0 : index
    %11 = vector.load %arg5[%c0_9, %c0_10] : memref<1x1024xf32, #tpu.memory_space<vmem>>, vector<1x1024xf32>
    %12 = vector.broadcast %11 : vector<1x1024xf32> to vector<128x1024xf32>
    %13 = arith.addf %10, %12 : vector<128x1024xf32>
    %c0_11 = arith.constant 0 : index
    %c0_12 = arith.constant 0 : index
    %14 = vector.load %arg6[%c0_11, %c0_12] : memref<128x1024xf32, #tpu.memory_space<vmem>>, vector<128x1024xf32>
    tpu.vector_store %arg6[%c0_11, %c0_12], %13 {strides = array<i32>} : memref<128x1024xf32, #tpu.memory_space<vmem>>, vector<128x1024xf32>,
    return
  }
  func.func @transform_0(%arg0: i32) -> (i32, i32) {
    %c0_i32 = arith.constant 0 : i32
    %c0_i32_0 = arith.constant 0 : i32
    return %arg0, %c0_i32 : i32, i32
  }
  func.func @transform_1(%arg0: i32) -> (i32, i32) {
    %c0_i32 = arith.constant 0 : i32
    %c0_i32_0 = arith.constant 0 : i32
    %c0_i32_1 = arith.constant 0 : i32
    return %c0_i32, %c0_i32_0 : i32, i32
  }
  func.func @transform_2(%arg0: i32) -> (i32, i32) {
    %c0_i32 = arith.constant 0 : i32
    %c0_i32_0 = arith.constant 0 : i32
    %c0_i32_1 = arith.constant 0 : i32
    return %c0_i32, %c0_i32_0 : i32, i32
  }
  func.func @transform_3(%arg0: i32) -> (i32, i32) {
    %c0_i32 = arith.constant 0 : i32
    %c0_i32_0 = arith.constant 0 : i32
    %c0_i32_1 = arith.constant 0 : i32
    return %c0_i32, %c0_i32_0 : i32, i32
  }
  func.func @transform_4(%arg0: i32) -> (i32, i32) {
    %c0_i32 = arith.constant 0 : i32
    %c0_i32_0 = arith.constant 0 : i32
    %c0_i32_1 = arith.constant 0 : i32
    return %c0_i32, %c0_i32_0 : i32, i32
  }
  func.func @transform_5(%arg0: i32) -> (i32, i32) {
    %c0_i32 = arith.constant 0 : i32
    %c0_i32_0 = arith.constant 0 : i32
    return %arg0, %c0_i32 : i32, i32
  }
}

module attributes {stable_mosaic.version = 11 : i64} {
  func.func @mlp_kernel(%arg0: i32, %arg1: memref<128x1024xbf16, #tpu.memory_space<vmem>>, %arg2: memref<1024x512xbf16, #tpu.memory_space<vmem>>, %arg3: memref<1x512xf32, #tpu.memory_space<vmem>>, %arg4: memref<512x1024xbf16, #tpu.memory_space<vmem>>, %arg5: memref<1x1024xf32, #tpu.memory_space<vmem>>, %arg6: memref<128x1024xf32, #tpu.memory_space<vmem>>) attributes {dimension_semantics = [#tpu.dimension_semantics<parallel>], iteration_bounds = array<i64: 2>, scalar_prefetch = 0 : i64, scratch_operands = 0 : i64, tpu.core_type = #tpu.core_type<tc>, window_params = [{transform_indices = @transform_0, window_bounds = array<i64: 128, 1024>}, {pipeline_mode = #tpu.pipeline_mode<synchronous>, transform_indices = @transform_1, window_bounds = array<i64: 1024, 512>}, {pipeline_mode = #tpu.pipeline_mode<synchronous>, transform_indices = @transform_2, window_bounds = array<i64: 1, 512>}, {pipeline_mode = #tpu.pipeline_mode<synchronous>, transform_indices = @transform_3, window_bounds = array<i64: 512, 1024>}, {pipeline_mode = #tpu.pipeline_mode<synchronous>, transform_indices = @transform_4, window_bounds = array<i64: 1, 1024>}, {transform_indices = @transform_5, window_bounds = array<i64: 128, 1024>}]} {
    %c0 = arith.constant 0 : index
    %c0_0 = arith.constant 0 : index
    %0 = vector.load %arg1[%c0, %c0_0] : memref<128x1024xbf16, #tpu.memory_space<vmem>>, vector<128x1024xbf16>
    %c0_1 = arith.constant 0 : index
    %c0_2 = arith.constant 0 : index
    %1 = vector.load %arg2[%c0_1, %c0_2] : memref<1024x512xbf16, #tpu.memory_space<vmem>>, vector<1024x512xbf16>
    %cst = arith.constant dense<0.000000e+00> : vector<128x512xf32>
    %2 = tpu.matmul %0, %1, %cst {dimension_numbers = #tpu.dot_dimension_numbers<[1], [0], [0], [1], [0, 0, 1, 1], [], []>} : vector<128x1024xbf16>, vector<1024x512xbf16>, vector<128x512xf32> -> vector<128x512xf32>
    %c0_3 = arith.constant 0 : index
    %c0_4 = arith.constant 0 : index
    %3 = vector.load %arg3[%c0_3, %c0_4] : memref<1x512xf32, #tpu.memory_space<vmem>>, vector<1x512xf32>
    %4 = vector.broadcast %3 : vector<1x512xf32> to vector<128x512xf32>
    %5 = arith.addf %2, %4 : vector<128x512xf32>
    %cst_5 = arith.constant 0.000000e+00 : f32
    %6 = vector.broadcast %cst_5 : f32 to vector<128x512xf32>
    %7 = arith.maximumf %5, %6 : vector<128x512xf32>
    %8 = arith.truncf %7 : vector<128x512xf32> to vector<128x512xbf16>
    %c0_6 = arith.constant 0 : index
    %c0_7 = arith.constant 0 : index
    %9 = vector.load %arg4[%c0_6, %c0_7] : memref<512x1024xbf16, #tpu.memory_space<vmem>>, vector<512x1024xbf16>
    %cst_8 = arith.constant dense<0.000000e+00> : vector<128x1024xf32>
    %10 = tpu.matmul %8, %9, %cst_8 {dimension_numbers = #tpu.dot_dimension_numbers<[1], [0], [0], [1], [0, 0, 1, 1], [], []>} : vector<128x512xbf16>, vector<512x1024xbf16>, vector<128x1024xf32> -> vector<128x1024xf32>
    %c0_9 = arith.constant 0 : index
    %c0_10 = arith.constant 0 : index
    %11 = vector.load %arg5[%c0_9, %c0_10] : memref<1x1024xf32, #tpu.memory_space<vmem>>, vector<1x1024xf32>
    %12 = vector.broadcast %11 : vector<1x1024xf32> to vector<128x1024xf32>
    %13 = arith.addf %10, %12 : vector<128x1024xf32>
    %c0_11 = arith.constant 0 : index
    %c0_12 = arith.constant 0 : index
    %14 = vector.load %arg6[%c0_11, %c0_12] : memref<128x1024xf32, #tpu.memory_space<vmem>>, vector<128x1024xf32>
    tpu.vector_store %arg6[%c0_11, %c0_12], %13 {strides = array<i32>} : memref<128x1024xf32, #tpu.memory_space<vmem>>, vector<128x1024xf32>,
    return
  }
  func.func @transform_0(%arg0: i32) -> (i32, i32) {
    %c0_i32 = arith.constant 0 : i32
    %c0_i32_0 = arith.constant 0 : i32
    return %arg0, %c0_i32 : i32, i32
  }
  func.func @transform_1(%arg0: i32) -> (i32, i32) {
    %c0_i32 = arith.constant 0 : i32
    %c0_i32_0 = arith.constant 0 : i32
    %c0_i32_1 = arith.constant 0 : i32
    return %c0_i32, %c0_i32_0 : i32, i32
  }
  func.func @transform_2(%arg0: i32) -> (i32, i32) {
    %c0_i32 = arith.constant 0 : i32
    %c0_i32_0 = arith.constant 0 : i32
    %c0_i32_1 = arith.constant 0 : i32
    return %c0_i32, %c0_i32_0 : i32, i32
  }
  func.func @transform_3(%arg0: i32) -> (i32, i32) {
    %c0_i32 = arith.constant 0 : i32
    %c0_i32_0 = arith.constant 0 : i32
    %c0_i32_1 = arith.constant 0 : i32
    return %c0_i32, %c0_i32_0 : i32, i32
  }
  func.func @transform_4(%arg0: i32) -> (i32, i32) {
    %c0_i32 = arith.constant 0 : i32
    %c0_i32_0 = arith.constant 0 : i32
    %c0_i32_1 = arith.constant 0 : i32
    return %c0_i32, %c0_i32_0 : i32, i32
  }
  func.func @transform_5(%arg0: i32) -> (i32, i32) {
    %c0_i32 = arith.constant 0 : i32
    %c0_i32_0 = arith.constant 0 : i32
    return %arg0, %c0_i32 : i32, i32
  }
}

</mosaic_0001>

<bundles_post_ra>
// kernel: tpu_custom_call.1
= control target key start
LH: loop header
LB: loop body
LE: loop exit
PB: predicated region body
PF: predicated region fallthrough
CT: control target
= control target key end

     0   :  { %10 = vsyncpa [#allocation3], 0  ;;  %s8885_s0 = inlined_call_operand.hbm [shape: bf16[256,1024], index: 0, kind: input, shape index: {}]   ;;  %s8886_s1 = inlined_call_operand.hbm [shape: bf16[1024,512], index: 1, kind: input, shape index: {}]   ;;  %s8887_s2 = inlined_call_operand.vmem [shape: f32[1,512], index: 2, kind: input, shape index: {}]   ;;  %s8888_s3 = inlined_call_operand.hbm [shape: bf16[512,1024], index: 3, kind: input, shape index: {}]   ;;  %s8889_s4 = inlined_call_operand.vmem [shape: f32[1,1024], index: 4, kind: input, shape index: {}]   ;;  %s8890_s5 = inlined_call_operand.hbm [shape: f32[256,1024], index: 5, kind: output, shape index: {}]  }
   0x1   :  { %12 = vsyncpa [#allocation3 + $0x1], 0 }
   0x2   :  { %13 = vsyncpa [#allocation6], 0 }
   0x3   :  { %14 = vsyncpa [#allocation4], 0 }
   0x4   :  { %16 = vsyncpa [#allocation4 + $0x1], 0  ;;  %s7701_s18 = smov 0   ;;  %s7703_s19 = smov 0  }
   0x5   :  { %s7705_s20 = smov 0   ;;  %s7707_s21 = smov 0  }
   0x6 LB: > { %s7722_s22 = sadd.s32 4294967295, %s7659_s21   ;;  %s5934_s23 = sadd.s32 4294967294, %s7659_s21   ;;  %s7659_s21 = sphi %s7707_s21, %s8918_s21   ;;  %s7655_s20 = sphi %s7705_s20, %s8917_s20   ;;  %s7651_s19 = sphi %s7703_s19, %s8916_s19   ;;  %s7647_s18 = sphi %s7701_s18, %s8915_s18  }
   0x7   : > { %p42_p0 = scmp.ne.s32.totalorder %s7651_s19, %s7647_s18  ;;  %p8891_p1 = scmp.eq.s32.totalorder %s7722_s22, 0 }
   0x8   : > { %p156_p3 = scmp.eq.s32.totalorder %s5934_s23, 1  ;;  %p5935_p5 = scmp.ge.s32.totalorder %s7659_s21, 1 }
   0x9   : > { %p7731_p4 = por %p8891_p1, %p42_p0  ;;  %p163_p7 = scmp.lt.s32.totalorder %s7659_s21, 3 }
   0xa   : > { %p7736_p6 = por %p156_p3, %p42_p0  ;;  %s7661_s27 = smov [#allocation5]  }
   0xb   : > { %s8898_s24 = scalar_select %p7731_p4, 1, 0 }
   0xc   : > { %s8899_s25 = scalar_select %p7736_p6, 1, 0 }
   0xd   : > { %p7741_p8 = pnand %p5935_p5, %p163_p7  ;;  %s175_s28 = sshll.u32 %s7661_s27, 4  ;;  %s7745_s28 = int_to_ptr.vmem [resolvable:$true] %s175_s28 }
   0xe   : > { %s7662_s30 = smov [#allocation7]   ;;  %s7503_s9 = scalar_lea.hbm %s8886_s1, 32768 }
   0xf   : > { %p7058_p9 = pneg %p7741_p8  ;;  %s191_s6 = sshll.u32 %s7662_s30, 4  ;;  %s7756_s6 = int_to_ptr.vmem [resolvable:$true] %s191_s6 }
  0x10   : > { %p7504_p12 = scmp.ne.s32.totalorder %s8886_s1, %s7503_s9  ;;  %p7510_p5 = scmp.lt.u32.totalorder %s7503_s9, %s8886_s1 }
  0x11   : > { %p7752_p11 = pnand %p7058_p9, %p8891_p1 }
  0x13   : > { %p7505_p13 = pneg %p7752_p11 }
  0x15   : > { %p7506_p0 = pnand %p7505_p13, %p7504_p12 }
  0x17   : > { %p7507_p3 = pneg %p7506_p0 }
  0x19   : > { %p7512_p7 = pnand %p7510_p5, %p7507_p3 }
  0x1b   : > { %7515 = shalt.err (!%p7512_p7)
}
  0x1c   : > { %s7516_s14 = scalar_lea.vmem %s7745_s28, 32768  ;;  %p7524_p2 = scmp.lt.s32.totalorder %s7745_s28, %s7745_s28 }
  0x1d   : > { %p7517_p9 = scmp.ne.s32.totalorder %s7745_s28, %s7516_s14  ;;  %p7525_p12 = scmp.lt.s32.totalorder %s7516_s14, %s7516_s14 }
  0x1f   : > { %p7519_p10 = pnand %p7517_p9, %p7505_p13  ;;  %p7526_p0 = por %p7525_p12, %p7524_p2 }
  0x21   : > { %p7520_p1 = pneg %p7519_p10 }
  0x23   : > { %p7527_p6 = pnand %p7526_p0, %p7520_p1 }
  0x25   : > { %7530 = shalt.err (!%p7527_p6)
}
  0x26   : > { %s7663_s15 = smov 256   ;;  %s7664_s16 = smov 16  }
  0x27   : > { %7061 = dma.hbm_to_vmem [thread:$0]  (!%p7752_p11), %s8886_s1, 32768, %s7745_s28, [#allocation6], %s7663_s15, %s7663_s15, %s7664_s16  }
  0x28   : > { %s7531_s7 = scalar_lea.hbm %s8888_s3, 32768 }
  0x29   : > { %p7532_p2 = scmp.ne.s32.totalorder %s8888_s3, %s7531_s7  ;;  %p7538_p10 = scmp.lt.u32.totalorder %s7531_s7, %s8888_s3 }
  0x2b   : > { %p7534_p1 = pnand %p7532_p2, %p7505_p13 }
  0x2d   : > { %p7535_p6 = pneg %p7534_p1 }
  0x2f   : > { %p7540_p3 = pnand %p7538_p10, %p7535_p6 }
  0x31   : > { %7543 = shalt.err (!%p7540_p3)
}
  0x32   : > { %s7544_s28 = scalar_lea.vmem %s7756_s6, 32768  ;;  %p7552_p12 = scmp.lt.s32.totalorder %s7756_s6, %s7756_s6 }
  0x33   : > { %p7545_p5 = scmp.ne.s32.totalorder %s7756_s6, %s7544_s28  ;;  %p7553_p0 = scmp.lt.s32.totalorder %s7544_s28, %s7544_s28 }
  0x35   : > { %p7547_p7 = pnand %p7545_p5, %p7505_p13  ;;  %p7554_p2 = por %p7553_p0, %p7552_p12 }
  0x37   : > { %p7548_p9 = pneg %p7547_p7 }
  0x39   : > { %p7555_p1 = pnand %p7554_p2, %p7548_p9 }
  0x3b   : > { %7558 = shalt.err (!%p7555_p1)
}
  0x3c   : > { %s7665_s12 = smov 512   ;;  %s7666_s13 = smov 32  }
  0x3d   : > { %7064 = dma.hbm_to_vmem [thread:$0]  (!%p7752_p11), %s8888_s3, 32768, %s7756_s6, [#allocation6], %s7665_s12, %s7665_s12, %s7666_s13  }
  0x3e   : > { %s7814_s16 = sadd.s32 1, %s7659_s21   ;;  %s29_s23 = sadd.s32 1, %s7655_s20 }
  0x3f   : > { %s26_s17 = ssub.s32 %s7659_s21, %s7814_s16  ;;  %p36_p6 = scmp.ne.s32.totalorder %s7655_s20, %s7651_s19 }
  0x40   : > { %p27_p13 = scmp.eq.s32.totalorder %s26_s17, 0  ;;  %p37_p10 = scmp.eq.s32.totalorder %s7659_s21, 0 }
  0x41   : > { %p8902_p5 = scmp.eq.s32.totalorder %s7722_s22, 1  ;;  %p7075_p9 = scmp.lt.s32.totalorder %s7659_s21, 2 }
  0x42   : > { %s7823_s27 = scalar_select %p27_p13, %s7655_s20, %s29_s23  }
  0x43   : > { %p38_p3 = por %p37_p10, %p36_p6  ;;  %p7827_p7 = por %p8902_p5, %p36_p6 }
  0x44   : > { %s208_s30 = sand.u32 1, %s7655_s20   ;;  %s6531_s6 = sshll.u32 %s7659_s21, 13 }
  0x45   : > { %s8903_s29 = scalar_select %p7827_p7, 1, 0 }
  0x46   : > { %s5939_s7 = sshll.u32 %s208_s30, 9  ;;  %s7837_s10 = scalar_lea.hbm %s8885_s0, %s6531_s6 }
  0x47   : > { %s212_s11 = scalar_lea.vmem [#allocation2], %s5939_s7  ;;  %p7841_p11 = pnand %p7075_p9, %p38_p3 }
  0x48   : > { %s220_s28 = sshll.u32 %s212_s11, 4  ;;  %s7845_s15 = scalar_lea.sflag [#allocation3], %s208_s30  ;;  %s7839_s28 = int_to_ptr.vmem [resolvable:$true] %s220_s28 }
  0x49   : > { %s7559_s17 = scalar_lea.hbm %s7837_s10, 8192  ;;  %p7561_p0 = pneg %p7841_p11 }
  0x4a   : > { %p7560_p12 = scmp.ne.s32.totalorder %s7837_s10, %s7559_s17  ;;  %s7564_s6 = scalar_lea.hbm %s8885_s0, 16384 }
  0x4b   : > { %p7565_p13 = scmp.lt.u32.totalorder %s7837_s10, %s8885_s0  ;;  %p7566_p6 = scmp.lt.u32.totalorder %s7564_s6, %s7559_s17 }
  0x4c   : > { %p7562_p2 = pnand %p7561_p0, %p7560_p12  ;;  %p7568_p3 = scmp.lt.u32.totalorder %s7559_s17, %s7837_s10 }
  0x4d   : > { %p7567_p10 = por %p7566_p6, %p7565_p13 }
  0x4e   : > { %p7563_p1 = pneg %p7562_p2 }
  0x4f   : > { %p7569_p5 = por %p7568_p3, %p7567_p10 }
  0x51   : > { %p7570_p9 = pnand %p7569_p5, %p7563_p1 }
  0x53   : > { %7573 = shalt.err (!%p7570_p9)
}
  0x54   : > { %s7574_s30 = scalar_lea.vmem %s7839_s28, 8192  ;;  %s7667_s11 = smov [#allocation2]  }
  0x55   : > { %p7575_p12 = scmp.ne.s32.totalorder %s7839_s28, %s7574_s30  ;;  %s7579_s23 = sshll.u32 %s7667_s11, 4  ;;  %s7580_s23 = int_to_ptr.vmem [resolvable:$false] %s7579_s23 }
  0x56   : > { %s7581_s7 = scalar_lea.vmem %s7580_s23, 16384  ;;  %p7582_p4 = scmp.lt.s32.totalorder %s7839_s28, %s7580_s23 }
  0x57   : > { %p7577_p2 = pnand %p7575_p12, %p7561_p0  ;;  %p7583_p13 = scmp.lt.s32.totalorder %s7581_s7, %s7574_s30 }
  0x59   : > { %p7578_p7 = pneg %p7577_p2  ;;  %p7584_p6 = por %p7583_p13, %p7582_p4 }
  0x5b   : > { %p7585_p10 = pnand %p7584_p6, %p7578_p7 }
  0x5d   : > { %7588 = shalt.err (!%p7585_p10)
}
  0x5e   : > { %7068 = dma.hbm_to_vmem [thread:$0]  (!%p7841_p11), %s7837_s10, 8192, %s7839_s28, %s7845_s15, %s7665_s12, %s7665_s12, %s7666_s13  }
  0x5f   : > { %232 = sbr.rel (%p7741_p8) target bundleno = 1068 (0x42c), region = 40  ;;  %s7879_s17 = sand.u32 (!%p7741_p8), 1, %s7651_s19  }
  0x60   : > { %s5944_s6 = sshll.u32 (!%p7741_p8), %s7879_s17, 9  ;;  %s235_s8 = scalar_lea.sflag (!%p7741_p8), [#allocation3], %s7879_s17 }
  0x61   : > { %s7883_s9 = scalar_lea.vmem (!%p7741_p8), [#allocation2], %s5944_s6  ;;  %p8905_p4 = scmp.ne.s32.totalorder (!%p7741_p8), %s8898_s24, 0 }
  0x66   : > { %7634 = dma.done.wait (%p8905_p4), %s235_s8, 8192  }
  0x67   : > { %7636 = vsyncadd (%p8905_p4), %s235_s8, 4294959104  ;;  %p8906_p7 = scmp.eq.s32.totalorder %s7722_s22, 0 }
  0x69   : > { %7638 = dma.done.wait (%p8906_p7), [#allocation6], 65536   ;;  %p8907_p8 = pmov %p8906_p7 }
  0x6a   : > { %v7119_v0 = vld [vmem:[#allocation5 + $0x4] ss:$16 sps:$4 sm:$0xff]   ;;  %v7121_v1 = vld [vmem:[#allocation5 + $0xc] ss:$16 sps:$4 sm:$0xff]   ;;  %v7123_v2 = vld [vmem:[#allocation5] ss:$16 sps:$4 sm:$0xff]  }
  0x6b   : > { %7640 = vsyncadd (%p8907_p8), [#allocation6], 4294901760  ;;  %2217 = vmatprep.subr.bf16.mxu0 %v7119_v0  ;;  %v7124_v3 = vld [vmem:[#allocation5 + $0x8] ss:$16 sps:$4 sm:$0xff]   ;;  %2669 = vmatprep.subr.bf16.mxu1 %v7121_v1  ;;  %v7125_v4 = vld [vmem:[#allocation5 + $0x24] ss:$16 sps:$4 sm:$0xff]  }
  0x6c   : > { %2218 = vmatpush1.bf16.msra.mxu0 %v7123_v2  ;;  %2670 = vmatpush1.bf16.msra.mxu1 %v7124_v3  ;;  %v7127_v5 = vld [vmem:[#allocation5 + $0x2c] ss:$16 sps:$4 sm:$0xff]   ;;  %v7129_v6 = vld [vmem:[#allocation5 + $0x20] ss:$16 sps:$4 sm:$0xff]   ;;  %v7130_v7 = vld [vmem:[#allocation5 + $0x28] ss:$16 sps:$4 sm:$0xff]  }
  0x6d   : > { %2219 = vmatprep.subr.bf16.mxu0 %v7125_v4  ;;  %2671 = vmatprep.subr.bf16.mxu1 %v7127_v5  ;;  %v7131_v8 = vld [vmem:[#allocation5 + $0x44] ss:$16 sps:$4 sm:$0xff]   ;;  %v7133_v9 = vld [vmem:[#allocation5 + $0x4c] ss:$16 sps:$4 sm:$0xff]   ;;  %v7135_v10 = vld [vmem:[#allocation5 + $0x40] ss:$16 sps:$4 sm:$0xff]  }
  0x6e   : > { %v7136_v11 = vld [vmem:[#allocation5 + $0x48] ss:$16 sps:$4 sm:$0xff]   ;;  %v7137_v12 = vld [vmem:[#allocation5 + $0x64] ss:$16 sps:$4 sm:$0xff]   ;;  %v7139_v13 = vld [vmem:[#allocation5 + $0x6c] ss:$16 sps:$4 sm:$0xff]  }
  0x6f   : > { %v7141_v14 = vld [vmem:[#allocation5 + $0x60] ss:$16 sps:$4 sm:$0xff]   ;;  %v7142_v15 = vld [vmem:[#allocation5 + $0x68] ss:$16 sps:$4 sm:$0xff]   ;;  %v7143_v16 = vld [vmem:[#allocation5 + $0x84] ss:$16 sps:$4 sm:$0xff]  }
  0x70   : > { %2220 = vmatpush1.bf16.msra.mxu0 %v7129_v6  ;;  %2672 = vmatpush1.bf16.msra.mxu1 %v7130_v7  ;;  %v7145_v17 = vld [vmem:[#allocation5 + $0x8c] ss:$16 sps:$4 sm:$0xff]   ;;  %v7147_v18 = vld [vmem:[#allocation5 + $0x80] ss:$16 sps:$4 sm:$0xff]   ;;  %v7148_v19 = vld [vmem:[#allocation5 + $0x88] ss:$16 sps:$4 sm:$0xff]  }
  0x71   : > { %2221 = vmatprep.subr.bf16.mxu0 %v7131_v8  ;;  %2673 = vmatprep.subr.bf16.mxu1 %v7133_v9  ;;  %v7149_v20 = vld [vmem:[#allocation5 + $0xa4] ss:$16 sps:$4 sm:$0xff]   ;;  %v7151_v21 = vld [vmem:[#allocation5 + $0xac] ss:$16 sps:$4 sm:$0xff]   ;;  %v7153_v22 = vld [vmem:[#allocation5 + $0xa0] ss:$16 sps:$4 sm:$0xff]  }
  0x72   : > { %v7154_v23 = vld [vmem:[#allocation5 + $0xa8] ss:$16 sps:$4 sm:$0xff]   ;;  %v7155_v24 = vld [vmem:[#allocation5 + $0xc4] ss:$16 sps:$4 sm:$0xff]   ;;  %v7157_v25 = vld [vmem:[#allocation5 + $0xcc] ss:$16 sps:$4 sm:$0xff]  }
  0x73   : > { %v7159_v26 = vld [vmem:[#allocation5 + $0xc0] ss:$16 sps:$4 sm:$0xff]   ;;  %v7160_v27 = vld [vmem:[#allocation5 + $0xc8] ss:$16 sps:$4 sm:$0xff]   ;;  %v7161_v28 = vld [vmem:[#allocation5 + $0xe4] ss:$16 sps:$4 sm:$0xff]  }
  0x74   : > { %2222 = vmatpush1.bf16.msra.mxu0 %v7135_v10  ;;  %2674 = vmatpush1.bf16.msra.mxu1 %v7136_v11  ;;  %v7163_v29 = vld [vmem:[#allocation5 + $0xec] ss:$16 sps:$4 sm:$0xff]   ;;  %v7165_v30 = vld [vmem:[#allocation5 + $0xe0] ss:$16 sps:$4 sm:$0xff]   ;;  %v7166_v31 = vld [vmem:[#allocation5 + $0xe8] ss:$16 sps:$4 sm:$0xff]  }
  0x75   : > { %2223 = vmatprep.subr.bf16.mxu0 %v7137_v12  ;;  %2675 = vmatprep.subr.bf16.mxu1 %v7139_v13  ;;  %v7167_v32 = vld [vmem:[#allocation5 + $0x104] ss:$16 sps:$4 sm:$0xff]   ;;  %v7169_v33 = vld [vmem:[#allocation5 + $0x10c] ss:$16 sps:$4 sm:$0xff]   ;;  %v7171_v34 = vld [vmem:[#allocation5 + $0x100] ss:$16 sps:$4 sm:$0xff]  }
  0x76   : > { %v7172_v35 = vld [vmem:[#allocation5 + $0x108] ss:$16 sps:$4 sm:$0xff]   ;;  %v7173_v36 = vld [vmem:[#allocation5 + $0x124] ss:$16 sps:$4 sm:$0xff]   ;;  %v7175_v37 = vld [vmem:[#allocation5 + $0x12c] ss:$16 sps:$4 sm:$0xff]  }
  0x77   : > { %v7177_v38 = vld [vmem:[#allocation5 + $0x120] ss:$16 sps:$4 sm:$0xff]   ;;  %v7178_v39 = vld [vmem:[#allocation5 + $0x128] ss:$16 sps:$4 sm:$0xff]   ;;  %v7179_v40 = vld [vmem:[#allocation5 + $0x144] ss:$16 sps:$4 sm:$0xff]  }
  0x78   : > { %2224 = vmatpush1.bf16.msra.mxu0 %v7141_v14  ;;  %2676 = vmatpush1.bf16.msra.mxu1 %v7142_v15  ;;  %v7181_v41 = vld [vmem:[#allocation5 + $0x14c] ss:$16 sps:$4 sm:$0xff]   ;;  %v7183_v42 = vld [vmem:[#allocation5 + $0x140] ss:$16 sps:$4 sm:$0xff]   ;;  %v7184_v43 = vld [vmem:[#allocation5 + $0x148] ss:$16 sps:$4 sm:$0xff]  }
  0x79   : > { %2225 = vmatprep.subr.bf16.mxu0 %v7143_v16  ;;  %2677 = vmatprep.subr.bf16.mxu1 %v7145_v17  ;;  %v7185_v44 = vld [vmem:[#allocation5 + $0x164] ss:$16 sps:$4 sm:$0xff]   ;;  %v7187_v45 = vld [vmem:[#allocation5 + $0x16c] ss:$16 sps:$4 sm:$0xff]   ;;  %v7189_v48 = vld [vmem:[#allocation5 + $0x160] ss:$16 sps:$4 sm:$0xff]  }
  0x7a   : > { %v275_v46 = vld [vmem:[%s7883_s9] sm:$0xff]  ;;  %v7190_v49 = vld [vmem:[#allocation5 + $0x168] ss:$16 sps:$4 sm:$0xff]   ;;  %v7193_v52 = vld [vmem:[#allocation5 + $0x18c] ss:$16 sps:$4 sm:$0xff]   ;;  %s5947_s10 = sshll.u32 %s7879_s17, 10 }
  0x7b   : > { %v279_v47 = vld [vmem:[%s7883_s9 + $0x20] sm:$0xff]  ;;  %v7196_v54 = vld [vmem:[#allocation5 + $0x188] ss:$16 sps:$4 sm:$0xff]   ;;  %v7199_v56 = vld [vmem:[#allocation5 + $0x1ac] ss:$16 sps:$4 sm:$0xff]   ;;  %s8563_s28 = scalar_lea.vmem [#allocation8], %s5947_s10 }
  0x7c   : > { %2226 = vmatpush1.bf16.msra.mxu0 %v7147_v18  ;;  %2678 = vmatpush1.bf16.msra.mxu1 %v7148_v19  ;;  %v5949_v50 = vcombine.high %v275_v46, %v279_v47  ;;  %v7191_v51 = vld [vmem:[#allocation5 + $0x184] ss:$16 sps:$4 sm:$0xff]   ;;  %v7195_v53 = vld [vmem:[#allocation5 + $0x180] ss:$16 sps:$4 sm:$0xff]   ;;  %v7202_v58 = vld [vmem:[#allocation5 + $0x1a8] ss:$16 sps:$4 sm:$0xff]   ;;  %v5948_v7 = vcombine.low %v275_v46, %v279_v47 }
  0x7d   : > { %2227 = vmatprep.subr.bf16.mxu0 %v7149_v20  ;;  %2679 = vmatprep.subr.bf16.mxu1 %v7151_v21  ;;  %v7197_v55 = vld [vmem:[#allocation5 + $0x1a4] ss:$16 sps:$4 sm:$0xff]   ;;  %v7201_v57 = vld [vmem:[#allocation5 + $0x1a0] ss:$16 sps:$4 sm:$0xff]   ;;  %v7205_v60 = vld [vmem:[#allocation5 + $0x1cc] ss:$16 sps:$4 sm:$0xff]  }
  0x7e   : > { %2249 = vmatprep.mubr.bf16.mxu0 %v5949_v50  ;;  %2701 = vmatprep.mubr.bf16.mxu1 %v5949_v50  ;;  %v7203_v59 = vld [vmem:[#allocation5 + $0x1c4] ss:$16 sps:$4 sm:$0xff]   ;;  %v7207_v61 = vld [vmem:[#allocation5 + $0x1c0] ss:$16 sps:$4 sm:$0xff]   ;;  %v7208_v62 = vld [vmem:[#allocation5 + $0x1c8] ss:$16 sps:$4 sm:$0xff]  }
  0x7f   : > { %v7209_v63 = vld [vmem:[#allocation5 + $0x1e4] ss:$16 sps:$4 sm:$0xff]   ;;  %v7211_v0 = vld [vmem:[#allocation5 + $0x1ec] ss:$16 sps:$4 sm:$0xff]   ;;  %v7213_v1 = vld [vmem:[#allocation5 + $0x1e0] ss:$16 sps:$4 sm:$0xff]  }
  0x80   : > { %2228 = vmatpush1.bf16.msra.mxu0 %v7153_v22  ;;  %2680 = vmatpush1.bf16.msra.mxu1 %v7154_v23  ;;  %v7214_v2 = vld [vmem:[#allocation5 + $0x1e8] ss:$16 sps:$4 sm:$0xff]   ;;  %v7217_v3 = vld [vmem:[#allocation5 + $0x204] ss:$16 sps:$4 sm:$0xff]   ;;  %v7220_v4 = vld [vmem:[#allocation5 + $0x20c] ss:$16 sps:$4 sm:$0xff]  }
  0x81   : > { %2229 = vmatprep.subr.bf16.mxu0 %v7155_v24  ;;  %2681 = vmatprep.subr.bf16.mxu1 %v7157_v25  ;;  %v7215_v5 = vld [vmem:[#allocation5 + $0x200] ss:$16 sps:$4 sm:$0xff]   ;;  %v7218_v6 = vld [vmem:[#allocation5 + $0x208] ss:$16 sps:$4 sm:$0xff]   ;;  %v7223_v10 = vld [vmem:[#allocation5 + $0x224] ss:$16 sps:$4 sm:$0xff]  }
  0x82   : > { %v283_v8 = vld [vmem:[%s7883_s9 + $0x40] sm:$0xff]  ;;  %v7226_v11 = vld [vmem:[#allocation5 + $0x22c] ss:$16 sps:$4 sm:$0xff]   ;;  %v7224_v14 = vld [vmem:[#allocation5 + $0x228] ss:$16 sps:$4 sm:$0xff]   ;;  %s6533_s14 = sshll.u32 %s7722_s22, 14 }
  0x83   : > { %v287_v9 = vld [vmem:[%s7883_s9 + $0x60] sm:$0xff]  ;;  %v7232_v16 = vld [vmem:[#allocation5 + $0x24c] ss:$16 sps:$4 sm:$0xff]   ;;  %v7230_v21 = vld [vmem:[#allocation5 + $0x248] ss:$16 sps:$4 sm:$0xff]   ;;  %s5842_s15 = sshll.u32 %s8563_s28, 4  ;;  %s8833_s11 = scalar_lea.hbm %s8890_s5, %s6533_s14  ;;  %s8835_s15 = int_to_ptr.vmem [resolvable:$true] %s5842_s15 }
  0x84   : > { %2230 = vmatpush1.bf16.msra.mxu0 %v7159_v26  ;;  %2682 = vmatpush1.bf16.msra.mxu1 %v7160_v27  ;;  %v5957_v12 = vcombine.high %v283_v8, %v287_v9  ;;  %v7221_v13 = vld [vmem:[#allocation5 + $0x220] ss:$16 sps:$4 sm:$0xff]   ;;  %v7229_v15 = vld [vmem:[#allocation5 + $0x244] ss:$16 sps:$4 sm:$0xff]   ;;  %v5956_v18 = vcombine.low %v283_v8, %v287_v9  ;;  %v7238_v23 = vld [vmem:[#allocation5 + $0x26c] ss:$16 sps:$4 sm:$0xff]  }
  0x85   : > { %2231 = vmatprep.subr.bf16.mxu0 %v7161_v28  ;;  %2683 = vmatprep.subr.bf16.mxu1 %v7163_v29  ;;  %v291_v17 = vld [vmem:[%s7883_s9 + $0x80] sm:$0xff]  ;;  %v7236_v26 = vld [vmem:[#allocation5 + $0x268] ss:$16 sps:$4 sm:$0xff]   ;;  %v7244_v28 = vld [vmem:[#allocation5 + $0x28c] ss:$16 sps:$4 sm:$0xff]   ;;  %s5828_s23 = scalar_lea.sflag [#allocation4], %s7879_s17 }
  0x86   : > { %v295_v19 = vld [vmem:[%s7883_s9 + $0xa0] sm:$0xff]  ;;  %v7262_v47 = vld [vmem:[#allocation5 + $0x2ec] ss:$16 sps:$4 sm:$0xff]   ;;  %v7260_v50 = vld [vmem:[#allocation5 + $0x2e8] ss:$16 sps:$4 sm:$0xff]   ;;  %s7589_s7 = scalar_lea.vmem %s8835_s15, 16384 }
  0x87   : > { %v7227_v20 = vld [vmem:[#allocation5 + $0x240] ss:$16 sps:$4 sm:$0xff]   ;;  %v7235_v22 = vld [vmem:[#allocation5 + $0x264] ss:$16 sps:$4 sm:$0xff]   ;;  %v5965_v24 = vcombine.high %v291_v17, %v295_v19  ;;  %p7590_p11 = scmp.ne.s32.totalorder %s8835_s15, %s7589_s7  ;;  %p8912_p0 = scmp.ne.s32.totalorder %s8903_s29, 0 }
  0x88   : > { %2232 = vmatpush1.bf16.msra.mxu0 %v7165_v30  ;;  %2684 = vmatpush1.bf16.msra.mxu1 %v7166_v31  ;;  %v7233_v25 = vld [vmem:[#allocation5 + $0x260] ss:$16 sps:$4 sm:$0xff]   ;;  %v7241_v27 = vld [vmem:[#allocation5 + $0x284] ss:$16 sps:$4 sm:$0xff]   ;;  %v5964_v30 = vcombine.low %v291_v17, %v295_v19  ;;  %v7298_v19 = vld [vmem:[#allocation5 + $0x3ac] ss:$16 sps:$4 sm:$0xff]  }
  0x89   : > { %2233 = vmatprep.subr.bf16.mxu0 %v7167_v32  ;;  %2685 = vmatprep.subr.bf16.mxu1 %v7169_v33  ;;  %v299_v29 = vld [vmem:[%s7883_s9 + $0xc0] sm:$0xff]  ;;  %v7242_v33 = vld [vmem:[#allocation5 + $0x288] ss:$16 sps:$4 sm:$0xff]   ;;  %p7591_p1 = pnand %p7590_p11, %p8912_p0  ;;  %s7668_s6 = smov [#allocation8]  }
  0x8a   : > { %v303_v31 = vld [vmem:[%s7883_s9 + $0xe0] sm:$0xff]  ;;  %s7593_s8 = sshll.u32 %s7668_s6, 4  ;;  %s7594_s8 = int_to_ptr.vmem [resolvable:$false] %s7593_s8 }
  0x8b   : > { %v7239_v32 = vld [vmem:[#allocation5 + $0x280] ss:$16 sps:$4 sm:$0xff]   ;;  %v7259_v46 = vld [vmem:[#allocation5 + $0x2e4] ss:$16 sps:$4 sm:$0xff]   ;;  %p7592_p3 = pneg %p7591_p1  ;;  %p7596_p5 = scmp.lt.s32.totalorder %s8835_s15, %s7594_s8 }
  0x8c   : > { %2234 = vmatpush1.bf16.msra.mxu0 %v7171_v34  ;;  %2686 = vmatpush1.bf16.msra.mxu1 %v7172_v35  ;;  %v7247_v34 = vld [vmem:[#allocation5 + $0x2a4] ss:$16 sps:$4 sm:$0xff]   ;;  %v7250_v35 = vld [vmem:[#allocation5 + $0x2ac] ss:$16 sps:$4 sm:$0xff]   ;;  %v7281_v9 = vld [vmem:[#allocation5 + $0x360] ss:$16 sps:$4 sm:$0xff]  }
  0x8d   : > { %2235 = vmatprep.subr.bf16.mxu0 %v7173_v36  ;;  %2687 = vmatprep.subr.bf16.mxu1 %v7175_v37  ;;  %v5973_v36 = vcombine.high %v299_v29, %v303_v31  ;;  %v7245_v37 = vld [vmem:[#allocation5 + $0x2a0] ss:$16 sps:$4 sm:$0xff]  }
  0x8e   : > { %v335_v17 = vld [vmem:[%s7883_s9 + $0x1e0] sm:$0xff] }
  0x90   : > { %2236 = vmatpush1.bf16.msra.mxu0 %v7177_v38  ;;  %2688 = vmatpush1.bf16.msra.mxu1 %v7178_v39  ;;  %v7248_v38 = vld [vmem:[#allocation5 + $0x2a8] ss:$16 sps:$4 sm:$0xff]   ;;  %v7253_v39 = vld [vmem:[#allocation5 + $0x2c4] ss:$16 sps:$4 sm:$0xff]  }
  0x91   : > { %2237 = vmatprep.subr.bf16.mxu0 %v7179_v40  ;;  %2689 = vmatprep.subr.bf16.mxu1 %v7181_v41  ;;  %v7256_v40 = vld [vmem:[#allocation5 + $0x2cc] ss:$16 sps:$4 sm:$0xff]   ;;  %v7251_v41 = vld [vmem:[#allocation5 + $0x2c0] ss:$16 sps:$4 sm:$0xff]  }
  0x94   : > { %2238 = vmatpush1.bf16.msra.mxu0 %v7183_v42  ;;  %2690 = vmatpush1.bf16.msra.mxu1 %v7184_v43  ;;  %v7254_v42 = vld [vmem:[#allocation5 + $0x2c8] ss:$16 sps:$4 sm:$0xff]   ;;  %v5972_v43 = vcombine.low %v299_v29, %v303_v31  ;;  %v7310_v31 = vld [vmem:[#allocation5 + $0x3ec] ss:$16 sps:$4 sm:$0xff]  }
  0x95   : > { %2239 = vmatprep.subr.bf16.mxu0 %v7185_v44  ;;  %2691 = vmatprep.subr.bf16.mxu1 %v7187_v45  ;;  %v307_v44 = vld [vmem:[%s7883_s9 + $0x100] sm:$0xff]  ;;  %v7302_v29 = vld [vmem:[#allocation5 + $0x3c8] ss:$16 sps:$4 sm:$0xff]  }
  0x96   : > { %v311_v45 = vld [vmem:[%s7883_s9 + $0x120] sm:$0xff] }
  0x98   : > { %2240 = vmatpush1.bf16.msra.mxu0 %v7189_v48  ;;  %2692 = vmatpush1.bf16.msra.mxu1 %v7190_v49  ;;  %v5981_v48 = vcombine.high %v307_v44, %v311_v45  ;;  %v7257_v49 = vld [vmem:[#allocation5 + $0x2e0] ss:$16 sps:$4 sm:$0xff]  }
  0x99   : > { %2241 = vmatprep.subr.bf16.mxu0 %v7191_v51  ;;  %2693 = vmatprep.subr.bf16.mxu1 %v7193_v52  ;;  %v7265_v51 = vld [vmem:[#allocation5 + $0x304] ss:$16 sps:$4 sm:$0xff]   ;;  %v7268_v52 = vld [vmem:[#allocation5 + $0x30c] ss:$16 sps:$4 sm:$0xff]  }
  0x9c   : > { %2242 = vmatpush1.bf16.msra.mxu0 %v7195_v53  ;;  %2694 = vmatpush1.bf16.msra.mxu1 %v7196_v54  ;;  %v315_v53 = vld [vmem:[%s7883_s9 + $0x140] sm:$0xff]  ;;  %v5980_v54 = vcombine.low %v307_v44, %v311_v45 }
  0x9d   : > { %2243 = vmatprep.subr.bf16.mxu0 %v7197_v55  ;;  %2695 = vmatprep.subr.bf16.mxu1 %v7199_v56  ;;  %v319_v55 = vld [vmem:[%s7883_s9 + $0x160] sm:$0xff] }
  0x9e   : > { %v7263_v56 = vld [vmem:[#allocation5 + $0x300] ss:$16 sps:$4 sm:$0xff]  }
  0x9f   : > { %v7317_v45 = vld [vmem:[#allocation5 + $0x420] ss:$16 sps:$4 sm:$0xff]  }
  0xa0   : > { %2244 = vmatpush1.bf16.msra.mxu0 %v7201_v57  ;;  %2696 = vmatpush1.bf16.msra.mxu1 %v7202_v58  ;;  %v7266_v57 = vld [vmem:[#allocation5 + $0x308] ss:$16 sps:$4 sm:$0xff]   ;;  %v7271_v58 = vld [vmem:[#allocation5 + $0x324] ss:$16 sps:$4 sm:$0xff]  }
  0xa1   : > { %2245 = vmatprep.subr.bf16.mxu0 %v7203_v59  ;;  %2697 = vmatprep.subr.bf16.mxu1 %v7205_v60  ;;  %v7274_v59 = vld [vmem:[#allocation5 + $0x32c] ss:$16 sps:$4 sm:$0xff]   ;;  %v5989_v60 = vcombine.high %v315_v53, %v319_v55 }
  0xa4   : > { %2246 = vmatpush1.bf16.msra.mxu0 %v7207_v61  ;;  %2698 = vmatpush1.bf16.msra.mxu1 %v7208_v62  ;;  %v7269_v61 = vld [vmem:[#allocation5 + $0x320] ss:$16 sps:$4 sm:$0xff]   ;;  %v7272_v62 = vld [vmem:[#allocation5 + $0x328] ss:$16 sps:$4 sm:$0xff]  }
  0xa5   : > { %2247 = vmatprep.subr.bf16.mxu0 %v7209_v63  ;;  %2699 = vmatprep.subr.bf16.mxu1 %v7211_v0  ;;  %v7277_v63 = vld [vmem:[#allocation5 + $0x344] ss:$16 sps:$4 sm:$0xff]   ;;  %v7280_v0 = vld [vmem:[#allocation5 + $0x34c] ss:$16 sps:$4 sm:$0xff]  }
  0xa8   : > { %2248 = vmatpush1.bf16.msra.mxu0 %v7213_v1  ;;  %2700 = vmatpush1.bf16.msra.mxu1 %v7214_v2  ;;  %v323_v1 = vld [vmem:[%s7883_s9 + $0x180] sm:$0xff]  ;;  %v5988_v2 = vcombine.low %v315_v53, %v319_v55  ;;  %v296_v53 = vld [vmem:[%s7883_s9 + $0xa8] sm:$0xff] }
  0xa9   : > { %2330 = vmatprep.subr.bf16.mxu0 %v7217_v3  ;;  %2782 = vmatprep.subr.bf16.mxu1 %v7220_v4  ;;  %v327_v3 = vld [vmem:[%s7883_s9 + $0x1a0] sm:$0xff]  ;;  %v7334_v55 = vld [vmem:[#allocation5 + $0x46c] ss:$16 sps:$4 sm:$0xff]  }
  0xaa   : > { %v7275_v4 = vld [vmem:[#allocation5 + $0x340] ss:$16 sps:$4 sm:$0xff]   ;;  %v5997_v8 = vcombine.high %v323_v1, %v327_v3 }
  0xab   : > { %2250 = vmatmul.mubr.bf16.vlgmr.msra.gmra.mrb[0].mxu0 %v5948_v7  ;;  %2702 = vmatmul.mubr.bf16.vlgmr.msra.gmra.mrb[0].mxu1 %v5948_v7  ;;  %v7286_v7 = vld [vmem:[#allocation5 + $0x36c] ss:$16 sps:$4 sm:$0xff]  }
  0xac   : > { %2331 = vmatpush1.bf16.msra.mxu0 %v7215_v5  ;;  %2783 = vmatpush1.bf16.msra.mxu1 %v7218_v6  ;;  %v7278_v5 = vld [vmem:[#allocation5 + $0x348] ss:$16 sps:$4 sm:$0xff]   ;;  %v7283_v6 = vld [vmem:[#allocation5 + $0x364] ss:$16 sps:$4 sm:$0xff]  }
  0xad   : > { %2332 = vmatprep.subr.bf16.mxu0 %v7223_v10  ;;  %2784 = vmatprep.subr.bf16.mxu1 %v7226_v11  ;;  %v7284_v10 = vld [vmem:[#allocation5 + $0x368] ss:$16 sps:$4 sm:$0xff]   ;;  %v7289_v11 = vld [vmem:[#allocation5 + $0x384] ss:$16 sps:$4 sm:$0xff]  }
  0xae   : > { %2259 = vmatprep.mubr.bf16.mxu0 %v5957_v12  ;;  %2711 = vmatprep.mubr.bf16.mxu1 %v5957_v12  ;;  %v7292_v12 = vld [vmem:[#allocation5 + $0x38c] ss:$16 sps:$4 sm:$0xff]  }
  0xb0   : > { %2333 = vmatpush1.bf16.msra.mxu0 %v7221_v13  ;;  %2785 = vmatpush1.bf16.msra.mxu1 %v7224_v14  ;;  %v7287_v13 = vld [vmem:[#allocation5 + $0x380] ss:$16 sps:$4 sm:$0xff]   ;;  %v7290_v14 = vld [vmem:[#allocation5 + $0x388] ss:$16 sps:$4 sm:$0xff]  }
  0xb1   : > { %2334 = vmatprep.subr.bf16.mxu0 %v7229_v15  ;;  %2786 = vmatprep.subr.bf16.mxu1 %v7232_v16  ;;  %v5996_v15 = vcombine.low %v323_v1, %v327_v3  ;;  %v331_v16 = vld [vmem:[%s7883_s9 + $0x1c0] sm:$0xff]  ;;  %v7338_v1 = vld [vmem:[#allocation5 + $0x488] ss:$16 sps:$4 sm:$0xff]   ;;  %v7346_v3 = vld [vmem:[#allocation5 + $0x4ac] ss:$16 sps:$4 sm:$0xff]  }
  0xb3   : > { %2260 = vmatmul.mubr.bf16.gmra.mrb[4].mxu0 %v5956_v18  ;;  %2712 = vmatmul.mubr.bf16.gmra.mrb[4].mxu1 %v5956_v18  ;;  %v7295_v18 = vld [vmem:[#allocation5 + $0x3a4] ss:$16 sps:$4 sm:$0xff]  }
  0xb4   : > { %2335 = vmatpush1.bf16.msra.mxu0 %v7227_v20  ;;  %2787 = vmatpush1.bf16.msra.mxu1 %v7230_v21  ;;  %v6005_v20 = vcombine.high %v331_v16, %v335_v17  ;;  %v7293_v21 = vld [vmem:[#allocation5 + $0x3a0] ss:$16 sps:$4 sm:$0xff]  }
  0xb5   : > { %2336 = vmatprep.subr.bf16.mxu0 %v7235_v22  ;;  %2788 = vmatprep.subr.bf16.mxu1 %v7238_v23  ;;  %v7296_v22 = vld [vmem:[#allocation5 + $0x3a8] ss:$16 sps:$4 sm:$0xff]   ;;  %v7301_v23 = vld [vmem:[#allocation5 + $0x3c4] ss:$16 sps:$4 sm:$0xff]  }
  0xb6   : > { %2269 = vmatprep.mubr.bf16.mxu0 %v5965_v24  ;;  %2721 = vmatprep.mubr.bf16.mxu1 %v5965_v24  ;;  %v7304_v24 = vld [vmem:[#allocation5 + $0x3cc] ss:$16 sps:$4 sm:$0xff]  }
  0xb8   : > { %2337 = vmatpush1.bf16.msra.mxu0 %v7233_v25  ;;  %2789 = vmatpush1.bf16.msra.mxu1 %v7236_v26  ;;  %v276_v25 = vld [vmem:[%s7883_s9 + $0x8] sm:$0xff]  ;;  %v6004_v26 = vcombine.low %v331_v16, %v335_v17  ;;  %v7353_v17 = vld [vmem:[#allocation5 + $0x4e0] ss:$16 sps:$4 sm:$0xff]  }
  0xb9   : > { %2338 = vmatprep.subr.bf16.mxu0 %v7241_v27  ;;  %2790 = vmatprep.subr.bf16.mxu1 %v7244_v28  ;;  %v280_v27 = vld [vmem:[%s7883_s9 + $0x28] sm:$0xff]  ;;  %v7299_v28 = vld [vmem:[#allocation5 + $0x3c0] ss:$16 sps:$4 sm:$0xff]  }
  0xbb   : > { %2270 = vmatmul.mubr.bf16.gmra.mrb[8].mxu0 %v5964_v30  ;;  %2722 = vmatmul.mubr.bf16.gmra.mrb[8].mxu1 %v5964_v30  ;;  %v7307_v30 = vld [vmem:[#allocation5 + $0x3e4] ss:$16 sps:$4 sm:$0xff]  }
  0xbc   : > { %2339 = vmatpush1.bf16.msra.mxu0 %v7239_v32  ;;  %2791 = vmatpush1.bf16.msra.mxu1 %v7242_v33  ;;  %v5951_v32 = vcombine.high %v276_v25, %v280_v27  ;;  %v7305_v33 = vld [vmem:[#allocation5 + $0x3e0] ss:$16 sps:$4 sm:$0xff]  }
  0xbd   : > { %2340 = vmatprep.subr.bf16.mxu0 %v7247_v34  ;;  %2792 = vmatprep.subr.bf16.mxu1 %v7250_v35  ;;  %v7308_v34 = vld [vmem:[#allocation5 + $0x3e8] ss:$16 sps:$4 sm:$0xff]   ;;  %v7313_v35 = vld [vmem:[#allocation5 + $0x404] ss:$16 sps:$4 sm:$0xff]  }
  0xbe   : > { %2279 = vmatprep.mubr.bf16.mxu0 %v5973_v36  ;;  %2731 = vmatprep.mubr.bf16.mxu1 %v5973_v36  ;;  %v7316_v36 = vld [vmem:[#allocation5 + $0x40c] ss:$16 sps:$4 sm:$0xff]  }
  0xc0   : > { %2341 = vmatpush1.bf16.msra.mxu0 %v7245_v37  ;;  %2793 = vmatpush1.bf16.msra.mxu1 %v7248_v38  ;;  %v284_v37 = vld [vmem:[%s7883_s9 + $0x48] sm:$0xff]  ;;  %v5950_v38 = vcombine.low %v276_v25, %v280_v27 }
  0xc1   : > { %2342 = vmatprep.subr.bf16.mxu0 %v7253_v39  ;;  %2794 = vmatprep.subr.bf16.mxu1 %v7256_v40  ;;  %v288_v39 = vld [vmem:[%s7883_s9 + $0x68] sm:$0xff]  ;;  %v7311_v40 = vld [vmem:[#allocation5 + $0x400] ss:$16 sps:$4 sm:$0xff]  }
  0xc2   : > { %v5959_v44 = vcombine.high %v284_v37, %v288_v39  ;;  %v320_v25 = vld [vmem:[%s7883_s9 + $0x168] sm:$0xff] }
  0xc3   : > { %2280 = vmatmul.mubr.bf16.gmra.mrb[12].mxu0 %v5972_v43  ;;  %2732 = vmatmul.mubr.bf16.gmra.mrb[12].mxu1 %v5972_v43  ;;  %v7322_v43 = vld [vmem:[#allocation5 + $0x42c] ss:$16 sps:$4 sm:$0xff]  }
  0xc4   : > { %2343 = vmatpush1.bf16.msra.mxu0 %v7251_v41  ;;  %2795 = vmatpush1.bf16.msra.mxu1 %v7254_v42  ;;  %v7314_v41 = vld [vmem:[#allocation5 + $0x408] ss:$16 sps:$4 sm:$0xff]   ;;  %v7319_v42 = vld [vmem:[#allocation5 + $0x424] ss:$16 sps:$4 sm:$0xff]   ;;  %v7370_v27 = vld [vmem:[#allocation5 + $0x52c] ss:$16 sps:$4 sm:$0xff]  }
  0xc5   : > { %2344 = vmatprep.subr.bf16.mxu0 %v7259_v46  ;;  %2796 = vmatprep.subr.bf16.mxu1 %v7262_v47  ;;  %v7320_v46 = vld [vmem:[#allocation5 + $0x428] ss:$16 sps:$4 sm:$0xff]   ;;  %v7325_v47 = vld [vmem:[#allocation5 + $0x444] ss:$16 sps:$4 sm:$0xff]  }
  0xc6   : > { %2289 = vmatprep.mubr.bf16.mxu0 %v5981_v48  ;;  %2741 = vmatprep.mubr.bf16.mxu1 %v5981_v48  ;;  %v7328_v48 = vld [vmem:[#allocation5 + $0x44c] ss:$16 sps:$4 sm:$0xff]  }
  0xc8   : > { %2345 = vmatpush1.bf16.msra.mxu0 %v7257_v49  ;;  %2797 = vmatpush1.bf16.msra.mxu1 %v7260_v50  ;;  %v7323_v49 = vld [vmem:[#allocation5 + $0x440] ss:$16 sps:$4 sm:$0xff]   ;;  %v7326_v50 = vld [vmem:[#allocation5 + $0x448] ss:$16 sps:$4 sm:$0xff]  }
  0xc9   : > { %2346 = vmatprep.subr.bf16.mxu0 %v7265_v51  ;;  %2798 = vmatprep.subr.bf16.mxu1 %v7268_v52  ;;  %v5958_v51 = vcombine.low %v284_v37, %v288_v39  ;;  %v292_v52 = vld [vmem:[%s7883_s9 + $0x88] sm:$0xff] }
  0xca   : > { %v7374_v37 = vld [vmem:[#allocation5 + $0x548] ss:$16 sps:$4 sm:$0xff]   ;;  %v7382_v39 = vld [vmem:[#allocation5 + $0x56c] ss:$16 sps:$4 sm:$0xff]  }
  0xcb   : > { %2290 = vmatmul.mubr.bf16.gmra.mrb[16].mxu0 %v5980_v54  ;;  %2742 = vmatmul.mubr.bf16.gmra.mrb[16].mxu1 %v5980_v54  ;;  %v7331_v54 = vld [vmem:[#allocation5 + $0x464] ss:$16 sps:$4 sm:$0xff]  }
  0xcc   : > { %2347 = vmatpush1.bf16.msra.mxu0 %v7263_v56  ;;  %2799 = vmatpush1.bf16.msra.mxu1 %v7266_v57  ;;  %v5967_v56 = vcombine.high %v292_v52, %v296_v53  ;;  %v7329_v57 = vld [vmem:[#allocation5 + $0x460] ss:$16 sps:$4 sm:$0xff]  }
  0xcd   : > { %2348 = vmatprep.subr.bf16.mxu0 %v7271_v58  ;;  %2800 = vmatprep.subr.bf16.mxu1 %v7274_v59  ;;  %v7332_v58 = vld [vmem:[#allocation5 + $0x468] ss:$16 sps:$4 sm:$0xff]   ;;  %v7337_v59 = vld [vmem:[#allocation5 + $0x484] ss:$16 sps:$4 sm:$0xff]  }
  0xce   : > { %2299 = vmatprep.mubr.bf16.mxu0 %v5989_v60  ;;  %2751 = vmatprep.mubr.bf16.mxu1 %v5989_v60  ;;  %v7340_v60 = vld [vmem:[#allocation5 + $0x48c] ss:$16 sps:$4 sm:$0xff]  }
  0xd0   : > { %2349 = vmatpush1.bf16.msra.mxu0 %v7269_v61  ;;  %2801 = vmatpush1.bf16.msra.mxu1 %v7272_v62  ;;  %v300_v61 = vld [vmem:[%s7883_s9 + $0xc8] sm:$0xff]  ;;  %v5966_v62 = vcombine.low %v292_v52, %v296_v53  ;;  %v7389_v53 = vld [vmem:[#allocation5 + $0x5a0] ss:$16 sps:$4 sm:$0xff]  }
  0xd1   : > { %2350 = vmatprep.subr.bf16.mxu0 %v7277_v63  ;;  %2802 = vmatprep.subr.bf16.mxu1 %v7280_v0  ;;  %v304_v63 = vld [vmem:[%s7883_s9 + $0xe8] sm:$0xff]  ;;  %v7335_v0 = vld [vmem:[#allocation5 + $0x480] ss:$16 sps:$4 sm:$0xff]  }
  0xd3   : > { %2300 = vmatmul.mubr.bf16.gmra.mrb[20].mxu0 %v5988_v2  ;;  %2752 = vmatmul.mubr.bf16.gmra.mrb[20].mxu1 %v5988_v2  ;;  %v7343_v2 = vld [vmem:[#allocation5 + $0x4a4] ss:$16 sps:$4 sm:$0xff]  }
  0xd4   : > { %2351 = vmatpush1.bf16.msra.mxu0 %v7275_v4  ;;  %2803 = vmatpush1.bf16.msra.mxu1 %v7278_v5  ;;  %v5975_v4 = vcombine.high %v300_v61, %v304_v63  ;;  %v7341_v5 = vld [vmem:[#allocation5 + $0x4a0] ss:$16 sps:$4 sm:$0xff]  }
  0xd5   : > { %2352 = vmatprep.subr.bf16.mxu0 %v7283_v6  ;;  %2804 = vmatprep.subr.bf16.mxu1 %v7286_v7  ;;  %v7344_v6 = vld [vmem:[#allocation5 + $0x4a8] ss:$16 sps:$4 sm:$0xff]   ;;  %v7349_v7 = vld [vmem:[#allocation5 + $0x4c4] ss:$16 sps:$4 sm:$0xff]  }
  0xd6   : > { %2309 = vmatprep.mubr.bf16.mxu0 %v5997_v8  ;;  %2761 = vmatprep.mubr.bf16.mxu1 %v5997_v8  ;;  %v7352_v8 = vld [vmem:[#allocation5 + $0x4cc] ss:$16 sps:$4 sm:$0xff]  }
  0xd8   : > { %2353 = vmatpush1.bf16.msra.mxu0 %v7281_v9  ;;  %2805 = vmatpush1.bf16.msra.mxu1 %v7284_v10  ;;  %v308_v9 = vld [vmem:[%s7883_s9 + $0x108] sm:$0xff]  ;;  %v5974_v10 = vcombine.low %v300_v61, %v304_v63  ;;  %v281_v61 = vld [vmem:[%s7883_s9 + $0x30] sm:$0xff] }
  0xd9   : > { %2354 = vmatprep.subr.bf16.mxu0 %v7289_v11  ;;  %2806 = vmatprep.subr.bf16.mxu1 %v7292_v12  ;;  %v312_v11 = vld [vmem:[%s7883_s9 + $0x128] sm:$0xff]  ;;  %v7347_v12 = vld [vmem:[#allocation5 + $0x4c0] ss:$16 sps:$4 sm:$0xff]  }
  0xda   : > { %v5983_v16 = vcombine.high %v308_v9, %v312_v11  ;;  %v7406_v63 = vld [vmem:[#allocation5 + $0x5ec] ss:$16 sps:$4 sm:$0xff]  }
  0xdb   : > { %2310 = vmatmul.mubr.bf16.gmra.mrb[24].mxu0 %v5996_v15  ;;  %2762 = vmatmul.mubr.bf16.gmra.mrb[24].mxu1 %v5996_v15  ;;  %v7358_v15 = vld [vmem:[#allocation5 + $0x4ec] ss:$16 sps:$4 sm:$0xff]  }
  0xdc   : > { %2355 = vmatpush1.bf16.msra.mxu0 %v7287_v13  ;;  %2807 = vmatpush1.bf16.msra.mxu1 %v7290_v14  ;;  %v7350_v13 = vld [vmem:[#allocation5 + $0x4c8] ss:$16 sps:$4 sm:$0xff]   ;;  %v7355_v14 = vld [vmem:[#allocation5 + $0x4e4] ss:$16 sps:$4 sm:$0xff]  }
  0xdd   : > { %2356 = vmatprep.subr.bf16.mxu0 %v7295_v18  ;;  %2808 = vmatprep.subr.bf16.mxu1 %v7298_v19  ;;  %v7356_v18 = vld [vmem:[#allocation5 + $0x4e8] ss:$16 sps:$4 sm:$0xff]   ;;  %v7361_v19 = vld [vmem:[#allocation5 + $0x504] ss:$16 sps:$4 sm:$0xff]  }
  0xde   : > { %2319 = vmatprep.mubr.bf16.mxu0 %v6005_v20  ;;  %2771 = vmatprep.mubr.bf16.mxu1 %v6005_v20  ;;  %v7364_v20 = vld [vmem:[#allocation5 + $0x50c] ss:$16 sps:$4 sm:$0xff]  }
  0xe0   : > { %2357 = vmatpush1.bf16.msra.mxu0 %v7293_v21  ;;  %2809 = vmatpush1.bf16.msra.mxu1 %v7296_v22  ;;  %v7359_v21 = vld [vmem:[#allocation5 + $0x500] ss:$16 sps:$4 sm:$0xff]   ;;  %v7362_v22 = vld [vmem:[#allocation5 + $0x508] ss:$16 sps:$4 sm:$0xff]  }
  0xe1   : > { %2358 = vmatprep.subr.bf16.mxu0 %v7301_v23  ;;  %2810 = vmatprep.subr.bf16.mxu1 %v7304_v24  ;;  %v5982_v23 = vcombine.low %v308_v9, %v312_v11  ;;  %v316_v24 = vld [vmem:[%s7883_s9 + $0x148] sm:$0xff] }
  0xe2   : > { %v7410_v9 = vld [vmem:[#allocation5 + $0x608] ss:$16 sps:$4 sm:$0xff]   ;;  %v7418_v11 = vld [vmem:[#allocation5 + $0x62c] ss:$16 sps:$4 sm:$0xff]  }
  0xe3   : > { %2320 = vmatmul.mubr.bf16.gmra.mrb[28].mxu0 %v6004_v26  ;;  %2772 = vmatmul.mubr.bf16.gmra.mrb[28].mxu1 %v6004_v26  ;;  %v7367_v26 = vld [vmem:[#allocation5 + $0x524] ss:$16 sps:$4 sm:$0xff]  }
  0xe4   : > { %2359 = vmatpush1.bf16.msra.mxu0 %v7299_v28  ;;  %2811 = vmatpush1.bf16.msra.mxu1 %v7302_v29  ;;  %v5991_v28 = vcombine.high %v316_v24, %v320_v25  ;;  %v7365_v29 = vld [vmem:[#allocation5 + $0x520] ss:$16 sps:$4 sm:$0xff]  }
  0xe5   : > { %2360 = vmatprep.subr.bf16.mxu0 %v7307_v30  ;;  %2812 = vmatprep.subr.bf16.mxu1 %v7310_v31  ;;  %v7368_v30 = vld [vmem:[#allocation5 + $0x528] ss:$16 sps:$4 sm:$0xff]   ;;  %v7373_v31 = vld [vmem:[#allocation5 + $0x544] ss:$16 sps:$4 sm:$0xff]  }
  0xe6   : > { %2362 = vmatprep.mubr.bf16.mxu0 %v5951_v32  ;;  %2814 = vmatprep.mubr.bf16.mxu1 %v5951_v32  ;;  %v7376_v32 = vld [vmem:[#allocation5 + $0x54c] ss:$16 sps:$4 sm:$0xff]  }
  0xe8   : > { %2361 = vmatpush1.bf16.msra.mxu0 %v7305_v33  ;;  %2813 = vmatpush1.bf16.msra.mxu1 %v7308_v34  ;;  %v324_v33 = vld [vmem:[%s7883_s9 + $0x188] sm:$0xff]  ;;  %v5990_v34 = vcombine.low %v316_v24, %v320_v25  ;;  %v7425_v25 = vld [vmem:[#allocation5 + $0x660] ss:$16 sps:$4 sm:$0xff]  }
  0xe9   : > { %2443 = vmatprep.subr.bf16.mxu0 %v7313_v35  ;;  %2895 = vmatprep.subr.bf16.mxu1 %v7316_v36  ;;  %v328_v35 = vld [vmem:[%s7883_s9 + $0x1a8] sm:$0xff]  ;;  %v7371_v36 = vld [vmem:[#allocation5 + $0x540] ss:$16 sps:$4 sm:$0xff]  }
  0xeb   : > { %2363 = vmatmul.mubr.bf16.vlgmr.msra.gmra.mrb[0].mxu0 %v5950_v38  ;;  %2815 = vmatmul.mubr.bf16.vlgmr.msra.gmra.mrb[0].mxu1 %v5950_v38  ;;  %v7379_v38 = vld [vmem:[#allocation5 + $0x564] ss:$16 sps:$4 sm:$0xff]  }
  0xec   : > { %2444 = vmatpush1.bf16.msra.mxu0 %v7311_v40  ;;  %2896 = vmatpush1.bf16.msra.mxu1 %v7314_v41  ;;  %v5999_v40 = vcombine.high %v324_v33, %v328_v35  ;;  %v7377_v41 = vld [vmem:[#allocation5 + $0x560] ss:$16 sps:$4 sm:$0xff]  }
  0xed   : > { %2445 = vmatprep.subr.bf16.mxu0 %v7319_v42  ;;  %2897 = vmatprep.subr.bf16.mxu1 %v7322_v43  ;;  %v7380_v42 = vld [vmem:[#allocation5 + $0x568] ss:$16 sps:$4 sm:$0xff]   ;;  %v7385_v43 = vld [vmem:[#allocation5 + $0x584] ss:$16 sps:$4 sm:$0xff]  }
  0xee   : > { %2372 = vmatprep.mubr.bf16.mxu0 %v5959_v44  ;;  %2824 = vmatprep.mubr.bf16.mxu1 %v5959_v44  ;;  %v7388_v44 = vld [vmem:[#allocation5 + $0x58c] ss:$16 sps:$4 sm:$0xff]  }
  0xf0   : > { %2446 = vmatpush1.bf16.msra.mxu0 %v7317_v45  ;;  %2898 = vmatpush1.bf16.msra.mxu1 %v7320_v46  ;;  %v332_v45 = vld [vmem:[%s7883_s9 + $0x1c8] sm:$0xff]  ;;  %v5998_v46 = vcombine.low %v324_v33, %v328_v35 }
  0xf1   : > { %2447 = vmatprep.subr.bf16.mxu0 %v7325_v47  ;;  %2899 = vmatprep.subr.bf16.mxu1 %v7328_v48  ;;  %v336_v47 = vld [vmem:[%s7883_s9 + $0x1e8] sm:$0xff]  ;;  %v7383_v48 = vld [vmem:[#allocation5 + $0x580] ss:$16 sps:$4 sm:$0xff]  }
  0xf2   : > { %v6007_v52 = vcombine.high %v332_v45, %v336_v47  ;;  %v7434_v33 = vld [vmem:[#allocation5 + $0x688] ss:$16 sps:$4 sm:$0xff]   ;;  %v7442_v35 = vld [vmem:[#allocation5 + $0x6ac] ss:$16 sps:$4 sm:$0xff]  }
  0xf3   : > { %2373 = vmatmul.mubr.bf16.gmra.mrb[4].mxu0 %v5958_v51  ;;  %2825 = vmatmul.mubr.bf16.gmra.mrb[4].mxu1 %v5958_v51  ;;  %v7394_v51 = vld [vmem:[#allocation5 + $0x5ac] ss:$16 sps:$4 sm:$0xff]  }
  0xf4   : > { %2448 = vmatpush1.bf16.msra.mxu0 %v7323_v49  ;;  %2900 = vmatpush1.bf16.msra.mxu1 %v7326_v50  ;;  %v7386_v49 = vld [vmem:[#allocation5 + $0x588] ss:$16 sps:$4 sm:$0xff]   ;;  %v7391_v50 = vld [vmem:[#allocation5 + $0x5a4] ss:$16 sps:$4 sm:$0xff]  }
  0xf5   : > { %2449 = vmatprep.subr.bf16.mxu0 %v7331_v54  ;;  %2901 = vmatprep.subr.bf16.mxu1 %v7334_v55  ;;  %v7392_v54 = vld [vmem:[#allocation5 + $0x5a8] ss:$16 sps:$4 sm:$0xff]   ;;  %v7397_v55 = vld [vmem:[#allocation5 + $0x5c4] ss:$16 sps:$4 sm:$0xff]  }
  0xf6   : > { %2382 = vmatprep.mubr.bf16.mxu0 %v5967_v56  ;;  %2834 = vmatprep.mubr.bf16.mxu1 %v5967_v56  ;;  %v7400_v56 = vld [vmem:[#allocation5 + $0x5cc] ss:$16 sps:$4 sm:$0xff]  }
  0xf8   : > { %2450 = vmatpush1.bf16.msra.mxu0 %v7329_v57  ;;  %2902 = vmatpush1.bf16.msra.mxu1 %v7332_v58  ;;  %v7395_v57 = vld [vmem:[#allocation5 + $0x5c0] ss:$16 sps:$4 sm:$0xff]   ;;  %v7398_v58 = vld [vmem:[#allocation5 + $0x5c8] ss:$16 sps:$4 sm:$0xff]  }
  0xf9   : > { %2451 = vmatprep.subr.bf16.mxu0 %v7337_v59  ;;  %2903 = vmatprep.subr.bf16.mxu1 %v7340_v60  ;;  %v6006_v59 = vcombine.low %v332_v45, %v336_v47  ;;  %v277_v60 = vld [vmem:[%s7883_s9 + $0x10] sm:$0xff]  ;;  %v7446_v45 = vld [vmem:[#allocation5 + $0x6c8] ss:$16 sps:$4 sm:$0xff]   ;;  %v7454_v47 = vld [vmem:[#allocation5 + $0x6ec] ss:$16 sps:$4 sm:$0xff]  }
  0xfb   : > { %2383 = vmatmul.mubr.bf16.gmra.mrb[8].mxu0 %v5966_v62  ;;  %2835 = vmatmul.mubr.bf16.gmra.mrb[8].mxu1 %v5966_v62  ;;  %v7403_v62 = vld [vmem:[#allocation5 + $0x5e4] ss:$16 sps:$4 sm:$0xff]  }
  0xfc   : > { %2452 = vmatpush1.bf16.msra.mxu0 %v7335_v0  ;;  %2904 = vmatpush1.bf16.msra.mxu1 %v7338_v1  ;;  %v5953_v0 = vcombine.high %v277_v60, %v281_v61  ;;  %v7401_v1 = vld [vmem:[#allocation5 + $0x5e0] ss:$16 sps:$4 sm:$0xff]  }
  0xfd   : > { %2453 = vmatprep.subr.bf16.mxu0 %v7343_v2  ;;  %2905 = vmatprep.subr.bf16.mxu1 %v7346_v3  ;;  %v7404_v2 = vld [vmem:[#allocation5 + $0x5e8] ss:$16 sps:$4 sm:$0xff]   ;;  %v7409_v3 = vld [vmem:[#allocation5 + $0x604] ss:$16 sps:$4 sm:$0xff]  }
  0xfe   : > { %2392 = vmatprep.mubr.bf16.mxu0 %v5975_v4  ;;  %2844 = vmatprep.mubr.bf16.mxu1 %v5975_v4  ;;  %v7412_v4 = vld [vmem:[#allocation5 + $0x60c] ss:$16 sps:$4 sm:$0xff]  }
 0x100   : > { %2454 = vmatpush1.bf16.msra.mxu0 %v7341_v5  ;;  %2906 = vmatpush1.bf16.msra.mxu1 %v7344_v6  ;;  %v5952_v5 = vcombine.low %v277_v60, %v281_v61  ;;  %v285_v6 = vld [vmem:[%s7883_s9 + $0x50] sm:$0xff] }
 0x101   : > { %2455 = vmatprep.subr.bf16.mxu0 %v7349_v7  ;;  %2907 = vmatprep.subr.bf16.mxu1 %v7352_v8  ;;  %v289_v7 = vld [vmem:[%s7883_s9 + $0x70] sm:$0xff] }
 0x102   : > { %v7407_v8 = vld [vmem:[#allocation5 + $0x600] ss:$16 sps:$4 sm:$0xff]  }
 0x103   : > { %2393 = vmatmul.mubr.bf16.gmra.mrb[12].mxu0 %v5974_v10  ;;  %2845 = vmatmul.mubr.bf16.gmra.mrb[12].mxu1 %v5974_v10  ;;  %v7415_v10 = vld [vmem:[#allocation5 + $0x624] ss:$16 sps:$4 sm:$0xff]   ;;  %v7461_v61 = vld [vmem:[#allocation5 + $0x720] ss:$16 sps:$4 sm:$0xff]  }
 0x104   : > { %2456 = vmatpush1.bf16.msra.mxu0 %v7347_v12  ;;  %2908 = vmatpush1.bf16.msra.mxu1 %v7350_v13  ;;  %v5961_v12 = vcombine.high %v285_v6, %v289_v7  ;;  %v7413_v13 = vld [vmem:[#allocation5 + $0x620] ss:$16 sps:$4 sm:$0xff]  }
 0x105   : > { %2457 = vmatprep.subr.bf16.mxu0 %v7355_v14  ;;  %2909 = vmatprep.subr.bf16.mxu1 %v7358_v15  ;;  %v7416_v14 = vld [vmem:[#allocation5 + $0x628] ss:$16 sps:$4 sm:$0xff]   ;;  %v7421_v15 = vld [vmem:[#allocation5 + $0x644] ss:$16 sps:$4 sm:$0xff]  }
 0x106   : > { %2402 = vmatprep.mubr.bf16.mxu0 %v5983_v16  ;;  %2854 = vmatprep.mubr.bf16.mxu1 %v5983_v16  ;;  %v7424_v16 = vld [vmem:[#allocation5 + $0x64c] ss:$16 sps:$4 sm:$0xff]  }
 0x108   : > { %2458 = vmatpush1.bf16.msra.mxu0 %v7353_v17  ;;  %2910 = vmatpush1.bf16.msra.mxu1 %v7356_v18  ;;  %v5960_v17 = vcombine.low %v285_v6, %v289_v7  ;;  %v293_v18 = vld [vmem:[%s7883_s9 + $0x90] sm:$0xff]  ;;  %v7478_v7 = vld [vmem:[#allocation5 + $0x76c] ss:$16 sps:$4 sm:$0xff]  }
 0x109   : > { %2459 = vmatprep.subr.bf16.mxu0 %v7361_v19  ;;  %2911 = vmatprep.subr.bf16.mxu1 %v7364_v20  ;;  %v297_v19 = vld [vmem:[%s7883_s9 + $0xb0] sm:$0xff] }
 0x10a   : > { %v7419_v20 = vld [vmem:[#allocation5 + $0x640] ss:$16 sps:$4 sm:$0xff]   ;;  %v5969_v24 = vcombine.high %v293_v18, %v297_v19  ;;  %v7475_v6 = vld [vmem:[#allocation5 + $0x764] ss:$16 sps:$4 sm:$0xff]  }
 0x10b   : > { %2403 = vmatmul.mubr.bf16.gmra.mrb[16].mxu0 %v5982_v23  ;;  %2855 = vmatmul.mubr.bf16.gmra.mrb[16].mxu1 %v5982_v23  ;;  %v7430_v23 = vld [vmem:[#allocation5 + $0x66c] ss:$16 sps:$4 sm:$0xff]  }
 0x10c   : > { %2460 = vmatpush1.bf16.msra.mxu0 %v7359_v21  ;;  %2912 = vmatpush1.bf16.msra.mxu1 %v7362_v22  ;;  %v7422_v21 = vld [vmem:[#allocation5 + $0x648] ss:$16 sps:$4 sm:$0xff]   ;;  %v7427_v22 = vld [vmem:[#allocation5 + $0x664] ss:$16 sps:$4 sm:$0xff]  }
 0x10d   : > { %2461 = vmatprep.subr.bf16.mxu0 %v7367_v26  ;;  %2913 = vmatprep.subr.bf16.mxu1 %v7370_v27  ;;  %v7428_v26 = vld [vmem:[#allocation5 + $0x668] ss:$16 sps:$4 sm:$0xff]   ;;  %v7433_v27 = vld [vmem:[#allocation5 + $0x684] ss:$16 sps:$4 sm:$0xff]  }
 0x10e   : > { %2412 = vmatprep.mubr.bf16.mxu0 %v5991_v28  ;;  %2864 = vmatprep.mubr.bf16.mxu1 %v5991_v28  ;;  %v7436_v28 = vld [vmem:[#allocation5 + $0x68c] ss:$16 sps:$4 sm:$0xff]  }
 0x110   : > { %2462 = vmatpush1.bf16.msra.mxu0 %v7365_v29  ;;  %2914 = vmatpush1.bf16.msra.mxu1 %v7368_v30  ;;  %v5968_v29 = vcombine.low %v293_v18, %v297_v19  ;;  %v301_v30 = vld [vmem:[%s7883_s9 + $0xd0] sm:$0xff]  ;;  %v7490_v19 = vld [vmem:[#allocation5 + $0x7ac] ss:$16 sps:$4 sm:$0xff]  }
 0x111   : > { %2463 = vmatprep.subr.bf16.mxu0 %v7373_v31  ;;  %2915 = vmatprep.subr.bf16.mxu1 %v7376_v32  ;;  %v305_v31 = vld [vmem:[%s7883_s9 + $0xf0] sm:$0xff] }
 0x112   : > { %v7431_v32 = vld [vmem:[#allocation5 + $0x680] ss:$16 sps:$4 sm:$0xff]   ;;  %v7487_v18 = vld [vmem:[#allocation5 + $0x7a4] ss:$16 sps:$4 sm:$0xff]  }
 0x113   : > { %2413 = vmatmul.mubr.bf16.gmra.mrb[20].mxu0 %v5990_v34  ;;  %2865 = vmatmul.mubr.bf16.gmra.mrb[20].mxu1 %v5990_v34  ;;  %v7439_v34 = vld [vmem:[#allocation5 + $0x6a4] ss:$16 sps:$4 sm:$0xff]  }
 0x114   : > { %2464 = vmatpush1.bf16.msra.mxu0 %v7371_v36  ;;  %2916 = vmatpush1.bf16.msra.mxu1 %v7374_v37  ;;  %v5977_v36 = vcombine.high %v301_v30, %v305_v31  ;;  %v7437_v37 = vld [vmem:[#allocation5 + $0x6a0] ss:$16 sps:$4 sm:$0xff]  }
 0x115   : > { %2465 = vmatprep.subr.bf16.mxu0 %v7379_v38  ;;  %2917 = vmatprep.subr.bf16.mxu1 %v7382_v39  ;;  %v7440_v38 = vld [vmem:[#allocation5 + $0x6a8] ss:$16 sps:$4 sm:$0xff]   ;;  %v7445_v39 = vld [vmem:[#allocation5 + $0x6c4] ss:$16 sps:$4 sm:$0xff]  }
 0x116   : > { %2422 = vmatprep.mubr.bf16.mxu0 %v5999_v40  ;;  %2874 = vmatprep.mubr.bf16.mxu1 %v5999_v40  ;;  %v7448_v40 = vld [vmem:[#allocation5 + $0x6cc] ss:$16 sps:$4 sm:$0xff]  }
 0x118   : > { %2466 = vmatpush1.bf16.msra.mxu0 %v7377_v41  ;;  %2918 = vmatpush1.bf16.msra.mxu1 %v7380_v42  ;;  %v5976_v41 = vcombine.low %v301_v30, %v305_v31  ;;  %v309_v42 = vld [vmem:[%s7883_s9 + $0x110] sm:$0xff]  ;;  %v7502_v31 = vld [vmem:[#allocation5 + $0x7ec] ss:$16 sps:$4 sm:$0xff]  }
 0x119   : > { %2467 = vmatprep.subr.bf16.mxu0 %v7385_v43  ;;  %2919 = vmatprep.subr.bf16.mxu1 %v7388_v44  ;;  %v313_v43 = vld [vmem:[%s7883_s9 + $0x130] sm:$0xff] }
 0x11a   : > { %v7443_v44 = vld [vmem:[#allocation5 + $0x6c0] ss:$16 sps:$4 sm:$0xff]   ;;  %v7499_v30 = vld [vmem:[#allocation5 + $0x7e4] ss:$16 sps:$4 sm:$0xff]  }
 0x11b   : > { %2423 = vmatmul.mubr.bf16.gmra.mrb[24].mxu0 %v5998_v46  ;;  %2875 = vmatmul.mubr.bf16.gmra.mrb[24].mxu1 %v5998_v46  ;;  %v7451_v46 = vld [vmem:[#allocation5 + $0x6e4] ss:$16 sps:$4 sm:$0xff]  }
 0x11c   : > { %2468 = vmatpush1.bf16.msra.mxu0 %v7383_v48  ;;  %2920 = vmatpush1.bf16.msra.mxu1 %v7386_v49  ;;  %v5985_v48 = vcombine.high %v309_v42, %v313_v43  ;;  %v7449_v49 = vld [vmem:[#allocation5 + $0x6e0] ss:$16 sps:$4 sm:$0xff]  }
 0x11d   : > { %2469 = vmatprep.subr.bf16.mxu0 %v7391_v50  ;;  %2921 = vmatprep.subr.bf16.mxu1 %v7394_v51  ;;  %v7452_v50 = vld [vmem:[#allocation5 + $0x6e8] ss:$16 sps:$4 sm:$0xff]   ;;  %v7457_v51 = vld [vmem:[#allocation5 + $0x704] ss:$16 sps:$4 sm:$0xff]  }
 0x11e   : > { %2432 = vmatprep.mubr.bf16.mxu0 %v6007_v52  ;;  %2884 = vmatprep.mubr.bf16.mxu1 %v6007_v52  ;;  %v7460_v52 = vld [vmem:[#allocation5 + $0x70c] ss:$16 sps:$4 sm:$0xff]  }
 0x120   : > { %2470 = vmatpush1.bf16.msra.mxu0 %v7389_v53  ;;  %2922 = vmatpush1.bf16.msra.mxu1 %v7392_v54  ;;  %v5984_v53 = vcombine.low %v309_v42, %v313_v43  ;;  %v317_v54 = vld [vmem:[%s7883_s9 + $0x150] sm:$0xff]  ;;  %v3225_v43 = vld [vmem:[#allocation7 + $0x40] sm:$0xff] }
 0x121   : > { %2471 = vmatprep.subr.bf16.mxu0 %v7397_v55  ;;  %2923 = vmatprep.subr.bf16.mxu1 %v7400_v56  ;;  %v321_v55 = vld [vmem:[%s7883_s9 + $0x170] sm:$0xff] }
 0x122   : > { %v7455_v56 = vld [vmem:[#allocation5 + $0x700] ss:$16 sps:$4 sm:$0xff]   ;;  %v5993_v60 = vcombine.high %v317_v54, %v321_v55 }
 0x123   : > { %2433 = vmatmul.mubr.bf16.gmra.mrb[28].mxu0 %v6006_v59  ;;  %2885 = vmatmul.mubr.bf16.gmra.mrb[28].mxu1 %v6006_v59  ;;  %v7466_v59 = vld [vmem:[#allocation5 + $0x72c] ss:$16 sps:$4 sm:$0xff]  }
 0x124   : > { %2472 = vmatpush1.bf16.msra.mxu0 %v7395_v57  ;;  %2924 = vmatpush1.bf16.msra.mxu1 %v7398_v58  ;;  %v7458_v57 = vld [vmem:[#allocation5 + $0x708] ss:$16 sps:$4 sm:$0xff]   ;;  %v7463_v58 = vld [vmem:[#allocation5 + $0x724] ss:$16 sps:$4 sm:$0xff]  }
 0x125   : > { %2473 = vmatprep.subr.bf16.mxu0 %v7403_v62  ;;  %2925 = vmatprep.subr.bf16.mxu1 %v7406_v63  ;;  %v7464_v62 = vld [vmem:[#allocation5 + $0x728] ss:$16 sps:$4 sm:$0xff]   ;;  %v7469_v63 = vld [vmem:[#allocation5 + $0x744] ss:$16 sps:$4 sm:$0xff]  }
 0x126   : > { %2475 = vmatprep.mubr.bf16.mxu0 %v5953_v0  ;;  %2927 = vmatprep.mubr.bf16.mxu1 %v5953_v0  ;;  %v7472_v0 = vld [vmem:[#allocation5 + $0x74c] ss:$16 sps:$4 sm:$0xff]  }
 0x128   : > { %2474 = vmatpush1.bf16.msra.mxu0 %v7401_v1  ;;  %2926 = vmatpush1.bf16.msra.mxu1 %v7404_v2  ;;  %v5992_v1 = vcombine.low %v317_v54, %v321_v55  ;;  %v325_v2 = vld [vmem:[%s7883_s9 + $0x190] sm:$0xff]  ;;  %v3237_v54 = vld [vmem:[#allocation7 + $0xa0] sm:$0xff]  ;;  %v3234_v55 = vld [vmem:[#allocation7 + $0x88] sm:$0xff] }
 0x129   : > { %2556 = vmatprep.subr.bf16.mxu0 %v7409_v3  ;;  %3008 = vmatprep.subr.bf16.mxu1 %v7412_v4  ;;  %v329_v3 = vld [vmem:[%s7883_s9 + $0x1b0] sm:$0xff] }
 0x12a   : > { %v7467_v4 = vld [vmem:[#allocation5 + $0x740] ss:$16 sps:$4 sm:$0xff]  }
 0x12b   : > { %2476 = vmatmul.mubr.bf16.vlgmr.msra.gmra.mrb[0].mxu0 %v5952_v5  ;;  %2928 = vmatmul.mubr.bf16.vlgmr.msra.gmra.mrb[0].mxu1 %v5952_v5  ;;  %v7470_v5 = vld [vmem:[#allocation5 + $0x748] ss:$16 sps:$4 sm:$0xff]  }
 0x12c   : > { %2557 = vmatpush1.bf16.msra.mxu0 %v7407_v8  ;;  %3009 = vmatpush1.bf16.msra.mxu1 %v7410_v9  ;;  %v6001_v8 = vcombine.high %v325_v2, %v329_v3  ;;  %v7473_v9 = vld [vmem:[#allocation5 + $0x760] ss:$16 sps:$4 sm:$0xff]  }
 0x12d   : > { %2558 = vmatprep.subr.bf16.mxu0 %v7415_v10  ;;  %3010 = vmatprep.subr.bf16.mxu1 %v7418_v11  ;;  %v7476_v10 = vld [vmem:[#allocation5 + $0x768] ss:$16 sps:$4 sm:$0xff]   ;;  %v7481_v11 = vld [vmem:[#allocation5 + $0x784] ss:$16 sps:$4 sm:$0xff]  }
 0x12e   : > { %2485 = vmatprep.mubr.bf16.mxu0 %v5961_v12  ;;  %2937 = vmatprep.mubr.bf16.mxu1 %v5961_v12  ;;  %v7484_v12 = vld [vmem:[#allocation5 + $0x78c] ss:$16 sps:$4 sm:$0xff]  }
 0x130   : > { %2559 = vmatpush1.bf16.msra.mxu0 %v7413_v13  ;;  %3011 = vmatpush1.bf16.msra.mxu1 %v7416_v14  ;;  %v6000_v13 = vcombine.low %v325_v2, %v329_v3  ;;  %v333_v14 = vld [vmem:[%s7883_s9 + $0x1d0] sm:$0xff]  ;;  %v3242_v2 = vld [vmem:[#allocation7 + $0xc8] sm:$0xff] }
 0x131   : > { %2560 = vmatprep.subr.bf16.mxu0 %v7421_v15  ;;  %3012 = vmatprep.subr.bf16.mxu1 %v7424_v16  ;;  %v337_v15 = vld [vmem:[%s7883_s9 + $0x1f0] sm:$0xff]  ;;  %v3246_v3 = vld [vmem:[#allocation7 + $0xe8] sm:$0xff] }
 0x132   : > { %v7479_v16 = vld [vmem:[#allocation5 + $0x780] ss:$16 sps:$4 sm:$0xff]  }
 0x133   : > { %2486 = vmatmul.mubr.bf16.gmra.mrb[4].mxu0 %v5960_v17  ;;  %2938 = vmatmul.mubr.bf16.gmra.mrb[4].mxu1 %v5960_v17  ;;  %v7482_v17 = vld [vmem:[#allocation5 + $0x788] ss:$16 sps:$4 sm:$0xff]  }
 0x134   : > { %2561 = vmatpush1.bf16.msra.mxu0 %v7419_v20  ;;  %3013 = vmatpush1.bf16.msra.mxu1 %v7422_v21  ;;  %v6009_v20 = vcombine.high %v333_v14, %v337_v15  ;;  %v7485_v21 = vld [vmem:[#allocation5 + $0x7a0] ss:$16 sps:$4 sm:$0xff]  }
 0x135   : > { %2562 = vmatprep.subr.bf16.mxu0 %v7427_v22  ;;  %3014 = vmatprep.subr.bf16.mxu1 %v7430_v23  ;;  %v7488_v22 = vld [vmem:[#allocation5 + $0x7a8] ss:$16 sps:$4 sm:$0xff]   ;;  %v7493_v23 = vld [vmem:[#allocation5 + $0x7c4] ss:$16 sps:$4 sm:$0xff]  }
 0x136   : > { %2495 = vmatprep.mubr.bf16.mxu0 %v5969_v24  ;;  %2947 = vmatprep.mubr.bf16.mxu1 %v5969_v24  ;;  %v7496_v24 = vld [vmem:[#allocation5 + $0x7cc] ss:$16 sps:$4 sm:$0xff]  }
 0x138   : > { %2563 = vmatpush1.bf16.msra.mxu0 %v7425_v25  ;;  %3015 = vmatpush1.bf16.msra.mxu1 %v7428_v26  ;;  %v6008_v25 = vcombine.low %v333_v14, %v337_v15  ;;  %v278_v26 = vld [vmem:[%s7883_s9 + $0x18] sm:$0xff] }
 0x139   : > { %2564 = vmatprep.subr.bf16.mxu0 %v7433_v27  ;;  %3016 = vmatprep.subr.bf16.mxu1 %v7436_v28  ;;  %v282_v27 = vld [vmem:[%s7883_s9 + $0x38] sm:$0xff]  ;;  %v7491_v28 = vld [vmem:[#allocation5 + $0x7c0] ss:$16 sps:$4 sm:$0xff]  }
 0x13a   : > { %v306_v14 = vld [vmem:[%s7883_s9 + $0xf8] sm:$0xff] }
 0x13b   : > { %2496 = vmatmul.mubr.bf16.gmra.mrb[8].mxu0 %v5968_v29  ;;  %2948 = vmatmul.mubr.bf16.gmra.mrb[8].mxu1 %v5968_v29  ;;  %v7494_v29 = vld [vmem:[#allocation5 + $0x7c8] ss:$16 sps:$4 sm:$0xff]  }
 0x13c   : > { %2565 = vmatpush1.bf16.msra.mxu0 %v7431_v32  ;;  %3017 = vmatpush1.bf16.msra.mxu1 %v7434_v33  ;;  %v3217_v32 = vld [vmem:[#allocation7] sm:$0xff]  ;;  %v5955_v33 = vcombine.high %v278_v26, %v282_v27 }
 0x13d   : > { %2566 = vmatprep.subr.bf16.mxu0 %v7439_v34  ;;  %3018 = vmatprep.subr.bf16.mxu1 %v7442_v35  ;;  %v3221_v34 = vld [vmem:[#allocation7 + $0x20] sm:$0xff]  ;;  %v3218_v35 = vld [vmem:[#allocation7 + $0x8] sm:$0xff] }
 0x13e   : > { %2505 = vmatprep.mubr.bf16.mxu0 %v5977_v36  ;;  %2957 = vmatprep.mubr.bf16.mxu1 %v5977_v36  ;;  %v3222_v36 = vld [vmem:[#allocation7 + $0x28] sm:$0xff] }
 0x13f   : > { %v6271_v42 = vcombine.high %v3218_v35, %v3222_v36 }
 0x140   : > { %2567 = vmatpush1.bf16.msra.mxu0 %v7437_v37  ;;  %3019 = vmatpush1.bf16.msra.mxu1 %v7440_v38  ;;  %v7497_v37 = vld [vmem:[#allocation5 + $0x7e0] ss:$16 sps:$4 sm:$0xff]   ;;  %v7500_v38 = vld [vmem:[#allocation5 + $0x7e8] ss:$16 sps:$4 sm:$0xff]  }
 0x141   : > { %2568 = vmatprep.subr.bf16.mxu0 %v7445_v39  ;;  %3020 = vmatprep.subr.bf16.mxu1 %v7448_v40  ;;  %v286_v39 = vld [vmem:[%s7883_s9 + $0x58] sm:$0xff] }
 0x142   : > { %v290_v40 = vld [vmem:[%s7883_s9 + $0x78] sm:$0xff] }
 0x143   : > { %2506 = vmatmul.mubr.bf16.gmra.mrb[12].mxu0 %v5976_v41  ;;  %2958 = vmatmul.mubr.bf16.gmra.mrb[12].mxu1 %v5976_v41  ;;  %v6269_v41 = vcombine.high %v3217_v32, %v3221_v34 }
 0x144   : > { %2569 = vmatpush1.bf16.msra.mxu0 %v7443_v44  ;;  %3021 = vmatpush1.bf16.msra.mxu1 %v7446_v45  ;;  %v5954_v44 = vcombine.low %v278_v26, %v282_v27  ;;  %v3229_v45 = vld [vmem:[#allocation7 + $0x60] sm:$0xff] }
 0x145   : > { %2570 = vmatprep.subr.bf16.mxu0 %v7451_v46  ;;  %3022 = vmatprep.subr.bf16.mxu1 %v7454_v47  ;;  %v3226_v46 = vld [vmem:[#allocation7 + $0x48] sm:$0xff] }
 0x146   : > { %2515 = vmatprep.mubr.bf16.mxu0 %v5985_v48  ;;  %2967 = vmatprep.mubr.bf16.mxu1 %v5985_v48  ;;  %v3230_v47 = vld [vmem:[#allocation7 + $0x68] sm:$0xff]  ;;  %v5963_v48 = vcombine.high %v286_v39, %v290_v40 }
 0x148   : > { %2571 = vmatpush1.bf16.msra.mxu0 %v7449_v49  ;;  %3023 = vmatpush1.bf16.msra.mxu1 %v7452_v50  ;;  %v6268_v49 = vcombine.low %v3217_v32, %v3221_v34  ;;  %v6270_v50 = vcombine.low %v3218_v35, %v3222_v36  ;;  %v3270_v32 = vld [vmem:[#allocation7 + $0x1a8] sm:$0xff]  ;;  %v314_v34 = vld [vmem:[%s7883_s9 + $0x138] sm:$0xff] }
 0x149   : > { %2572 = vmatprep.subr.bf16.mxu0 %v7457_v51  ;;  %3024 = vmatprep.subr.bf16.mxu1 %v7460_v52  ;;  %v6277_v51 = vcombine.high %v3225_v43, %v3229_v45  ;;  %v6279_v52 = vcombine.high %v3226_v46, %v3230_v47 }
 0x14b   : > { %2516 = vmatmul.mubr.bf16.gmra.mrb[16].mxu0 %v5984_v53  ;;  %2968 = vmatmul.mubr.bf16.gmra.mrb[16].mxu1 %v5984_v53  ;;  %v3233_v53 = vld [vmem:[#allocation7 + $0x80] sm:$0xff] }
 0x14c   : > { %2573 = vmatpush1.bf16.msra.mxu0 %v7455_v56  ;;  %3025 = vmatpush1.bf16.msra.mxu1 %v7458_v57  ;;  %v3238_v56 = vld [vmem:[#allocation7 + $0xa8] sm:$0xff]  ;;  %v294_v57 = vld [vmem:[%s7883_s9 + $0x98] sm:$0xff] }
 0x14d   : > { %2574 = vmatprep.subr.bf16.mxu0 %v7463_v58  ;;  %3026 = vmatprep.subr.bf16.mxu1 %v7466_v59  ;;  %v298_v58 = vld [vmem:[%s7883_s9 + $0xb8] sm:$0xff]  ;;  %v6276_v59 = vcombine.low %v3225_v43, %v3229_v45  ;;  %v3278_v43 = vld [vmem:[#allocation7 + $0x1e8] sm:$0xff] }
 0x14e   : > { %2525 = vmatprep.mubr.bf16.mxu0 %v5993_v60  ;;  %2977 = vmatprep.mubr.bf16.mxu1 %v5993_v60  ;;  %v6278_v60 = vcombine.low %v3226_v46, %v3230_v47 }
 0x150   : > { %2575 = vmatpush1.bf16.msra.mxu0 %v7461_v61  ;;  %3027 = vmatpush1.bf16.msra.mxu1 %v7464_v62  ;;  %v6285_v61 = vcombine.high %v3233_v53, %v3237_v54  ;;  %v6287_v62 = vcombine.high %v3234_v55, %v3238_v56 }
 0x151   : > { %2576 = vmatprep.subr.bf16.mxu0 %v7469_v63  ;;  %3028 = vmatprep.subr.bf16.mxu1 %v7472_v0  ;;  %v3241_v63 = vld [vmem:[#allocation7 + $0xc0] sm:$0xff]  ;;  %v5962_v0 = vcombine.low %v286_v39, %v290_v40 }
 0x152   : > { %v3273_v39 = vld [vmem:[#allocation7 + $0x1c0] sm:$0xff] }
 0x153   : > { %2526 = vmatmul.mubr.bf16.gmra.mrb[20].mxu0 %v5992_v1  ;;  %2978 = vmatmul.mubr.bf16.gmra.mrb[20].mxu1 %v5992_v1  ;;  %v3245_v1 = vld [vmem:[#allocation7 + $0xe0] sm:$0xff] }
 0x154   : > { %2577 = vmatpush1.bf16.msra.mxu0 %v7467_v4  ;;  %3029 = vmatpush1.bf16.msra.mxu1 %v7470_v5  ;;  %v5971_v4 = vcombine.high %v294_v57, %v298_v58  ;;  %v6284_v5 = vcombine.low %v3233_v53, %v3237_v54  ;;  %v6292_v15 = vcombine.low %v3241_v63, %v3245_v1  ;;  %v318_v53 = vld [vmem:[%s7883_s9 + $0x158] sm:$0xff] }
 0x155   : > { %2578 = vmatprep.subr.bf16.mxu0 %v7475_v6  ;;  %3030 = vmatprep.subr.bf16.mxu1 %v7478_v7  ;;  %v6286_v6 = vcombine.low %v3234_v55, %v3238_v56  ;;  %v6293_v7 = vcombine.high %v3241_v63, %v3245_v1  ;;  %v322_v54 = vld [vmem:[%s7883_s9 + $0x178] sm:$0xff]  ;;  %v3294_v63 = vld [vmem:[#allocation7 + $0x268] sm:$0xff] }
 0x156   : > { %2535 = vmatprep.mubr.bf16.mxu0 %v6001_v8  ;;  %2987 = vmatprep.mubr.bf16.mxu1 %v6001_v8  ;;  %v6295_v8 = vcombine.high %v3242_v2, %v3246_v3 }
 0x158   : > { %2579 = vmatpush1.bf16.msra.mxu0 %v7473_v9  ;;  %3031 = vmatpush1.bf16.msra.mxu1 %v7476_v10  ;;  %v3249_v9 = vld [vmem:[#allocation7 + $0x100] sm:$0xff] }
 0x159   : > { %2580 = vmatprep.subr.bf16.mxu0 %v7481_v11  ;;  %3032 = vmatprep.subr.bf16.mxu1 %v7484_v12  ;;  %v3253_v10 = vld [vmem:[#allocation7 + $0x120] sm:$0xff]  ;;  %v3250_v11 = vld [vmem:[#allocation7 + $0x108] sm:$0xff] }
 0x15a   : > { %v3254_v12 = vld [vmem:[#allocation7 + $0x128] sm:$0xff] }
 0x15b   : > { %2536 = vmatmul.mubr.bf16.gmra.mrb[24].mxu0 %v6000_v13  ;;  %2988 = vmatmul.mubr.bf16.gmra.mrb[24].mxu1 %v6000_v13  ;;  %v302_v13 = vld [vmem:[%s7883_s9 + $0xd8] sm:$0xff]  ;;  %v6302_v26 = vcombine.low %v3250_v11, %v3254_v12 }
 0x15c   : > { %2581 = vmatpush1.bf16.msra.mxu0 %v7479_v16  ;;  %3033 = vmatpush1.bf16.msra.mxu1 %v7482_v17  ;;  %v6294_v16 = vcombine.low %v3242_v2, %v3246_v3  ;;  %v6301_v17 = vcombine.high %v3249_v9, %v3253_v10  ;;  %v5978_v40 = vcombine.low %v302_v13, %v306_v14 }
 0x15d   : > { %2582 = vmatprep.subr.bf16.mxu0 %v7487_v18  ;;  %3034 = vmatprep.subr.bf16.mxu1 %v7490_v19  ;;  %v6303_v18 = vcombine.high %v3250_v11, %v3254_v12  ;;  %v3257_v19 = vld [vmem:[#allocation7 + $0x140] sm:$0xff] }
 0x15e   : > { %2545 = vmatprep.mubr.bf16.mxu0 %v6009_v20  ;;  %2997 = vmatprep.mubr.bf16.mxu1 %v6009_v20  ;;  %v5970_v20 = vcombine.low %v294_v57, %v298_v58 }
 0x160   : > { %2583 = vmatpush1.bf16.msra.mxu0 %v7485_v21  ;;  %3035 = vmatpush1.bf16.msra.mxu1 %v7488_v22  ;;  %v3261_v21 = vld [vmem:[#allocation7 + $0x160] sm:$0xff]  ;;  %v3258_v22 = vld [vmem:[#allocation7 + $0x148] sm:$0xff] }
 0x161   : > { %2584 = vmatprep.subr.bf16.mxu0 %v7493_v23  ;;  %3036 = vmatprep.subr.bf16.mxu1 %v7496_v24  ;;  %v3262_v23 = vld [vmem:[#allocation7 + $0x168] sm:$0xff]  ;;  %v5979_v24 = vcombine.high %v302_v13, %v306_v14  ;;  %v6309_v27 = vcombine.high %v3257_v19, %v3261_v21  ;;  %v6308_v35 = vcombine.low %v3257_v19, %v3261_v21 }
 0x162   : > { %v6310_v36 = vcombine.low %v3258_v22, %v3262_v23  ;;  %v3310_v19 = vld [vmem:[#allocation7 + $0x2e8] sm:$0xff] }
 0x163   : > { %2546 = vmatmul.mubr.bf16.gmra.mrb[28].mxu0 %v6008_v25  ;;  %2998 = vmatmul.mubr.bf16.gmra.mrb[28].mxu1 %v6008_v25  ;;  %v6300_v25 = vcombine.low %v3249_v9, %v3253_v10  ;;  %v326_v9 = vld [vmem:[%s7883_s9 + $0x198] sm:$0xff] }
 0x164   : > { %2585 = vmatpush1.bf16.msra.mxu0 %v7491_v28  ;;  %3037 = vmatpush1.bf16.msra.mxu1 %v7494_v29  ;;  %v6311_v28 = vcombine.high %v3258_v22, %v3262_v23  ;;  %v3265_v29 = vld [vmem:[#allocation7 + $0x180] sm:$0xff]  ;;  %v330_v10 = vld [vmem:[%s7883_s9 + $0x1b8] sm:$0xff] }
 0x165   : > { %2586 = vmatprep.subr.bf16.mxu0 %v7499_v30  ;;  %3038 = vmatprep.subr.bf16.mxu1 %v7502_v31  ;;  %v3269_v30 = vld [vmem:[#allocation7 + $0x1a0] sm:$0xff]  ;;  %v3266_v31 = vld [vmem:[#allocation7 + $0x188] sm:$0xff] }
 0x166   : > { %2588 = vmatprep.mubr.bf16.mxu0 %v5955_v33  ;;  %3040 = vmatprep.mubr.bf16.mxu1 %v5955_v33  ;;  %v310_v33 = vld [vmem:[%s7883_s9 + $0x118] sm:$0xff]  ;;  %v6316_v45 = vcombine.low %v3265_v29, %v3269_v30  ;;  %v6318_v46 = vcombine.low %v3266_v31, %v3270_v32 }
 0x168   : > { %2587 = vmatpush1.bf16.msra.mxu0 %v7497_v37  ;;  %3039 = vmatpush1.bf16.msra.mxu1 %v7500_v38  ;;  %v6317_v37 = vcombine.high %v3265_v29, %v3269_v30  ;;  %v6319_v38 = vcombine.high %v3266_v31, %v3270_v32  ;;  %v334_v29 = vld [vmem:[%s7883_s9 + $0x1d8] sm:$0xff] }
 0x169   : > { %4795 = vmatprep.subr.bf16.mxu0 %v6269_v41  ;;  %5021 = vmatprep.subr.bf16.mxu1 %v6271_v42  ;;  %v3277_v41 = vld [vmem:[#allocation7 + $0x1e0] sm:$0xff]  ;;  %v3274_v42 = vld [vmem:[#allocation7 + $0x1c8] sm:$0xff]  ;;  %v338_v30 = vld [vmem:[%s7883_s9 + $0x1f8] sm:$0xff]  ;;  %s7595_s9 = scalar_lea.vmem %s7594_s8, 32768 }
 0x16a   : > { %v6325_v47 = vcombine.high %v3273_v39, %v3277_v41  ;;  %v6324_v55 = vcombine.low %v3273_v39, %v3277_v41  ;;  %v6326_v56 = vcombine.low %v3274_v42, %v3278_v43  ;;  %v3326_v39 = vld [vmem:[#allocation7 + $0x368] sm:$0xff]  ;;  %p7597_p9 = scmp.lt.s32.totalorder %s7595_s9, %s7589_s7 }
 0x16b   : > { %2589 = vmatmul.mubr.bf16.vlgmr.msra.gmra.mrb[0].mxu0 %v5954_v44  ;;  %3041 = vmatmul.mubr.bf16.vlgmr.msra.gmra.mrb[0].mxu1 %v5954_v44  ;;  %v5987_v44 = vcombine.high %v310_v33, %v314_v34 }
 0x16c   : > { %2598 = vmatprep.mubr.bf16.mxu0 %v5963_v48  ;;  %3050 = vmatprep.mubr.bf16.mxu1 %v5963_v48  ;;  %v6327_v48 = vcombine.high %v3274_v42, %v3278_v43  ;;  %p7598_p12 = por %p7597_p9, %p7596_p5 }
 0x16d   : > { %4796 = vmatpush1.bf16.msra.mxu0 %v6268_v49  ;;  %5022 = vmatpush1.bf16.msra.mxu1 %v6270_v50  ;;  %v3281_v49 = vld [vmem:[#allocation7 + $0x200] sm:$0xff] }
 0x16e   : > { %4797 = vmatprep.subr.bf16.mxu0 %v6277_v51  ;;  %5023 = vmatprep.subr.bf16.mxu1 %v6279_v52  ;;  %v3285_v50 = vld [vmem:[#allocation7 + $0x220] sm:$0xff]  ;;  %v3282_v51 = vld [vmem:[#allocation7 + $0x208] sm:$0xff]  ;;  %p7599_p2 = pnand %p7598_p12, %p7592_p3 }
 0x16f   : > { %v3286_v52 = vld [vmem:[#allocation7 + $0x228] sm:$0xff]  ;;  %v6333_v57 = vcombine.high %v3281_v49, %v3285_v50  ;;  %v6332_v1 = vcombine.low %v3281_v49, %v3285_v50  ;;  %v3333_v49 = vld [vmem:[#allocation7 + $0x3a0] sm:$0xff] }
 0x170   : > { %v6335_v58 = vcombine.high %v3282_v51, %v3286_v52  ;;  %v6334_v2 = vcombine.low %v3282_v51, %v3286_v52  ;;  %v3330_v50 = vld [vmem:[#allocation7 + $0x388] sm:$0xff] }
 0x171   : > { %4798 = vmatpush1.bf16.msra.mxu0 %v6276_v59  ;;  %5024 = vmatpush1.bf16.msra.mxu1 %v6278_v60  ;;  %v3289_v59 = vld [vmem:[#allocation7 + $0x240] sm:$0xff]  ;;  %v5986_v60 = vcombine.low %v310_v33, %v314_v34  ;;  %v3334_v52 = vld [vmem:[#allocation7 + $0x3a8] sm:$0xff] }
 0x172   : > { %4799 = vmatprep.subr.bf16.mxu0 %v6285_v61  ;;  %5025 = vmatprep.subr.bf16.mxu1 %v6287_v62  ;;  %v3293_v61 = vld [vmem:[#allocation7 + $0x260] sm:$0xff]  ;;  %v3290_v62 = vld [vmem:[#allocation7 + $0x248] sm:$0xff] }
 0x173   : > { %2599 = vmatmul.mubr.bf16.gmra.mrb[4].mxu0 %v5962_v0  ;;  %3051 = vmatmul.mubr.bf16.gmra.mrb[4].mxu1 %v5962_v0  ;;  %v5995_v0 = vcombine.high %v318_v53, %v322_v54  ;;  %v6341_v3 = vcombine.high %v3289_v59, %v3293_v61  ;;  %v6340_v11 = vcombine.low %v3289_v59, %v3293_v61 }
 0x174   : > { %2608 = vmatprep.mubr.bf16.mxu0 %v5971_v4  ;;  %3060 = vmatprep.mubr.bf16.mxu1 %v5971_v4  ;;  %v6343_v4 = vcombine.high %v3290_v62, %v3294_v63  ;;  %v6342_v12 = vcombine.low %v3290_v62, %v3294_v63 }
 0x175   : > { %4800 = vmatpush1.bf16.msra.mxu0 %v6284_v5  ;;  %5026 = vmatpush1.bf16.msra.mxu1 %v6286_v6  ;;  %v3297_v5 = vld [vmem:[#allocation7 + $0x280] sm:$0xff] }
 0x176   : > { %4801 = vmatprep.subr.bf16.mxu0 %v6293_v7  ;;  %5027 = vmatprep.subr.bf16.mxu1 %v6295_v8  ;;  %v3301_v6 = vld [vmem:[#allocation7 + $0x2a0] sm:$0xff]  ;;  %v3298_v7 = vld [vmem:[#allocation7 + $0x288] sm:$0xff] }
 0x177   : > { %v3302_v8 = vld [vmem:[#allocation7 + $0x2a8] sm:$0xff]  ;;  %v6349_v13 = vcombine.high %v3297_v5, %v3301_v6  ;;  %v6348_v21 = vcombine.low %v3297_v5, %v3301_v6 }
 0x178   : > { %v6351_v14 = vcombine.high %v3298_v7, %v3302_v8  ;;  %v6350_v22 = vcombine.low %v3298_v7, %v3302_v8  ;;  %v597_v8 = vlaneseq }
 0x179   : > { %4802 = vmatpush1.bf16.msra.mxu0 %v6292_v15  ;;  %5028 = vmatpush1.bf16.msra.mxu1 %v6294_v16  ;;  %v3305_v15 = vld [vmem:[#allocation7 + $0x2c0] sm:$0xff]  ;;  %v5994_v16 = vcombine.low %v318_v53, %v322_v54  ;;  %v6382_v54 = vcombine.low %v3330_v50, %v3334_v52 }
 0x17a   : > { %4803 = vmatprep.subr.bf16.mxu0 %v6301_v17  ;;  %5029 = vmatprep.subr.bf16.mxu1 %v6303_v18  ;;  %v3309_v17 = vld [vmem:[#allocation7 + $0x2e0] sm:$0xff]  ;;  %v3306_v18 = vld [vmem:[#allocation7 + $0x2c8] sm:$0xff] }
 0x17b   : > { %2609 = vmatmul.mubr.bf16.gmra.mrb[8].mxu0 %v5970_v20  ;;  %3061 = vmatmul.mubr.bf16.gmra.mrb[8].mxu1 %v5970_v20  ;;  %v6003_v20 = vcombine.high %v326_v9, %v330_v10  ;;  %v6357_v23 = vcombine.high %v3305_v15, %v3309_v17  ;;  %v6356_v31 = vcombine.low %v3305_v15, %v3309_v17 }
 0x17c   : > { %2618 = vmatprep.mubr.bf16.mxu0 %v5979_v24  ;;  %3070 = vmatprep.mubr.bf16.mxu1 %v5979_v24  ;;  %v6359_v24 = vcombine.high %v3306_v18, %v3310_v19  ;;  %v6358_v32 = vcombine.low %v3306_v18, %v3310_v19 }
 0x17d   : > { %4804 = vmatpush1.bf16.msra.mxu0 %v6300_v25  ;;  %5030 = vmatpush1.bf16.msra.mxu1 %v6302_v26  ;;  %v3313_v25 = vld [vmem:[#allocation7 + $0x300] sm:$0xff] }
 0x17e   : > { %4805 = vmatprep.subr.bf16.mxu0 %v6309_v27  ;;  %5031 = vmatprep.subr.bf16.mxu1 %v6311_v28  ;;  %v3317_v26 = vld [vmem:[#allocation7 + $0x320] sm:$0xff]  ;;  %v3314_v27 = vld [vmem:[#allocation7 + $0x308] sm:$0xff] }
 0x17f   : > { %v3318_v28 = vld [vmem:[#allocation7 + $0x328] sm:$0xff]  ;;  %v6365_v33 = vcombine.high %v3313_v25, %v3317_v26  ;;  %v6364_v41 = vcombine.low %v3313_v25, %v3317_v26 }
 0x180   : > { %v6367_v34 = vcombine.high %v3314_v27, %v3318_v28  ;;  %v6366_v42 = vcombine.low %v3314_v27, %v3318_v28  ;;  %v8004_v27 = vld [vmem:[#allocation7 + $0x448] sm:$0xff] }
 0x181   : > { %4806 = vmatpush1.bf16.msra.mxu0 %v6308_v35  ;;  %5032 = vmatpush1.bf16.msra.mxu1 %v6310_v36  ;;  %v3321_v35 = vld [vmem:[#allocation7 + $0x340] sm:$0xff]  ;;  %v6002_v36 = vcombine.low %v326_v9, %v330_v10  ;;  %v7973_v9 = vshrl.u32 %v597_v8, 7  ;;  %v8006_v28 = vld [vmem:[#allocation7 + $0x468] sm:$0xff] }
 0x182   : > { %4807 = vmatprep.subr.bf16.mxu0 %v6317_v37  ;;  %5033 = vmatprep.subr.bf16.mxu1 %v6319_v38  ;;  %v3325_v37 = vld [vmem:[#allocation7 + $0x360] sm:$0xff]  ;;  %v3322_v38 = vld [vmem:[#allocation7 + $0x348] sm:$0xff] }
 0x183   : > { %2619 = vmatmul.mubr.bf16.gmra.mrb[12].mxu0 %v5978_v40  ;;  %3071 = vmatmul.mubr.bf16.gmra.mrb[12].mxu1 %v5978_v40  ;;  %v6011_v40 = vcombine.high %v334_v29, %v338_v30  ;;  %v6373_v43 = vcombine.high %v3321_v35, %v3325_v37  ;;  %v8897_v10 = vsub.s32 0, %v7973_v9  ;;  %v8048_v8 = vld [vmem:[#allocation7 + $0x4c8] sm:$0xff] }
 0x184   : > { %2628 = vmatprep.mubr.bf16.mxu0 %v5987_v44  ;;  %3080 = vmatprep.mubr.bf16.mxu1 %v5987_v44  ;;  %v6375_v44 = vcombine.high %v3322_v38, %v3326_v39 }
 0x185   : > { %4808 = vmatpush1.bf16.msra.mxu0 %v6316_v45  ;;  %5034 = vmatpush1.bf16.msra.mxu1 %v6318_v46  ;;  %v6372_v45 = vcombine.low %v3321_v35, %v3325_v37  ;;  %v6374_v46 = vcombine.low %v3322_v38, %v3326_v39 }
 0x186   : > { %4809 = vmatprep.subr.bf16.mxu0 %v6325_v47  ;;  %5035 = vmatprep.subr.bf16.mxu1 %v6327_v48  ;;  %v6010_v47 = vcombine.low %v334_v29, %v338_v30  ;;  %v3329_v48 = vld [vmem:[#allocation7 + $0x380] sm:$0xff] }
 0x187   : > { %v6381_v51 = vcombine.high %v3329_v48, %v3333_v49  ;;  %v6380_v53 = vcombine.low %v3329_v48, %v3333_v49  ;;  %v8024_v48 = vld [vmem:[#allocation7 + $0x488] sm:$0xff] }
 0x188   : > { %v8026_v49 = vld [vmem:[#allocation7 + $0x4a8] sm:$0xff] }
 0x189   : > { %4810 = vmatpush1.bf16.msra.mxu0 %v6324_v55  ;;  %5036 = vmatpush1.bf16.msra.mxu1 %v6326_v56  ;;  %v6383_v55 = vcombine.high %v3330_v50, %v3334_v52  ;;  %v3337_v56 = vld [vmem:[#allocation7 + $0x3c0] sm:$0xff] }
 0x18a   : > { %4811 = vmatprep.subr.bf16.mxu0 %v6333_v57  ;;  %5037 = vmatprep.subr.bf16.mxu1 %v6335_v58  ;;  %v3341_v57 = vld [vmem:[#allocation7 + $0x3e0] sm:$0xff]  ;;  %v3338_v58 = vld [vmem:[#allocation7 + $0x3c8] sm:$0xff] }
 0x18b   : > { %2629 = vmatmul.mubr.bf16.gmra.mrb[16].mxu0 %v5986_v60  ;;  %3081 = vmatmul.mubr.bf16.gmra.mrb[16].mxu1 %v5986_v60  ;;  %v6389_v59 = vcombine.high %v3337_v56, %v3341_v57  ;;  %v3342_v60 = vld [vmem:[#allocation7 + $0x3e8] sm:$0xff]  ;;  %v6388_v61 = vcombine.low %v3337_v56, %v3341_v57 }
 0x18c   : > { %2638 = vmatprep.mubr.bf16.mxu0 %v5995_v0  ;;  %3090 = vmatprep.mubr.bf16.mxu1 %v5995_v0  ;;  %v6390_v62 = vcombine.low %v3338_v58, %v3342_v60  ;;  %v6391_v63 = vcombine.high %v3338_v58, %v3342_v60  ;;  %v7957_v0 = vld [vmem:[#allocation7 + $0x400] sm:$0xff]  ;;  %v6407_v58 = vcombine.high %v8004_v27, %v8006_v28 }
 0x18d   : > { %4812 = vmatpush1.bf16.msra.mxu0 %v6332_v1  ;;  %5038 = vmatpush1.bf16.msra.mxu1 %v6334_v2  ;;  %v7959_v1 = vld [vmem:[#allocation7 + $0x420] sm:$0xff]  ;;  %v7961_v2 = vld [vmem:[#allocation7 + $0x408] sm:$0xff] }
 0x18e   : > { %4813 = vmatprep.subr.bf16.mxu0 %v6341_v3  ;;  %5039 = vmatprep.subr.bf16.mxu1 %v6343_v4  ;;  %v6397_v3 = vcombine.high %v7957_v0, %v7959_v1  ;;  %v7965_v4 = vld [vmem:[#allocation7 + $0x428] sm:$0xff]  ;;  %v6396_v5 = vcombine.low %v7957_v0, %v7959_v1 }
 0x18f   : > { %v6398_v6 = vcombine.low %v7961_v2, %v7965_v4  ;;  %v6399_v7 = vcombine.high %v7961_v2, %v7965_v4  ;;  %v8086_v0 = vld [vmem:[#allocation7 + $0x528] sm:$0xff] }
 0x191   : > { %4814 = vmatpush1.bf16.msra.mxu0 %v6340_v11  ;;  %5040 = vmatpush1.bf16.msra.mxu1 %v6342_v12  ;;  %v8896_v11 = vsub.s32 2, %v7973_v9  ;;  %v595_v12 = vld [vmem:[%s8887_s2] sm:$0xf] }
 0x192   : > { %4815 = vmatprep.subr.bf16.mxu0 %v6349_v13  ;;  %5041 = vmatprep.subr.bf16.mxu1 %v6351_v14  ;;  %v8895_v13 = vsub.s32 1, %v7973_v9  ;;  %v8894_v14 = vsub.s32 3, %v7973_v9  ;;  %v7984_v15 = vrot.slane %v595_v12, %v8897_v10 }
 0x193   : > { %2639 = vmatmul.mubr.bf16.gmra.mrb[20].mxu0 %v5994_v16  ;;  %3091 = vmatmul.mubr.bf16.gmra.mrb[20].mxu1 %v5994_v16  ;;  %v7988_v16 = vrot.slane %v595_v12, %v8896_v11 }
 0x194   : > { %2648 = vmatprep.mubr.bf16.mxu0 %v6003_v20  ;;  %3100 = vmatprep.mubr.bf16.mxu1 %v6003_v20  ;;  %v7992_v17 = vrot.slane %v595_v12, %v8895_v13  ;;  %v7996_v18 = vrot.slane %v595_v12, %v8894_v14  ;;  %v8050_v12 = vld [vmem:[#allocation7 + $0x4e8] sm:$0xff]  ;;  %v3465_v13 = vld [vmem:[#allocation7 + $0x7c0] sm:$0xff] }
 0x195   : > { %4816 = vmatpush1.bf16.msra.mxu0 %v6348_v21  ;;  %5042 = vmatpush1.bf16.msra.mxu1 %v6350_v22  ;;  %v7998_v21 = vld [vmem:[#allocation7 + $0x440] sm:$0xff] }
 0x196   : > { %4817 = vmatprep.subr.bf16.mxu0 %v6357_v23  ;;  %5043 = vmatprep.subr.bf16.mxu1 %v6359_v24  ;;  %v8000_v22 = vld [vmem:[#allocation7 + $0x460] sm:$0xff] }
 0x197   : > { %v6405_v37 = vcombine.high %v7998_v21, %v8000_v22 }
 0x199   : > { %4818 = vmatpush1.bf16.msra.mxu0 %v6356_v31  ;;  %5044 = vmatpush1.bf16.msra.mxu1 %v6358_v32 }
 0x19a   : > { %4819 = vmatprep.subr.bf16.mxu0 %v6365_v33  ;;  %5045 = vmatprep.subr.bf16.mxu1 %v6367_v34 }
 0x19b   : > { %2649 = vmatmul.mubr.bf16.gmra.mrb[24].mxu0 %v6002_v36  ;;  %3101 = vmatmul.mubr.bf16.gmra.mrb[24].mxu1 %v6002_v36 }
 0x19c   : > { %2658 = vmatprep.mubr.bf16.mxu0 %v6011_v40  ;;  %3110 = vmatprep.mubr.bf16.mxu1 %v6011_v40  ;;  %v6404_v40 = vcombine.low %v7998_v21, %v8000_v22  ;;  %v8119_v22 = vld [vmem:[#allocation7 + $0x548] sm:$0xff] }
 0x19d   : > { %4820 = vmatpush1.bf16.msra.mxu0 %v6364_v41  ;;  %5046 = vmatpush1.bf16.msra.mxu1 %v6366_v42  ;;  %v6406_v41 = vcombine.low %v8004_v27, %v8006_v28  ;;  %v8020_v42 = vld [vmem:[#allocation7 + $0x480] sm:$0xff]  ;;  %v8121_v27 = vld [vmem:[#allocation7 + $0x568] sm:$0xff] }
 0x19e   : > { %4821 = vmatprep.subr.bf16.mxu0 %v6373_v43  ;;  %5047 = vmatprep.subr.bf16.mxu1 %v6375_v44  ;;  %v8022_v43 = vld [vmem:[#allocation7 + $0x4a0] sm:$0xff] }
 0x1a1   : > { %4822 = vmatpush1.bf16.msra.mxu0 %v6372_v45  ;;  %5048 = vmatpush1.bf16.msra.mxu1 %v6374_v46 }
 0x1a2   : > { %4823 = vmatprep.subr.bf16.mxu0 %v6381_v51  ;;  %5049 = vmatprep.subr.bf16.mxu1 %v6383_v55  ;;  %v8030_v55 = vld [vmem:[#allocation7 + $0x4e0] sm:$0xff] }
 0x1a3   : > { %2659 = vmatmul.mubr.bf16.gmra.mrb[28].mxu0 %v6010_v47  ;;  %3111 = vmatmul.mubr.bf16.gmra.mrb[28].mxu1 %v6010_v47 }
 0x1a5   : > { %4824 = vmatpush1.bf16.msra.mxu0 %v6380_v53  ;;  %5050 = vmatpush1.bf16.msra.mxu1 %v6382_v54  ;;  %v8028_v54 = vld [vmem:[#allocation7 + $0x4c0] sm:$0xff] }
 0x1a6   : > { %4825 = vmatprep.subr.bf16.mxu0 %v6389_v59  ;;  %5051 = vmatprep.subr.bf16.mxu1 %v6391_v63  ;;  %v6413_v59 = vcombine.high %v8020_v42, %v8022_v43 }
 0x1a9   : > { %4826 = vmatpush1.bf16.msra.mxu0 %v6388_v61  ;;  %5052 = vmatpush1.bf16.msra.mxu1 %v6390_v62 }
 0x1aa   : > { %4908 = vmatprep.subr.bf16.mxu0 %v6397_v3  ;;  %5134 = vmatprep.subr.bf16.mxu1 %v6399_v7  ;;  %v6412_v3 = vcombine.low %v8020_v42, %v8022_v43  ;;  %v6414_v7 = vcombine.low %v8024_v48, %v8026_v49 }
 0x23e   : > { %v2590_v19 = vpop.f32.mrb[0].mxu0  ;;  %v3042_v20 = vpop.f32.mrb[0].mxu1 }
 0x23f   : > { %v6534_v23 = vadd.f32 %v2590_v19, %v7984_v15  ;;  %v6566_v24 = vadd.f32 %v3042_v20, %v7988_v16  ;;  %v2592_v25 = vpop.f32.mrb[1].mxu0  ;;  %v3044_v26 = vpop.f32.mrb[1].mxu1 }
 0x240   : > { %v6535_v29 = vadd.f32 %v2592_v25, %v7992_v17  ;;  %v6567_v30 = vadd.f32 %v3044_v26, %v7996_v18  ;;  %v2594_v31 = vpop.f32.mrb[2].mxu0  ;;  %v3046_v32 = vpop.f32.mrb[2].mxu1  ;;  %v6415_v25 = vcombine.high %v8024_v48, %v8026_v49  ;;  %v6421_v26 = vcombine.high %v8028_v54, %v8030_v55 }
 0x241   : > { %v6536_v33 = vadd.f32 %v2594_v31, %v7984_v15  ;;  %v6568_v34 = vadd.f32 %v3046_v32, %v7988_v16  ;;  %v2596_v35 = vpop.f32.mrb[3].mxu0  ;;  %v3048_v36 = vpop.f32.mrb[3].mxu1  ;;  %v3121_v44 = vmax.f32 %v6534_v23, 0.0  ;;  %v3123_v45 = vmax.f32 %v6566_v24, 0.0 }
 0x242   : > { %v6537_v38 = vadd.f32 %v2596_v35, %v7992_v17  ;;  %v6569_v39 = vadd.f32 %v3048_v36, %v7996_v18  ;;  %v3122_v50 = vmax.f32 %v6535_v29, 0.0  ;;  %v3124_v51 = vmax.f32 %v6567_v30, 0.0 }
 0x243   : > { %v3125_v46 = vmax.f32 %v6536_v33, 0.0  ;;  %v3127_v47 = vmax.f32 %v6568_v34, 0.0  ;;  %v6420_v33 = vcombine.low %v8028_v54, %v8030_v55 }
 0x244   : > { %v3126_v52 = vmax.f32 %v6537_v38, 0.0  ;;  %v3128_v53 = vmax.f32 %v6569_v39, 0.0  ;;  %v6422_v39 = vcombine.low %v8048_v8, %v8050_v12 }
 0x245   : > { %v8032_v56 = vpack.c.bf16 %v3125_v46, %v3121_v44  ;;  %v8034_v57 = vpack.c.bf16 %v3127_v47, %v3123_v45  ;;  %v6423_v46 = vcombine.high %v8048_v8, %v8050_v12  ;;  %v8080_v47 = vld [vmem:[#allocation7 + $0x500] sm:$0xff] }
 0x246   : > { %v8040_v60 = vpack.c.bf16 %v3126_v52, %v3122_v50  ;;  %v8042_v61 = vpack.c.bf16 %v3128_v53, %v3124_v51  ;;  %v2600_v62 = vpop.f32.mrb[4].mxu0  ;;  %v3052_v63 = vpop.f32.mrb[4].mxu1  ;;  %v8082_v50 = vld [vmem:[#allocation7 + $0x520] sm:$0xff] }
 0x247   : > { %v6538_v19 = vadd.f32 %v2600_v62, %v7984_v15  ;;  %v6570_v20 = vadd.f32 %v3052_v63, %v7988_v16  ;;  %v2602_v23 = vpop.f32.mrb[5].mxu0  ;;  %v3054_v24 = vpop.f32.mrb[5].mxu1  ;;  %v8084_v63 = vld [vmem:[#allocation7 + $0x508] sm:$0xff] }
 0x248   : > { %v6539_v29 = vadd.f32 %v2602_v23, %v7992_v17  ;;  %v6571_v30 = vadd.f32 %v3054_v24, %v7996_v18  ;;  %v2604_v31 = vpop.f32.mrb[6].mxu0  ;;  %v3056_v32 = vpop.f32.mrb[6].mxu1  ;;  %4827 = vmatprep.mubr.bf16.mxu0 %v8040_v60  ;;  %5053 = vmatprep.mubr.bf16.mxu1 %v8040_v60  ;;  %v6431_v21 = vcombine.high %v8084_v63, %v8086_v0 }
 0x249   : > { %v6540_v34 = vadd.f32 %v2604_v31, %v7984_v15  ;;  %v6572_v35 = vadd.f32 %v3056_v32, %v7988_v16  ;;  %v2606_v36 = vpop.f32.mrb[7].mxu0  ;;  %v3058_v38 = vpop.f32.mrb[7].mxu1  ;;  %4828 = vmatmul.mubr.bf16.vlgmr.msra.gmra.mrb[32].mxu0 %v8032_v56  ;;  %5054 = vmatmul.mubr.bf16.vlgmr.msra.gmra.mrb[32].mxu1 %v8032_v56  ;;  %v3129_v51 = vmax.f32 %v6538_v19, 0.0  ;;  %v3131_v52 = vmax.f32 %v6570_v20, 0.0 }
 0x24a   : > { %v6541_v44 = vadd.f32 %v2606_v36, %v7992_v17  ;;  %v6573_v45 = vadd.f32 %v3058_v38, %v7996_v18  ;;  %4909 = vmatpush1.bf16.msra.mxu0 %v6396_v5  ;;  %5135 = vmatpush1.bf16.msra.mxu1 %v6398_v6  ;;  %v3130_v1 = vmax.f32 %v6539_v29, 0.0  ;;  %v3132_v2 = vmax.f32 %v6571_v30, 0.0 }
 0x24b   : > { %v3133_v53 = vmax.f32 %v6540_v34, 0.0  ;;  %v3135_v62 = vmax.f32 %v6572_v35, 0.0  ;;  %4910 = vmatprep.subr.bf16.mxu0 %v6405_v37  ;;  %5136 = vmatprep.subr.bf16.mxu1 %v6407_v58  ;;  %v6428_v19 = vcombine.low %v8080_v47, %v8082_v50  ;;  %v6429_v20 = vcombine.high %v8080_v47, %v8082_v50  ;;  %v8096_v37 = vld [vmem:[#allocation7 + $0x540] sm:$0xff] }
 0x24c   : > { %v3134_v4 = vmax.f32 %v6541_v44, 0.0  ;;  %v3136_v5 = vmax.f32 %v6573_v45, 0.0  ;;  %v8098_v58 = vld [vmem:[#allocation7 + $0x560] sm:$0xff]  ;;  %v6430_v32 = vcombine.low %v8084_v63, %v8086_v0 }
 0x24d   : > { %v8088_v6 = vpack.c.bf16 %v3133_v53, %v3129_v51  ;;  %v8090_v23 = vpack.c.bf16 %v3135_v62, %v3131_v52  ;;  %v6436_v53 = vcombine.low %v8096_v37, %v8098_v58  ;;  %v8216_v47 = vld [vmem:[#allocation7 + $0x600] sm:$0xff] }
 0x24e   : > { %v8100_v24 = vpack.c.bf16 %v3134_v4, %v3130_v1  ;;  %v8102_v29 = vpack.c.bf16 %v3136_v5, %v3132_v2  ;;  %v2610_v30 = vpop.f32.mrb[8].mxu0  ;;  %v3062_v31 = vpop.f32.mrb[8].mxu1  ;;  %4911 = vmatpush1.bf16.msra.mxu0 %v6404_v40  ;;  %5137 = vmatpush1.bf16.msra.mxu1 %v6406_v41  ;;  %v6438_v2 = vcombine.low %v8119_v22, %v8121_v27  ;;  %v8145_v4 = vld [vmem:[#allocation7 + $0x580] sm:$0xff] }
 0x24f   : > { %v6542_v34 = vadd.f32 %v2610_v30, %v7984_v15  ;;  %v6574_v35 = vadd.f32 %v3062_v31, %v7988_v16  ;;  %v2612_v36 = vpop.f32.mrb[9].mxu0  ;;  %v3064_v38 = vpop.f32.mrb[9].mxu1  ;;  %4912 = vmatprep.subr.bf16.mxu0 %v6413_v59  ;;  %5138 = vmatprep.subr.bf16.mxu1 %v6415_v25  ;;  %v6437_v59 = vcombine.high %v8096_v37, %v8098_v58  ;;  %v8147_v5 = vld [vmem:[#allocation7 + $0x5a0] sm:$0xff] }
 0x250   : > { %v6543_v28 = vadd.f32 %v2612_v36, %v7992_v17  ;;  %v6575_v40 = vadd.f32 %v3064_v38, %v7996_v18  ;;  %v2614_v41 = vpop.f32.mrb[10].mxu0  ;;  %v3066_v44 = vpop.f32.mrb[10].mxu1  ;;  %4837 = vmatprep.mubr.bf16.mxu0 %v8100_v24  ;;  %5063 = vmatprep.mubr.bf16.mxu1 %v8100_v24  ;;  %v8218_v50 = vld [vmem:[#allocation7 + $0x620] sm:$0xff] }
 0x251   : > { %v6544_v25 = vadd.f32 %v2614_v41, %v7984_v15  ;;  %v6576_v45 = vadd.f32 %v3066_v44, %v7988_v16  ;;  %v2616_v51 = vpop.f32.mrb[11].mxu0  ;;  %v3068_v52 = vpop.f32.mrb[11].mxu1  ;;  %4838 = vmatmul.mubr.bf16.gmra.mrb[36].mxu0 %v8088_v6  ;;  %5064 = vmatmul.mubr.bf16.gmra.mrb[36].mxu1 %v8088_v6  ;;  %v3137_v30 = vmax.f32 %v6542_v34, 0.0  ;;  %v3139_v31 = vmax.f32 %v6574_v35, 0.0  ;;  %v8251_v58 = vld [vmem:[#allocation7 + $0x640] sm:$0xff] }
 0x252   : > { %v6545_v62 = vadd.f32 %v2616_v51, %v7992_v17  ;;  %v6577_v1 = vadd.f32 %v3068_v52, %v7996_v18  ;;  %4913 = vmatpush1.bf16.msra.mxu0 %v6412_v3  ;;  %5139 = vmatpush1.bf16.msra.mxu1 %v6414_v7  ;;  %v3138_v42 = vmax.f32 %v6543_v28, 0.0  ;;  %v3140_v43 = vmax.f32 %v6575_v40, 0.0  ;;  %v8152_v3 = vld [vmem:[#allocation7 + $0x588] sm:$0xff]  ;;  %v8178_v51 = vld [vmem:[#allocation7 + $0x5e0] sm:$0xff] }
 0x253   : > { %v3141_v36 = vmax.f32 %v6544_v25, 0.0  ;;  %v3143_v38 = vmax.f32 %v6576_v45, 0.0  ;;  %4914 = vmatprep.subr.bf16.mxu0 %v6421_v26  ;;  %5140 = vmatprep.subr.bf16.mxu1 %v6423_v46  ;;  %v8154_v7 = vld [vmem:[#allocation7 + $0x5a8] sm:$0xff]  ;;  %v6439_v34 = vcombine.high %v8119_v22, %v8121_v27  ;;  %v6445_v35 = vcombine.high %v8145_v4, %v8147_v5  ;;  %v8176_v45 = vld [vmem:[#allocation7 + $0x5c0] sm:$0xff] }
 0x254   : > { %v3142_v48 = vmax.f32 %v6545_v62, 0.0  ;;  %v3144_v49 = vmax.f32 %v6577_v1, 0.0  ;;  %v6444_v25 = vcombine.low %v8145_v4, %v8147_v5  ;;  %v6446_v54 = vcombine.low %v8152_v3, %v8154_v7  ;;  %v8253_v22 = vld [vmem:[#allocation7 + $0x660] sm:$0xff] }
 0x255   : > { %v8156_v41 = vpack.c.bf16 %v3141_v36, %v3137_v30  ;;  %v8158_v44 = vpack.c.bf16 %v3143_v38, %v3139_v31  ;;  %v6453_v38 = vcombine.high %v8176_v45, %v8178_v51  ;;  %v6460_v37 = vcombine.low %v8216_v47, %v8218_v50 }
 0x256   : > { %v8164_v26 = vpack.c.bf16 %v3142_v48, %v3138_v42  ;;  %v8166_v46 = vpack.c.bf16 %v3144_v49, %v3140_v43  ;;  %v2620_v28 = vpop.f32.mrb[12].mxu0  ;;  %v3072_v40 = vpop.f32.mrb[12].mxu1  ;;  %4915 = vmatpush1.bf16.msra.mxu0 %v6420_v33  ;;  %5141 = vmatpush1.bf16.msra.mxu1 %v6422_v39  ;;  %v6447_v39 = vcombine.high %v8152_v3, %v8154_v7  ;;  %v8209_v49 = vld [vmem:[#allocation7 + $0x5c8] sm:$0xff] }
 0x257   : > { %v6546_v52 = vadd.f32 %v2620_v28, %v7984_v15  ;;  %v6578_v62 = vadd.f32 %v3072_v40, %v7988_v16  ;;  %v2622_v1 = vpop.f32.mrb[13].mxu0  ;;  %v3074_v30 = vpop.f32.mrb[13].mxu1  ;;  %4916 = vmatprep.subr.bf16.mxu0 %v6429_v20  ;;  %5142 = vmatprep.subr.bf16.mxu1 %v6431_v21  ;;  %v6452_v48 = vcombine.low %v8176_v45, %v8178_v51  ;;  %v8211_v28 = vld [vmem:[#allocation7 + $0x5e8] sm:$0xff] }
 0x258   : > { %v6547_v55 = vadd.f32 %v2622_v1, %v7992_v17  ;;  %v6579_v8 = vadd.f32 %v3074_v30, %v7996_v18  ;;  %v2624_v12 = vpop.f32.mrb[14].mxu0  ;;  %v3076_v33 = vpop.f32.mrb[14].mxu1  ;;  %4847 = vmatprep.mubr.bf16.mxu0 %v8164_v26  ;;  %5073 = vmatprep.mubr.bf16.mxu1 %v8164_v26 }
 0x259   : > { %v6548_v31 = vadd.f32 %v2624_v12, %v7984_v15  ;;  %v6580_v20 = vadd.f32 %v3076_v33, %v7988_v16  ;;  %v2626_v21 = vpop.f32.mrb[15].mxu0  ;;  %v3078_v36 = vpop.f32.mrb[15].mxu1  ;;  %4848 = vmatmul.mubr.bf16.gmra.mrb[40].mxu0 %v8156_v41  ;;  %5074 = vmatmul.mubr.bf16.gmra.mrb[40].mxu1 %v8156_v41  ;;  %v3145_v40 = vmax.f32 %v6546_v52, 0.0  ;;  %v3147_v1 = vmax.f32 %v6578_v62, 0.0 }
 0x25a   : > { %v6549_v42 = vadd.f32 %v2626_v21, %v7992_v17  ;;  %v6581_v43 = vadd.f32 %v3078_v36, %v7996_v18  ;;  %4917 = vmatpush1.bf16.msra.mxu0 %v6428_v19  ;;  %5143 = vmatpush1.bf16.msra.mxu1 %v6430_v32  ;;  %v3146_v63 = vmax.f32 %v6547_v55, 0.0  ;;  %v3148_v0 = vmax.f32 %v6579_v8, 0.0 }
 0x25b   : > { %v3149_v30 = vmax.f32 %v6548_v31, 0.0  ;;  %v3151_v12 = vmax.f32 %v6580_v20, 0.0  ;;  %4918 = vmatprep.subr.bf16.mxu0 %v6437_v59  ;;  %5144 = vmatprep.subr.bf16.mxu1 %v6439_v34  ;;  %v6454_v52 = vcombine.low %v8209_v49, %v8211_v28  ;;  %v6455_v62 = vcombine.high %v8209_v49, %v8211_v28  ;;  %v8228_v59 = vld [vmem:[#allocation7 + $0x608] sm:$0xff] }
 0x25c   : > { %v3150_v19 = vmax.f32 %v6549_v42, 0.0  ;;  %v3152_v32 = vmax.f32 %v6581_v43, 0.0  ;;  %v8230_v34 = vld [vmem:[#allocation7 + $0x628] sm:$0xff]  ;;  %v6461_v36 = vcombine.high %v8216_v47, %v8218_v50 }
 0x25d   : > { %v8220_v33 = vpack.c.bf16 %v3149_v30, %v3145_v40  ;;  %v8222_v21 = vpack.c.bf16 %v3151_v12, %v3147_v1  ;;  %v8341_v47 = vld [vmem:[#allocation7 + $0x6e8] sm:$0xff] }
 0x25e   : > { %v8232_v31 = vpack.c.bf16 %v3150_v19, %v3146_v63  ;;  %v8234_v55 = vpack.c.bf16 %v3152_v32, %v3148_v0  ;;  %v2630_v8 = vpop.f32.mrb[16].mxu0  ;;  %v3082_v20 = vpop.f32.mrb[16].mxu1  ;;  %4919 = vmatpush1.bf16.msra.mxu0 %v6436_v53  ;;  %5145 = vmatpush1.bf16.msra.mxu1 %v6438_v2  ;;  %v6463_v63 = vcombine.high %v8228_v59, %v8230_v34 }
 0x25f   : > { %v6550_v42 = vadd.f32 %v2630_v8, %v7984_v15  ;;  %v6582_v43 = vadd.f32 %v3082_v20, %v7988_v16  ;;  %v2632_v49 = vpop.f32.mrb[17].mxu0  ;;  %v3084_v28 = vpop.f32.mrb[17].mxu1  ;;  %4920 = vmatprep.subr.bf16.mxu0 %v6445_v35  ;;  %5146 = vmatprep.subr.bf16.mxu1 %v6447_v39  ;;  %v6462_v35 = vcombine.low %v8228_v59, %v8230_v34  ;;  %v8277_v8 = vld [vmem:[#allocation7 + $0x648] sm:$0xff] }
 0x260   : > { %v6551_v27 = vadd.f32 %v2632_v49, %v7992_v17  ;;  %v6583_v53 = vadd.f32 %v3084_v28, %v7996_v18  ;;  %v2634_v2 = vpop.f32.mrb[18].mxu0  ;;  %v3086_v40 = vpop.f32.mrb[18].mxu1  ;;  %4857 = vmatprep.mubr.bf16.mxu0 %v8232_v31  ;;  %5083 = vmatprep.mubr.bf16.mxu1 %v8232_v31  ;;  %v6469_v32 = vcombine.high %v8251_v58, %v8253_v22  ;;  %v8279_v20 = vld [vmem:[#allocation7 + $0x668] sm:$0xff] }
 0x261   : > { %v6552_v39 = vadd.f32 %v2634_v2, %v7984_v15  ;;  %v6584_v1 = vadd.f32 %v3086_v40, %v7988_v16  ;;  %v2636_v30 = vpop.f32.mrb[19].mxu0  ;;  %v3088_v12 = vpop.f32.mrb[19].mxu1  ;;  %4858 = vmatmul.mubr.bf16.gmra.mrb[44].mxu0 %v8220_v33  ;;  %5084 = vmatmul.mubr.bf16.gmra.mrb[44].mxu1 %v8220_v33  ;;  %v3153_v49 = vmax.f32 %v6550_v42, 0.0  ;;  %v3155_v28 = vmax.f32 %v6582_v43, 0.0 }
 0x262   : > { %v6553_v0 = vadd.f32 %v2636_v30, %v7992_v17  ;;  %v6585_v19 = vadd.f32 %v3088_v12, %v7996_v18  ;;  %4921 = vmatpush1.bf16.msra.mxu0 %v6444_v25  ;;  %5147 = vmatpush1.bf16.msra.mxu1 %v6446_v54  ;;  %v3154_v4 = vmax.f32 %v6551_v27, 0.0  ;;  %v3156_v5 = vmax.f32 %v6583_v53, 0.0  ;;  %v8284_v25 = vld [vmem:[#allocation7 + $0x680] sm:$0xff] }
 0x263   : > { %v3157_v2 = vmax.f32 %v6552_v39, 0.0  ;;  %v3159_v40 = vmax.f32 %v6584_v1, 0.0  ;;  %4922 = vmatprep.subr.bf16.mxu0 %v6453_v38  ;;  %5148 = vmatprep.subr.bf16.mxu1 %v6455_v62  ;;  %v8286_v54 = vld [vmem:[#allocation7 + $0x6a0] sm:$0xff]  ;;  %v6468_v42 = vcombine.low %v8251_v58, %v8253_v22  ;;  %v6470_v43 = vcombine.low %v8277_v8, %v8279_v20  ;;  %v8305_v1 = vld [vmem:[#allocation7 + $0x688] sm:$0xff] }
 0x264   : > { %v3158_v3 = vmax.f32 %v6553_v0, 0.0  ;;  %v3160_v7 = vmax.f32 %v6585_v19, 0.0  ;;  %v6471_v39 = vcombine.high %v8277_v8, %v8279_v20  ;;  %v8307_v58 = vld [vmem:[#allocation7 + $0x6a8] sm:$0xff]  ;;  %v6477_v45 = vcombine.high %v8284_v25, %v8286_v54 }
 0x265   : > { %v8288_v30 = vpack.c.bf16 %v3157_v2, %v3153_v49  ;;  %v8290_v12 = vpack.c.bf16 %v3159_v40, %v3155_v28  ;;  %v6476_v20 = vcombine.low %v8284_v25, %v8286_v54  ;;  %v6478_v40 = vcombine.low %v8305_v1, %v8307_v58  ;;  %v3450_v25 = vld [vmem:[#allocation7 + $0x748] sm:$0xff] }
 0x266   : > { %v8296_v38 = vpack.c.bf16 %v3158_v3, %v3154_v4  ;;  %v8298_v62 = vpack.c.bf16 %v3160_v7, %v3156_v5  ;;  %v2640_v27 = vpop.f32.mrb[20].mxu0  ;;  %v3092_v53 = vpop.f32.mrb[20].mxu1  ;;  %4923 = vmatpush1.bf16.msra.mxu0 %v6452_v48  ;;  %5149 = vmatpush1.bf16.msra.mxu1 %v6454_v52  ;;  %v6479_v3 = vcombine.high %v8305_v1, %v8307_v58  ;;  %v8335_v7 = vld [vmem:[#allocation7 + $0x6c0] sm:$0xff]  ;;  %v3454_v54 = vld [vmem:[#allocation7 + $0x768] sm:$0xff] }
 0x267   : > { %v6554_v22 = vadd.f32 %v2640_v27, %v7984_v15  ;;  %v6586_v0 = vadd.f32 %v3092_v53, %v7988_v16  ;;  %v2642_v19 = vpop.f32.mrb[21].mxu0  ;;  %v3094_v49 = vpop.f32.mrb[21].mxu1  ;;  %4924 = vmatprep.subr.bf16.mxu0 %v6461_v36  ;;  %5150 = vmatprep.subr.bf16.mxu1 %v6463_v63  ;;  %v8337_v27 = vld [vmem:[#allocation7 + $0x6e0] sm:$0xff] }
 0x268   : > { %v6555_v51 = vadd.f32 %v2642_v19, %v7992_v17  ;;  %v6587_v48 = vadd.f32 %v3094_v49, %v7996_v18  ;;  %v2644_v52 = vpop.f32.mrb[22].mxu0  ;;  %v3096_v8 = vpop.f32.mrb[22].mxu1  ;;  %4867 = vmatprep.mubr.bf16.mxu0 %v8296_v38  ;;  %5093 = vmatprep.mubr.bf16.mxu1 %v8296_v38  ;;  %v6484_v58 = vcombine.low %v8335_v7, %v8337_v27 }
 0x269   : > { %v6556_v28 = vadd.f32 %v2644_v52, %v7984_v15  ;;  %v6588_v36 = vadd.f32 %v3096_v8, %v7988_v16  ;;  %v2646_v63 = vpop.f32.mrb[23].mxu0  ;;  %v3098_v2 = vpop.f32.mrb[23].mxu1  ;;  %4868 = vmatmul.mubr.bf16.gmra.mrb[48].mxu0 %v8288_v30  ;;  %5094 = vmatmul.mubr.bf16.gmra.mrb[48].mxu1 %v8288_v30  ;;  %v3161_v53 = vmax.f32 %v6554_v22, 0.0  ;;  %v3163_v19 = vmax.f32 %v6586_v0, 0.0  ;;  %v8339_v8 = vld [vmem:[#allocation7 + $0x6c8] sm:$0xff] }
 0x26a   : > { %v6557_v4 = vadd.f32 %v2646_v63, %v7992_v17  ;;  %v6589_v5 = vadd.f32 %v3098_v2, %v7996_v18  ;;  %4925 = vmatpush1.bf16.msra.mxu0 %v6460_v37  ;;  %5151 = vmatpush1.bf16.msra.mxu1 %v6462_v35  ;;  %v3162_v50 = vmax.f32 %v6555_v51, 0.0  ;;  %v3164_v59 = vmax.f32 %v6587_v48, 0.0 }
 0x26b   : > { %v3165_v49 = vmax.f32 %v6556_v28, 0.0  ;;  %v3167_v52 = vmax.f32 %v6588_v36, 0.0  ;;  %4926 = vmatprep.subr.bf16.mxu0 %v6469_v32  ;;  %5152 = vmatprep.subr.bf16.mxu1 %v6471_v39  ;;  %v6485_v22 = vcombine.high %v8335_v7, %v8337_v27  ;;  %v8351_v32 = vld [vmem:[#allocation7 + $0x700] sm:$0xff]  ;;  %v6486_v36 = vcombine.low %v8339_v8, %v8341_v47  ;;  %v8365_v27 = vld [vmem:[#allocation7 + $0x708] sm:$0xff] }
 0x26c   : > { %v3166_v34 = vmax.f32 %v6557_v4, 0.0  ;;  %v3168_v37 = vmax.f32 %v6589_v5, 0.0  ;;  %v8353_v39 = vld [vmem:[#allocation7 + $0x720] sm:$0xff]  ;;  %v6487_v7 = vcombine.high %v8339_v8, %v8341_v47 }
 0x26d   : > { %v8343_v35 = vpack.c.bf16 %v3165_v49, %v3161_v53  ;;  %v8345_v1 = vpack.c.bf16 %v3167_v52, %v3163_v19  ;;  %v8367_v53 = vld [vmem:[#allocation7 + $0x728] sm:$0xff] }
 0x26e   : > { %v8355_v0 = vpack.c.bf16 %v3166_v34, %v3162_v50  ;;  %v8357_v51 = vpack.c.bf16 %v3168_v37, %v3164_v59  ;;  %v2650_v48 = vpop.f32.mrb[24].mxu0  ;;  %v3102_v28 = vpop.f32.mrb[24].mxu1  ;;  %4927 = vmatpush1.bf16.msra.mxu0 %v6468_v42  ;;  %5153 = vmatpush1.bf16.msra.mxu1 %v6470_v43  ;;  %v6492_v50 = vcombine.low %v8351_v32, %v8353_v39 }
 0x26f   : > { %v6558_v63 = vadd.f32 %v2650_v48, %v7984_v15  ;;  %v6590_v2 = vadd.f32 %v3102_v28, %v7988_v16  ;;  %v2652_v4 = vpop.f32.mrb[25].mxu0  ;;  %v3104_v5 = vpop.f32.mrb[25].mxu1  ;;  %4928 = vmatprep.subr.bf16.mxu0 %v6477_v45  ;;  %5154 = vmatprep.subr.bf16.mxu1 %v6479_v3  ;;  %v6493_v45 = vcombine.high %v8351_v32, %v8353_v39  ;;  %v8388_v48 = vld [vmem:[#allocation7 + $0x740] sm:$0xff] }
 0x270   : > { %v6559_v42 = vadd.f32 %v2652_v4, %v7992_v17  ;;  %v6591_v43 = vadd.f32 %v3104_v5, %v7996_v18  ;;  %v2654_v19 = vpop.f32.mrb[26].mxu0  ;;  %v3106_v49 = vpop.f32.mrb[26].mxu1  ;;  %4877 = vmatprep.mubr.bf16.mxu0 %v8355_v0  ;;  %5103 = vmatprep.mubr.bf16.mxu1 %v8355_v0  ;;  %v6495_v37 = vcombine.high %v8365_v27, %v8367_v53  ;;  %v8390_v28 = vld [vmem:[#allocation7 + $0x760] sm:$0xff] }
 0x271   : > { %v6560_v3 = vadd.f32 %v2654_v19, %v7984_v15  ;;  %v6592_v52 = vadd.f32 %v3106_v49, %v7988_v16  ;;  %v2656_v8 = vpop.f32.mrb[27].mxu0  ;;  %v3108_v47 = vpop.f32.mrb[27].mxu1  ;;  %4878 = vmatmul.mubr.bf16.gmra.mrb[52].mxu0 %v8343_v35  ;;  %5104 = vmatmul.mubr.bf16.gmra.mrb[52].mxu1 %v8343_v35  ;;  %v3169_v4 = vmax.f32 %v6558_v63, 0.0  ;;  %v3171_v5 = vmax.f32 %v6590_v2, 0.0 }
 0x272   : > { %v6561_v59 = vadd.f32 %v2656_v8, %v7992_v17  ;;  %v6593_v34 = vadd.f32 %v3108_v47, %v7996_v18  ;;  %4929 = vmatpush1.bf16.msra.mxu0 %v6476_v20  ;;  %5155 = vmatpush1.bf16.msra.mxu1 %v6478_v40  ;;  %v3170_v39 = vmax.f32 %v6559_v42, 0.0  ;;  %v3172_v49 = vmax.f32 %v6591_v43, 0.0 }
 0x273   : > { %v3173_v19 = vmax.f32 %v6560_v3, 0.0  ;;  %v3175_v32 = vmax.f32 %v6592_v52, 0.0  ;;  %4930 = vmatprep.subr.bf16.mxu0 %v6485_v22  ;;  %5156 = vmatprep.subr.bf16.mxu1 %v6487_v7  ;;  %v6494_v14 = vcombine.low %v8365_v27, %v8367_v53  ;;  %v6501_v63 = vcombine.high %v8388_v48, %v8390_v28  ;;  %v8406_v3 = vld [vmem:[#allocation7 + $0x780] sm:$0xff] }
 0x274   : > { %v3174_v8 = vmax.f32 %v6561_v59, 0.0  ;;  %v3176_v47 = vmax.f32 %v6593_v34, 0.0  ;;  %v6500_v43 = vcombine.low %v8388_v48, %v8390_v28  ;;  %v8408_v52 = vld [vmem:[#allocation7 + $0x7a0] sm:$0xff] }
 0x275   : > { %v8392_v20 = vpack.c.bf16 %v3173_v19, %v3169_v4  ;;  %v8394_v40 = vpack.c.bf16 %v3175_v32, %v3171_v5  ;;  %v6503_v4 = vcombine.high %v3450_v25, %v3454_v54  ;;  %v3458_v5 = vld [vmem:[#allocation7 + $0x788] sm:$0xff]  ;;  %v6502_v32 = vcombine.low %v3450_v25, %v3454_v54 }
 0x276   : > { %v8400_v2 = vpack.c.bf16 %v3174_v8, %v3170_v39  ;;  %v8402_v22 = vpack.c.bf16 %v3176_v47, %v3172_v49  ;;  %v2660_v7 = vpop.f32.mrb[28].mxu0  ;;  %v3112_v42 = vpop.f32.mrb[28].mxu1  ;;  %4931 = vmatpush1.bf16.msra.mxu0 %v6484_v58  ;;  %5157 = vmatpush1.bf16.msra.mxu1 %v6486_v36  ;;  %v3462_v19 = vld [vmem:[#allocation7 + $0x7a8] sm:$0xff]  ;;  %v6509_v8 = vcombine.high %v8406_v3, %v8408_v52 }
 0x277   : > { %v6562_v27 = vadd.f32 %v2660_v7, %v7984_v15  ;;  %v6594_v53 = vadd.f32 %v3112_v42, %v7988_v16  ;;  %v2662_v59 = vpop.f32.mrb[29].mxu0  ;;  %v3114_v34 = vpop.f32.mrb[29].mxu1  ;;  %4932 = vmatprep.subr.bf16.mxu0 %v6493_v45  ;;  %5158 = vmatprep.subr.bf16.mxu1 %v6495_v37  ;;  %v6511_v25 = vcombine.high %v3458_v5, %v3462_v19 }
 0x278   : > { %v6563_v58 = vadd.f32 %v2662_v59, %v7992_v17  ;;  %v6595_v36 = vadd.f32 %v3114_v34, %v7996_v18  ;;  %v2664_v48 = vpop.f32.mrb[30].mxu0  ;;  %v3116_v28 = vpop.f32.mrb[30].mxu1  ;;  %4887 = vmatprep.mubr.bf16.mxu0 %v8400_v2  ;;  %5113 = vmatprep.mubr.bf16.mxu1 %v8400_v2 }
 0x279   : > { %v6564_v39 = vadd.f32 %v2664_v48, %v7984_v15  ;;  %v6596_v49 = vadd.f32 %v3116_v28, %v7988_v16  ;;  %v2666_v45 = vpop.f32.mrb[31].mxu0  ;;  %v3118_v37 = vpop.f32.mrb[31].mxu1  ;;  %4888 = vmatmul.mubr.bf16.gmra.mrb[56].mxu0 %v8392_v20  ;;  %5114 = vmatmul.mubr.bf16.gmra.mrb[56].mxu1 %v8392_v20  ;;  %v3177_v54 = vmax.f32 %v6562_v27, 0.0  ;;  %v3179_v15 = vmax.f32 %v6594_v53, 0.0 }
 0x27a   : > { %v6565_v47 = vadd.f32 %v2666_v45, %v7992_v17  ;;  %v6597_v7 = vadd.f32 %v3118_v37, %v7996_v18  ;;  %4933 = vmatpush1.bf16.msra.mxu0 %v6492_v50  ;;  %5159 = vmatpush1.bf16.msra.mxu1 %v6494_v14  ;;  %v3178_v59 = vmax.f32 %v6563_v58, 0.0  ;;  %v3180_v34 = vmax.f32 %v6595_v36, 0.0  ;;  %v3469_v17 = vld [vmem:[#allocation7 + $0x7e0] sm:$0xff]  ;;  %v3466_v18 = vld [vmem:[#allocation7 + $0x7c8] sm:$0xff]  ;;  %v3219_v36 = vld [vmem:[#allocation7 + $0x10] sm:$0xff] }
 0x27b   : > { %v3181_v42 = vmax.f32 %v6564_v39, 0.0  ;;  %v3183_v16 = vmax.f32 %v6596_v49, 0.0  ;;  %4934 = vmatprep.subr.bf16.mxu0 %v6501_v63  ;;  %5160 = vmatprep.subr.bf16.mxu1 %v6503_v4  ;;  %v3470_v50 = vld [vmem:[#allocation7 + $0x7e8] sm:$0xff]  ;;  %v6508_v63 = vcombine.low %v8406_v3, %v8408_v52  ;;  %v6510_v53 = vcombine.low %v3458_v5, %v3462_v19  ;;  %v3223_v39 = vld [vmem:[#allocation7 + $0x30] sm:$0xff]  ;;  %v3228_v37 = vld [vmem:[#allocation7 + $0x58] sm:$0xff] }
 0x27c   : > { %v3182_v48 = vmax.f32 %v6565_v47, 0.0  ;;  %v3184_v28 = vmax.f32 %v6597_v7, 0.0  ;;  %v6517_v4 = vcombine.high %v3465_v13, %v3469_v17  ;;  %v6519_v58 = vcombine.high %v3466_v18, %v3470_v50  ;;  %v3227_v49 = vld [vmem:[#allocation7 + $0x50] sm:$0xff] }
 0x27d   : > { %v8424_v11 = vpack.c.bf16 %v3181_v42, %v3177_v54  ;;  %v8426_v10 = vpack.c.bf16 %v3183_v16, %v3179_v15  ;;  %v6516_v3 = vcombine.low %v3465_v13, %v3469_v17  ;;  %v6518_v52 = vcombine.low %v3466_v18, %v3470_v50  ;;  %v3231_v45 = vld [vmem:[#allocation7 + $0x70] sm:$0xff]  ;;  %v3236_v42 = vld [vmem:[#allocation7 + $0x98] sm:$0xff] }
 0x27e   : > { %v8428_v14 = vpack.c.bf16 %v3182_v48, %v3178_v59  ;;  %v8430_v27 = vpack.c.bf16 %v3184_v28, %v3180_v34  ;;  %4935 = vmatpush1.bf16.msra.mxu0 %v6500_v43  ;;  %5161 = vmatpush1.bf16.msra.mxu1 %v6502_v32  ;;  %v3220_v43 = vld [vmem:[#allocation7 + $0x18] sm:$0xff]  ;;  %v6273_v5 = vcombine.high %v3219_v36, %v3223_v39  ;;  %v3235_v54 = vld [vmem:[#allocation7 + $0x90] sm:$0xff] }
 0x27f   : > { %4936 = vmatprep.subr.bf16.mxu0 %v6509_v8  ;;  %5162 = vmatprep.subr.bf16.mxu1 %v6511_v25  ;;  %v3224_v32 = vld [vmem:[#allocation7 + $0x38] sm:$0xff]  ;;  %v6272_v47 = vcombine.low %v3219_v36, %v3223_v39  ;;  %v6281_v25 = vcombine.high %v3227_v49, %v3231_v45  ;;  %v3239_v15 = vld [vmem:[#allocation7 + $0xb0] sm:$0xff]  ;;  %v6280_v59 = vcombine.low %v3227_v49, %v3231_v45 }
 0x280   : > { %4897 = vmatprep.mubr.bf16.mxu0 %v8428_v14  ;;  %5123 = vmatprep.mubr.bf16.mxu1 %v8428_v14  ;;  %v6275_v19 = vcombine.high %v3220_v43, %v3224_v32  ;;  %v3232_v8 = vld [vmem:[#allocation7 + $0x78] sm:$0xff]  ;;  %v6274_v7 = vcombine.low %v3220_v43, %v3224_v32  ;;  %v6289_v48 = vcombine.high %v3235_v54, %v3239_v15  ;;  %v3243_v17 = vld [vmem:[#allocation7 + $0xd0] sm:$0xff] }
 0x281   : > { %4898 = vmatmul.mubr.bf16.gmra.mrb[60].mxu0 %v8424_v11  ;;  %5124 = vmatmul.mubr.bf16.gmra.mrb[60].mxu1 %v8424_v11  ;;  %v6283_v13 = vcombine.high %v3228_v37, %v3232_v8  ;;  %v3240_v16 = vld [vmem:[#allocation7 + $0xb8] sm:$0xff]  ;;  %v6282_v34 = vcombine.low %v3228_v37, %v3232_v8  ;;  %v3247_v18 = vld [vmem:[#allocation7 + $0xf0] sm:$0xff] }
 0x282   : > { %4937 = vmatpush1.bf16.msra.mxu0 %v6508_v63  ;;  %4940 = vmatprep.mubr.bf16.mxu0 %v8042_v61  ;;  %v6291_v28 = vcombine.high %v3236_v42, %v3240_v16  ;;  %v3244_v50 = vld [vmem:[#allocation7 + $0xd8] sm:$0xff]  ;;  %v3251_v39 = vld [vmem:[#allocation7 + $0x110] sm:$0xff] }
 0x283   : > { %5163 = vmatpush1.bf16.msra.mxu1 %v6510_v53  ;;  %5166 = vmatprep.mubr.bf16.mxu1 %v8042_v61  ;;  %v3248_v63 = vld [vmem:[#allocation7 + $0xf8] sm:$0xff]  ;;  %v6288_v53 = vcombine.low %v3235_v54, %v3239_v15  ;;  %v3255_v43 = vld [vmem:[#allocation7 + $0x130] sm:$0xff] }
 0x284   : > { %4938 = vmatprep.subr.bf16.mxu0 %v6517_v4  ;;  %5164 = vmatprep.subr.bf16.mxu1 %v6519_v58  ;;  %v6290_v4 = vcombine.low %v3236_v42, %v3240_v16  ;;  %v6297_v58 = vcombine.high %v3243_v17, %v3247_v18  ;;  %v6299_v36 = vcombine.high %v3244_v50, %v3248_v63  ;;  %v3252_v32 = vld [vmem:[#allocation7 + $0x118] sm:$0xff]  ;;  %v3259_v45 = vld [vmem:[#allocation7 + $0x150] sm:$0xff] }
 0x285   : > { %v3263_v37 = vld [vmem:[#allocation7 + $0x170] sm:$0xff]  ;;  %v3260_v8 = vld [vmem:[#allocation7 + $0x158] sm:$0xff] }
 0x286   : > { %4939 = vmatpush1.bf16.msra.mxu0 %v6516_v3  ;;  %v3256_v3 = vld [vmem:[#allocation7 + $0x138] sm:$0xff]  ;;  %v3267_v15 = vld [vmem:[#allocation7 + $0x190] sm:$0xff] }
 0x287   : > { %5165 = vmatpush1.bf16.msra.mxu1 %v6518_v52  ;;  %5247 = vmatprep.subr.bf16.mxu0 %v6273_v5  ;;  %v6296_v52 = vcombine.low %v3243_v17, %v3247_v18  ;;  %v6298_v5 = vcombine.low %v3244_v50, %v3248_v63  ;;  %v6307_v49 = vcombine.high %v3252_v32, %v3256_v3  ;;  %v3271_v42 = vld [vmem:[#allocation7 + $0x1b0] sm:$0xff]  ;;  %v3268_v16 = vld [vmem:[#allocation7 + $0x198] sm:$0xff] }
 0x288   : > { %5473 = vmatprep.subr.bf16.mxu1 %v6275_v19  ;;  %v6305_v19 = vcombine.high %v3251_v39, %v3255_v43  ;;  %v3275_v18 = vld [vmem:[#allocation7 + $0x1d0] sm:$0xff]  ;;  %v3276_v63 = vld [vmem:[#allocation7 + $0x1d8] sm:$0xff] }
 0x289   : > { %4941 = vmatmul.mubr.bf16.vlgmr.msra.gmra.mrb[32].mxu0 %v8034_v57  ;;  %v3279_v50 = vld [vmem:[#allocation7 + $0x1f0] sm:$0xff] }
 0x28a   : > { %5167 = vmatmul.mubr.bf16.vlgmr.msra.gmra.mrb[32].mxu1 %v8034_v57  ;;  %4950 = vmatprep.mubr.bf16.mxu0 %v8102_v29 }
 0x28b   : > { %5176 = vmatprep.mubr.bf16.mxu1 %v8102_v29  ;;  %5248 = vmatpush1.bf16.msra.mxu0 %v6272_v47  ;;  %v3264_v47 = vld [vmem:[#allocation7 + $0x178] sm:$0xff] }
 0x28c   : > { %5474 = vmatpush1.bf16.msra.mxu1 %v6274_v7  ;;  %5249 = vmatprep.subr.bf16.mxu0 %v6281_v25  ;;  %v6304_v7 = vcombine.low %v3251_v39, %v3255_v43  ;;  %v6306_v25 = vcombine.low %v3252_v32, %v3256_v3  ;;  %v6315_v54 = vcombine.high %v3260_v8, %v3264_v47  ;;  %v3283_v43 = vld [vmem:[#allocation7 + $0x210] sm:$0xff]  ;;  %v3284_v3 = vld [vmem:[#allocation7 + $0x218] sm:$0xff] }
 0x28d   : > { %5475 = vmatprep.subr.bf16.mxu1 %v6283_v13  ;;  %v6313_v13 = vcombine.high %v3259_v45, %v3263_v37  ;;  %v3287_v32 = vld [vmem:[#allocation7 + $0x230] sm:$0xff] }
 0x28f   : > { %5250 = vmatpush1.bf16.msra.mxu0 %v6280_v59  ;;  %v3272_v59 = vld [vmem:[#allocation7 + $0x1b8] sm:$0xff] }
 0x290   : > { %5476 = vmatpush1.bf16.msra.mxu1 %v6282_v34  ;;  %5251 = vmatprep.subr.bf16.mxu0 %v6289_v48  ;;  %v6312_v34 = vcombine.low %v3259_v45, %v3263_v37  ;;  %v6314_v48 = vcombine.low %v3260_v8, %v3264_v47  ;;  %v6323_v17 = vcombine.high %v3268_v16, %v3272_v59  ;;  %v3291_v37 = vld [vmem:[#allocation7 + $0x250] sm:$0xff]  ;;  %v3292_v47 = vld [vmem:[#allocation7 + $0x258] sm:$0xff] }
 0x291   : > { %4951 = vmatmul.mubr.bf16.gmra.mrb[36].mxu0 %v8090_v23  ;;  %5477 = vmatprep.subr.bf16.mxu1 %v6291_v28  ;;  %v6321_v28 = vcombine.high %v3267_v15, %v3271_v42  ;;  %v3295_v8 = vld [vmem:[#allocation7 + $0x270] sm:$0xff] }
 0x292   : > { %5177 = vmatmul.mubr.bf16.gmra.mrb[36].mxu1 %v8090_v23  ;;  %4960 = vmatprep.mubr.bf16.mxu0 %v8166_v46 }
 0x293   : > { %5186 = vmatprep.mubr.bf16.mxu1 %v8166_v46  ;;  %5252 = vmatpush1.bf16.msra.mxu0 %v6288_v53  ;;  %v3280_v53 = vld [vmem:[#allocation7 + $0x1f8] sm:$0xff] }
 0x294   : > { %5478 = vmatpush1.bf16.msra.mxu1 %v6290_v4  ;;  %5253 = vmatprep.subr.bf16.mxu0 %v6297_v58  ;;  %v6320_v4 = vcombine.low %v3267_v15, %v3271_v42  ;;  %v6322_v58 = vcombine.low %v3268_v16, %v3272_v59  ;;  %v6331_v39 = vcombine.high %v3276_v63, %v3280_v53  ;;  %v3299_v42 = vld [vmem:[#allocation7 + $0x290] sm:$0xff]  ;;  %v3300_v59 = vld [vmem:[#allocation7 + $0x298] sm:$0xff] }
 0x295   : > { %5479 = vmatprep.subr.bf16.mxu1 %v6299_v36  ;;  %v6329_v36 = vcombine.high %v3275_v18, %v3279_v50  ;;  %v3303_v16 = vld [vmem:[#allocation7 + $0x2b0] sm:$0xff] }
 0x297   : > { %5254 = vmatpush1.bf16.msra.mxu0 %v6296_v52  ;;  %v3288_v52 = vld [vmem:[#allocation7 + $0x238] sm:$0xff] }
 0x298   : > { %5480 = vmatpush1.bf16.msra.mxu1 %v6298_v5  ;;  %5255 = vmatprep.subr.bf16.mxu0 %v6305_v19  ;;  %v6328_v5 = vcombine.low %v3275_v18, %v3279_v50  ;;  %v6330_v19 = vcombine.low %v3276_v63, %v3280_v53  ;;  %v6339_v45 = vcombine.high %v3284_v3, %v3288_v52  ;;  %v3307_v50 = vld [vmem:[#allocation7 + $0x2d0] sm:$0xff]  ;;  %v3308_v53 = vld [vmem:[#allocation7 + $0x2d8] sm:$0xff] }
 0x299   : > { %4961 = vmatmul.mubr.bf16.gmra.mrb[40].mxu0 %v8158_v44  ;;  %5481 = vmatprep.subr.bf16.mxu1 %v6307_v49  ;;  %v6337_v49 = vcombine.high %v3283_v43, %v3287_v32  ;;  %v3311_v63 = vld [vmem:[#allocation7 + $0x2f0] sm:$0xff] }
 0x29a   : > { %5187 = vmatmul.mubr.bf16.gmra.mrb[40].mxu1 %v8158_v44  ;;  %4970 = vmatprep.mubr.bf16.mxu0 %v8234_v55 }
 0x29b   : > { %5196 = vmatprep.mubr.bf16.mxu1 %v8234_v55  ;;  %5256 = vmatpush1.bf16.msra.mxu0 %v6304_v7  ;;  %v3296_v7 = vld [vmem:[#allocation7 + $0x278] sm:$0xff] }
 0x29c   : > { %5482 = vmatpush1.bf16.msra.mxu1 %v6306_v25  ;;  %5257 = vmatprep.subr.bf16.mxu0 %v6313_v13  ;;  %v6336_v25 = vcombine.low %v3283_v43, %v3287_v32  ;;  %v6338_v13 = vcombine.low %v3284_v3, %v3288_v52  ;;  %v6347_v15 = vcombine.high %v3292_v47, %v3296_v7  ;;  %v3315_v32 = vld [vmem:[#allocation7 + $0x310] sm:$0xff]  ;;  %v3316_v52 = vld [vmem:[#allocation7 + $0x318] sm:$0xff] }
 0x29d   : > { %5483 = vmatprep.subr.bf16.mxu1 %v6315_v54  ;;  %v6345_v54 = vcombine.high %v3291_v37, %v3295_v8  ;;  %v3319_v3 = vld [vmem:[#allocation7 + $0x330] sm:$0xff] }
 0x29f   : > { %5258 = vmatpush1.bf16.msra.mxu0 %v6312_v34  ;;  %v3304_v34 = vld [vmem:[#allocation7 + $0x2b8] sm:$0xff] }
 0x2a0   : > { %5484 = vmatpush1.bf16.msra.mxu1 %v6314_v48  ;;  %5259 = vmatprep.subr.bf16.mxu0 %v6321_v28  ;;  %v6344_v48 = vcombine.low %v3291_v37, %v3295_v8  ;;  %v6346_v28 = vcombine.low %v3292_v47, %v3296_v7  ;;  %v6355_v18 = vcombine.high %v3300_v59, %v3304_v34  ;;  %v3323_v8 = vld [vmem:[#allocation7 + $0x350] sm:$0xff]  ;;  %v3324_v7 = vld [vmem:[#allocation7 + $0x358] sm:$0xff] }
 0x2a1   : > { %4971 = vmatmul.mubr.bf16.gmra.mrb[44].mxu0 %v8222_v21  ;;  %5485 = vmatprep.subr.bf16.mxu1 %v6323_v17  ;;  %v6353_v17 = vcombine.high %v3299_v42, %v3303_v16  ;;  %v3327_v47 = vld [vmem:[#allocation7 + $0x370] sm:$0xff] }
 0x2a2   : > { %5197 = vmatmul.mubr.bf16.gmra.mrb[44].mxu1 %v8222_v21  ;;  %4980 = vmatprep.mubr.bf16.mxu0 %v8298_v62 }
 0x2a3   : > { %5206 = vmatprep.mubr.bf16.mxu1 %v8298_v62  ;;  %5260 = vmatpush1.bf16.msra.mxu0 %v6320_v4  ;;  %v3312_v4 = vld [vmem:[#allocation7 + $0x2f8] sm:$0xff] }
 0x2a4   : > { %5486 = vmatpush1.bf16.msra.mxu1 %v6322_v58  ;;  %5261 = vmatprep.subr.bf16.mxu0 %v6329_v36  ;;  %v6352_v58 = vcombine.low %v3299_v42, %v3303_v16  ;;  %v6354_v36 = vcombine.low %v3300_v59, %v3304_v34  ;;  %v6363_v43 = vcombine.high %v3308_v53, %v3312_v4  ;;  %v3331_v16 = vld [vmem:[#allocation7 + $0x390] sm:$0xff]  ;;  %v3332_v34 = vld [vmem:[#allocation7 + $0x398] sm:$0xff] }
 0x2a5   : > { %5487 = vmatprep.subr.bf16.mxu1 %v6331_v39  ;;  %v6361_v39 = vcombine.high %v3307_v50, %v3311_v63  ;;  %v3335_v59 = vld [vmem:[#allocation7 + $0x3b0] sm:$0xff] }
 0x2a7   : > { %5262 = vmatpush1.bf16.msra.mxu0 %v6328_v5  ;;  %v3320_v5 = vld [vmem:[#allocation7 + $0x338] sm:$0xff] }
 0x2a8   : > { %5488 = vmatpush1.bf16.msra.mxu1 %v6330_v19  ;;  %5263 = vmatprep.subr.bf16.mxu0 %v6337_v49  ;;  %v6360_v19 = vcombine.low %v3307_v50, %v3311_v63  ;;  %v6362_v49 = vcombine.low %v3308_v53, %v3312_v4  ;;  %v6371_v37 = vcombine.high %v3316_v52, %v3320_v5  ;;  %v3339_v63 = vld [vmem:[#allocation7 + $0x3d0] sm:$0xff]  ;;  %v3340_v4 = vld [vmem:[#allocation7 + $0x3d8] sm:$0xff] }
 0x2a9   : > { %4981 = vmatmul.mubr.bf16.gmra.mrb[48].mxu0 %v8290_v12  ;;  %5489 = vmatprep.subr.bf16.mxu1 %v6339_v45  ;;  %v6369_v45 = vcombine.high %v3315_v32, %v3319_v3  ;;  %v3343_v53 = vld [vmem:[#allocation7 + $0x3f0] sm:$0xff] }
 0x2aa   : > { %5207 = vmatmul.mubr.bf16.gmra.mrb[48].mxu1 %v8290_v12  ;;  %4990 = vmatprep.mubr.bf16.mxu0 %v8357_v51 }
 0x2ab   : > { %5216 = vmatprep.mubr.bf16.mxu1 %v8357_v51  ;;  %5264 = vmatpush1.bf16.msra.mxu0 %v6336_v25  ;;  %v3328_v25 = vld [vmem:[#allocation7 + $0x378] sm:$0xff] }
 0x2ac   : > { %5490 = vmatpush1.bf16.msra.mxu1 %v6338_v13  ;;  %5265 = vmatprep.subr.bf16.mxu0 %v6345_v54  ;;  %v6368_v13 = vcombine.low %v3315_v32, %v3319_v3  ;;  %v6370_v54 = vcombine.low %v3316_v52, %v3320_v5  ;;  %v6379_v42 = vcombine.high %v3324_v7, %v3328_v25  ;;  %v3347_v3 = vld [vmem:[#allocation7 + $0x410] sm:$0xff]  ;;  %v3348_v5 = vld [vmem:[#allocation7 + $0x418] sm:$0xff] }
 0x2ad   : > { %5491 = vmatprep.subr.bf16.mxu1 %v6347_v15  ;;  %v6377_v15 = vcombine.high %v3323_v8, %v3327_v47  ;;  %v3351_v52 = vld [vmem:[#allocation7 + $0x430] sm:$0xff] }
 0x2af   : > { %5266 = vmatpush1.bf16.msra.mxu0 %v6344_v48  ;;  %v3336_v48 = vld [vmem:[#allocation7 + $0x3b8] sm:$0xff] }
 0x2b0   : > { %5492 = vmatpush1.bf16.msra.mxu1 %v6346_v28  ;;  %5267 = vmatprep.subr.bf16.mxu0 %v6353_v17  ;;  %v6376_v28 = vcombine.low %v3323_v8, %v3327_v47  ;;  %v6378_v17 = vcombine.low %v3324_v7, %v3328_v25  ;;  %v6387_v50 = vcombine.high %v3332_v34, %v3336_v48  ;;  %v3355_v47 = vld [vmem:[#allocation7 + $0x450] sm:$0xff]  ;;  %v3356_v25 = vld [vmem:[#allocation7 + $0x458] sm:$0xff] }
 0x2b1   : > { %4991 = vmatmul.mubr.bf16.gmra.mrb[52].mxu0 %v8345_v1  ;;  %5493 = vmatprep.subr.bf16.mxu1 %v6355_v18  ;;  %v6385_v18 = vcombine.high %v3331_v16, %v3335_v59  ;;  %v3359_v7 = vld [vmem:[#allocation7 + $0x470] sm:$0xff] }
 0x2b2   : > { %5217 = vmatmul.mubr.bf16.gmra.mrb[52].mxu1 %v8345_v1  ;;  %5000 = vmatprep.mubr.bf16.mxu0 %v8402_v22 }
 0x2b3   : > { %5226 = vmatprep.mubr.bf16.mxu1 %v8402_v22  ;;  %5268 = vmatpush1.bf16.msra.mxu0 %v6352_v58  ;;  %v3344_v58 = vld [vmem:[#allocation7 + $0x3f8] sm:$0xff] }
 0x2b4   : > { %5494 = vmatpush1.bf16.msra.mxu1 %v6354_v36  ;;  %5269 = vmatprep.subr.bf16.mxu0 %v6361_v39  ;;  %v6384_v36 = vcombine.low %v3331_v16, %v3335_v59  ;;  %v6386_v39 = vcombine.low %v3332_v34, %v3336_v48  ;;  %v6395_v32 = vcombine.high %v3340_v4, %v3344_v58  ;;  %v3363_v16 = vld [vmem:[#allocation7 + $0x490] sm:$0xff]  ;;  %v3364_v34 = vld [vmem:[#allocation7 + $0x498] sm:$0xff] }
 0x2b5   : > { %5495 = vmatprep.subr.bf16.mxu1 %v6363_v43  ;;  %v6393_v43 = vcombine.high %v3339_v63, %v3343_v53  ;;  %v3367_v59 = vld [vmem:[#allocation7 + $0x4b0] sm:$0xff]  ;;  %v3368_v48 = vld [vmem:[#allocation7 + $0x4b8] sm:$0xff] }
 0x2b7   : > { %5270 = vmatpush1.bf16.msra.mxu0 %v6360_v19  ;;  %v3352_v19 = vld [vmem:[#allocation7 + $0x438] sm:$0xff] }
 0x2b8   : > { %5496 = vmatpush1.bf16.msra.mxu1 %v6362_v49  ;;  %5271 = vmatprep.subr.bf16.mxu0 %v6369_v45  ;;  %v6392_v49 = vcombine.low %v3339_v63, %v3343_v53  ;;  %v6394_v45 = vcombine.low %v3340_v4, %v3344_v58  ;;  %v6403_v8 = vcombine.high %v3348_v5, %v3352_v19  ;;  %v3371_v63 = vld [vmem:[#allocation7 + $0x4d0] sm:$0xff]  ;;  %v3372_v4 = vld [vmem:[#allocation7 + $0x4d8] sm:$0xff] }
 0x2b9   : > { %5001 = vmatmul.mubr.bf16.gmra.mrb[56].mxu0 %v8394_v40  ;;  %5497 = vmatprep.subr.bf16.mxu1 %v6371_v37  ;;  %v6401_v37 = vcombine.high %v3347_v3, %v3351_v52  ;;  %v3375_v53 = vld [vmem:[#allocation7 + $0x4f0] sm:$0xff]  ;;  %v3376_v58 = vld [vmem:[#allocation7 + $0x4f8] sm:$0xff] }
 0x2ba   : > { %5227 = vmatmul.mubr.bf16.gmra.mrb[56].mxu1 %v8394_v40  ;;  %5010 = vmatprep.mubr.bf16.mxu0 %v8430_v27 }
 0x2bb   : > { %5236 = vmatprep.mubr.bf16.mxu1 %v8430_v27  ;;  %5272 = vmatpush1.bf16.msra.mxu0 %v6368_v13  ;;  %v3360_v13 = vld [vmem:[#allocation7 + $0x478] sm:$0xff] }
 0x2bc   : > { %5498 = vmatpush1.bf16.msra.mxu1 %v6370_v54  ;;  %5273 = vmatprep.subr.bf16.mxu0 %v6377_v15  ;;  %v6400_v54 = vcombine.low %v3347_v3, %v3351_v52  ;;  %v6402_v15 = vcombine.low %v3348_v5, %v3352_v19  ;;  %v3380_v3 = vld [vmem:[#allocation7 + $0x518] sm:$0xff]  ;;  %v6424_v5 = vcombine.low %v3371_v63, %v3375_v53 }
 0x2bd   : > { %5499 = vmatprep.subr.bf16.mxu1 %v6379_v42  ;;  %v6409_v42 = vcombine.high %v3355_v47, %v3359_v7  ;;  %v3384_v52 = vld [vmem:[#allocation7 + $0x538] sm:$0xff]  ;;  %v6426_v19 = vcombine.low %v3372_v4, %v3376_v58 }
 0x2bf   : > { %5274 = vmatpush1.bf16.msra.mxu0 %v6376_v28  ;;  %v6408_v28 = vcombine.low %v3355_v47, %v3359_v7  ;;  %v3388_v47 = vld [vmem:[#allocation7 + $0x558] sm:$0xff] }
 0x2c0   : > { %5500 = vmatpush1.bf16.msra.mxu1 %v6378_v17  ;;  %5275 = vmatprep.subr.bf16.mxu0 %v6385_v18  ;;  %v6410_v17 = vcombine.low %v3356_v25, %v3360_v13  ;;  %v6417_v18 = vcombine.high %v3363_v16, %v3367_v59  ;;  %v3392_v7 = vld [vmem:[#allocation7 + $0x578] sm:$0xff] }
 0x2c1   : > { %5011 = vmatmul.mubr.bf16.gmra.mrb[60].mxu0 %v8426_v10  ;;  %5501 = vmatprep.subr.bf16.mxu1 %v6387_v50  ;;  %v6419_v50 = vcombine.high %v3364_v34, %v3368_v48 }
 0x2c2   : > { %5237 = vmatmul.mubr.bf16.gmra.mrb[60].mxu1 %v8426_v10  ;;  %5279 = vmatprep.mubr.bf16.mxu0 %v8040_v60 }
 0x2c3   : > { %5276 = vmatpush1.bf16.msra.mxu0 %v6384_v36  ;;  %5505 = vmatprep.mubr.bf16.mxu1 %v8040_v60  ;;  %v6411_v60 = vcombine.high %v3356_v25, %v3360_v13  ;;  %v6418_v36 = vcombine.low %v3364_v34, %v3368_v48  ;;  %v6434_v25 = vcombine.low %v3380_v3, %v3384_v52 }
 0x2c4   : > { %5502 = vmatpush1.bf16.msra.mxu1 %v6386_v39  ;;  %5277 = vmatprep.subr.bf16.mxu0 %v6393_v43  ;;  %v6425_v39 = vcombine.high %v3371_v63, %v3375_v53  ;;  %v3379_v43 = vld [vmem:[#allocation7 + $0x510] sm:$0xff] }
 0x2c5   : > { %5503 = vmatprep.subr.bf16.mxu1 %v6395_v32  ;;  %v3383_v32 = vld [vmem:[#allocation7 + $0x530] sm:$0xff] }
 0x2c7   : > { %5278 = vmatpush1.bf16.msra.mxu0 %v6392_v49  ;;  %v6433_v49 = vcombine.high %v3379_v43, %v3383_v32 }
 0x2c8   : > { %5504 = vmatpush1.bf16.msra.mxu1 %v6394_v45  ;;  %5360 = vmatprep.subr.bf16.mxu0 %v6401_v37  ;;  %v6435_v45 = vcombine.high %v3380_v3, %v3384_v52  ;;  %v3387_v37 = vld [vmem:[#allocation7 + $0x550] sm:$0xff] }
 0x2c9   : > { %5586 = vmatprep.subr.bf16.mxu1 %v6403_v8  ;;  %v3391_v8 = vld [vmem:[#allocation7 + $0x570] sm:$0xff] }
 0x2ca   : > { %5280 = vmatmul.mubr.bf16.vlgmr.msra.gmra.mrb[64].mxu0 %v8032_v56  ;;  %v6441_v13 = vcombine.high %v3387_v37, %v3391_v8  ;;  %v3419_v3 = vld [vmem:[#allocation7 + $0x650] sm:$0xff] }
 0x2cb   : > { %5506 = vmatmul.mubr.bf16.vlgmr.msra.gmra.mrb[64].mxu1 %v8032_v56  ;;  %5289 = vmatprep.mubr.bf16.mxu0 %v8100_v24  ;;  %v6416_v56 = vcombine.low %v3363_v16, %v3367_v59  ;;  %v6440_v16 = vcombine.low %v3387_v37, %v3391_v8  ;;  %v6442_v59 = vcombine.low %v3388_v47, %v3392_v7  ;;  %v3423_v52 = vld [vmem:[#allocation7 + $0x670] sm:$0xff] }
 0x2cc   : > { %5361 = vmatpush1.bf16.msra.mxu0 %v6400_v54  ;;  %5515 = vmatprep.mubr.bf16.mxu1 %v8100_v24  ;;  %v6427_v24 = vcombine.high %v3372_v4, %v3376_v58  ;;  %v3395_v54 = vld [vmem:[#allocation7 + $0x590] sm:$0xff] }
 0x2cd   : > { %5587 = vmatpush1.bf16.msra.mxu1 %v6402_v15  ;;  %5362 = vmatprep.subr.bf16.mxu0 %v6409_v42  ;;  %v3399_v15 = vld [vmem:[#allocation7 + $0x5b0] sm:$0xff]  ;;  %v3396_v42 = vld [vmem:[#allocation7 + $0x598] sm:$0xff] }
 0x2ce   : > { %5588 = vmatprep.subr.bf16.mxu1 %v6411_v60  ;;  %v3400_v60 = vld [vmem:[#allocation7 + $0x5b8] sm:$0xff]  ;;  %v6449_v34 = vcombine.high %v3395_v54, %v3399_v15  ;;  %v3411_v4 = vld [vmem:[#allocation7 + $0x610] sm:$0xff] }
 0x2cf   : > { %v6451_v48 = vcombine.high %v3396_v42, %v3400_v60  ;;  %v6450_v63 = vcombine.low %v3396_v42, %v3400_v60  ;;  %v3415_v58 = vld [vmem:[#allocation7 + $0x630] sm:$0xff]  ;;  %v3436_v42 = vld [vmem:[#allocation7 + $0x6d8] sm:$0xff] }
 0x2d0   : > { %5363 = vmatpush1.bf16.msra.mxu0 %v6408_v28  ;;  %v3403_v28 = vld [vmem:[#allocation7 + $0x5d0] sm:$0xff]  ;;  %v3440_v60 = vld [vmem:[#allocation7 + $0x6f8] sm:$0xff] }
 0x2d1   : > { %5589 = vmatpush1.bf16.msra.mxu1 %v6410_v17  ;;  %5364 = vmatprep.subr.bf16.mxu0 %v6417_v18  ;;  %v3407_v17 = vld [vmem:[#allocation7 + $0x5f0] sm:$0xff]  ;;  %v3404_v18 = vld [vmem:[#allocation7 + $0x5d8] sm:$0xff] }
 0x2d2   : > { %5290 = vmatmul.mubr.bf16.gmra.mrb[68].mxu0 %v8088_v6  ;;  %5590 = vmatprep.subr.bf16.mxu1 %v6419_v50  ;;  %v3408_v50 = vld [vmem:[#allocation7 + $0x5f8] sm:$0xff]  ;;  %v6457_v53 = vcombine.high %v3403_v28, %v3407_v17  ;;  %v3427_v37 = vld [vmem:[#allocation7 + $0x690] sm:$0xff] }
 0x2d3   : > { %5516 = vmatmul.mubr.bf16.gmra.mrb[68].mxu1 %v8088_v6  ;;  %5299 = vmatprep.mubr.bf16.mxu0 %v8164_v26  ;;  %v6432_v6 = vcombine.low %v3379_v43, %v3383_v32  ;;  %v6465_v43 = vcombine.high %v3411_v4, %v3415_v58  ;;  %v3431_v8 = vld [vmem:[#allocation7 + $0x6b0] sm:$0xff] }
 0x2d4   : > { %5365 = vmatpush1.bf16.msra.mxu0 %v6416_v56  ;;  %5525 = vmatprep.mubr.bf16.mxu1 %v8164_v26  ;;  %v6443_v26 = vcombine.high %v3388_v47, %v3392_v7  ;;  %v3412_v56 = vld [vmem:[#allocation7 + $0x618] sm:$0xff] }
 0x2d5   : > { %5591 = vmatpush1.bf16.msra.mxu1 %v6418_v36  ;;  %5366 = vmatprep.subr.bf16.mxu0 %v6425_v39  ;;  %v3416_v36 = vld [vmem:[#allocation7 + $0x638] sm:$0xff]  ;;  %v6456_v39 = vcombine.low %v3403_v28, %v3407_v17 }
 0x2d6   : > { %5592 = vmatprep.subr.bf16.mxu1 %v6427_v24  ;;  %v6458_v24 = vcombine.low %v3404_v18, %v3408_v50  ;;  %v6467_v32 = vcombine.high %v3412_v56, %v3416_v36  ;;  %v3428_v47 = vld [vmem:[#allocation7 + $0x698] sm:$0xff] }
 0x2d7   : > { %v3432_v7 = vld [vmem:[#allocation7 + $0x6b8] sm:$0xff] }
 0x2d8   : > { %5367 = vmatpush1.bf16.msra.mxu0 %v6424_v5  ;;  %v3420_v5 = vld [vmem:[#allocation7 + $0x658] sm:$0xff] }
 0x2d9   : > { %5593 = vmatpush1.bf16.msra.mxu1 %v6426_v19  ;;  %5368 = vmatprep.subr.bf16.mxu0 %v6433_v49  ;;  %v3424_v19 = vld [vmem:[#allocation7 + $0x678] sm:$0xff]  ;;  %v6466_v49 = vcombine.low %v3412_v56, %v3416_v36 }
 0x2da   : > { %5300 = vmatmul.mubr.bf16.gmra.mrb[72].mxu0 %v8156_v41  ;;  %5594 = vmatprep.subr.bf16.mxu1 %v6435_v45  ;;  %v6473_v45 = vcombine.high %v3419_v3, %v3423_v52  ;;  %v3444_v28 = vld [vmem:[#allocation7 + $0x718] sm:$0xff] }
 0x2db   : > { %5526 = vmatmul.mubr.bf16.gmra.mrb[72].mxu1 %v8156_v41  ;;  %5309 = vmatprep.mubr.bf16.mxu0 %v8232_v31  ;;  %v6448_v41 = vcombine.low %v3395_v54, %v3399_v15  ;;  %v3435_v54 = vld [vmem:[#allocation7 + $0x6d0] sm:$0xff]  ;;  %v3448_v17 = vld [vmem:[#allocation7 + $0x738] sm:$0xff] }
 0x2dc   : > { %5369 = vmatpush1.bf16.msra.mxu0 %v6432_v6  ;;  %5535 = vmatprep.mubr.bf16.mxu1 %v8232_v31  ;;  %v6459_v31 = vcombine.high %v3404_v18, %v3408_v50  ;;  %v6472_v6 = vcombine.low %v3419_v3, %v3423_v52  ;;  %v3439_v15 = vld [vmem:[#allocation7 + $0x6f0] sm:$0xff]  ;;  %v6490_v50 = vcombine.low %v3436_v42, %v3440_v60 }
 0x2dd   : > { %5595 = vmatpush1.bf16.msra.mxu1 %v6434_v25  ;;  %5370 = vmatprep.subr.bf16.mxu0 %v6441_v13  ;;  %v6474_v25 = vcombine.low %v3420_v5, %v3424_v19  ;;  %v6481_v13 = vcombine.high %v3427_v37, %v3431_v8  ;;  %v6488_v18 = vcombine.low %v3435_v54, %v3439_v15 }
 0x2de   : > { %5596 = vmatprep.subr.bf16.mxu1 %v6443_v26  ;;  %v6483_v26 = vcombine.high %v3428_v47, %v3432_v7  ;;  %v6498_v56 = vcombine.low %v3444_v28, %v3448_v17 }
 0x2e0   : > { %5371 = vmatpush1.bf16.msra.mxu0 %v6440_v16  ;;  %v6482_v16 = vcombine.low %v3428_v47, %v3432_v7 }
 0x2e1   : > { %5597 = vmatpush1.bf16.msra.mxu1 %v6442_v59  ;;  %5372 = vmatprep.subr.bf16.mxu0 %v6449_v34  ;;  %v6489_v59 = vcombine.high %v3435_v54, %v3439_v15  ;;  %v3443_v34 = vld [vmem:[#allocation7 + $0x710] sm:$0xff] }
 0x2e2   : > { %5310 = vmatmul.mubr.bf16.gmra.mrb[76].mxu0 %v8220_v33  ;;  %5598 = vmatprep.subr.bf16.mxu1 %v6451_v48  ;;  %v3447_v48 = vld [vmem:[#allocation7 + $0x730] sm:$0xff] }
 0x2e3   : > { %5536 = vmatmul.mubr.bf16.gmra.mrb[76].mxu1 %v8220_v33  ;;  %5319 = vmatprep.mubr.bf16.mxu0 %v8296_v38  ;;  %v6464_v33 = vcombine.low %v3411_v4, %v3415_v58  ;;  %v3452_v4 = vld [vmem:[#allocation7 + $0x758] sm:$0xff] }
 0x2e4   : > { %5373 = vmatpush1.bf16.msra.mxu0 %v6448_v41  ;;  %5545 = vmatprep.mubr.bf16.mxu1 %v8296_v38  ;;  %v6475_v38 = vcombine.high %v3420_v5, %v3424_v19  ;;  %v6497_v41 = vcombine.high %v3443_v34, %v3447_v48  ;;  %v3456_v58 = vld [vmem:[#allocation7 + $0x778] sm:$0xff] }
 0x2e5   : > { %5599 = vmatpush1.bf16.msra.mxu1 %v6450_v63  ;;  %5374 = vmatprep.subr.bf16.mxu0 %v6457_v53  ;;  %v6499_v63 = vcombine.high %v3444_v28, %v3448_v17  ;;  %v3451_v53 = vld [vmem:[#allocation7 + $0x750] sm:$0xff]  ;;  %v6506_v52 = vcombine.low %v3452_v4, %v3456_v58 }
 0x2e6   : > { %5600 = vmatprep.subr.bf16.mxu1 %v6459_v31  ;;  %v3455_v31 = vld [vmem:[#allocation7 + $0x770] sm:$0xff] }
 0x2e7   : > { %v6505_v36 = vcombine.high %v3451_v53, %v3455_v31  ;;  %v6504_v3 = vcombine.low %v3451_v53, %v3455_v31 }
 0x2e8   : > { %5375 = vmatpush1.bf16.msra.mxu0 %v6456_v39  ;;  %v3459_v39 = vld [vmem:[#allocation7 + $0x790] sm:$0xff] }
 0x2e9   : > { %5601 = vmatpush1.bf16.msra.mxu1 %v6458_v24  ;;  %5376 = vmatprep.subr.bf16.mxu0 %v6465_v43  ;;  %v3463_v24 = vld [vmem:[#allocation7 + $0x7b0] sm:$0xff]  ;;  %v3460_v43 = vld [vmem:[#allocation7 + $0x798] sm:$0xff] }
 0x2ea   : > { %5320 = vmatmul.mubr.bf16.gmra.mrb[80].mxu0 %v8288_v30  ;;  %5602 = vmatprep.subr.bf16.mxu1 %v6467_v32  ;;  %v3464_v32 = vld [vmem:[#allocation7 + $0x7b8] sm:$0xff]  ;;  %v6513_v5 = vcombine.high %v3459_v39, %v3463_v24 }
 0x2eb   : > { %5546 = vmatmul.mubr.bf16.gmra.mrb[80].mxu1 %v8288_v30  ;;  %5329 = vmatprep.mubr.bf16.mxu0 %v8355_v0  ;;  %v6480_v30 = vcombine.low %v3427_v37, %v3431_v8  ;;  %v6515_v19 = vcombine.high %v3460_v43, %v3464_v32  ;;  %v6514_v37 = vcombine.low %v3460_v43, %v3464_v32 }
 0x2ec   : > { %5377 = vmatpush1.bf16.msra.mxu0 %v6464_v33  ;;  %5555 = vmatprep.mubr.bf16.mxu1 %v8355_v0  ;;  %v6491_v0 = vcombine.high %v3436_v42, %v3440_v60  ;;  %v3467_v33 = vld [vmem:[#allocation7 + $0x7d0] sm:$0xff] }
 0x2ed   : > { %5603 = vmatpush1.bf16.msra.mxu1 %v6466_v49  ;;  %5378 = vmatprep.subr.bf16.mxu0 %v6473_v45  ;;  %v3471_v49 = vld [vmem:[#allocation7 + $0x7f0] sm:$0xff]  ;;  %v3468_v45 = vld [vmem:[#allocation7 + $0x7d8] sm:$0xff] }
 0x2ee   : > { %5604 = vmatprep.subr.bf16.mxu1 %v6475_v38  ;;  %v3472_v38 = vld [vmem:[#allocation7 + $0x7f8] sm:$0xff]  ;;  %v6521_v8 = vcombine.high %v3467_v33, %v3471_v49  ;;  %v6520_v47 = vcombine.low %v3467_v33, %v3471_v49 }
 0x2ef   : > { %v6522_v7 = vcombine.low %v3468_v45, %v3472_v38 }
 0x2f0   : > { %5379 = vmatpush1.bf16.msra.mxu0 %v6472_v6 }
 0x2f1   : > { %5605 = vmatpush1.bf16.msra.mxu1 %v6474_v25  ;;  %5380 = vmatprep.subr.bf16.mxu0 %v6481_v13 }
 0x2f2   : > { %5330 = vmatmul.mubr.bf16.gmra.mrb[84].mxu0 %v8343_v35  ;;  %5606 = vmatprep.subr.bf16.mxu1 %v6483_v26 }
 0x2f3   : > { %5556 = vmatmul.mubr.bf16.gmra.mrb[84].mxu1 %v8343_v35  ;;  %5339 = vmatprep.mubr.bf16.mxu0 %v8400_v2  ;;  %v6496_v35 = vcombine.low %v3443_v34, %v3447_v48 }
 0x2f4   : > { %5381 = vmatpush1.bf16.msra.mxu0 %v6480_v30  ;;  %5565 = vmatprep.mubr.bf16.mxu1 %v8400_v2  ;;  %v6507_v2 = vcombine.high %v3452_v4, %v3456_v58 }
 0x2f5   : > { %5607 = vmatpush1.bf16.msra.mxu1 %v6482_v16  ;;  %5382 = vmatprep.subr.bf16.mxu0 %v6489_v59 }
 0x2f6   : > { %5608 = vmatprep.subr.bf16.mxu1 %v6491_v0 }
 0x2f8   : > { %5383 = vmatpush1.bf16.msra.mxu0 %v6488_v18 }
 0x2f9   : > { %5609 = vmatpush1.bf16.msra.mxu1 %v6490_v50  ;;  %5384 = vmatprep.subr.bf16.mxu0 %v6497_v41 }
 0x2fa   : > { %5340 = vmatmul.mubr.bf16.gmra.mrb[88].mxu0 %v8392_v20  ;;  %5610 = vmatprep.subr.bf16.mxu1 %v6499_v63 }
 0x2fb   : > { %5566 = vmatmul.mubr.bf16.gmra.mrb[88].mxu1 %v8392_v20  ;;  %5349 = vmatprep.mubr.bf16.mxu0 %v8428_v14  ;;  %v6512_v20 = vcombine.low %v3459_v39, %v3463_v24 }
 0x2fc   : > { %5385 = vmatpush1.bf16.msra.mxu0 %v6496_v35  ;;  %5575 = vmatprep.mubr.bf16.mxu1 %v8428_v14  ;;  %v6523_v14 = vcombine.high %v3468_v45, %v3472_v38 }
 0x2fd   : > { %5611 = vmatpush1.bf16.msra.mxu1 %v6498_v56  ;;  %5386 = vmatprep.subr.bf16.mxu0 %v6505_v36 }
 0x2fe   : > { %5612 = vmatprep.subr.bf16.mxu1 %v6507_v2 }
 0x300   : > { %5387 = vmatpush1.bf16.msra.mxu0 %v6504_v3 }
 0x301   : > { %5613 = vmatpush1.bf16.msra.mxu1 %v6506_v52  ;;  %5388 = vmatprep.subr.bf16.mxu0 %v6513_v5 }
 0x302   : > { %5350 = vmatmul.mubr.bf16.gmra.mrb[92].mxu0 %v8424_v11  ;;  %5614 = vmatprep.subr.bf16.mxu1 %v6515_v19 }
 0x303   : > { %5576 = vmatmul.mubr.bf16.gmra.mrb[92].mxu1 %v8424_v11  ;;  %5392 = vmatprep.mubr.bf16.mxu0 %v8042_v61  ;;  %v8537_v11 = vld [vmem:[%s8889_s4] sm:$0xff] }
 0x304   : > { %5389 = vmatpush1.bf16.msra.mxu0 %v6512_v20  ;;  %5618 = vmatprep.mubr.bf16.mxu1 %v8042_v61 }
 0x305   : > { %5615 = vmatpush1.bf16.msra.mxu1 %v6514_v37  ;;  %5390 = vmatprep.subr.bf16.mxu0 %v6521_v8 }
 0x306   : > { %5616 = vmatprep.subr.bf16.mxu1 %v6523_v14 }
 0x308   : > { %5391 = vmatpush1.bf16.msra.mxu0 %v6520_v47 }
 0x309   : > { %5617 = vmatpush1.bf16.msra.mxu1 %v6522_v7 }
 0x30b   : > { %5393 = vmatmul.mubr.bf16.vlgmr.msra.gmra.mrb[64].mxu0 %v8034_v57 }
 0x30c   : > { %5619 = vmatmul.mubr.bf16.vlgmr.msra.gmra.mrb[64].mxu1 %v8034_v57  ;;  %5402 = vmatprep.mubr.bf16.mxu0 %v8102_v29  ;;  %v8908_v57 = vsub.s32 0, %v7973_v9 }
 0x30d   : > { %5628 = vmatprep.mubr.bf16.mxu1 %v8102_v29 }
 0x30e   : > { %v8543_v61 = vrot.slane %v8537_v11, %v8908_v57 }
 0x313   : > { %5403 = vmatmul.mubr.bf16.gmra.mrb[68].mxu0 %v8090_v23 }
 0x314   : > { %5629 = vmatmul.mubr.bf16.gmra.mrb[68].mxu1 %v8090_v23  ;;  %5412 = vmatprep.mubr.bf16.mxu0 %v8166_v46  ;;  %v8909_v23 = vsub.s32 2, %v7973_v9 }
 0x315   : > { %5638 = vmatprep.mubr.bf16.mxu1 %v8166_v46  ;;  %v8911_v46 = vsub.s32 3, %v7973_v9 }
 0x316   : > { %v8548_v29 = vrot.slane %v8537_v11, %v8909_v23 }
 0x31b   : > { %5413 = vmatmul.mubr.bf16.gmra.mrb[72].mxu0 %v8158_v44 }
 0x31c   : > { %5639 = vmatmul.mubr.bf16.gmra.mrb[72].mxu1 %v8158_v44  ;;  %5422 = vmatprep.mubr.bf16.mxu0 %v8234_v55  ;;  %v8910_v44 = vsub.s32 1, %v7973_v9 }
 0x31d   : > { %5648 = vmatprep.mubr.bf16.mxu1 %v8234_v55 }
 0x323   : > { %5423 = vmatmul.mubr.bf16.gmra.mrb[76].mxu0 %v8222_v21 }
 0x324   : > { %5649 = vmatmul.mubr.bf16.gmra.mrb[76].mxu1 %v8222_v21  ;;  %5432 = vmatprep.mubr.bf16.mxu0 %v8298_v62  ;;  %v8558_v21 = vrot.slane %v8537_v11, %v8911_v46 }
 0x325   : > { %5658 = vmatprep.mubr.bf16.mxu1 %v8298_v62 }
 0x32b   : > { %5433 = vmatmul.mubr.bf16.gmra.mrb[80].mxu0 %v8290_v12 }
 0x32c   : > { %5659 = vmatmul.mubr.bf16.gmra.mrb[80].mxu1 %v8290_v12  ;;  %5442 = vmatprep.mubr.bf16.mxu0 %v8357_v51 }
 0x32d   : > { %5668 = vmatprep.mubr.bf16.mxu1 %v8357_v51 }
 0x333   : > { %5443 = vmatmul.mubr.bf16.gmra.mrb[84].mxu0 %v8345_v1 }
 0x334   : > { %5669 = vmatmul.mubr.bf16.gmra.mrb[84].mxu1 %v8345_v1  ;;  %5452 = vmatprep.mubr.bf16.mxu0 %v8402_v22 }
 0x335   : > { %5678 = vmatprep.mubr.bf16.mxu1 %v8402_v22 }
 0x33b   : > { %5453 = vmatmul.mubr.bf16.gmra.mrb[88].mxu0 %v8394_v40 }
 0x33c   : > { %5679 = vmatmul.mubr.bf16.gmra.mrb[88].mxu1 %v8394_v40  ;;  %5462 = vmatprep.mubr.bf16.mxu0 %v8430_v27 }
 0x33d   : > { %5688 = vmatprep.mubr.bf16.mxu1 %v8430_v27 }
 0x343   : > { %5463 = vmatmul.mubr.bf16.gmra.mrb[92].mxu0 %v8426_v10 }
 0x344   : > { %5689 = vmatmul.mubr.bf16.gmra.mrb[92].mxu1 %v8426_v10  ;;  %v8553_v10 = vrot.slane %v8537_v11, %v8910_v44 }
 0x35c   : > { %v4942_v55 = vpop.f32.mrb[32].mxu0 }
 0x35d   : > { %v6598_v12 = vadd.f32 %v4942_v55, %v8543_v61  ;;  %v5168_v62 = vpop.f32.mrb[32].mxu1  ;;  %v4944_v1 = vpop.f32.mrb[33].mxu0 }
 0x35e   : > { %v6630_v51 = vadd.f32 %v5168_v62, %v8548_v29  ;;  %v6599_v40 = vadd.f32 %v4944_v1, %v8553_v10  ;;  %v5170_v22 = vpop.f32.mrb[33].mxu1  ;;  %v4946_v27 = vpop.f32.mrb[34].mxu0 }
 0x35f   : > { %5699 = vst [vmem:[%s8563_s28] sm:$0xff] %v6598_v12  ;;  %v6631_v6 = vadd.f32 %v5170_v22, %v8558_v21  ;;  %v6600_v25 = vadd.f32 %v4946_v27, %v8543_v61  ;;  %v5172_v13 = vpop.f32.mrb[34].mxu1  ;;  %v4948_v26 = vpop.f32.mrb[35].mxu0 }
 0x360   : > { %5701 = vst [vmem:[%s8563_s28 + $0x10] sm:$0xff] %v6630_v51  ;;  %5700 = vst [vmem:[%s8563_s28 + $0x8] sm:$0xff] %v6599_v40  ;;  %v6632_v54 = vadd.f32 %v5172_v13, %v8548_v29  ;;  %v6601_v15 = vadd.f32 %v4948_v26, %v8553_v10  ;;  %v5174_v42 = vpop.f32.mrb[35].mxu1 }
 0x361   : > { %5702 = vst [vmem:[%s8563_s28 + $0x18] sm:$0xff] %v6631_v6  ;;  %5707 = vst [vmem:[%s8563_s28 + $0x40] sm:$0xff] %v6600_v25  ;;  %v6633_v60 = vadd.f32 %v5174_v42, %v8558_v21 }
 0x362   : > { %5709 = vst [vmem:[%s8563_s28 + $0x50] sm:$0xff] %v6632_v54  ;;  %5708 = vst [vmem:[%s8563_s28 + $0x48] sm:$0xff] %v6601_v15 }
 0x363   : > { %5710 = vst [vmem:[%s8563_s28 + $0x58] sm:$0xff] %v6633_v60 }
 0x364   : > { %v4952_v30 = vpop.f32.mrb[36].mxu0 }
 0x365   : > { %v6602_v16 = vadd.f32 %v4952_v30, %v8543_v61  ;;  %v5178_v59 = vpop.f32.mrb[36].mxu1  ;;  %v4954_v0 = vpop.f32.mrb[37].mxu0 }
 0x366   : > { %v6634_v34 = vadd.f32 %v5178_v59, %v8548_v29  ;;  %v6603_v48 = vadd.f32 %v4954_v0, %v8553_v10  ;;  %v5180_v28 = vpop.f32.mrb[37].mxu1  ;;  %v4956_v17 = vpop.f32.mrb[38].mxu0 }
 0x367   : > { %5715 = vst [vmem:[%s8563_s28 + $0x80] sm:$0xff] %v6602_v16  ;;  %v6635_v18 = vadd.f32 %v5180_v28, %v8558_v21  ;;  %v6604_v50 = vadd.f32 %v4956_v17, %v8543_v61  ;;  %v5182_v41 = vpop.f32.mrb[38].mxu1  ;;  %v4958_v63 = vpop.f32.mrb[39].mxu0 }
 0x368   : > { %5717 = vst [vmem:[%s8563_s28 + $0x90] sm:$0xff] %v6634_v34  ;;  %5716 = vst [vmem:[%s8563_s28 + $0x88] sm:$0xff] %v6603_v48  ;;  %v6636_v53 = vadd.f32 %v5182_v41, %v8548_v29  ;;  %v6605_v31 = vadd.f32 %v4958_v63, %v8553_v10  ;;  %v5184_v4 = vpop.f32.mrb[39].mxu1 }
 0x369   : > { %5718 = vst [vmem:[%s8563_s28 + $0x98] sm:$0xff] %v6635_v18  ;;  %5723 = vst [vmem:[%s8563_s28 + $0xc0] sm:$0xff] %v6604_v50  ;;  %v6637_v58 = vadd.f32 %v5184_v4, %v8558_v21 }
 0x36a   : > { %5725 = vst [vmem:[%s8563_s28 + $0xd0] sm:$0xff] %v6636_v53  ;;  %5724 = vst [vmem:[%s8563_s28 + $0xc8] sm:$0xff] %v6605_v31 }
 0x36b   : > { %5726 = vst [vmem:[%s8563_s28 + $0xd8] sm:$0xff] %v6637_v58 }
 0x36c   : > { %v4962_v35 = vpop.f32.mrb[40].mxu0 }
 0x36d   : > { %v6606_v56 = vadd.f32 %v4962_v35, %v8543_v61  ;;  %v5188_v36 = vpop.f32.mrb[40].mxu1  ;;  %v4964_v2 = vpop.f32.mrb[41].mxu0 }
 0x36e   : > { %v6638_v39 = vadd.f32 %v5188_v36, %v8548_v29  ;;  %v6607_v24 = vadd.f32 %v4964_v2, %v8553_v10  ;;  %v5190_v43 = vpop.f32.mrb[41].mxu1  ;;  %v4966_v32 = vpop.f32.mrb[42].mxu0 }
 0x36f   : > { %5731 = vst [vmem:[%s8563_s28 + $0x100] sm:$0xff] %v6606_v56  ;;  %v6639_v3 = vadd.f32 %v5190_v43, %v8558_v21  ;;  %v6608_v52 = vadd.f32 %v4966_v32, %v8543_v61  ;;  %v5192_v5 = vpop.f32.mrb[42].mxu1  ;;  %v4968_v19 = vpop.f32.mrb[43].mxu0 }
 0x370   : > { %5733 = vst [vmem:[%s8563_s28 + $0x110] sm:$0xff] %v6638_v39  ;;  %5732 = vst [vmem:[%s8563_s28 + $0x108] sm:$0xff] %v6607_v24  ;;  %v6640_v33 = vadd.f32 %v5192_v5, %v8548_v29  ;;  %v6609_v49 = vadd.f32 %v4968_v19, %v8553_v10  ;;  %v5194_v45 = vpop.f32.mrb[43].mxu1 }
 0x371   : > { %5734 = vst [vmem:[%s8563_s28 + $0x118] sm:$0xff] %v6639_v3  ;;  %5739 = vst [vmem:[%s8563_s28 + $0x140] sm:$0xff] %v6608_v52  ;;  %v6641_v38 = vadd.f32 %v5194_v45, %v8558_v21 }
 0x372   : > { %5741 = vst [vmem:[%s8563_s28 + $0x150] sm:$0xff] %v6640_v33  ;;  %5740 = vst [vmem:[%s8563_s28 + $0x148] sm:$0xff] %v6609_v49 }
 0x373   : > { %5742 = vst [vmem:[%s8563_s28 + $0x158] sm:$0xff] %v6641_v38 }
 0x374   : > { %v4972_v20 = vpop.f32.mrb[44].mxu0 }
 0x375   : > { %v6610_v37 = vadd.f32 %v4972_v20, %v8543_v61  ;;  %v5198_v8 = vpop.f32.mrb[44].mxu1  ;;  %v4974_v14 = vpop.f32.mrb[45].mxu0 }
 0x376   : > { %v6642_v47 = vadd.f32 %v5198_v8, %v8548_v29  ;;  %v6611_v7 = vadd.f32 %v4974_v14, %v8553_v10  ;;  %v5200_v57 = vpop.f32.mrb[45].mxu1  ;;  %v4976_v23 = vpop.f32.mrb[46].mxu0 }
 0x377   : > { %5747 = vst [vmem:[%s8563_s28 + $0x180] sm:$0xff] %v6610_v37  ;;  %v6643_v44 = vadd.f32 %v5200_v57, %v8558_v21  ;;  %v6612_v46 = vadd.f32 %v4976_v23, %v8543_v61  ;;  %v5202_v55 = vpop.f32.mrb[46].mxu1  ;;  %v4978_v12 = vpop.f32.mrb[47].mxu0 }
 0x378   : > { %5749 = vst [vmem:[%s8563_s28 + $0x190] sm:$0xff] %v6642_v47  ;;  %5748 = vst [vmem:[%s8563_s28 + $0x188] sm:$0xff] %v6611_v7  ;;  %v6644_v62 = vadd.f32 %v5202_v55, %v8548_v29  ;;  %v6613_v1 = vadd.f32 %v4978_v12, %v8553_v10  ;;  %v5204_v51 = vpop.f32.mrb[47].mxu1 }
 0x379   : > { %5750 = vst [vmem:[%s8563_s28 + $0x198] sm:$0xff] %v6643_v44  ;;  %5755 = vst [vmem:[%s8563_s28 + $0x1c0] sm:$0xff] %v6612_v46  ;;  %v6645_v40 = vadd.f32 %v5204_v51, %v8558_v21 }
 0x37a   : > { %5757 = vst [vmem:[%s8563_s28 + $0x1d0] sm:$0xff] %v6644_v62  ;;  %5756 = vst [vmem:[%s8563_s28 + $0x1c8] sm:$0xff] %v6613_v1 }
 0x37b   : > { %5758 = vst [vmem:[%s8563_s28 + $0x1d8] sm:$0xff] %v6645_v40 }
 0x37c   : > { %v4982_v22 = vpop.f32.mrb[48].mxu0 }
 0x37d   : > { %v6614_v27 = vadd.f32 %v4982_v22, %v8543_v61  ;;  %v5208_v6 = vpop.f32.mrb[48].mxu1  ;;  %v4984_v25 = vpop.f32.mrb[49].mxu0 }
 0x37e   : > { %v6646_v13 = vadd.f32 %v5208_v6, %v8548_v29  ;;  %v6615_v26 = vadd.f32 %v4984_v25, %v8553_v10  ;;  %v5210_v54 = vpop.f32.mrb[49].mxu1  ;;  %v4986_v15 = vpop.f32.mrb[50].mxu0 }
 0x37f   : > { %5763 = vst [vmem:[%s8563_s28 + $0x200] sm:$0xff] %v6614_v27  ;;  %v6647_v42 = vadd.f32 %v5210_v54, %v8558_v21  ;;  %v6616_v60 = vadd.f32 %v4986_v15, %v8543_v61  ;;  %v5212_v30 = vpop.f32.mrb[50].mxu1  ;;  %v4988_v16 = vpop.f32.mrb[51].mxu0  ;;  %v3493_v54 = vsub.s32 4, %v7973_v9  ;;  %v3497_v15 = vsub.s32 5, %v7973_v9 }
 0x380   : > { %5765 = vst [vmem:[%s8563_s28 + $0x210] sm:$0xff] %v6646_v13  ;;  %5764 = vst [vmem:[%s8563_s28 + $0x208] sm:$0xff] %v6615_v26  ;;  %v6648_v59 = vadd.f32 %v5212_v30, %v8548_v29  ;;  %v6617_v0 = vadd.f32 %v4988_v16, %v8553_v10  ;;  %v5214_v34 = vpop.f32.mrb[51].mxu1 }
 0x381   : > { %5766 = vst [vmem:[%s8563_s28 + $0x218] sm:$0xff] %v6647_v42  ;;  %5771 = vst [vmem:[%s8563_s28 + $0x240] sm:$0xff] %v6616_v60  ;;  %v6649_v48 = vadd.f32 %v5214_v34, %v8558_v21  ;;  %v3505_v42 = vsub.s32 7, %v7973_v9 }
 0x382   : > { %5773 = vst [vmem:[%s8563_s28 + $0x250] sm:$0xff] %v6648_v59  ;;  %5772 = vst [vmem:[%s8563_s28 + $0x248] sm:$0xff] %v6617_v0 }
 0x383   : > { %5774 = vst [vmem:[%s8563_s28 + $0x258] sm:$0xff] %v6649_v48  ;;  %v8704_v60 = vrot.slane %v8537_v11, %v3505_v42 }
 0x384   : > { %v4992_v28 = vpop.f32.mrb[52].mxu0 }
 0x385   : > { %v6618_v17 = vadd.f32 %v4992_v28, %v8543_v61  ;;  %v5218_v18 = vpop.f32.mrb[52].mxu1  ;;  %v4994_v50 = vpop.f32.mrb[53].mxu0 }
 0x386   : > { %v6650_v41 = vadd.f32 %v5218_v18, %v8548_v29  ;;  %v6619_v63 = vadd.f32 %v4994_v50, %v8553_v10  ;;  %v5220_v53 = vpop.f32.mrb[53].mxu1  ;;  %v4996_v31 = vpop.f32.mrb[54].mxu0 }
 0x387   : > { %5779 = vst [vmem:[%s8563_s28 + $0x280] sm:$0xff] %v6618_v17  ;;  %v6651_v4 = vadd.f32 %v5220_v53, %v8558_v21  ;;  %v6620_v58 = vadd.f32 %v4996_v31, %v8543_v61  ;;  %v5222_v35 = vpop.f32.mrb[54].mxu1  ;;  %v4998_v56 = vpop.f32.mrb[55].mxu0 }
 0x388   : > { %5781 = vst [vmem:[%s8563_s28 + $0x290] sm:$0xff] %v6650_v41  ;;  %5780 = vst [vmem:[%s8563_s28 + $0x288] sm:$0xff] %v6619_v63  ;;  %v6652_v36 = vadd.f32 %v5222_v35, %v8548_v29  ;;  %v6621_v2 = vadd.f32 %v4998_v56, %v8553_v10  ;;  %v5224_v39 = vpop.f32.mrb[55].mxu1 }
 0x389   : > { %5782 = vst [vmem:[%s8563_s28 + $0x298] sm:$0xff] %v6651_v4  ;;  %5787 = vst [vmem:[%s8563_s28 + $0x2c0] sm:$0xff] %v6620_v58  ;;  %v6653_v24 = vadd.f32 %v5224_v39, %v8558_v21 }
 0x38a   : > { %5789 = vst [vmem:[%s8563_s28 + $0x2d0] sm:$0xff] %v6652_v36  ;;  %5788 = vst [vmem:[%s8563_s28 + $0x2c8] sm:$0xff] %v6621_v2 }
 0x38b   : > { %5790 = vst [vmem:[%s8563_s28 + $0x2d8] sm:$0xff] %v6653_v24 }
 0x38c   : > { %v5002_v43 = vpop.f32.mrb[56].mxu0 }
 0x38d   : > { %v6622_v32 = vadd.f32 %v5002_v43, %v8543_v61  ;;  %v5228_v3 = vpop.f32.mrb[56].mxu1  ;;  %v5004_v52 = vpop.f32.mrb[57].mxu0 }
 0x38e   : > { %v6654_v5 = vadd.f32 %v5228_v3, %v8548_v29  ;;  %v6623_v19 = vadd.f32 %v5004_v52, %v8553_v10  ;;  %v5230_v33 = vpop.f32.mrb[57].mxu1  ;;  %v5006_v49 = vpop.f32.mrb[58].mxu0 }
 0x38f   : > { %5795 = vst [vmem:[%s8563_s28 + $0x300] sm:$0xff] %v6622_v32  ;;  %v6655_v45 = vadd.f32 %v5230_v33, %v8558_v21  ;;  %v6624_v38 = vadd.f32 %v5006_v49, %v8543_v61  ;;  %v5232_v20 = vpop.f32.mrb[58].mxu1  ;;  %v5008_v37 = vpop.f32.mrb[59].mxu0 }
 0x390   : > { %5797 = vst [vmem:[%s8563_s28 + $0x310] sm:$0xff] %v6654_v5  ;;  %5796 = vst [vmem:[%s8563_s28 + $0x308] sm:$0xff] %v6623_v19  ;;  %v6656_v8 = vadd.f32 %v5232_v20, %v8548_v29  ;;  %v6625_v14 = vadd.f32 %v5008_v37, %v8553_v10  ;;  %v5234_v47 = vpop.f32.mrb[59].mxu1 }
 0x391   : > { %5798 = vst [vmem:[%s8563_s28 + $0x318] sm:$0xff] %v6655_v45  ;;  %5803 = vst [vmem:[%s8563_s28 + $0x340] sm:$0xff] %v6624_v38  ;;  %v6657_v7 = vadd.f32 %v5234_v47, %v8558_v21 }
 0x392   : > { %5805 = vst [vmem:[%s8563_s28 + $0x350] sm:$0xff] %v6656_v8  ;;  %5804 = vst [vmem:[%s8563_s28 + $0x348] sm:$0xff] %v6625_v14 }
 0x393   : > { %5806 = vst [vmem:[%s8563_s28 + $0x358] sm:$0xff] %v6657_v7 }
 0x394   : > { %v5012_v57 = vpop.f32.mrb[60].mxu0 }
 0x395   : > { %v6626_v23 = vadd.f32 %v5012_v57, %v8543_v61  ;;  %v5238_v44 = vpop.f32.mrb[60].mxu1  ;;  %v5014_v46 = vpop.f32.mrb[61].mxu0 }
 0x396   : > { %v6658_v55 = vadd.f32 %v5238_v44, %v8548_v29  ;;  %v6627_v12 = vadd.f32 %v5014_v46, %v8553_v10  ;;  %v5240_v62 = vpop.f32.mrb[61].mxu1  ;;  %v5016_v1 = vpop.f32.mrb[62].mxu0 }
 0x397   : > { %5811 = vst [vmem:[%s8563_s28 + $0x380] sm:$0xff] %v6626_v23  ;;  %v6659_v51 = vadd.f32 %v5240_v62, %v8558_v21  ;;  %v6628_v40 = vadd.f32 %v5016_v1, %v8543_v61  ;;  %v5242_v22 = vpop.f32.mrb[62].mxu1  ;;  %v5018_v27 = vpop.f32.mrb[63].mxu0  ;;  %v3501_v61 = vsub.s32 6, %v7973_v9 }
 0x398   : > { %5813 = vst [vmem:[%s8563_s28 + $0x390] sm:$0xff] %v6658_v55  ;;  %5812 = vst [vmem:[%s8563_s28 + $0x388] sm:$0xff] %v6627_v12  ;;  %v6660_v6 = vadd.f32 %v5242_v22, %v8548_v29  ;;  %v6629_v25 = vadd.f32 %v5018_v27, %v8553_v10  ;;  %v5244_v13 = vpop.f32.mrb[63].mxu1  ;;  %v8695_v29 = vrot.slane %v8537_v11, %v3493_v54 }
 0x399   : > { %5814 = vst [vmem:[%s8563_s28 + $0x398] sm:$0xff] %v6659_v51  ;;  %5819 = vst [vmem:[%s8563_s28 + $0x3c0] sm:$0xff] %v6628_v40  ;;  %v6661_v26 = vadd.f32 %v5244_v13, %v8558_v21  ;;  %v8698_v10 = vrot.slane %v8537_v11, %v3501_v61  ;;  %v8701_v21 = vrot.slane %v8537_v11, %v3497_v15 }
 0x39a   : > { %5821 = vst [vmem:[%s8563_s28 + $0x3d0] sm:$0xff] %v6660_v6  ;;  %5820 = vst [vmem:[%s8563_s28 + $0x3c8] sm:$0xff] %v6629_v25 }
 0x39b   : > { %5822 = vst [vmem:[%s8563_s28 + $0x3d8] sm:$0xff] %v6661_v26 }
 0x3de   : > { %v5394_v30 = vpop.f32.mrb[64].mxu0 }
 0x3df   : > { %v6662_v16 = vadd.f32 %v5394_v30, %v8695_v29  ;;  %v5620_v59 = vpop.f32.mrb[64].mxu1  ;;  %v5396_v9 = vpop.f32.mrb[65].mxu0 }
 0x3e0   : > { %v6694_v0 = vadd.f32 %v5620_v59, %v8698_v10  ;;  %v6663_v34 = vadd.f32 %v5396_v9, %v8701_v21  ;;  %v5622_v48 = vpop.f32.mrb[65].mxu1  ;;  %v5398_v28 = vpop.f32.mrb[66].mxu0 }
 0x3e1   : > { %5703 = vst [vmem:[%s8563_s28 + $0x20] sm:$0xff] %v6662_v16  ;;  %v6695_v11 = vadd.f32 %v5622_v48, %v8704_v60  ;;  %v6664_v17 = vadd.f32 %v5398_v28, %v8695_v29  ;;  %v5624_v18 = vpop.f32.mrb[66].mxu1  ;;  %v5400_v50 = vpop.f32.mrb[67].mxu0 }
 0x3e2   : > { %5705 = vst [vmem:[%s8563_s28 + $0x30] sm:$0xff] %v6694_v0  ;;  %5704 = vst [vmem:[%s8563_s28 + $0x28] sm:$0xff] %v6663_v34  ;;  %v6696_v41 = vadd.f32 %v5624_v18, %v8698_v10  ;;  %v6665_v63 = vadd.f32 %v5400_v50, %v8701_v21  ;;  %v5626_v53 = vpop.f32.mrb[67].mxu1 }
 0x3e3   : > { %5706 = vst [vmem:[%s8563_s28 + $0x38] sm:$0xff] %v6695_v11  ;;  %5711 = vst [vmem:[%s8563_s28 + $0x60] sm:$0xff] %v6664_v17  ;;  %v6697_v31 = vadd.f32 %v5626_v53, %v8704_v60 }
 0x3e4   : > { %5713 = vst [vmem:[%s8563_s28 + $0x70] sm:$0xff] %v6696_v41  ;;  %5712 = vst [vmem:[%s8563_s28 + $0x68] sm:$0xff] %v6665_v63 }
 0x3e5   : > { %5714 = vst [vmem:[%s8563_s28 + $0x78] sm:$0xff] %v6697_v31 }
 0x3e6   : > { %v5404_v4 = vpop.f32.mrb[68].mxu0 }
 0x3e7   : > { %v6666_v58 = vadd.f32 %v5404_v4, %v8695_v29  ;;  %v5630_v35 = vpop.f32.mrb[68].mxu1  ;;  %v5406_v56 = vpop.f32.mrb[69].mxu0 }
 0x3e8   : > { %v6698_v36 = vadd.f32 %v5630_v35, %v8698_v10  ;;  %v6667_v2 = vadd.f32 %v5406_v56, %v8701_v21  ;;  %v5632_v39 = vpop.f32.mrb[69].mxu1  ;;  %v5408_v24 = vpop.f32.mrb[70].mxu0 }
 0x3e9   : > { %5719 = vst [vmem:[%s8563_s28 + $0xa0] sm:$0xff] %v6666_v58  ;;  %v6699_v43 = vadd.f32 %v5632_v39, %v8704_v60  ;;  %v6668_v32 = vadd.f32 %v5408_v24, %v8695_v29  ;;  %v5634_v3 = vpop.f32.mrb[70].mxu1  ;;  %v5410_v52 = vpop.f32.mrb[71].mxu0 }
 0x3ea   : > { %5721 = vst [vmem:[%s8563_s28 + $0xb0] sm:$0xff] %v6698_v36  ;;  %5720 = vst [vmem:[%s8563_s28 + $0xa8] sm:$0xff] %v6667_v2  ;;  %v6700_v5 = vadd.f32 %v5634_v3, %v8698_v10  ;;  %v6669_v19 = vadd.f32 %v5410_v52, %v8701_v21  ;;  %v5636_v33 = vpop.f32.mrb[71].mxu1 }
 0x3eb   : > { %5722 = vst [vmem:[%s8563_s28 + $0xb8] sm:$0xff] %v6699_v43  ;;  %5727 = vst [vmem:[%s8563_s28 + $0xe0] sm:$0xff] %v6668_v32  ;;  %v6701_v49 = vadd.f32 %v5636_v33, %v8704_v60 }
 0x3ec   : > { %5729 = vst [vmem:[%s8563_s28 + $0xf0] sm:$0xff] %v6700_v5  ;;  %5728 = vst [vmem:[%s8563_s28 + $0xe8] sm:$0xff] %v6669_v19 }
 0x3ed   : > { %5730 = vst [vmem:[%s8563_s28 + $0xf8] sm:$0xff] %v6701_v49 }
 0x3ee   : > { %v5414_v45 = vpop.f32.mrb[72].mxu0 }
 0x3ef   : > { %v6670_v38 = vadd.f32 %v5414_v45, %v8695_v29  ;;  %v5640_v20 = vpop.f32.mrb[72].mxu1  ;;  %v5416_v37 = vpop.f32.mrb[73].mxu0 }
 0x3f0   : > { %v6702_v8 = vadd.f32 %v5640_v20, %v8698_v10  ;;  %v6671_v14 = vadd.f32 %v5416_v37, %v8701_v21  ;;  %v5642_v47 = vpop.f32.mrb[73].mxu1  ;;  %v5418_v7 = vpop.f32.mrb[74].mxu0 }
 0x3f1   : > { %5735 = vst [vmem:[%s8563_s28 + $0x120] sm:$0xff] %v6670_v38  ;;  %v6703_v57 = vadd.f32 %v5642_v47, %v8704_v60  ;;  %v6672_v23 = vadd.f32 %v5418_v7, %v8695_v29  ;;  %v5644_v44 = vpop.f32.mrb[74].mxu1  ;;  %v5420_v46 = vpop.f32.mrb[75].mxu0 }
 0x3f2   : > { %5737 = vst [vmem:[%s8563_s28 + $0x130] sm:$0xff] %v6702_v8  ;;  %5736 = vst [vmem:[%s8563_s28 + $0x128] sm:$0xff] %v6671_v14  ;;  %v6704_v55 = vadd.f32 %v5644_v44, %v8698_v10  ;;  %v6673_v12 = vadd.f32 %v5420_v46, %v8701_v21  ;;  %v5646_v62 = vpop.f32.mrb[75].mxu1 }
 0x3f3   : > { %5738 = vst [vmem:[%s8563_s28 + $0x138] sm:$0xff] %v6703_v57  ;;  %5743 = vst [vmem:[%s8563_s28 + $0x160] sm:$0xff] %v6672_v23  ;;  %v6705_v1 = vadd.f32 %v5646_v62, %v8704_v60 }
 0x3f4   : > { %5745 = vst [vmem:[%s8563_s28 + $0x170] sm:$0xff] %v6704_v55  ;;  %5744 = vst [vmem:[%s8563_s28 + $0x168] sm:$0xff] %v6673_v12 }
 0x3f5   : > { %5746 = vst [vmem:[%s8563_s28 + $0x178] sm:$0xff] %v6705_v1 }
 0x3f6   : > { %v5424_v51 = vpop.f32.mrb[76].mxu0 }
 0x3f7   : > { %v6674_v40 = vadd.f32 %v5424_v51, %v8695_v29  ;;  %v5650_v22 = vpop.f32.mrb[76].mxu1  ;;  %v5426_v27 = vpop.f32.mrb[77].mxu0 }
 0x3f8   : > { %v6706_v6 = vadd.f32 %v5650_v22, %v8698_v10  ;;  %v6675_v25 = vadd.f32 %v5426_v27, %v8701_v21  ;;  %v5652_v13 = vpop.f32.mrb[77].mxu1  ;;  %v5428_v26 = vpop.f32.mrb[78].mxu0 }
 0x3f9   : > { %5751 = vst [vmem:[%s8563_s28 + $0x1a0] sm:$0xff] %v6674_v40  ;;  %v6707_v54 = vadd.f32 %v5652_v13, %v8704_v60  ;;  %v6676_v61 = vadd.f32 %v5428_v26, %v8695_v29  ;;  %v5654_v15 = vpop.f32.mrb[78].mxu1  ;;  %v5430_v42 = vpop.f32.mrb[79].mxu0 }
 0x3fa   : > { %5753 = vst [vmem:[%s8563_s28 + $0x1b0] sm:$0xff] %v6706_v6  ;;  %5752 = vst [vmem:[%s8563_s28 + $0x1a8] sm:$0xff] %v6675_v25  ;;  %v6708_v30 = vadd.f32 %v5654_v15, %v8698_v10  ;;  %v6677_v16 = vadd.f32 %v5430_v42, %v8701_v21  ;;  %v5656_v59 = vpop.f32.mrb[79].mxu1 }
 0x3fb   : > { %5754 = vst [vmem:[%s8563_s28 + $0x1b8] sm:$0xff] %v6707_v54  ;;  %5759 = vst [vmem:[%s8563_s28 + $0x1e0] sm:$0xff] %v6676_v61  ;;  %v6709_v9 = vadd.f32 %v5656_v59, %v8704_v60 }
 0x3fc   : > { %5761 = vst [vmem:[%s8563_s28 + $0x1f0] sm:$0xff] %v6708_v30  ;;  %5760 = vst [vmem:[%s8563_s28 + $0x1e8] sm:$0xff] %v6677_v16 }
 0x3fd   : > { %5762 = vst [vmem:[%s8563_s28 + $0x1f8] sm:$0xff] %v6709_v9 }
 0x3fe   : > { %v5434_v0 = vpop.f32.mrb[80].mxu0 }
 0x3ff   : > { %v6678_v34 = vadd.f32 %v5434_v0, %v8695_v29  ;;  %v5660_v48 = vpop.f32.mrb[80].mxu1  ;;  %v5436_v28 = vpop.f32.mrb[81].mxu0 }
 0x400   : > { %v6710_v11 = vadd.f32 %v5660_v48, %v8698_v10  ;;  %v6679_v17 = vadd.f32 %v5436_v28, %v8701_v21  ;;  %v5662_v18 = vpop.f32.mrb[81].mxu1  ;;  %v5438_v50 = vpop.f32.mrb[82].mxu0 }
 0x401   : > { %5767 = vst [vmem:[%s8563_s28 + $0x220] sm:$0xff] %v6678_v34  ;;  %v6711_v41 = vadd.f32 %v5662_v18, %v8704_v60  ;;  %v6680_v63 = vadd.f32 %v5438_v50, %v8695_v29  ;;  %v5664_v53 = vpop.f32.mrb[82].mxu1  ;;  %v5440_v31 = vpop.f32.mrb[83].mxu0 }
 0x402   : > { %5769 = vst [vmem:[%s8563_s28 + $0x230] sm:$0xff] %v6710_v11  ;;  %5768 = vst [vmem:[%s8563_s28 + $0x228] sm:$0xff] %v6679_v17  ;;  %v6712_v4 = vadd.f32 %v5664_v53, %v8698_v10  ;;  %v6681_v58 = vadd.f32 %v5440_v31, %v8701_v21  ;;  %v5666_v35 = vpop.f32.mrb[83].mxu1 }
 0x403   : > { %5770 = vst [vmem:[%s8563_s28 + $0x238] sm:$0xff] %v6711_v41  ;;  %5775 = vst [vmem:[%s8563_s28 + $0x260] sm:$0xff] %v6680_v63  ;;  %v6713_v56 = vadd.f32 %v5666_v35, %v8704_v60 }
 0x404   : > { %5777 = vst [vmem:[%s8563_s28 + $0x270] sm:$0xff] %v6712_v4  ;;  %5776 = vst [vmem:[%s8563_s28 + $0x268] sm:$0xff] %v6681_v58 }
 0x405   : > { %5778 = vst [vmem:[%s8563_s28 + $0x278] sm:$0xff] %v6713_v56 }
 0x406   : > { %v5444_v36 = vpop.f32.mrb[84].mxu0 }
 0x407   : > { %v6682_v2 = vadd.f32 %v5444_v36, %v8695_v29  ;;  %v5670_v39 = vpop.f32.mrb[84].mxu1  ;;  %v5446_v24 = vpop.f32.mrb[85].mxu0 }
 0x408   : > { %v6714_v43 = vadd.f32 %v5670_v39, %v8698_v10  ;;  %v6683_v32 = vadd.f32 %v5446_v24, %v8701_v21  ;;  %v5672_v3 = vpop.f32.mrb[85].mxu1  ;;  %v5448_v52 = vpop.f32.mrb[86].mxu0 }
 0x409   : > { %5783 = vst [vmem:[%s8563_s28 + $0x2a0] sm:$0xff] %v6682_v2  ;;  %v6715_v5 = vadd.f32 %v5672_v3, %v8704_v60  ;;  %v6684_v19 = vadd.f32 %v5448_v52, %v8695_v29  ;;  %v5674_v33 = vpop.f32.mrb[86].mxu1  ;;  %v5450_v49 = vpop.f32.mrb[87].mxu0 }
 0x40a   : > { %5785 = vst [vmem:[%s8563_s28 + $0x2b0] sm:$0xff] %v6714_v43  ;;  %5784 = vst [vmem:[%s8563_s28 + $0x2a8] sm:$0xff] %v6683_v32  ;;  %v6716_v45 = vadd.f32 %v5674_v33, %v8698_v10  ;;  %v6685_v38 = vadd.f32 %v5450_v49, %v8701_v21  ;;  %v5676_v20 = vpop.f32.mrb[87].mxu1 }
 0x40b   : > { %5786 = vst [vmem:[%s8563_s28 + $0x2b8] sm:$0xff] %v6715_v5  ;;  %5791 = vst [vmem:[%s8563_s28 + $0x2e0] sm:$0xff] %v6684_v19  ;;  %v6717_v37 = vadd.f32 %v5676_v20, %v8704_v60 }
 0x40c   : > { %5793 = vst [vmem:[%s8563_s28 + $0x2f0] sm:$0xff] %v6716_v45  ;;  %5792 = vst [vmem:[%s8563_s28 + $0x2e8] sm:$0xff] %v6685_v38 }
 0x40d   : > { %5794 = vst [vmem:[%s8563_s28 + $0x2f8] sm:$0xff] %v6717_v37 }
 0x40e   : > { %v5454_v8 = vpop.f32.mrb[88].mxu0 }
 0x40f   : > { %v6686_v14 = vadd.f32 %v5454_v8, %v8695_v29  ;;  %v5680_v47 = vpop.f32.mrb[88].mxu1  ;;  %v5456_v7 = vpop.f32.mrb[89].mxu0 }
 0x410   : > { %v6718_v57 = vadd.f32 %v5680_v47, %v8698_v10  ;;  %v6687_v23 = vadd.f32 %v5456_v7, %v8701_v21  ;;  %v5682_v44 = vpop.f32.mrb[89].mxu1  ;;  %v5458_v46 = vpop.f32.mrb[90].mxu0 }
 0x411   : > { %5799 = vst [vmem:[%s8563_s28 + $0x320] sm:$0xff] %v6686_v14  ;;  %v6719_v55 = vadd.f32 %v5682_v44, %v8704_v60  ;;  %v6688_v12 = vadd.f32 %v5458_v46, %v8695_v29  ;;  %v5684_v62 = vpop.f32.mrb[90].mxu1  ;;  %v5460_v1 = vpop.f32.mrb[91].mxu0 }
 0x412   : > { %5801 = vst [vmem:[%s8563_s28 + $0x330] sm:$0xff] %v6718_v57  ;;  %5800 = vst [vmem:[%s8563_s28 + $0x328] sm:$0xff] %v6687_v23  ;;  %v6720_v51 = vadd.f32 %v5684_v62, %v8698_v10  ;;  %v6689_v40 = vadd.f32 %v5460_v1, %v8701_v21  ;;  %v5686_v22 = vpop.f32.mrb[91].mxu1 }
 0x413   : > { %5802 = vst [vmem:[%s8563_s28 + $0x338] sm:$0xff] %v6719_v55  ;;  %5807 = vst [vmem:[%s8563_s28 + $0x360] sm:$0xff] %v6688_v12  ;;  %v6721_v27 = vadd.f32 %v5686_v22, %v8704_v60 }
 0x414   : > { %5809 = vst [vmem:[%s8563_s28 + $0x370] sm:$0xff] %v6720_v51  ;;  %5808 = vst [vmem:[%s8563_s28 + $0x368] sm:$0xff] %v6689_v40 }
 0x415   : > { %5810 = vst [vmem:[%s8563_s28 + $0x378] sm:$0xff] %v6721_v27 }
 0x416   : > { %v5464_v6 = vpop.f32.mrb[92].mxu0 }
 0x417   : > { %v6690_v25 = vadd.f32 %v5464_v6, %v8695_v29  ;;  %v5690_v13 = vpop.f32.mrb[92].mxu1  ;;  %v5466_v26 = vpop.f32.mrb[93].mxu0 }
 0x418   : > { %v6722_v54 = vadd.f32 %v5690_v13, %v8698_v10  ;;  %v6691_v61 = vadd.f32 %v5466_v26, %v8701_v21  ;;  %v5692_v15 = vpop.f32.mrb[93].mxu1  ;;  %v5468_v42 = vpop.f32.mrb[94].mxu0 }
 0x419   : > { %5815 = vst [vmem:[%s8563_s28 + $0x3a0] sm:$0xff] %v6690_v25  ;;  %v6723_v30 = vadd.f32 %v5692_v15, %v8704_v60  ;;  %v6692_v16 = vadd.f32 %v5468_v42, %v8695_v29  ;;  %v5694_v59 = vpop.f32.mrb[94].mxu1  ;;  %v5470_v9 = vpop.f32.mrb[95].mxu0 }
 0x41a   : > { %5817 = vst [vmem:[%s8563_s28 + $0x3b0] sm:$0xff] %v6722_v54  ;;  %5816 = vst [vmem:[%s8563_s28 + $0x3a8] sm:$0xff] %v6691_v61  ;;  %v6724_v0 = vadd.f32 %v5694_v59, %v8698_v10  ;;  %v6693_v34 = vadd.f32 %v5470_v9, %v8701_v21  ;;  %v5696_v48 = vpop.f32.mrb[95].mxu1 }
 0x41b   : > { %5818 = vst [vmem:[%s8563_s28 + $0x3b8] sm:$0xff] %v6723_v30  ;;  %5823 = vst [vmem:[%s8563_s28 + $0x3e0] sm:$0xff] %v6692_v16  ;;  %v6725_v29 = vadd.f32 %v5696_v48, %v8704_v60 }
 0x41c   : > { %5825 = vst [vmem:[%s8563_s28 + $0x3f0] sm:$0xff] %v6724_v0  ;;  %5824 = vst [vmem:[%s8563_s28 + $0x3e8] sm:$0xff] %v6693_v34 }
 0x41d   : > { %5826 = vst [vmem:[%s8563_s28 + $0x3f8] sm:$0xff] %v6725_v29 }
 0x41e   : > { %7602 = shalt.err (!%p7599_p2)
}
 0x41f   : > { %s7603_s24 = scalar_lea.hbm %s8833_s11, 16384  ;;  %s7607_s13 = scalar_lea.hbm %s8890_s5, 32768 }
 0x420   : > { %p7604_p13 = scmp.ne.s32.totalorder %s8833_s11, %s7603_s24  ;;  %p7608_p4 = scmp.lt.u32.totalorder %s8833_s11, %s8890_s5 }
 0x421   : > { %p7609_p7 = scmp.lt.u32.totalorder %s7607_s13, %s7603_s24  ;;  %p7611_p11 = scmp.lt.u32.totalorder %s7603_s24, %s8833_s11 }
 0x422   : > { %p7605_p6 = pnand %p7604_p13, %p8912_p0 }
 0x423   : > { %p7610_p8 = por %p7609_p7, %p7608_p4 }
 0x424   : > { %p7606_p10 = pneg %p7605_p6 }
 0x425   : > { %p7612_p1 = por %p7611_p11, %p7610_p8 }
 0x427   : > { %p7613_p3 = pnand %p7612_p1, %p7606_p10 }
 0x429   : > { %7616 = shalt.err (!%p7613_p3)
}
 0x42a   : > { %s7669_s14 = smov 1024   ;;  %s7670_s22 = smov 64  }
 0x42b   : > { %7056 = dma.vmem_to_hbm [thread:$0]  (%p8912_p0), %s8835_s15, 16384, %s8833_s11, %s5828_s23, %s7669_s14, %s7669_s14, %s7670_s22  }
 0x42c PF: > { %s5857_s30 = sand.u32 1, %s7647_s18   ;;  %p8913_p5 = scmp.ne.s32.totalorder %s8899_s25, 0 }
 0x42d   : > { %p8914_p9 = scmp.ge.s32.totalorder %s7659_s21, 2  ;;  %s5858_s7 = scalar_lea.sflag [#allocation4], %s5857_s30 }
 0x42f   : > { %p7070_p12 = pnand %p8914_p9, %p8913_p5 }
 0x431   : > { %7642 = dma.done.wait (!%p7070_p12), %s5858_s7, 16384  }
 0x432   : > { %7644 = vsyncadd (!%p7070_p12), %s5858_s7, 4294950912  ;;  %p19_p2 = scmp.ge.s32.totalorder %s7814_s16, 4   ;;  %s8915_s18 = smov %s7651_s19 }
 0x433   : > { %s8916_s19 = smov %s7655_s20  ;;  %s8917_s20 = smov %s7823_s27 }
 0x434   : > { %s8918_s21 = smov %s7814_s16  ;;  %21 = sbr.rel (!%p19_p2) target bundleno = 6 (0x6), region = 93 }
 0x43b   :  { %5863 = vsyncpa [#allocation3], 1 }
 0x43c   :  { %5865 = vsyncpa [#allocation3 + $0x1], 1 }
 0x43d   :  { %5866 = vsyncpa [#allocation6], 1 }
 0x43e   :  { %5867 = vsyncpa [#allocation4], 1 }
 0x43f   :  { %5869 = vsyncpa [#allocation4 + $0x1], 1 }

// kernel: tpu_custom_call.1
= control target key start
LH: loop header
LB: loop body
LE: loop exit
PB: predicated region body
PF: predicated region fallthrough
CT: control target
= control target key end

     0   :  { %10 = vsyncpa [#allocation3], 0  ;;  %s8885_s0 = inlined_call_operand.hbm [shape: bf16[256,1024], index: 0, kind: input, shape index: {}]   ;;  %s8886_s1 = inlined_call_operand.hbm [shape: bf16[1024,512], index: 1, kind: input, shape index: {}]   ;;  %s8887_s2 = inlined_call_operand.vmem [shape: f32[1,512], index: 2, kind: input, shape index: {}]   ;;  %s8888_s3 = inlined_call_operand.hbm [shape: bf16[512,1024], index: 3, kind: input, shape index: {}]   ;;  %s8889_s4 = inlined_call_operand.vmem [shape: f32[1,1024], index: 4, kind: input, shape index: {}]   ;;  %s8890_s5 = inlined_call_operand.hbm [shape: f32[256,1024], index: 5, kind: output, shape index: {}]  }
   0x1   :  { %12 = vsyncpa [#allocation3 + $0x1], 0 }
   0x2   :  { %13 = vsyncpa [#allocation6], 0 }
   0x3   :  { %14 = vsyncpa [#allocation4], 0 }
   0x4   :  { %16 = vsyncpa [#allocation4 + $0x1], 0  ;;  %s7701_s18 = smov 0   ;;  %s7703_s19 = smov 0  }
   0x5   :  { %s7705_s20 = smov 0   ;;  %s7707_s21 = smov 0  }
   0x6 LB: > { %s7722_s22 = sadd.s32 4294967295, %s7659_s21   ;;  %s5934_s23 = sadd.s32 4294967294, %s7659_s21   ;;  %s7659_s21 = sphi %s7707_s21, %s8918_s21   ;;  %s7655_s20 = sphi %s7705_s20, %s8917_s20   ;;  %s7651_s19 = sphi %s7703_s19, %s8916_s19   ;;  %s7647_s18 = sphi %s7701_s18, %s8915_s18  }
   0x7   : > { %p42_p0 = scmp.ne.s32.totalorder %s7651_s19, %s7647_s18  ;;  %p8891_p1 = scmp.eq.s32.totalorder %s7722_s22, 0 }
   0x8   : > { %p156_p3 = scmp.eq.s32.totalorder %s5934_s23, 1  ;;  %p5935_p5 = scmp.ge.s32.totalorder %s7659_s21, 1 }
   0x9   : > { %p7731_p4 = por %p8891_p1, %p42_p0  ;;  %p163_p7 = scmp.lt.s32.totalorder %s7659_s21, 3 }
   0xa   : > { %p7736_p6 = por %p156_p3, %p42_p0  ;;  %s7661_s27 = smov [#allocation5]  }
   0xb   : > { %s8898_s24 = scalar_select %p7731_p4, 1, 0 }
   0xc   : > { %s8899_s25 = scalar_select %p7736_p6, 1, 0 }
   0xd   : > { %p7741_p8 = pnand %p5935_p5, %p163_p7  ;;  %s175_s28 = sshll.u32 %s7661_s27, 4  ;;  %s7745_s28 = int_to_ptr.vmem [resolvable:$true] %s175_s28 }
   0xe   : > { %s7662_s30 = smov [#allocation7]   ;;  %s7503_s9 = scalar_lea.hbm %s8886_s1, 32768 }
   0xf   : > { %p7058_p9 = pneg %p7741_p8  ;;  %s191_s6 = sshll.u32 %s7662_s30, 4  ;;  %s7756_s6 = int_to_ptr.vmem [resolvable:$true] %s191_s6 }
  0x10   : > { %p7504_p12 = scmp.ne.s32.totalorder %s8886_s1, %s7503_s9  ;;  %p7510_p5 = scmp.lt.u32.totalorder %s7503_s9, %s8886_s1 }
  0x11   : > { %p7752_p11 = pnand %p7058_p9, %p8891_p1 }
  0x13   : > { %p7505_p13 = pneg %p7752_p11 }
  0x15   : > { %p7506_p0 = pnand %p7505_p13, %p7504_p12 }
  0x17   : > { %p7507_p3 = pneg %p7506_p0 }
  0x19   : > { %p7512_p7 = pnand %p7510_p5, %p7507_p3 }
  0x1b   : > { %7515 = shalt.err (!%p7512_p7)
}
  0x1c   : > { %s7516_s14 = scalar_lea.vmem %s7745_s28, 32768  ;;  %p7524_p2 = scmp.lt.s32.totalorder %s7745_s28, %s7745_s28 }
  0x1d   : > { %p7517_p9 = scmp.ne.s32.totalorder %s7745_s28, %s7516_s14  ;;  %p7525_p12 = scmp.lt.s32.totalorder %s7516_s14, %s7516_s14 }
  0x1f   : > { %p7519_p10 = pnand %p7517_p9, %p7505_p13  ;;  %p7526_p0 = por %p7525_p12, %p7524_p2 }
  0x21   : > { %p7520_p1 = pneg %p7519_p10 }
  0x23   : > { %p7527_p6 = pnand %p7526_p0, %p7520_p1 }
  0x25   : > { %7530 = shalt.err (!%p7527_p6)
}
  0x26   : > { %s7663_s15 = smov 256   ;;  %s7664_s16 = smov 16  }
  0x27   : > { %7061 = dma.hbm_to_vmem [thread:$0]  (!%p7752_p11), %s8886_s1, 32768, %s7745_s28, [#allocation6], %s7663_s15, %s7663_s15, %s7664_s16  }
  0x28   : > { %s7531_s7 = scalar_lea.hbm %s8888_s3, 32768 }
  0x29   : > { %p7532_p2 = scmp.ne.s32.totalorder %s8888_s3, %s7531_s7  ;;  %p7538_p10 = scmp.lt.u32.totalorder %s7531_s7, %s8888_s3 }
  0x2b   : > { %p7534_p1 = pnand %p7532_p2, %p7505_p13 }
  0x2d   : > { %p7535_p6 = pneg %p7534_p1 }
  0x2f   : > { %p7540_p3 = pnand %p7538_p10, %p7535_p6 }
  0x31   : > { %7543 = shalt.err (!%p7540_p3)
}
  0x32   : > { %s7544_s28 = scalar_lea.vmem %s7756_s6, 32768  ;;  %p7552_p12 = scmp.lt.s32.totalorder %s7756_s6, %s7756_s6 }
  0x33   : > { %p7545_p5 = scmp.ne.s32.totalorder %s7756_s6, %s7544_s28  ;;  %p7553_p0 = scmp.lt.s32.totalorder %s7544_s28, %s7544_s28 }
  0x35   : > { %p7547_p7 = pnand %p7545_p5, %p7505_p13  ;;  %p7554_p2 = por %p7553_p0, %p7552_p12 }
  0x37   : > { %p7548_p9 = pneg %p7547_p7 }
  0x39   : > { %p7555_p1 = pnand %p7554_p2, %p7548_p9 }
  0x3b   : > { %7558 = shalt.err (!%p7555_p1)
}
  0x3c   : > { %s7665_s12 = smov 512   ;;  %s7666_s13 = smov 32  }
  0x3d   : > { %7064 = dma.hbm_to_vmem [thread:$0]  (!%p7752_p11), %s8888_s3, 32768, %s7756_s6, [#allocation6], %s7665_s12, %s7665_s12, %s7666_s13  }
  0x3e   : > { %s7814_s16 = sadd.s32 1, %s7659_s21   ;;  %s29_s23 = sadd.s32 1, %s7655_s20 }
  0x3f   : > { %s26_s17 = ssub.s32 %s7659_s21, %s7814_s16  ;;  %p36_p6 = scmp.ne.s32.totalorder %s7655_s20, %s7651_s19 }
  0x40   : > { %p27_p13 = scmp.eq.s32.totalorder %s26_s17, 0  ;;  %p37_p10 = scmp.eq.s32.totalorder %s7659_s21, 0 }
  0x41   : > { %p8902_p5 = scmp.eq.s32.totalorder %s7722_s22, 1  ;;  %p7075_p9 = scmp.lt.s32.totalorder %s7659_s21, 2 }
  0x42   : > { %s7823_s27 = scalar_select %p27_p13, %s7655_s20, %s29_s23  }
  0x43   : > { %p38_p3 = por %p37_p10, %p36_p6  ;;  %p7827_p7 = por %p8902_p5, %p36_p6 }
  0x44   : > { %s208_s30 = sand.u32 1, %s7655_s20   ;;  %s6531_s6 = sshll.u32 %s7659_s21, 13 }
  0x45   : > { %s8903_s29 = scalar_select %p7827_p7, 1, 0 }
  0x46   : > { %s5939_s7 = sshll.u32 %s208_s30, 9  ;;  %s7837_s10 = scalar_lea.hbm %s8885_s0, %s6531_s6 }
  0x47   : > { %s212_s11 = scalar_lea.vmem [#allocation2], %s5939_s7  ;;  %p7841_p11 = pnand %p7075_p9, %p38_p3 }
  0x48   : > { %s220_s28 = sshll.u32 %s212_s11, 4  ;;  %s7845_s15 = scalar_lea.sflag [#allocation3], %s208_s30  ;;  %s7839_s28 = int_to_ptr.vmem [resolvable:$true] %s220_s28 }
  0x49   : > { %s7559_s17 = scalar_lea.hbm %s7837_s10, 8192  ;;  %p7561_p0 = pneg %p7841_p11 }
  0x4a   : > { %p7560_p12 = scmp.ne.s32.totalorder %s7837_s10, %s7559_s17  ;;  %s7564_s6 = scalar_lea.hbm %s8885_s0, 16384 }
  0x4b   : > { %p7565_p13 = scmp.lt.u32.totalorder %s7837_s10, %s8885_s0  ;;  %p7566_p6 = scmp.lt.u32.totalorder %s7564_s6, %s7559_s17 }
  0x4c   : > { %p7562_p2 = pnand %p7561_p0, %p7560_p12  ;;  %p7568_p3 = scmp.lt.u32.totalorder %s7559_s17, %s7837_s10 }
  0x4d   : > { %p7567_p10 = por %p7566_p6, %p7565_p13 }
  0x4e   : > { %p7563_p1 = pneg %p7562_p2 }
  0x4f   : > { %p7569_p5 = por %p7568_p3, %p7567_p10 }
  0x51   : > { %p7570_p9 = pnand %p7569_p5, %p7563_p1 }
  0x53   : > { %7573 = shalt.err (!%p7570_p9)
}
  0x54   : > { %s7574_s30 = scalar_lea.vmem %s7839_s28, 8192  ;;  %s7667_s11 = smov [#allocation2]  }
  0x55   : > { %p7575_p12 = scmp.ne.s32.totalorder %s7839_s28, %s7574_s30  ;;  %s7579_s23 = sshll.u32 %s7667_s11, 4  ;;  %s7580_s23 = int_to_ptr.vmem [resolvable:$false] %s7579_s23 }
  0x56   : > { %s7581_s7 = scalar_lea.vmem %s7580_s23, 16384  ;;  %p7582_p4 = scmp.lt.s32.totalorder %s7839_s28, %s7580_s23 }
  0x57   : > { %p7577_p2 = pnand %p7575_p12, %p7561_p0  ;;  %p7583_p13 = scmp.lt.s32.totalorder %s7581_s7, %s7574_s30 }
  0x59   : > { %p7578_p7 = pneg %p7577_p2  ;;  %p7584_p6 = por %p7583_p13, %p7582_p4 }
  0x5b   : > { %p7585_p10 = pnand %p7584_p6, %p7578_p7 }
  0x5d   : > { %7588 = shalt.err (!%p7585_p10)
}
  0x5e   : > { %7068 = dma.hbm_to_vmem [thread:$0]  (!%p7841_p11), %s7837_s10, 8192, %s7839_s28, %s7845_s15, %s7665_s12, %s7665_s12, %s7666_s13  }
  0x5f   : > { %232 = sbr.rel (%p7741_p8) target bundleno = 1068 (0x42c), region = 40  ;;  %s7879_s17 = sand.u32 (!%p7741_p8), 1, %s7651_s19  }
  0x60   : > { %s5944_s6 = sshll.u32 (!%p7741_p8), %s7879_s17, 9  ;;  %s235_s8 = scalar_lea.sflag (!%p7741_p8), [#allocation3], %s7879_s17 }
  0x61   : > { %s7883_s9 = scalar_lea.vmem (!%p7741_p8), [#allocation2], %s5944_s6  ;;  %p8905_p4 = scmp.ne.s32.totalorder (!%p7741_p8), %s8898_s24, 0 }
  0x66   : > { %7634 = dma.done.wait (%p8905_p4), %s235_s8, 8192  }
  0x67   : > { %7636 = vsyncadd (%p8905_p4), %s235_s8, 4294959104  ;;  %p8906_p7 = scmp.eq.s32.totalorder %s7722_s22, 0 }
  0x69   : > { %7638 = dma.done.wait (%p8906_p7), [#allocation6], 65536   ;;  %p8907_p8 = pmov %p8906_p7 }
  0x6a   : > { %v7119_v0 = vld [vmem:[#allocation5 + $0x4] ss:$16 sps:$4 sm:$0xff]   ;;  %v7121_v1 = vld [vmem:[#allocation5 + $0xc] ss:$16 sps:$4 sm:$0xff]   ;;  %v7123_v2 = vld [vmem:[#allocation5] ss:$16 sps:$4 sm:$0xff]  }
  0x6b   : > { %7640 = vsyncadd (%p8907_p8), [#allocation6], 4294901760  ;;  %2217 = vmatprep.subr.bf16.mxu0 %v7119_v0  ;;  %v7124_v3 = vld [vmem:[#allocation5 + $0x8] ss:$16 sps:$4 sm:$0xff]   ;;  %2669 = vmatprep.subr.bf16.mxu1 %v7121_v1  ;;  %v7125_v4 = vld [vmem:[#allocation5 + $0x24] ss:$16 sps:$4 sm:$0xff]  }
  0x6c   : > { %2218 = vmatpush1.bf16.msra.mxu0 %v7123_v2  ;;  %2670 = vmatpush1.bf16.msra.mxu1 %v7124_v3  ;;  %v7127_v5 = vld [vmem:[#allocation5 + $0x2c] ss:$16 sps:$4 sm:$0xff]   ;;  %v7129_v6 = vld [vmem:[#allocation5 + $0x20] ss:$16 sps:$4 sm:$0xff]   ;;  %v7130_v7 = vld [vmem:[#allocation5 + $0x28] ss:$16 sps:$4 sm:$0xff]  }
  0x6d   : > { %2219 = vmatprep.subr.bf16.mxu0 %v7125_v4  ;;  %2671 = vmatprep.subr.bf16.mxu1 %v7127_v5  ;;  %v7131_v8 = vld [vmem:[#allocation5 + $0x44] ss:$16 sps:$4 sm:$0xff]   ;;  %v7133_v9 = vld [vmem:[#allocation5 + $0x4c] ss:$16 sps:$4 sm:$0xff]   ;;  %v7135_v10 = vld [vmem:[#allocation5 + $0x40] ss:$16 sps:$4 sm:$0xff]  }
  0x6e   : > { %v7136_v11 = vld [vmem:[#allocation5 + $0x48] ss:$16 sps:$4 sm:$0xff]   ;;  %v7137_v12 = vld [vmem:[#allocation5 + $0x64] ss:$16 sps:$4 sm:$0xff]   ;;  %v7139_v13 = vld [vmem:[#allocation5 + $0x6c] ss:$16 sps:$4 sm:$0xff]  }
  0x6f   : > { %v7141_v14 = vld [vmem:[#allocation5 + $0x60] ss:$16 sps:$4 sm:$0xff]   ;;  %v7142_v15 = vld [vmem:[#allocation5 + $0x68] ss:$16 sps:$4 sm:$0xff]   ;;  %v7143_v16 = vld [vmem:[#allocation5 + $0x84] ss:$16 sps:$4 sm:$0xff]  }
  0x70   : > { %2220 = vmatpush1.bf16.msra.mxu0 %v7129_v6  ;;  %2672 = vmatpush1.bf16.msra.mxu1 %v7130_v7  ;;  %v7145_v17 = vld [vmem:[#allocation5 + $0x8c] ss:$16 sps:$4 sm:$0xff]   ;;  %v7147_v18 = vld [vmem:[#allocation5 + $0x80] ss:$16 sps:$4 sm:$0xff]   ;;  %v7148_v19 = vld [vmem:[#allocation5 + $0x88] ss:$16 sps:$4 sm:$0xff]  }
  0x71   : > { %2221 = vmatprep.subr.bf16.mxu0 %v7131_v8  ;;  %2673 = vmatprep.subr.bf16.mxu1 %v7133_v9  ;;  %v7149_v20 = vld [vmem:[#allocation5 + $0xa4] ss:$16 sps:$4 sm:$0xff]   ;;  %v7151_v21 = vld [vmem:[#allocation5 + $0xac] ss:$16 sps:$4 sm:$0xff]   ;;  %v7153_v22 = vld [vmem:[#allocation5 + $0xa0] ss:$16 sps:$4 sm:$0xff]  }
  0x72   : > { %v7154_v23 = vld [vmem:[#allocation5 + $0xa8] ss:$16 sps:$4 sm:$0xff]   ;;  %v7155_v24 = vld [vmem:[#allocation5 + $0xc4] ss:$16 sps:$4 sm:$0xff]   ;;  %v7157_v25 = vld [vmem:[#allocation5 + $0xcc] ss:$16 sps:$4 sm:$0xff]  }
  0x73   : > { %v7159_v26 = vld [vmem:[#allocation5 + $0xc0] ss:$16 sps:$4 sm:$0xff]   ;;  %v7160_v27 = vld [vmem:[#allocation5 + $0xc8] ss:$16 sps:$4 sm:$0xff]   ;;  %v7161_v28 = vld [vmem:[#allocation5 + $0xe4] ss:$16 sps:$4 sm:$0xff]  }
  0x74   : > { %2222 = vmatpush1.bf16.msra.mxu0 %v7135_v10  ;;  %2674 = vmatpush1.bf16.msra.mxu1 %v7136_v11  ;;  %v7163_v29 = vld [vmem:[#allocation5 + $0xec] ss:$16 sps:$4 sm:$0xff]   ;;  %v7165_v30 = vld [vmem:[#allocation5 + $0xe0] ss:$16 sps:$4 sm:$0xff]   ;;  %v7166_v31 = vld [vmem:[#allocation5 + $0xe8] ss:$16 sps:$4 sm:$0xff]  }
  0x75   : > { %2223 = vmatprep.subr.bf16.mxu0 %v7137_v12  ;;  %2675 = vmatprep.subr.bf16.mxu1 %v7139_v13  ;;  %v7167_v32 = vld [vmem:[#allocation5 + $0x104] ss:$16 sps:$4 sm:$0xff]   ;;  %v7169_v33 = vld [vmem:[#allocation5 + $0x10c] ss:$16 sps:$4 sm:$0xff]   ;;  %v7171_v34 = vld [vmem:[#allocation5 + $0x100] ss:$16 sps:$4 sm:$0xff]  }
  0x76   : > { %v7172_v35 = vld [vmem:[#allocation5 + $0x108] ss:$16 sps:$4 sm:$0xff]   ;;  %v7173_v36 = vld [vmem:[#allocation5 + $0x124] ss:$16 sps:$4 sm:$0xff]   ;;  %v7175_v37 = vld [vmem:[#allocation5 + $0x12c] ss:$16 sps:$4 sm:$0xff]  }
  0x77   : > { %v7177_v38 = vld [vmem:[#allocation5 + $0x120] ss:$16 sps:$4 sm:$0xff]   ;;  %v7178_v39 = vld [vmem:[#allocation5 + $0x128] ss:$16 sps:$4 sm:$0xff]   ;;  %v7179_v40 = vld [vmem:[#allocation5 + $0x144] ss:$16 sps:$4 sm:$0xff]  }
  0x78   : > { %2224 = vmatpush1.bf16.msra.mxu0 %v7141_v14  ;;  %2676 = vmatpush1.bf16.msra.mxu1 %v7142_v15  ;;  %v7181_v41 = vld [vmem:[#allocation5 + $0x14c] ss:$16 sps:$4 sm:$0xff]   ;;  %v7183_v42 = vld [vmem:[#allocation5 + $0x140] ss:$16 sps:$4 sm:$0xff]   ;;  %v7184_v43 = vld [vmem:[#allocation5 + $0x148] ss:$16 sps:$4 sm:$0xff]  }
  0x79   : > { %2225 = vmatprep.subr.bf16.mxu0 %v7143_v16  ;;  %2677 = vmatprep.subr.bf16.mxu1 %v7145_v17  ;;  %v7185_v44 = vld [vmem:[#allocation5 + $0x164] ss:$16 sps:$4 sm:$0xff]   ;;  %v7187_v45 = vld [vmem:[#allocation5 + $0x16c] ss:$16 sps:$4 sm:$0xff]   ;;  %v7189_v48 = vld [vmem:[#allocation5 + $0x160] ss:$16 sps:$4 sm:$0xff]  }
  0x7a   : > { %v275_v46 = vld [vmem:[%s7883_s9] sm:$0xff]  ;;  %v7190_v49 = vld [vmem:[#allocation5 + $0x168] ss:$16 sps:$4 sm:$0xff]   ;;  %v7193_v52 = vld [vmem:[#allocation5 + $0x18c] ss:$16 sps:$4 sm:$0xff]   ;;  %s5947_s10 = sshll.u32 %s7879_s17, 10 }
  0x7b   : > { %v279_v47 = vld [vmem:[%s7883_s9 + $0x20] sm:$0xff]  ;;  %v7196_v54 = vld [vmem:[#allocation5 + $0x188] ss:$16 sps:$4 sm:$0xff]   ;;  %v7199_v56 = vld [vmem:[#allocation5 + $0x1ac] ss:$16 sps:$4 sm:$0xff]   ;;  %s8563_s28 = scalar_lea.vmem [#allocation8], %s5947_s10 }
  0x7c   : > { %2226 = vmatpush1.bf16.msra.mxu0 %v7147_v18  ;;  %2678 = vmatpush1.bf16.msra.mxu1 %v7148_v19  ;;  %v5949_v50 = vcombine.high %v275_v46, %v279_v47  ;;  %v7191_v51 = vld [vmem:[#allocation5 + $0x184] ss:$16 sps:$4 sm:$0xff]   ;;  %v7195_v53 = vld [vmem:[#allocation5 + $0x180] ss:$16 sps:$4 sm:$0xff]   ;;  %v7202_v58 = vld [vmem:[#allocation5 + $0x1a8] ss:$16 sps:$4 sm:$0xff]   ;;  %v5948_v7 = vcombine.low %v275_v46, %v279_v47 }
  0x7d   : > { %2227 = vmatprep.subr.bf16.mxu0 %v7149_v20  ;;  %2679 = vmatprep.subr.bf16.mxu1 %v7151_v21  ;;  %v7197_v55 = vld [vmem:[#allocation5 + $0x1a4] ss:$16 sps:$4 sm:$0xff]   ;;  %v7201_v57 = vld [vmem:[#allocation5 + $0x1a0] ss:$16 sps:$4 sm:$0xff]   ;;  %v7205_v60 = vld [vmem:[#allocation5 + $0x1cc] ss:$16 sps:$4 sm:$0xff]  }
  0x7e   : > { %2249 = vmatprep.mubr.bf16.mxu0 %v5949_v50  ;;  %2701 = vmatprep.mubr.bf16.mxu1 %v5949_v50  ;;  %v7203_v59 = vld [vmem:[#allocation5 + $0x1c4] ss:$16 sps:$4 sm:$0xff]   ;;  %v7207_v61 = vld [vmem:[#allocation5 + $0x1c0] ss:$16 sps:$4 sm:$0xff]   ;;  %v7208_v62 = vld [vmem:[#allocation5 + $0x1c8] ss:$16 sps:$4 sm:$0xff]  }
  0x7f   : > { %v7209_v63 = vld [vmem:[#allocation5 + $0x1e4] ss:$16 sps:$4 sm:$0xff]   ;;  %v7211_v0 = vld [vmem:[#allocation5 + $0x1ec] ss:$16 sps:$4 sm:$0xff]   ;;  %v7213_v1 = vld [vmem:[#allocation5 + $0x1e0] ss:$16 sps:$4 sm:$0xff]  }
  0x80   : > { %2228 = vmatpush1.bf16.msra.mxu0 %v7153_v22  ;;  %2680 = vmatpush1.bf16.msra.mxu1 %v7154_v23  ;;  %v7214_v2 = vld [vmem:[#allocation5 + $0x1e8] ss:$16 sps:$4 sm:$0xff]   ;;  %v7217_v3 = vld [vmem:[#allocation5 + $0x204] ss:$16 sps:$4 sm:$0xff]   ;;  %v7220_v4 = vld [vmem:[#allocation5 + $0x20c] ss:$16 sps:$4 sm:$0xff]  }
  0x81   : > { %2229 = vmatprep.subr.bf16.mxu0 %v7155_v24  ;;  %2681 = vmatprep.subr.bf16.mxu1 %v7157_v25  ;;  %v7215_v5 = vld [vmem:[#allocation5 + $0x200] ss:$16 sps:$4 sm:$0xff]   ;;  %v7218_v6 = vld [vmem:[#allocation5 + $0x208] ss:$16 sps:$4 sm:$0xff]   ;;  %v7223_v10 = vld [vmem:[#allocation5 + $0x224] ss:$16 sps:$4 sm:$0xff]  }
  0x82   : > { %v283_v8 = vld [vmem:[%s7883_s9 + $0x40] sm:$0xff]  ;;  %v7226_v11 = vld [vmem:[#allocation5 + $0x22c] ss:$16 sps:$4 sm:$0xff]   ;;  %v7224_v14 = vld [vmem:[#allocation5 + $0x228] ss:$16 sps:$4 sm:$0xff]   ;;  %s6533_s14 = sshll.u32 %s7722_s22, 14 }
  0x83   : > { %v287_v9 = vld [vmem:[%s7883_s9 + $0x60] sm:$0xff]  ;;  %v7232_v16 = vld [vmem:[#allocation5 + $0x24c] ss:$16 sps:$4 sm:$0xff]   ;;  %v7230_v21 = vld [vmem:[#allocation5 + $0x248] ss:$16 sps:$4 sm:$0xff]   ;;  %s5842_s15 = sshll.u32 %s8563_s28, 4  ;;  %s8833_s11 = scalar_lea.hbm %s8890_s5, %s6533_s14  ;;  %s8835_s15 = int_to_ptr.vmem [resolvable:$true] %s5842_s15 }
  0x84   : > { %2230 = vmatpush1.bf16.msra.mxu0 %v7159_v26  ;;  %2682 = vmatpush1.bf16.msra.mxu1 %v7160_v27  ;;  %v5957_v12 = vcombine.high %v283_v8, %v287_v9  ;;  %v7221_v13 = vld [vmem:[#allocation5 + $0x220] ss:$16 sps:$4 sm:$0xff]   ;;  %v7229_v15 = vld [vmem:[#allocation5 + $0x244] ss:$16 sps:$4 sm:$0xff]   ;;  %v5956_v18 = vcombine.low %v283_v8, %v287_v9  ;;  %v7238_v23 = vld [vmem:[#allocation5 + $0x26c] ss:$16 sps:$4 sm:$0xff]  }
  0x85   : > { %2231 = vmatprep.subr.bf16.mxu0 %v7161_v28  ;;  %2683 = vmatprep.subr.bf16.mxu1 %v7163_v29  ;;  %v291_v17 = vld [vmem:[%s7883_s9 + $0x80] sm:$0xff]  ;;  %v7236_v26 = vld [vmem:[#allocation5 + $0x268] ss:$16 sps:$4 sm:$0xff]   ;;  %v7244_v28 = vld [vmem:[#allocation5 + $0x28c] ss:$16 sps:$4 sm:$0xff]   ;;  %s5828_s23 = scalar_lea.sflag [#allocation4], %s7879_s17 }
  0x86   : > { %v295_v19 = vld [vmem:[%s7883_s9 + $0xa0] sm:$0xff]  ;;  %v7262_v47 = vld [vmem:[#allocation5 + $0x2ec] ss:$16 sps:$4 sm:$0xff]   ;;  %v7260_v50 = vld [vmem:[#allocation5 + $0x2e8] ss:$16 sps:$4 sm:$0xff]   ;;  %s7589_s7 = scalar_lea.vmem %s8835_s15, 16384 }
  0x87   : > { %v7227_v20 = vld [vmem:[#allocation5 + $0x240] ss:$16 sps:$4 sm:$0xff]   ;;  %v7235_v22 = vld [vmem:[#allocation5 + $0x264] ss:$16 sps:$4 sm:$0xff]   ;;  %v5965_v24 = vcombine.high %v291_v17, %v295_v19  ;;  %p7590_p11 = scmp.ne.s32.totalorder %s8835_s15, %s7589_s7  ;;  %p8912_p0 = scmp.ne.s32.totalorder %s8903_s29, 0 }
  0x88   : > { %2232 = vmatpush1.bf16.msra.mxu0 %v7165_v30  ;;  %2684 = vmatpush1.bf16.msra.mxu1 %v7166_v31  ;;  %v7233_v25 = vld [vmem:[#allocation5 + $0x260] ss:$16 sps:$4 sm:$0xff]   ;;  %v7241_v27 = vld [vmem:[#allocation5 + $0x284] ss:$16 sps:$4 sm:$0xff]   ;;  %v5964_v30 = vcombine.low %v291_v17, %v295_v19  ;;  %v7298_v19 = vld [vmem:[#allocation5 + $0x3ac] ss:$16 sps:$4 sm:$0xff]  }
  0x89   : > { %2233 = vmatprep.subr.bf16.mxu0 %v7167_v32  ;;  %2685 = vmatprep.subr.bf16.mxu1 %v7169_v33  ;;  %v299_v29 = vld [vmem:[%s7883_s9 + $0xc0] sm:$0xff]  ;;  %v7242_v33 = vld [vmem:[#allocation5 + $0x288] ss:$16 sps:$4 sm:$0xff]   ;;  %p7591_p1 = pnand %p7590_p11, %p8912_p0  ;;  %s7668_s6 = smov [#allocation8]  }
  0x8a   : > { %v303_v31 = vld [vmem:[%s7883_s9 + $0xe0] sm:$0xff]  ;;  %s7593_s8 = sshll.u32 %s7668_s6, 4  ;;  %s7594_s8 = int_to_ptr.vmem [resolvable:$false] %s7593_s8 }
  0x8b   : > { %v7239_v32 = vld [vmem:[#allocation5 + $0x280] ss:$16 sps:$4 sm:$0xff]   ;;  %v7259_v46 = vld [vmem:[#allocation5 + $0x2e4] ss:$16 sps:$4 sm:$0xff]   ;;  %p7592_p3 = pneg %p7591_p1  ;;  %p7596_p5 = scmp.lt.s32.totalorder %s8835_s15, %s7594_s8 }
  0x8c   : > { %2234 = vmatpush1.bf16.msra.mxu0 %v7171_v34  ;;  %2686 = vmatpush1.bf16.msra.mxu1 %v7172_v35  ;;  %v7247_v34 = vld [vmem:[#allocation5 + $0x2a4] ss:$16 sps:$4 sm:$0xff]   ;;  %v7250_v35 = vld [vmem:[#allocation5 + $0x2ac] ss:$16 sps:$4 sm:$0xff]   ;;  %v7281_v9 = vld [vmem:[#allocation5 + $0x360] ss:$16 sps:$4 sm:$0xff]  }
  0x8d   : > { %2235 = vmatprep.subr.bf16.mxu0 %v7173_v36  ;;  %2687 = vmatprep.subr.bf16.mxu1 %v7175_v37  ;;  %v5973_v36 = vcombine.high %v299_v29, %v303_v31  ;;  %v7245_v37 = vld [vmem:[#allocation5 + $0x2a0] ss:$16 sps:$4 sm:$0xff]  }
  0x8e   : > { %v335_v17 = vld [vmem:[%s7883_s9 + $0x1e0] sm:$0xff] }
  0x90   : > { %2236 = vmatpush1.bf16.msra.mxu0 %v7177_v38  ;;  %2688 = vmatpush1.bf16.msra.mxu1 %v7178_v39  ;;  %v7248_v38 = vld [vmem:[#allocation5 + $0x2a8] ss:$16 sps:$4 sm:$0xff]   ;;  %v7253_v39 = vld [vmem:[#allocation5 + $0x2c4] ss:$16 sps:$4 sm:$0xff]  }
  0x91   : > { %2237 = vmatprep.subr.bf16.mxu0 %v7179_v40  ;;  %2689 = vmatprep.subr.bf16.mxu1 %v7181_v41  ;;  %v7256_v40 = vld [vmem:[#allocation5 + $0x2cc] ss:$16 sps:$4 sm:$0xff]   ;;  %v7251_v41 = vld [vmem:[#allocation5 + $0x2c0] ss:$16 sps:$4 sm:$0xff]  }
  0x94   : > { %2238 = vmatpush1.bf16.msra.mxu0 %v7183_v42  ;;  %2690 = vmatpush1.bf16.msra.mxu1 %v7184_v43  ;;  %v7254_v42 = vld [vmem:[#allocation5 + $0x2c8] ss:$16 sps:$4 sm:$0xff]   ;;  %v5972_v43 = vcombine.low %v299_v29, %v303_v31  ;;  %v7310_v31 = vld [vmem:[#allocation5 + $0x3ec] ss:$16 sps:$4 sm:$0xff]  }
  0x95   : > { %2239 = vmatprep.subr.bf16.mxu0 %v7185_v44  ;;  %2691 = vmatprep.subr.bf16.mxu1 %v7187_v45  ;;  %v307_v44 = vld [vmem:[%s7883_s9 + $0x100] sm:$0xff]  ;;  %v7302_v29 = vld [vmem:[#allocation5 + $0x3c8] ss:$16 sps:$4 sm:$0xff]  }
  0x96   : > { %v311_v45 = vld [vmem:[%s7883_s9 + $0x120] sm:$0xff] }
  0x98   : > { %2240 = vmatpush1.bf16.msra.mxu0 %v7189_v48  ;;  %2692 = vmatpush1.bf16.msra.mxu1 %v7190_v49  ;;  %v5981_v48 = vcombine.high %v307_v44, %v311_v45  ;;  %v7257_v49 = vld [vmem:[#allocation5 + $0x2e0] ss:$16 sps:$4 sm:$0xff]  }
  0x99   : > { %2241 = vmatprep.subr.bf16.mxu0 %v7191_v51  ;;  %2693 = vmatprep.subr.bf16.mxu1 %v7193_v52  ;;  %v7265_v51 = vld [vmem:[#allocation5 + $0x304] ss:$16 sps:$4 sm:$0xff]   ;;  %v7268_v52 = vld [vmem:[#allocation5 + $0x30c] ss:$16 sps:$4 sm:$0xff]  }
  0x9c   : > { %2242 = vmatpush1.bf16.msra.mxu0 %v7195_v53  ;;  %2694 = vmatpush1.bf16.msra.mxu1 %v7196_v54  ;;  %v315_v53 = vld [vmem:[%s7883_s9 + $0x140] sm:$0xff]  ;;  %v5980_v54 = vcombine.low %v307_v44, %v311_v45 }
  0x9d   : > { %2243 = vmatprep.subr.bf16.mxu0 %v7197_v55  ;;  %2695 = vmatprep.subr.bf16.mxu1 %v7199_v56  ;;  %v319_v55 = vld [vmem:[%s7883_s9 + $0x160] sm:$0xff] }
  0x9e   : > { %v7263_v56 = vld [vmem:[#allocation5 + $0x300] ss:$16 sps:$4 sm:$0xff]  }
  0x9f   : > { %v7317_v45 = vld [vmem:[#allocation5 + $0x420] ss:$16 sps:$4 sm:$0xff]  }
  0xa0   : > { %2244 = vmatpush1.bf16.msra.mxu0 %v7201_v57  ;;  %2696 = vmatpush1.bf16.msra.mxu1 %v7202_v58  ;;  %v7266_v57 = vld [vmem:[#allocation5 + $0x308] ss:$16 sps:$4 sm:$0xff]   ;;  %v7271_v58 = vld [vmem:[#allocation5 + $0x324] ss:$16 sps:$4 sm:$0xff]  }
  0xa1   : > { %2245 = vmatprep.subr.bf16.mxu0 %v7203_v59  ;;  %2697 = vmatprep.subr.bf16.mxu1 %v7205_v60  ;;  %v7274_v59 = vld [vmem:[#allocation5 + $0x32c] ss:$16 sps:$4 sm:$0xff]   ;;  %v5989_v60 = vcombine.high %v315_v53, %v319_v55 }
  0xa4   : > { %2246 = vmatpush1.bf16.msra.mxu0 %v7207_v61  ;;  %2698 = vmatpush1.bf16.msra.mxu1 %v7208_v62  ;;  %v7269_v61 = vld [vmem:[#allocation5 + $0x320] ss:$16 sps:$4 sm:$0xff]   ;;  %v7272_v62 = vld [vmem:[#allocation5 + $0x328] ss:$16 sps:$4 sm:$0xff]  }
  0xa5   : > { %2247 = vmatprep.subr.bf16.mxu0 %v7209_v63  ;;  %2699 = vmatprep.subr.bf16.mxu1 %v7211_v0  ;;  %v7277_v63 = vld [vmem:[#allocation5 + $0x344] ss:$16 sps:$4 sm:$0xff]   ;;  %v7280_v0 = vld [vmem:[#allocation5 + $0x34c] ss:$16 sps:$4 sm:$0xff]  }
  0xa8   : > { %2248 = vmatpush1.bf16.msra.mxu0 %v7213_v1  ;;  %2700 = vmatpush1.bf16.msra.mxu1 %v7214_v2  ;;  %v323_v1 = vld [vmem:[%s7883_s9 + $0x180] sm:$0xff]  ;;  %v5988_v2 = vcombine.low %v315_v53, %v319_v55  ;;  %v296_v53 = vld [vmem:[%s7883_s9 + $0xa8] sm:$0xff] }
  0xa9   : > { %2330 = vmatprep.subr.bf16.mxu0 %v7217_v3  ;;  %2782 = vmatprep.subr.bf16.mxu1 %v7220_v4  ;;  %v327_v3 = vld [vmem:[%s7883_s9 + $0x1a0] sm:$0xff]  ;;  %v7334_v55 = vld [vmem:[#allocation5 + $0x46c] ss:$16 sps:$4 sm:$0xff]  }
  0xaa   : > { %v7275_v4 = vld [vmem:[#allocation5 + $0x340] ss:$16 sps:$4 sm:$0xff]   ;;  %v5997_v8 = vcombine.high %v323_v1, %v327_v3 }
  0xab   : > { %2250 = vmatmul.mubr.bf16.vlgmr.msra.gmra.mrb[0].mxu0 %v5948_v7  ;;  %2702 = vmatmul.mubr.bf16.vlgmr.msra.gmra.mrb[0].mxu1 %v5948_v7  ;;  %v7286_v7 = vld [vmem:[#allocation5 + $0x36c] ss:$16 sps:$4 sm:$0xff]  }
  0xac   : > { %2331 = vmatpush1.bf16.msra.mxu0 %v7215_v5  ;;  %2783 = vmatpush1.bf16.msra.mxu1 %v7218_v6  ;;  %v7278_v5 = vld [vmem:[#allocation5 + $0x348] ss:$16 sps:$4 sm:$0xff]   ;;  %v7283_v6 = vld [vmem:[#allocation5 + $0x364] ss:$16 sps:$4 sm:$0xff]  }
  0xad   : > { %2332 = vmatprep.subr.bf16.mxu0 %v7223_v10  ;;  %2784 = vmatprep.subr.bf16.mxu1 %v7226_v11  ;;  %v7284_v10 = vld [vmem:[#allocation5 + $0x368] ss:$16 sps:$4 sm:$0xff]   ;;  %v7289_v11 = vld [vmem:[#allocation5 + $0x384] ss:$16 sps:$4 sm:$0xff]  }
  0xae   : > { %2259 = vmatprep.mubr.bf16.mxu0 %v5957_v12  ;;  %2711 = vmatprep.mubr.bf16.mxu1 %v5957_v12  ;;  %v7292_v12 = vld [vmem:[#allocation5 + $0x38c] ss:$16 sps:$4 sm:$0xff]  }
  0xb0   : > { %2333 = vmatpush1.bf16.msra.mxu0 %v7221_v13  ;;  %2785 = vmatpush1.bf16.msra.mxu1 %v7224_v14  ;;  %v7287_v13 = vld [vmem:[#allocation5 + $0x380] ss:$16 sps:$4 sm:$0xff]   ;;  %v7290_v14 = vld [vmem:[#allocation5 + $0x388] ss:$16 sps:$4 sm:$0xff]  }
  0xb1   : > { %2334 = vmatprep.subr.bf16.mxu0 %v7229_v15  ;;  %2786 = vmatprep.subr.bf16.mxu1 %v7232_v16  ;;  %v5996_v15 = vcombine.low %v323_v1, %v327_v3  ;;  %v331_v16 = vld [vmem:[%s7883_s9 + $0x1c0] sm:$0xff]  ;;  %v7338_v1 = vld [vmem:[#allocation5 + $0x488] ss:$16 sps:$4 sm:$0xff]   ;;  %v7346_v3 = vld [vmem:[#allocation5 + $0x4ac] ss:$16 sps:$4 sm:$0xff]  }
  0xb3   : > { %2260 = vmatmul.mubr.bf16.gmra.mrb[4].mxu0 %v5956_v18  ;;  %2712 = vmatmul.mubr.bf16.gmra.mrb[4].mxu1 %v5956_v18  ;;  %v7295_v18 = vld [vmem:[#allocation5 + $0x3a4] ss:$16 sps:$4 sm:$0xff]  }
  0xb4   : > { %2335 = vmatpush1.bf16.msra.mxu0 %v7227_v20  ;;  %2787 = vmatpush1.bf16.msra.mxu1 %v7230_v21  ;;  %v6005_v20 = vcombine.high %v331_v16, %v335_v17  ;;  %v7293_v21 = vld [vmem:[#allocation5 + $0x3a0] ss:$16 sps:$4 sm:$0xff]  }
  0xb5   : > { %2336 = vmatprep.subr.bf16.mxu0 %v7235_v22  ;;  %2788 = vmatprep.subr.bf16.mxu1 %v7238_v23  ;;  %v7296_v22 = vld [vmem:[#allocation5 + $0x3a8] ss:$16 sps:$4 sm:$0xff]   ;;  %v7301_v23 = vld [vmem:[#allocation5 + $0x3c4] ss:$16 sps:$4 sm:$0xff]  }
  0xb6   : > { %2269 = vmatprep.mubr.bf16.mxu0 %v5965_v24  ;;  %2721 = vmatprep.mubr.bf16.mxu1 %v5965_v24  ;;  %v7304_v24 = vld [vmem:[#allocation5 + $0x3cc] ss:$16 sps:$4 sm:$0xff]  }
  0xb8   : > { %2337 = vmatpush1.bf16.msra.mxu0 %v7233_v25  ;;  %2789 = vmatpush1.bf16.msra.mxu1 %v7236_v26  ;;  %v276_v25 = vld [vmem:[%s7883_s9 + $0x8] sm:$0xff]  ;;  %v6004_v26 = vcombine.low %v331_v16, %v335_v17  ;;  %v7353_v17 = vld [vmem:[#allocation5 + $0x4e0] ss:$16 sps:$4 sm:$0xff]  }
  0xb9   : > { %2338 = vmatprep.subr.bf16.mxu0 %v7241_v27  ;;  %2790 = vmatprep.subr.bf16.mxu1 %v7244_v28  ;;  %v280_v27 = vld [vmem:[%s7883_s9 + $0x28] sm:$0xff]  ;;  %v7299_v28 = vld [vmem:[#allocation5 + $0x3c0] ss:$16 sps:$4 sm:$0xff]  }
  0xbb   : > { %2270 = vmatmul.mubr.bf16.gmra.mrb[8].mxu0 %v5964_v30  ;;  %2722 = vmatmul.mubr.bf16.gmra.mrb[8].mxu1 %v5964_v30  ;;  %v7307_v30 = vld [vmem:[#allocation5 + $0x3e4] ss:$16 sps:$4 sm:$0xff]  }
  0xbc   : > { %2339 = vmatpush1.bf16.msra.mxu0 %v7239_v32  ;;  %2791 = vmatpush1.bf16.msra.mxu1 %v7242_v33  ;;  %v5951_v32 = vcombine.high %v276_v25, %v280_v27  ;;  %v7305_v33 = vld [vmem:[#allocation5 + $0x3e0] ss:$16 sps:$4 sm:$0xff]  }
  0xbd   : > { %2340 = vmatprep.subr.bf16.mxu0 %v7247_v34  ;;  %2792 = vmatprep.subr.bf16.mxu1 %v7250_v35  ;;  %v7308_v34 = vld [vmem:[#allocation5 + $0x3e8] ss:$16 sps:$4 sm:$0xff]   ;;  %v7313_v35 = vld [vmem:[#allocation5 + $0x404] ss:$16 sps:$4 sm:$0xff]  }
  0xbe   : > { %2279 = vmatprep.mubr.bf16.mxu0 %v5973_v36  ;;  %2731 = vmatprep.mubr.bf16.mxu1 %v5973_v36  ;;  %v7316_v36 = vld [vmem:[#allocation5 + $0x40c] ss:$16 sps:$4 sm:$0xff]  }
  0xc0   : > { %2341 = vmatpush1.bf16.msra.mxu0 %v7245_v37  ;;  %2793 = vmatpush1.bf16.msra.mxu1 %v7248_v38  ;;  %v284_v37 = vld [vmem:[%s7883_s9 + $0x48] sm:$0xff]  ;;  %v5950_v38 = vcombine.low %v276_v25, %v280_v27 }
  0xc1   : > { %2342 = vmatprep.subr.bf16.mxu0 %v7253_v39  ;;  %2794 = vmatprep.subr.bf16.mxu1 %v7256_v40  ;;  %v288_v39 = vld [vmem:[%s7883_s9 + $0x68] sm:$0xff]  ;;  %v7311_v40 = vld [vmem:[#allocation5 + $0x400] ss:$16 sps:$4 sm:$0xff]  }
  0xc2   : > { %v5959_v44 = vcombine.high %v284_v37, %v288_v39  ;;  %v320_v25 = vld [vmem:[%s7883_s9 + $0x168] sm:$0xff] }
  0xc3   : > { %2280 = vmatmul.mubr.bf16.gmra.mrb[12].mxu0 %v5972_v43  ;;  %2732 = vmatmul.mubr.bf16.gmra.mrb[12].mxu1 %v5972_v43  ;;  %v7322_v43 = vld [vmem:[#allocation5 + $0x42c] ss:$16 sps:$4 sm:$0xff]  }
  0xc4   : > { %2343 = vmatpush1.bf16.msra.mxu0 %v7251_v41  ;;  %2795 = vmatpush1.bf16.msra.mxu1 %v7254_v42  ;;  %v7314_v41 = vld [vmem:[#allocation5 + $0x408] ss:$16 sps:$4 sm:$0xff]   ;;  %v7319_v42 = vld [vmem:[#allocation5 + $0x424] ss:$16 sps:$4 sm:$0xff]   ;;  %v7370_v27 = vld [vmem:[#allocation5 + $0x52c] ss:$16 sps:$4 sm:$0xff]  }
  0xc5   : > { %2344 = vmatprep.subr.bf16.mxu0 %v7259_v46  ;;  %2796 = vmatprep.subr.bf16.mxu1 %v7262_v47  ;;  %v7320_v46 = vld [vmem:[#allocation5 + $0x428] ss:$16 sps:$4 sm:$0xff]   ;;  %v7325_v47 = vld [vmem:[#allocation5 + $0x444] ss:$16 sps:$4 sm:$0xff]  }
  0xc6   : > { %2289 = vmatprep.mubr.bf16.mxu0 %v5981_v48  ;;  %2741 = vmatprep.mubr.bf16.mxu1 %v5981_v48  ;;  %v7328_v48 = vld [vmem:[#allocation5 + $0x44c] ss:$16 sps:$4 sm:$0xff]  }
  0xc8   : > { %2345 = vmatpush1.bf16.msra.mxu0 %v7257_v49  ;;  %2797 = vmatpush1.bf16.msra.mxu1 %v7260_v50  ;;  %v7323_v49 = vld [vmem:[#allocation5 + $0x440] ss:$16 sps:$4 sm:$0xff]   ;;  %v7326_v50 = vld [vmem:[#allocation5 + $0x448] ss:$16 sps:$4 sm:$0xff]  }
  0xc9   : > { %2346 = vmatprep.subr.bf16.mxu0 %v7265_v51  ;;  %2798 = vmatprep.subr.bf16.mxu1 %v7268_v52  ;;  %v5958_v51 = vcombine.low %v284_v37, %v288_v39  ;;  %v292_v52 = vld [vmem:[%s7883_s9 + $0x88] sm:$0xff] }
  0xca   : > { %v7374_v37 = vld [vmem:[#allocation5 + $0x548] ss:$16 sps:$4 sm:$0xff]   ;;  %v7382_v39 = vld [vmem:[#allocation5 + $0x56c] ss:$16 sps:$4 sm:$0xff]  }
  0xcb   : > { %2290 = vmatmul.mubr.bf16.gmra.mrb[16].mxu0 %v5980_v54  ;;  %2742 = vmatmul.mubr.bf16.gmra.mrb[16].mxu1 %v5980_v54  ;;  %v7331_v54 = vld [vmem:[#allocation5 + $0x464] ss:$16 sps:$4 sm:$0xff]  }
  0xcc   : > { %2347 = vmatpush1.bf16.msra.mxu0 %v7263_v56  ;;  %2799 = vmatpush1.bf16.msra.mxu1 %v7266_v57  ;;  %v5967_v56 = vcombine.high %v292_v52, %v296_v53  ;;  %v7329_v57 = vld [vmem:[#allocation5 + $0x460] ss:$16 sps:$4 sm:$0xff]  }
  0xcd   : > { %2348 = vmatprep.subr.bf16.mxu0 %v7271_v58  ;;  %2800 = vmatprep.subr.bf16.mxu1 %v7274_v59  ;;  %v7332_v58 = vld [vmem:[#allocation5 + $0x468] ss:$16 sps:$4 sm:$0xff]   ;;  %v7337_v59 = vld [vmem:[#allocation5 + $0x484] ss:$16 sps:$4 sm:$0xff]  }
  0xce   : > { %2299 = vmatprep.mubr.bf16.mxu0 %v5989_v60  ;;  %2751 = vmatprep.mubr.bf16.mxu1 %v5989_v60  ;;  %v7340_v60 = vld [vmem:[#allocation5 + $0x48c] ss:$16 sps:$4 sm:$0xff]  }
  0xd0   : > { %2349 = vmatpush1.bf16.msra.mxu0 %v7269_v61  ;;  %2801 = vmatpush1.bf16.msra.mxu1 %v7272_v62  ;;  %v300_v61 = vld [vmem:[%s7883_s9 + $0xc8] sm:$0xff]  ;;  %v5966_v62 = vcombine.low %v292_v52, %v296_v53  ;;  %v7389_v53 = vld [vmem:[#allocation5 + $0x5a0] ss:$16 sps:$4 sm:$0xff]  }
  0xd1   : > { %2350 = vmatprep.subr.bf16.mxu0 %v7277_v63  ;;  %2802 = vmatprep.subr.bf16.mxu1 %v7280_v0  ;;  %v304_v63 = vld [vmem:[%s7883_s9 + $0xe8] sm:$0xff]  ;;  %v7335_v0 = vld [vmem:[#allocation5 + $0x480] ss:$16 sps:$4 sm:$0xff]  }
  0xd3   : > { %2300 = vmatmul.mubr.bf16.gmra.mrb[20].mxu0 %v5988_v2  ;;  %2752 = vmatmul.mubr.bf16.gmra.mrb[20].mxu1 %v5988_v2  ;;  %v7343_v2 = vld [vmem:[#allocation5 + $0x4a4] ss:$16 sps:$4 sm:$0xff]  }
  0xd4   : > { %2351 = vmatpush1.bf16.msra.mxu0 %v7275_v4  ;;  %2803 = vmatpush1.bf16.msra.mxu1 %v7278_v5  ;;  %v5975_v4 = vcombine.high %v300_v61, %v304_v63  ;;  %v7341_v5 = vld [vmem:[#allocation5 + $0x4a0] ss:$16 sps:$4 sm:$0xff]  }
  0xd5   : > { %2352 = vmatprep.subr.bf16.mxu0 %v7283_v6  ;;  %2804 = vmatprep.subr.bf16.mxu1 %v7286_v7  ;;  %v7344_v6 = vld [vmem:[#allocation5 + $0x4a8] ss:$16 sps:$4 sm:$0xff]   ;;  %v7349_v7 = vld [vmem:[#allocation5 + $0x4c4] ss:$16 sps:$4 sm:$0xff]  }
  0xd6   : > { %2309 = vmatprep.mubr.bf16.mxu0 %v5997_v8  ;;  %2761 = vmatprep.mubr.bf16.mxu1 %v5997_v8  ;;  %v7352_v8 = vld [vmem:[#allocation5 + $0x4cc] ss:$16 sps:$4 sm:$0xff]  }
  0xd8   : > { %2353 = vmatpush1.bf16.msra.mxu0 %v7281_v9  ;;  %2805 = vmatpush1.bf16.msra.mxu1 %v7284_v10  ;;  %v308_v9 = vld [vmem:[%s7883_s9 + $0x108] sm:$0xff]  ;;  %v5974_v10 = vcombine.low %v300_v61, %v304_v63  ;;  %v281_v61 = vld [vmem:[%s7883_s9 + $0x30] sm:$0xff] }
  0xd9   : > { %2354 = vmatprep.subr.bf16.mxu0 %v7289_v11  ;;  %2806 = vmatprep.subr.bf16.mxu1 %v7292_v12  ;;  %v312_v11 = vld [vmem:[%s7883_s9 + $0x128] sm:$0xff]  ;;  %v7347_v12 = vld [vmem:[#allocation5 + $0x4c0] ss:$16 sps:$4 sm:$0xff]  }
  0xda   : > { %v5983_v16 = vcombine.high %v308_v9, %v312_v11  ;;  %v7406_v63 = vld [vmem:[#allocation5 + $0x5ec] ss:$16 sps:$4 sm:$0xff]  }
  0xdb   : > { %2310 = vmatmul.mubr.bf16.gmra.mrb[24].mxu0 %v5996_v15  ;;  %2762 = vmatmul.mubr.bf16.gmra.mrb[24].mxu1 %v5996_v15  ;;  %v7358_v15 = vld [vmem:[#allocation5 + $0x4ec] ss:$16 sps:$4 sm:$0xff]  }
  0xdc   : > { %2355 = vmatpush1.bf16.msra.mxu0 %v7287_v13  ;;  %2807 = vmatpush1.bf16.msra.mxu1 %v7290_v14  ;;  %v7350_v13 = vld [vmem:[#allocation5 + $0x4c8] ss:$16 sps:$4 sm:$0xff]   ;;  %v7355_v14 = vld [vmem:[#allocation5 + $0x4e4] ss:$16 sps:$4 sm:$0xff]  }
  0xdd   : > { %2356 = vmatprep.subr.bf16.mxu0 %v7295_v18  ;;  %2808 = vmatprep.subr.bf16.mxu1 %v7298_v19  ;;  %v7356_v18 = vld [vmem:[#allocation5 + $0x4e8] ss:$16 sps:$4 sm:$0xff]   ;;  %v7361_v19 = vld [vmem:[#allocation5 + $0x504] ss:$16 sps:$4 sm:$0xff]  }
  0xde   : > { %2319 = vmatprep.mubr.bf16.mxu0 %v6005_v20  ;;  %2771 = vmatprep.mubr.bf16.mxu1 %v6005_v20  ;;  %v7364_v20 = vld [vmem:[#allocation5 + $0x50c] ss:$16 sps:$4 sm:$0xff]  }
  0xe0   : > { %2357 = vmatpush1.bf16.msra.mxu0 %v7293_v21  ;;  %2809 = vmatpush1.bf16.msra.mxu1 %v7296_v22  ;;  %v7359_v21 = vld [vmem:[#allocation5 + $0x500] ss:$16 sps:$4 sm:$0xff]   ;;  %v7362_v22 = vld [vmem:[#allocation5 + $0x508] ss:$16 sps:$4 sm:$0xff]  }
  0xe1   : > { %2358 = vmatprep.subr.bf16.mxu0 %v7301_v23  ;;  %2810 = vmatprep.subr.bf16.mxu1 %v7304_v24  ;;  %v5982_v23 = vcombine.low %v308_v9, %v312_v11  ;;  %v316_v24 = vld [vmem:[%s7883_s9 + $0x148] sm:$0xff] }
  0xe2   : > { %v7410_v9 = vld [vmem:[#allocation5 + $0x608] ss:$16 sps:$4 sm:$0xff]   ;;  %v7418_v11 = vld [vmem:[#allocation5 + $0x62c] ss:$16 sps:$4 sm:$0xff]  }
  0xe3   : > { %2320 = vmatmul.mubr.bf16.gmra.mrb[28].mxu0 %v6004_v26  ;;  %2772 = vmatmul.mubr.bf16.gmra.mrb[28].mxu1 %v6004_v26  ;;  %v7367_v26 = vld [vmem:[#allocation5 + $0x524] ss:$16 sps:$4 sm:$0xff]  }
  0xe4   : > { %2359 = vmatpush1.bf16.msra.mxu0 %v7299_v28  ;;  %2811 = vmatpush1.bf16.msra.mxu1 %v7302_v29  ;;  %v5991_v28 = vcombine.high %v316_v24, %v320_v25  ;;  %v7365_v29 = vld [vmem:[#allocation5 + $0x520] ss:$16 sps:$4 sm:$0xff]  }
  0xe5   : > { %2360 = vmatprep.subr.bf16.mxu0 %v7307_v30  ;;  %2812 = vmatprep.subr.bf16.mxu1 %v7310_v31  ;;  %v7368_v30 = vld [vmem:[#allocation5 + $0x528] ss:$16 sps:$4 sm:$0xff]   ;;  %v7373_v31 = vld [vmem:[#allocation5 + $0x544] ss:$16 sps:$4 sm:$0xff]  }
  0xe6   : > { %2362 = vmatprep.mubr.bf16.mxu0 %v5951_v32  ;;  %2814 = vmatprep.mubr.bf16.mxu1 %v5951_v32  ;;  %v7376_v32 = vld [vmem:[#allocation5 + $0x54c] ss:$16 sps:$4 sm:$0xff]  }
  0xe8   : > { %2361 = vmatpush1.bf16.msra.mxu0 %v7305_v33  ;;  %2813 = vmatpush1.bf16.msra.mxu1 %v7308_v34  ;;  %v324_v33 = vld [vmem:[%s7883_s9 + $0x188] sm:$0xff]  ;;  %v5990_v34 = vcombine.low %v316_v24, %v320_v25  ;;  %v7425_v25 = vld [vmem:[#allocation5 + $0x660] ss:$16 sps:$4 sm:$0xff]  }
  0xe9   : > { %2443 = vmatprep.subr.bf16.mxu0 %v7313_v35  ;;  %2895 = vmatprep.subr.bf16.mxu1 %v7316_v36  ;;  %v328_v35 = vld [vmem:[%s7883_s9 + $0x1a8] sm:$0xff]  ;;  %v7371_v36 = vld [vmem:[#allocation5 + $0x540] ss:$16 sps:$4 sm:$0xff]  }
  0xeb   : > { %2363 = vmatmul.mubr.bf16.vlgmr.msra.gmra.mrb[0].mxu0 %v5950_v38  ;;  %2815 = vmatmul.mubr.bf16.vlgmr.msra.gmra.mrb[0].mxu1 %v5950_v38  ;;  %v7379_v38 = vld [vmem:[#allocation5 + $0x564] ss:$16 sps:$4 sm:$0xff]  }
  0xec   : > { %2444 = vmatpush1.bf16.msra.mxu0 %v7311_v40  ;;  %2896 = vmatpush1.bf16.msra.mxu1 %v7314_v41  ;;  %v5999_v40 = vcombine.high %v324_v33, %v328_v35  ;;  %v7377_v41 = vld [vmem:[#allocation5 + $0x560] ss:$16 sps:$4 sm:$0xff]  }
  0xed   : > { %2445 = vmatprep.subr.bf16.mxu0 %v7319_v42  ;;  %2897 = vmatprep.subr.bf16.mxu1 %v7322_v43  ;;  %v7380_v42 = vld [vmem:[#allocation5 + $0x568] ss:$16 sps:$4 sm:$0xff]   ;;  %v7385_v43 = vld [vmem:[#allocation5 + $0x584] ss:$16 sps:$4 sm:$0xff]  }
  0xee   : > { %2372 = vmatprep.mubr.bf16.mxu0 %v5959_v44  ;;  %2824 = vmatprep.mubr.bf16.mxu1 %v5959_v44  ;;  %v7388_v44 = vld [vmem:[#allocation5 + $0x58c] ss:$16 sps:$4 sm:$0xff]  }
  0xf0   : > { %2446 = vmatpush1.bf16.msra.mxu0 %v7317_v45  ;;  %2898 = vmatpush1.bf16.msra.mxu1 %v7320_v46  ;;  %v332_v45 = vld [vmem:[%s7883_s9 + $0x1c8] sm:$0xff]  ;;  %v5998_v46 = vcombine.low %v324_v33, %v328_v35 }
  0xf1   : > { %2447 = vmatprep.subr.bf16.mxu0 %v7325_v47  ;;  %2899 = vmatprep.subr.bf16.mxu1 %v7328_v48  ;;  %v336_v47 = vld [vmem:[%s7883_s9 + $0x1e8] sm:$0xff]  ;;  %v7383_v48 = vld [vmem:[#allocation5 + $0x580] ss:$16 sps:$4 sm:$0xff]  }
  0xf2   : > { %v6007_v52 = vcombine.high %v332_v45, %v336_v47  ;;  %v7434_v33 = vld [vmem:[#allocation5 + $0x688] ss:$16 sps:$4 sm:$0xff]   ;;  %v7442_v35 = vld [vmem:[#allocation5 + $0x6ac] ss:$16 sps:$4 sm:$0xff]  }
  0xf3   : > { %2373 = vmatmul.mubr.bf16.gmra.mrb[4].mxu0 %v5958_v51  ;;  %2825 = vmatmul.mubr.bf16.gmra.mrb[4].mxu1 %v5958_v51  ;;  %v7394_v51 = vld [vmem:[#allocation5 + $0x5ac] ss:$16 sps:$4 sm:$0xff]  }
  0xf4   : > { %2448 = vmatpush1.bf16.msra.mxu0 %v7323_v49  ;;  %2900 = vmatpush1.bf16.msra.mxu1 %v7326_v50  ;;  %v7386_v49 = vld [vmem:[#allocation5 + $0x588] ss:$16 sps:$4 sm:$0xff]   ;;  %v7391_v50 = vld [vmem:[#allocation5 + $0x5a4] ss:$16 sps:$4 sm:$0xff]  }
  0xf5   : > { %2449 = vmatprep.subr.bf16.mxu0 %v7331_v54  ;;  %2901 = vmatprep.subr.bf16.mxu1 %v7334_v55  ;;  %v7392_v54 = vld [vmem:[#allocation5 + $0x5a8] ss:$16 sps:$4 sm:$0xff]   ;;  %v7397_v55 = vld [vmem:[#allocation5 + $0x5c4] ss:$16 sps:$4 sm:$0xff]  }
  0xf6   : > { %2382 = vmatprep.mubr.bf16.mxu0 %v5967_v56  ;;  %2834 = vmatprep.mubr.bf16.mxu1 %v5967_v56  ;;  %v7400_v56 = vld [vmem:[#allocation5 + $0x5cc] ss:$16 sps:$4 sm:$0xff]  }
  0xf8   : > { %2450 = vmatpush1.bf16.msra.mxu0 %v7329_v57  ;;  %2902 = vmatpush1.bf16.msra.mxu1 %v7332_v58  ;;  %v7395_v57 = vld [vmem:[#allocation5 + $0x5c0] ss:$16 sps:$4 sm:$0xff]   ;;  %v7398_v58 = vld [vmem:[#allocation5 + $0x5c8] ss:$16 sps:$4 sm:$0xff]  }
  0xf9   : > { %2451 = vmatprep.subr.bf16.mxu0 %v7337_v59  ;;  %2903 = vmatprep.subr.bf16.mxu1 %v7340_v60  ;;  %v6006_v59 = vcombine.low %v332_v45, %v336_v47  ;;  %v277_v60 = vld [vmem:[%s7883_s9 + $0x10] sm:$0xff]  ;;  %v7446_v45 = vld [vmem:[#allocation5 + $0x6c8] ss:$16 sps:$4 sm:$0xff]   ;;  %v7454_v47 = vld [vmem:[#allocation5 + $0x6ec] ss:$16 sps:$4 sm:$0xff]  }
  0xfb   : > { %2383 = vmatmul.mubr.bf16.gmra.mrb[8].mxu0 %v5966_v62  ;;  %2835 = vmatmul.mubr.bf16.gmra.mrb[8].mxu1 %v5966_v62  ;;  %v7403_v62 = vld [vmem:[#allocation5 + $0x5e4] ss:$16 sps:$4 sm:$0xff]  }
  0xfc   : > { %2452 = vmatpush1.bf16.msra.mxu0 %v7335_v0  ;;  %2904 = vmatpush1.bf16.msra.mxu1 %v7338_v1  ;;  %v5953_v0 = vcombine.high %v277_v60, %v281_v61  ;;  %v7401_v1 = vld [vmem:[#allocation5 + $0x5e0] ss:$16 sps:$4 sm:$0xff]  }
  0xfd   : > { %2453 = vmatprep.subr.bf16.mxu0 %v7343_v2  ;;  %2905 = vmatprep.subr.bf16.mxu1 %v7346_v3  ;;  %v7404_v2 = vld [vmem:[#allocation5 + $0x5e8] ss:$16 sps:$4 sm:$0xff]   ;;  %v7409_v3 = vld [vmem:[#allocation5 + $0x604] ss:$16 sps:$4 sm:$0xff]  }
  0xfe   : > { %2392 = vmatprep.mubr.bf16.mxu0 %v5975_v4  ;;  %2844 = vmatprep.mubr.bf16.mxu1 %v5975_v4  ;;  %v7412_v4 = vld [vmem:[#allocation5 + $0x60c] ss:$16 sps:$4 sm:$0xff]  }
 0x100   : > { %2454 = vmatpush1.bf16.msra.mxu0 %v7341_v5  ;;  %2906 = vmatpush1.bf16.msra.mxu1 %v7344_v6  ;;  %v5952_v5 = vcombine.low %v277_v60, %v281_v61  ;;  %v285_v6 = vld [vmem:[%s7883_s9 + $0x50] sm:$0xff] }
 0x101   : > { %2455 = vmatprep.subr.bf16.mxu0 %v7349_v7  ;;  %2907 = vmatprep.subr.bf16.mxu1 %v7352_v8  ;;  %v289_v7 = vld [vmem:[%s7883_s9 + $0x70] sm:$0xff] }
 0x102   : > { %v7407_v8 = vld [vmem:[#allocation5 + $0x600] ss:$16 sps:$4 sm:$0xff]  }
 0x103   : > { %2393 = vmatmul.mubr.bf16.gmra.mrb[12].mxu0 %v5974_v10  ;;  %2845 = vmatmul.mubr.bf16.gmra.mrb[12].mxu1 %v5974_v10  ;;  %v7415_v10 = vld [vmem:[#allocation5 + $0x624] ss:$16 sps:$4 sm:$0xff]   ;;  %v7461_v61 = vld [vmem:[#allocation5 + $0x720] ss:$16 sps:$4 sm:$0xff]  }
 0x104   : > { %2456 = vmatpush1.bf16.msra.mxu0 %v7347_v12  ;;  %2908 = vmatpush1.bf16.msra.mxu1 %v7350_v13  ;;  %v5961_v12 = vcombine.high %v285_v6, %v289_v7  ;;  %v7413_v13 = vld [vmem:[#allocation5 + $0x620] ss:$16 sps:$4 sm:$0xff]  }
 0x105   : > { %2457 = vmatprep.subr.bf16.mxu0 %v7355_v14  ;;  %2909 = vmatprep.subr.bf16.mxu1 %v7358_v15  ;;  %v7416_v14 = vld [vmem:[#allocation5 + $0x628] ss:$16 sps:$4 sm:$0xff]   ;;  %v7421_v15 = vld [vmem:[#allocation5 + $0x644] ss:$16 sps:$4 sm:$0xff]  }
 0x106   : > { %2402 = vmatprep.mubr.bf16.mxu0 %v5983_v16  ;;  %2854 = vmatprep.mubr.bf16.mxu1 %v5983_v16  ;;  %v7424_v16 = vld [vmem:[#allocation5 + $0x64c] ss:$16 sps:$4 sm:$0xff]  }
 0x108   : > { %2458 = vmatpush1.bf16.msra.mxu0 %v7353_v17  ;;  %2910 = vmatpush1.bf16.msra.mxu1 %v7356_v18  ;;  %v5960_v17 = vcombine.low %v285_v6, %v289_v7  ;;  %v293_v18 = vld [vmem:[%s7883_s9 + $0x90] sm:$0xff]  ;;  %v7478_v7 = vld [vmem:[#allocation5 + $0x76c] ss:$16 sps:$4 sm:$0xff]  }
 0x109   : > { %2459 = vmatprep.subr.bf16.mxu0 %v7361_v19  ;;  %2911 = vmatprep.subr.bf16.mxu1 %v7364_v20  ;;  %v297_v19 = vld [vmem:[%s7883_s9 + $0xb0] sm:$0xff] }
 0x10a   : > { %v7419_v20 = vld [vmem:[#allocation5 + $0x640] ss:$16 sps:$4 sm:$0xff]   ;;  %v5969_v24 = vcombine.high %v293_v18, %v297_v19  ;;  %v7475_v6 = vld [vmem:[#allocation5 + $0x764] ss:$16 sps:$4 sm:$0xff]  }
 0x10b   : > { %2403 = vmatmul.mubr.bf16.gmra.mrb[16].mxu0 %v5982_v23  ;;  %2855 = vmatmul.mubr.bf16.gmra.mrb[16].mxu1 %v5982_v23  ;;  %v7430_v23 = vld [vmem:[#allocation5 + $0x66c] ss:$16 sps:$4 sm:$0xff]  }
 0x10c   : > { %2460 = vmatpush1.bf16.msra.mxu0 %v7359_v21  ;;  %2912 = vmatpush1.bf16.msra.mxu1 %v7362_v22  ;;  %v7422_v21 = vld [vmem:[#allocation5 + $0x648] ss:$16 sps:$4 sm:$0xff]   ;;  %v7427_v22 = vld [vmem:[#allocation5 + $0x664] ss:$16 sps:$4 sm:$0xff]  }
 0x10d   : > { %2461 = vmatprep.subr.bf16.mxu0 %v7367_v26  ;;  %2913 = vmatprep.subr.bf16.mxu1 %v7370_v27  ;;  %v7428_v26 = vld [vmem:[#allocation5 + $0x668] ss:$16 sps:$4 sm:$0xff]   ;;  %v7433_v27 = vld [vmem:[#allocation5 + $0x684] ss:$16 sps:$4 sm:$0xff]  }
 0x10e   : > { %2412 = vmatprep.mubr.bf16.mxu0 %v5991_v28  ;;  %2864 = vmatprep.mubr.bf16.mxu1 %v5991_v28  ;;  %v7436_v28 = vld [vmem:[#allocation5 + $0x68c] ss:$16 sps:$4 sm:$0xff]  }
 0x110   : > { %2462 = vmatpush1.bf16.msra.mxu0 %v7365_v29  ;;  %2914 = vmatpush1.bf16.msra.mxu1 %v7368_v30  ;;  %v5968_v29 = vcombine.low %v293_v18, %v297_v19  ;;  %v301_v30 = vld [vmem:[%s7883_s9 + $0xd0] sm:$0xff]  ;;  %v7490_v19 = vld [vmem:[#allocation5 + $0x7ac] ss:$16 sps:$4 sm:$0xff]  }
 0x111   : > { %2463 = vmatprep.subr.bf16.mxu0 %v7373_v31  ;;  %2915 = vmatprep.subr.bf16.mxu1 %v7376_v32  ;;  %v305_v31 = vld [vmem:[%s7883_s9 + $0xf0] sm:$0xff] }
 0x112   : > { %v7431_v32 = vld [vmem:[#allocation5 + $0x680] ss:$16 sps:$4 sm:$0xff]   ;;  %v7487_v18 = vld [vmem:[#allocation5 + $0x7a4] ss:$16 sps:$4 sm:$0xff]  }
 0x113   : > { %2413 = vmatmul.mubr.bf16.gmra.mrb[20].mxu0 %v5990_v34  ;;  %2865 = vmatmul.mubr.bf16.gmra.mrb[20].mxu1 %v5990_v34  ;;  %v7439_v34 = vld [vmem:[#allocation5 + $0x6a4] ss:$16 sps:$4 sm:$0xff]  }
 0x114   : > { %2464 = vmatpush1.bf16.msra.mxu0 %v7371_v36  ;;  %2916 = vmatpush1.bf16.msra.mxu1 %v7374_v37  ;;  %v5977_v36 = vcombine.high %v301_v30, %v305_v31  ;;  %v7437_v37 = vld [vmem:[#allocation5 + $0x6a0] ss:$16 sps:$4 sm:$0xff]  }
 0x115   : > { %2465 = vmatprep.subr.bf16.mxu0 %v7379_v38  ;;  %2917 = vmatprep.subr.bf16.mxu1 %v7382_v39  ;;  %v7440_v38 = vld [vmem:[#allocation5 + $0x6a8] ss:$16 sps:$4 sm:$0xff]   ;;  %v7445_v39 = vld [vmem:[#allocation5 + $0x6c4] ss:$16 sps:$4 sm:$0xff]  }
 0x116   : > { %2422 = vmatprep.mubr.bf16.mxu0 %v5999_v40  ;;  %2874 = vmatprep.mubr.bf16.mxu1 %v5999_v40  ;;  %v7448_v40 = vld [vmem:[#allocation5 + $0x6cc] ss:$16 sps:$4 sm:$0xff]  }
 0x118   : > { %2466 = vmatpush1.bf16.msra.mxu0 %v7377_v41  ;;  %2918 = vmatpush1.bf16.msra.mxu1 %v7380_v42  ;;  %v5976_v41 = vcombine.low %v301_v30, %v305_v31  ;;  %v309_v42 = vld [vmem:[%s7883_s9 + $0x110] sm:$0xff]  ;;  %v7502_v31 = vld [vmem:[#allocation5 + $0x7ec] ss:$16 sps:$4 sm:$0xff]  }
 0x119   : > { %2467 = vmatprep.subr.bf16.mxu0 %v7385_v43  ;;  %2919 = vmatprep.subr.bf16.mxu1 %v7388_v44  ;;  %v313_v43 = vld [vmem:[%s7883_s9 + $0x130] sm:$0xff] }
 0x11a   : > { %v7443_v44 = vld [vmem:[#allocation5 + $0x6c0] ss:$16 sps:$4 sm:$0xff]   ;;  %v7499_v30 = vld [vmem:[#allocation5 + $0x7e4] ss:$16 sps:$4 sm:$0xff]  }
 0x11b   : > { %2423 = vmatmul.mubr.bf16.gmra.mrb[24].mxu0 %v5998_v46  ;;  %2875 = vmatmul.mubr.bf16.gmra.mrb[24].mxu1 %v5998_v46  ;;  %v7451_v46 = vld [vmem:[#allocation5 + $0x6e4] ss:$16 sps:$4 sm:$0xff]  }
 0x11c   : > { %2468 = vmatpush1.bf16.msra.mxu0 %v7383_v48  ;;  %2920 = vmatpush1.bf16.msra.mxu1 %v7386_v49  ;;  %v5985_v48 = vcombine.high %v309_v42, %v313_v43  ;;  %v7449_v49 = vld [vmem:[#allocation5 + $0x6e0] ss:$16 sps:$4 sm:$0xff]  }
 0x11d   : > { %2469 = vmatprep.subr.bf16.mxu0 %v7391_v50  ;;  %2921 = vmatprep.subr.bf16.mxu1 %v7394_v51  ;;  %v7452_v50 = vld [vmem:[#allocation5 + $0x6e8] ss:$16 sps:$4 sm:$0xff]   ;;  %v7457_v51 = vld [vmem:[#allocation5 + $0x704] ss:$16 sps:$4 sm:$0xff]  }
 0x11e   : > { %2432 = vmatprep.mubr.bf16.mxu0 %v6007_v52  ;;  %2884 = vmatprep.mubr.bf16.mxu1 %v6007_v52  ;;  %v7460_v52 = vld [vmem:[#allocation5 + $0x70c] ss:$16 sps:$4 sm:$0xff]  }
 0x120   : > { %2470 = vmatpush1.bf16.msra.mxu0 %v7389_v53  ;;  %2922 = vmatpush1.bf16.msra.mxu1 %v7392_v54  ;;  %v5984_v53 = vcombine.low %v309_v42, %v313_v43  ;;  %v317_v54 = vld [vmem:[%s7883_s9 + $0x150] sm:$0xff]  ;;  %v3225_v43 = vld [vmem:[#allocation7 + $0x40] sm:$0xff] }
 0x121   : > { %2471 = vmatprep.subr.bf16.mxu0 %v7397_v55  ;;  %2923 = vmatprep.subr.bf16.mxu1 %v7400_v56  ;;  %v321_v55 = vld [vmem:[%s7883_s9 + $0x170] sm:$0xff] }
 0x122   : > { %v7455_v56 = vld [vmem:[#allocation5 + $0x700] ss:$16 sps:$4 sm:$0xff]   ;;  %v5993_v60 = vcombine.high %v317_v54, %v321_v55 }
 0x123   : > { %2433 = vmatmul.mubr.bf16.gmra.mrb[28].mxu0 %v6006_v59  ;;  %2885 = vmatmul.mubr.bf16.gmra.mrb[28].mxu1 %v6006_v59  ;;  %v7466_v59 = vld [vmem:[#allocation5 + $0x72c] ss:$16 sps:$4 sm:$0xff]  }
 0x124   : > { %2472 = vmatpush1.bf16.msra.mxu0 %v7395_v57  ;;  %2924 = vmatpush1.bf16.msra.mxu1 %v7398_v58  ;;  %v7458_v57 = vld [vmem:[#allocation5 + $0x708] ss:$16 sps:$4 sm:$0xff]   ;;  %v7463_v58 = vld [vmem:[#allocation5 + $0x724] ss:$16 sps:$4 sm:$0xff]  }
 0x125   : > { %2473 = vmatprep.subr.bf16.mxu0 %v7403_v62  ;;  %2925 = vmatprep.subr.bf16.mxu1 %v7406_v63  ;;  %v7464_v62 = vld [vmem:[#allocation5 + $0x728] ss:$16 sps:$4 sm:$0xff]   ;;  %v7469_v63 = vld [vmem:[#allocation5 + $0x744] ss:$16 sps:$4 sm:$0xff]  }
 0x126   : > { %2475 = vmatprep.mubr.bf16.mxu0 %v5953_v0  ;;  %2927 = vmatprep.mubr.bf16.mxu1 %v5953_v0  ;;  %v7472_v0 = vld [vmem:[#allocation5 + $0x74c] ss:$16 sps:$4 sm:$0xff]  }
 0x128   : > { %2474 = vmatpush1.bf16.msra.mxu0 %v7401_v1  ;;  %2926 = vmatpush1.bf16.msra.mxu1 %v7404_v2  ;;  %v5992_v1 = vcombine.low %v317_v54, %v321_v55  ;;  %v325_v2 = vld [vmem:[%s7883_s9 + $0x190] sm:$0xff]  ;;  %v3237_v54 = vld [vmem:[#allocation7 + $0xa0] sm:$0xff]  ;;  %v3234_v55 = vld [vmem:[#allocation7 + $0x88] sm:$0xff] }
 0x129   : > { %2556 = vmatprep.subr.bf16.mxu0 %v7409_v3  ;;  %3008 = vmatprep.subr.bf16.mxu1 %v7412_v4  ;;  %v329_v3 = vld [vmem:[%s7883_s9 + $0x1b0] sm:$0xff] }
 0x12a   : > { %v7467_v4 = vld [vmem:[#allocation5 + $0x740] ss:$16 sps:$4 sm:$0xff]  }
 0x12b   : > { %2476 = vmatmul.mubr.bf16.vlgmr.msra.gmra.mrb[0].mxu0 %v5952_v5  ;;  %2928 = vmatmul.mubr.bf16.vlgmr.msra.gmra.mrb[0].mxu1 %v5952_v5  ;;  %v7470_v5 = vld [vmem:[#allocation5 + $0x748] ss:$16 sps:$4 sm:$0xff]  }
 0x12c   : > { %2557 = vmatpush1.bf16.msra.mxu0 %v7407_v8  ;;  %3009 = vmatpush1.bf16.msra.mxu1 %v7410_v9  ;;  %v6001_v8 = vcombine.high %v325_v2, %v329_v3  ;;  %v7473_v9 = vld [vmem:[#allocation5 + $0x760] ss:$16 sps:$4 sm:$0xff]  }
 0x12d   : > { %2558 = vmatprep.subr.bf16.mxu0 %v7415_v10  ;;  %3010 = vmatprep.subr.bf16.mxu1 %v7418_v11  ;;  %v7476_v10 = vld [vmem:[#allocation5 + $0x768] ss:$16 sps:$4 sm:$0xff]   ;;  %v7481_v11 = vld [vmem:[#allocation5 + $0x784] ss:$16 sps:$4 sm:$0xff]  }
 0x12e   : > { %2485 = vmatprep.mubr.bf16.mxu0 %v5961_v12  ;;  %2937 = vmatprep.mubr.bf16.mxu1 %v5961_v12  ;;  %v7484_v12 = vld [vmem:[#allocation5 + $0x78c] ss:$16 sps:$4 sm:$0xff]  }
 0x130   : > { %2559 = vmatpush1.bf16.msra.mxu0 %v7413_v13  ;;  %3011 = vmatpush1.bf16.msra.mxu1 %v7416_v14  ;;  %v6000_v13 = vcombine.low %v325_v2, %v329_v3  ;;  %v333_v14 = vld [vmem:[%s7883_s9 + $0x1d0] sm:$0xff]  ;;  %v3242_v2 = vld [vmem:[#allocation7 + $0xc8] sm:$0xff] }
 0x131   : > { %2560 = vmatprep.subr.bf16.mxu0 %v7421_v15  ;;  %3012 = vmatprep.subr.bf16.mxu1 %v7424_v16  ;;  %v337_v15 = vld [vmem:[%s7883_s9 + $0x1f0] sm:$0xff]  ;;  %v3246_v3 = vld [vmem:[#allocation7 + $0xe8] sm:$0xff] }
 0x132   : > { %v7479_v16 = vld [vmem:[#allocation5 + $0x780] ss:$16 sps:$4 sm:$0xff]  }
 0x133   : > { %2486 = vmatmul.mubr.bf16.gmra.mrb[4].mxu0 %v5960_v17  ;;  %2938 = vmatmul.mubr.bf16.gmra.mrb[4].mxu1 %v5960_v17  ;;  %v7482_v17 = vld [vmem:[#allocation5 + $0x788] ss:$16 sps:$4 sm:$0xff]  }
 0x134   : > { %2561 = vmatpush1.bf16.msra.mxu0 %v7419_v20  ;;  %3013 = vmatpush1.bf16.msra.mxu1 %v7422_v21  ;;  %v6009_v20 = vcombine.high %v333_v14, %v337_v15  ;;  %v7485_v21 = vld [vmem:[#allocation5 + $0x7a0] ss:$16 sps:$4 sm:$0xff]  }
 0x135   : > { %2562 = vmatprep.subr.bf16.mxu0 %v7427_v22  ;;  %3014 = vmatprep.subr.bf16.mxu1 %v7430_v23  ;;  %v7488_v22 = vld [vmem:[#allocation5 + $0x7a8] ss:$16 sps:$4 sm:$0xff]   ;;  %v7493_v23 = vld [vmem:[#allocation5 + $0x7c4] ss:$16 sps:$4 sm:$0xff]  }
 0x136   : > { %2495 = vmatprep.mubr.bf16.mxu0 %v5969_v24  ;;  %2947 = vmatprep.mubr.bf16.mxu1 %v5969_v24  ;;  %v7496_v24 = vld [vmem:[#allocation5 + $0x7cc] ss:$16 sps:$4 sm:$0xff]  }
 0x138   : > { %2563 = vmatpush1.bf16.msra.mxu0 %v7425_v25  ;;  %3015 = vmatpush1.bf16.msra.mxu1 %v7428_v26  ;;  %v6008_v25 = vcombine.low %v333_v14, %v337_v15  ;;  %v278_v26 = vld [vmem:[%s7883_s9 + $0x18] sm:$0xff] }
 0x139   : > { %2564 = vmatprep.subr.bf16.mxu0 %v7433_v27  ;;  %3016 = vmatprep.subr.bf16.mxu1 %v7436_v28  ;;  %v282_v27 = vld [vmem:[%s7883_s9 + $0x38] sm:$0xff]  ;;  %v7491_v28 = vld [vmem:[#allocation5 + $0x7c0] ss:$16 sps:$4 sm:$0xff]  }
 0x13a   : > { %v306_v14 = vld [vmem:[%s7883_s9 + $0xf8] sm:$0xff] }
 0x13b   : > { %2496 = vmatmul.mubr.bf16.gmra.mrb[8].mxu0 %v5968_v29  ;;  %2948 = vmatmul.mubr.bf16.gmra.mrb[8].mxu1 %v5968_v29  ;;  %v7494_v29 = vld [vmem:[#allocation5 + $0x7c8] ss:$16 sps:$4 sm:$0xff]  }
 0x13c   : > { %2565 = vmatpush1.bf16.msra.mxu0 %v7431_v32  ;;  %3017 = vmatpush1.bf16.msra.mxu1 %v7434_v33  ;;  %v3217_v32 = vld [vmem:[#allocation7] sm:$0xff]  ;;  %v5955_v33 = vcombine.high %v278_v26, %v282_v27 }
 0x13d   : > { %2566 = vmatprep.subr.bf16.mxu0 %v7439_v34  ;;  %3018 = vmatprep.subr.bf16.mxu1 %v7442_v35  ;;  %v3221_v34 = vld [vmem:[#allocation7 + $0x20] sm:$0xff]  ;;  %v3218_v35 = vld [vmem:[#allocation7 + $0x8] sm:$0xff] }
 0x13e   : > { %2505 = vmatprep.mubr.bf16.mxu0 %v5977_v36  ;;  %2957 = vmatprep.mubr.bf16.mxu1 %v5977_v36  ;;  %v3222_v36 = vld [vmem:[#allocation7 + $0x28] sm:$0xff] }
 0x13f   : > { %v6271_v42 = vcombine.high %v3218_v35, %v3222_v36 }
 0x140   : > { %2567 = vmatpush1.bf16.msra.mxu0 %v7437_v37  ;;  %3019 = vmatpush1.bf16.msra.mxu1 %v7440_v38  ;;  %v7497_v37 = vld [vmem:[#allocation5 + $0x7e0] ss:$16 sps:$4 sm:$0xff]   ;;  %v7500_v38 = vld [vmem:[#allocation5 + $0x7e8] ss:$16 sps:$4 sm:$0xff]  }
 0x141   : > { %2568 = vmatprep.subr.bf16.mxu0 %v7445_v39  ;;  %3020 = vmatprep.subr.bf16.mxu1 %v7448_v40  ;;  %v286_v39 = vld [vmem:[%s7883_s9 + $0x58] sm:$0xff] }
 0x142   : > { %v290_v40 = vld [vmem:[%s7883_s9 + $0x78] sm:$0xff] }
 0x143   : > { %2506 = vmatmul.mubr.bf16.gmra.mrb[12].mxu0 %v5976_v41  ;;  %2958 = vmatmul.mubr.bf16.gmra.mrb[12].mxu1 %v5976_v41  ;;  %v6269_v41 = vcombine.high %v3217_v32, %v3221_v34 }
 0x144   : > { %2569 = vmatpush1.bf16.msra.mxu0 %v7443_v44  ;;  %3021 = vmatpush1.bf16.msra.mxu1 %v7446_v45  ;;  %v5954_v44 = vcombine.low %v278_v26, %v282_v27  ;;  %v3229_v45 = vld [vmem:[#allocation7 + $0x60] sm:$0xff] }
 0x145   : > { %2570 = vmatprep.subr.bf16.mxu0 %v7451_v46  ;;  %3022 = vmatprep.subr.bf16.mxu1 %v7454_v47  ;;  %v3226_v46 = vld [vmem:[#allocation7 + $0x48] sm:$0xff] }
 0x146   : > { %2515 = vmatprep.mubr.bf16.mxu0 %v5985_v48  ;;  %2967 = vmatprep.mubr.bf16.mxu1 %v5985_v48  ;;  %v3230_v47 = vld [vmem:[#allocation7 + $0x68] sm:$0xff]  ;;  %v5963_v48 = vcombine.high %v286_v39, %v290_v40 }
 0x148   : > { %2571 = vmatpush1.bf16.msra.mxu0 %v7449_v49  ;;  %3023 = vmatpush1.bf16.msra.mxu1 %v7452_v50  ;;  %v6268_v49 = vcombine.low %v3217_v32, %v3221_v34  ;;  %v6270_v50 = vcombine.low %v3218_v35, %v3222_v36  ;;  %v3270_v32 = vld [vmem:[#allocation7 + $0x1a8] sm:$0xff]  ;;  %v314_v34 = vld [vmem:[%s7883_s9 + $0x138] sm:$0xff] }
 0x149   : > { %2572 = vmatprep.subr.bf16.mxu0 %v7457_v51  ;;  %3024 = vmatprep.subr.bf16.mxu1 %v7460_v52  ;;  %v6277_v51 = vcombine.high %v3225_v43, %v3229_v45  ;;  %v6279_v52 = vcombine.high %v3226_v46, %v3230_v47 }
 0x14b   : > { %2516 = vmatmul.mubr.bf16.gmra.mrb[16].mxu0 %v5984_v53  ;;  %2968 = vmatmul.mubr.bf16.gmra.mrb[16].mxu1 %v5984_v53  ;;  %v3233_v53 = vld [vmem:[#allocation7 + $0x80] sm:$0xff] }
 0x14c   : > { %2573 = vmatpush1.bf16.msra.mxu0 %v7455_v56  ;;  %3025 = vmatpush1.bf16.msra.mxu1 %v7458_v57  ;;  %v3238_v56 = vld [vmem:[#allocation7 + $0xa8] sm:$0xff]  ;;  %v294_v57 = vld [vmem:[%s7883_s9 + $0x98] sm:$0xff] }
 0x14d   : > { %2574 = vmatprep.subr.bf16.mxu0 %v7463_v58  ;;  %3026 = vmatprep.subr.bf16.mxu1 %v7466_v59  ;;  %v298_v58 = vld [vmem:[%s7883_s9 + $0xb8] sm:$0xff]  ;;  %v6276_v59 = vcombine.low %v3225_v43, %v3229_v45  ;;  %v3278_v43 = vld [vmem:[#allocation7 + $0x1e8] sm:$0xff] }
 0x14e   : > { %2525 = vmatprep.mubr.bf16.mxu0 %v5993_v60  ;;  %2977 = vmatprep.mubr.bf16.mxu1 %v5993_v60  ;;  %v6278_v60 = vcombine.low %v3226_v46, %v3230_v47 }
 0x150   : > { %2575 = vmatpush1.bf16.msra.mxu0 %v7461_v61  ;;  %3027 = vmatpush1.bf16.msra.mxu1 %v7464_v62  ;;  %v6285_v61 = vcombine.high %v3233_v53, %v3237_v54  ;;  %v6287_v62 = vcombine.high %v3234_v55, %v3238_v56 }
 0x151   : > { %2576 = vmatprep.subr.bf16.mxu0 %v7469_v63  ;;  %3028 = vmatprep.subr.bf16.mxu1 %v7472_v0  ;;  %v3241_v63 = vld [vmem:[#allocation7 + $0xc0] sm:$0xff]  ;;  %v5962_v0 = vcombine.low %v286_v39, %v290_v40 }
 0x152   : > { %v3273_v39 = vld [vmem:[#allocation7 + $0x1c0] sm:$0xff] }
 0x153   : > { %2526 = vmatmul.mubr.bf16.gmra.mrb[20].mxu0 %v5992_v1  ;;  %2978 = vmatmul.mubr.bf16.gmra.mrb[20].mxu1 %v5992_v1  ;;  %v3245_v1 = vld [vmem:[#allocation7 + $0xe0] sm:$0xff] }
 0x154   : > { %2577 = vmatpush1.bf16.msra.mxu0 %v7467_v4  ;;  %3029 = vmatpush1.bf16.msra.mxu1 %v7470_v5  ;;  %v5971_v4 = vcombine.high %v294_v57, %v298_v58  ;;  %v6284_v5 = vcombine.low %v3233_v53, %v3237_v54  ;;  %v6292_v15 = vcombine.low %v3241_v63, %v3245_v1  ;;  %v318_v53 = vld [vmem:[%s7883_s9 + $0x158] sm:$0xff] }
 0x155   : > { %2578 = vmatprep.subr.bf16.mxu0 %v7475_v6  ;;  %3030 = vmatprep.subr.bf16.mxu1 %v7478_v7  ;;  %v6286_v6 = vcombine.low %v3234_v55, %v3238_v56  ;;  %v6293_v7 = vcombine.high %v3241_v63, %v3245_v1  ;;  %v322_v54 = vld [vmem:[%s7883_s9 + $0x178] sm:$0xff]  ;;  %v3294_v63 = vld [vmem:[#allocation7 + $0x268] sm:$0xff] }
 0x156   : > { %2535 = vmatprep.mubr.bf16.mxu0 %v6001_v8  ;;  %2987 = vmatprep.mubr.bf16.mxu1 %v6001_v8  ;;  %v6295_v8 = vcombine.high %v3242_v2, %v3246_v3 }
 0x158   : > { %2579 = vmatpush1.bf16.msra.mxu0 %v7473_v9  ;;  %3031 = vmatpush1.bf16.msra.mxu1 %v7476_v10  ;;  %v3249_v9 = vld [vmem:[#allocation7 + $0x100] sm:$0xff] }
 0x159   : > { %2580 = vmatprep.subr.bf16.mxu0 %v7481_v11  ;;  %3032 = vmatprep.subr.bf16.mxu1 %v7484_v12  ;;  %v3253_v10 = vld [vmem:[#allocation7 + $0x120] sm:$0xff]  ;;  %v3250_v11 = vld [vmem:[#allocation7 + $0x108] sm:$0xff] }
 0x15a   : > { %v3254_v12 = vld [vmem:[#allocation7 + $0x128] sm:$0xff] }
 0x15b   : > { %2536 = vmatmul.mubr.bf16.gmra.mrb[24].mxu0 %v6000_v13  ;;  %2988 = vmatmul.mubr.bf16.gmra.mrb[24].mxu1 %v6000_v13  ;;  %v302_v13 = vld [vmem:[%s7883_s9 + $0xd8] sm:$0xff]  ;;  %v6302_v26 = vcombine.low %v3250_v11, %v3254_v12 }
 0x15c   : > { %2581 = vmatpush1.bf16.msra.mxu0 %v7479_v16  ;;  %3033 = vmatpush1.bf16.msra.mxu1 %v7482_v17  ;;  %v6294_v16 = vcombine.low %v3242_v2, %v3246_v3  ;;  %v6301_v17 = vcombine.high %v3249_v9, %v3253_v10  ;;  %v5978_v40 = vcombine.low %v302_v13, %v306_v14 }
 0x15d   : > { %2582 = vmatprep.subr.bf16.mxu0 %v7487_v18  ;;  %3034 = vmatprep.subr.bf16.mxu1 %v7490_v19  ;;  %v6303_v18 = vcombine.high %v3250_v11, %v3254_v12  ;;  %v3257_v19 = vld [vmem:[#allocation7 + $0x140] sm:$0xff] }
 0x15e   : > { %2545 = vmatprep.mubr.bf16.mxu0 %v6009_v20  ;;  %2997 = vmatprep.mubr.bf16.mxu1 %v6009_v20  ;;  %v5970_v20 = vcombine.low %v294_v57, %v298_v58 }
 0x160   : > { %2583 = vmatpush1.bf16.msra.mxu0 %v7485_v21  ;;  %3035 = vmatpush1.bf16.msra.mxu1 %v7488_v22  ;;  %v3261_v21 = vld [vmem:[#allocation7 + $0x160] sm:$0xff]  ;;  %v3258_v22 = vld [vmem:[#allocation7 + $0x148] sm:$0xff] }
 0x161   : > { %2584 = vmatprep.subr.bf16.mxu0 %v7493_v23  ;;  %3036 = vmatprep.subr.bf16.mxu1 %v7496_v24  ;;  %v3262_v23 = vld [vmem:[#allocation7 + $0x168] sm:$0xff]  ;;  %v5979_v24 = vcombine.high %v302_v13, %v306_v14  ;;  %v6309_v27 = vcombine.high %v3257_v19, %v3261_v21  ;;  %v6308_v35 = vcombine.low %v3257_v19, %v3261_v21 }
 0x162   : > { %v6310_v36 = vcombine.low %v3258_v22, %v3262_v23  ;;  %v3310_v19 = vld [vmem:[#allocation7 + $0x2e8] sm:$0xff] }
 0x163   : > { %2546 = vmatmul.mubr.bf16.gmra.mrb[28].mxu0 %v6008_v25  ;;  %2998 = vmatmul.mubr.bf16.gmra.mrb[28].mxu1 %v6008_v25  ;;  %v6300_v25 = vcombine.low %v3249_v9, %v3253_v10  ;;  %v326_v9 = vld [vmem:[%s7883_s9 + $0x198] sm:$0xff] }
 0x164   : > { %2585 = vmatpush1.bf16.msra.mxu0 %v7491_v28  ;;  %3037 = vmatpush1.bf16.msra.mxu1 %v7494_v29  ;;  %v6311_v28 = vcombine.high %v3258_v22, %v3262_v23  ;;  %v3265_v29 = vld [vmem:[#allocation7 + $0x180] sm:$0xff]  ;;  %v330_v10 = vld [vmem:[%s7883_s9 + $0x1b8] sm:$0xff] }
 0x165   : > { %2586 = vmatprep.subr.bf16.mxu0 %v7499_v30  ;;  %3038 = vmatprep.subr.bf16.mxu1 %v7502_v31  ;;  %v3269_v30 = vld [vmem:[#allocation7 + $0x1a0] sm:$0xff]  ;;  %v3266_v31 = vld [vmem:[#allocation7 + $0x188] sm:$0xff] }
 0x166   : > { %2588 = vmatprep.mubr.bf16.mxu0 %v5955_v33  ;;  %3040 = vmatprep.mubr.bf16.mxu1 %v5955_v33  ;;  %v310_v33 = vld [vmem:[%s7883_s9 + $0x118] sm:$0xff]  ;;  %v6316_v45 = vcombine.low %v3265_v29, %v3269_v30  ;;  %v6318_v46 = vcombine.low %v3266_v31, %v3270_v32 }
 0x168   : > { %2587 = vmatpush1.bf16.msra.mxu0 %v7497_v37  ;;  %3039 = vmatpush1.bf16.msra.mxu1 %v7500_v38  ;;  %v6317_v37 = vcombine.high %v3265_v29, %v3269_v30  ;;  %v6319_v38 = vcombine.high %v3266_v31, %v3270_v32  ;;  %v334_v29 = vld [vmem:[%s7883_s9 + $0x1d8] sm:$0xff] }
 0x169   : > { %4795 = vmatprep.subr.bf16.mxu0 %v6269_v41  ;;  %5021 = vmatprep.subr.bf16.mxu1 %v6271_v42  ;;  %v3277_v41 = vld [vmem:[#allocation7 + $0x1e0] sm:$0xff]  ;;  %v3274_v42 = vld [vmem:[#allocation7 + $0x1c8] sm:$0xff]  ;;  %v338_v30 = vld [vmem:[%s7883_s9 + $0x1f8] sm:$0xff]  ;;  %s7595_s9 = scalar_lea.vmem %s7594_s8, 32768 }
 0x16a   : > { %v6325_v47 = vcombine.high %v3273_v39, %v3277_v41  ;;  %v6324_v55 = vcombine.low %v3273_v39, %v3277_v41  ;;  %v6326_v56 = vcombine.low %v3274_v42, %v3278_v43  ;;  %v3326_v39 = vld [vmem:[#allocation7 + $0x368] sm:$0xff]  ;;  %p7597_p9 = scmp.lt.s32.totalorder %s7595_s9, %s7589_s7 }
 0x16b   : > { %2589 = vmatmul.mubr.bf16.vlgmr.msra.gmra.mrb[0].mxu0 %v5954_v44  ;;  %3041 = vmatmul.mubr.bf16.vlgmr.msra.gmra.mrb[0].mxu1 %v5954_v44  ;;  %v5987_v44 = vcombine.high %v310_v33, %v314_v34 }
 0x16c   : > { %2598 = vmatprep.mubr.bf16.mxu0 %v5963_v48  ;;  %3050 = vmatprep.mubr.bf16.mxu1 %v5963_v48  ;;  %v6327_v48 = vcombine.high %v3274_v42, %v3278_v43  ;;  %p7598_p12 = por %p7597_p9, %p7596_p5 }
 0x16d   : > { %4796 = vmatpush1.bf16.msra.mxu0 %v6268_v49  ;;  %5022 = vmatpush1.bf16.msra.mxu1 %v6270_v50  ;;  %v3281_v49 = vld [vmem:[#allocation7 + $0x200] sm:$0xff] }
 0x16e   : > { %4797 = vmatprep.subr.bf16.mxu0 %v6277_v51  ;;  %5023 = vmatprep.subr.bf16.mxu1 %v6279_v52  ;;  %v3285_v50 = vld [vmem:[#allocation7 + $0x220] sm:$0xff]  ;;  %v3282_v51 = vld [vmem:[#allocation7 + $0x208] sm:$0xff]  ;;  %p7599_p2 = pnand %p7598_p12, %p7592_p3 }
 0x16f   : > { %v3286_v52 = vld [vmem:[#allocation7 + $0x228] sm:$0xff]  ;;  %v6333_v57 = vcombine.high %v3281_v49, %v3285_v50  ;;  %v6332_v1 = vcombine.low %v3281_v49, %v3285_v50  ;;  %v3333_v49 = vld [vmem:[#allocation7 + $0x3a0] sm:$0xff] }
 0x170   : > { %v6335_v58 = vcombine.high %v3282_v51, %v3286_v52  ;;  %v6334_v2 = vcombine.low %v3282_v51, %v3286_v52  ;;  %v3330_v50 = vld [vmem:[#allocation7 + $0x388] sm:$0xff] }
 0x171   : > { %4798 = vmatpush1.bf16.msra.mxu0 %v6276_v59  ;;  %5024 = vmatpush1.bf16.msra.mxu1 %v6278_v60  ;;  %v3289_v59 = vld [vmem:[#allocation7 + $0x240] sm:$0xff]  ;;  %v5986_v60 = vcombine.low %v310_v33, %v314_v34  ;;  %v3334_v52 = vld [vmem:[#allocation7 + $0x3a8] sm:$0xff] }
 0x172   : > { %4799 = vmatprep.subr.bf16.mxu0 %v6285_v61  ;;  %5025 = vmatprep.subr.bf16.mxu1 %v6287_v62  ;;  %v3293_v61 = vld [vmem:[#allocation7 + $0x260] sm:$0xff]  ;;  %v3290_v62 = vld [vmem:[#allocation7 + $0x248] sm:$0xff] }
 0x173   : > { %2599 = vmatmul.mubr.bf16.gmra.mrb[4].mxu0 %v5962_v0  ;;  %3051 = vmatmul.mubr.bf16.gmra.mrb[4].mxu1 %v5962_v0  ;;  %v5995_v0 = vcombine.high %v318_v53, %v322_v54  ;;  %v6341_v3 = vcombine.high %v3289_v59, %v3293_v61  ;;  %v6340_v11 = vcombine.low %v3289_v59, %v3293_v61 }
 0x174   : > { %2608 = vmatprep.mubr.bf16.mxu0 %v5971_v4  ;;  %3060 = vmatprep.mubr.bf16.mxu1 %v5971_v4  ;;  %v6343_v4 = vcombine.high %v3290_v62, %v3294_v63  ;;  %v6342_v12 = vcombine.low %v3290_v62, %v3294_v63 }
 0x175   : > { %4800 = vmatpush1.bf16.msra.mxu0 %v6284_v5  ;;  %5026 = vmatpush1.bf16.msra.mxu1 %v6286_v6  ;;  %v3297_v5 = vld [vmem:[#allocation7 + $0x280] sm:$0xff] }
 0x176   : > { %4801 = vmatprep.subr.bf16.mxu0 %v6293_v7  ;;  %5027 = vmatprep.subr.bf16.mxu1 %v6295_v8  ;;  %v3301_v6 = vld [vmem:[#allocation7 + $0x2a0] sm:$0xff]  ;;  %v3298_v7 = vld [vmem:[#allocation7 + $0x288] sm:$0xff] }
 0x177   : > { %v3302_v8 = vld [vmem:[#allocation7 + $0x2a8] sm:$0xff]  ;;  %v6349_v13 = vcombine.high %v3297_v5, %v3301_v6  ;;  %v6348_v21 = vcombine.low %v3297_v5, %v3301_v6 }
 0x178   : > { %v6351_v14 = vcombine.high %v3298_v7, %v3302_v8  ;;  %v6350_v22 = vcombine.low %v3298_v7, %v3302_v8  ;;  %v597_v8 = vlaneseq }
 0x179   : > { %4802 = vmatpush1.bf16.msra.mxu0 %v6292_v15  ;;  %5028 = vmatpush1.bf16.msra.mxu1 %v6294_v16  ;;  %v3305_v15 = vld [vmem:[#allocation7 + $0x2c0] sm:$0xff]  ;;  %v5994_v16 = vcombine.low %v318_v53, %v322_v54  ;;  %v6382_v54 = vcombine.low %v3330_v50, %v3334_v52 }
 0x17a   : > { %4803 = vmatprep.subr.bf16.mxu0 %v6301_v17  ;;  %5029 = vmatprep.subr.bf16.mxu1 %v6303_v18  ;;  %v3309_v17 = vld [vmem:[#allocation7 + $0x2e0] sm:$0xff]  ;;  %v3306_v18 = vld [vmem:[#allocation7 + $0x2c8] sm:$0xff] }
 0x17b   : > { %2609 = vmatmul.mubr.bf16.gmra.mrb[8].mxu0 %v5970_v20  ;;  %3061 = vmatmul.mubr.bf16.gmra.mrb[8].mxu1 %v5970_v20  ;;  %v6003_v20 = vcombine.high %v326_v9, %v330_v10  ;;  %v6357_v23 = vcombine.high %v3305_v15, %v3309_v17  ;;  %v6356_v31 = vcombine.low %v3305_v15, %v3309_v17 }
 0x17c   : > { %2618 = vmatprep.mubr.bf16.mxu0 %v5979_v24  ;;  %3070 = vmatprep.mubr.bf16.mxu1 %v5979_v24  ;;  %v6359_v24 = vcombine.high %v3306_v18, %v3310_v19  ;;  %v6358_v32 = vcombine.low %v3306_v18, %v3310_v19 }
 0x17d   : > { %4804 = vmatpush1.bf16.msra.mxu0 %v6300_v25  ;;  %5030 = vmatpush1.bf16.msra.mxu1 %v6302_v26  ;;  %v3313_v25 = vld [vmem:[#allocation7 + $0x300] sm:$0xff] }
 0x17e   : > { %4805 = vmatprep.subr.bf16.mxu0 %v6309_v27  ;;  %5031 = vmatprep.subr.bf16.mxu1 %v6311_v28  ;;  %v3317_v26 = vld [vmem:[#allocation7 + $0x320] sm:$0xff]  ;;  %v3314_v27 = vld [vmem:[#allocation7 + $0x308] sm:$0xff] }
 0x17f   : > { %v3318_v28 = vld [vmem:[#allocation7 + $0x328] sm:$0xff]  ;;  %v6365_v33 = vcombine.high %v3313_v25, %v3317_v26  ;;  %v6364_v41 = vcombine.low %v3313_v25, %v3317_v26 }
 0x180   : > { %v6367_v34 = vcombine.high %v3314_v27, %v3318_v28  ;;  %v6366_v42 = vcombine.low %v3314_v27, %v3318_v28  ;;  %v8004_v27 = vld [vmem:[#allocation7 + $0x448] sm:$0xff] }
 0x181   : > { %4806 = vmatpush1.bf16.msra.mxu0 %v6308_v35  ;;  %5032 = vmatpush1.bf16.msra.mxu1 %v6310_v36  ;;  %v3321_v35 = vld [vmem:[#allocation7 + $0x340] sm:$0xff]  ;;  %v6002_v36 = vcombine.low %v326_v9, %v330_v10  ;;  %v7973_v9 = vshrl.u32 %v597_v8, 7  ;;  %v8006_v28 = vld [vmem:[#allocation7 + $0x468] sm:$0xff] }
 0x182   : > { %4807 = vmatprep.subr.bf16.mxu0 %v6317_v37  ;;  %5033 = vmatprep.subr.bf16.mxu1 %v6319_v38  ;;  %v3325_v37 = vld [vmem:[#allocation7 + $0x360] sm:$0xff]  ;;  %v3322_v38 = vld [vmem:[#allocation7 + $0x348] sm:$0xff] }
 0x183   : > { %2619 = vmatmul.mubr.bf16.gmra.mrb[12].mxu0 %v5978_v40  ;;  %3071 = vmatmul.mubr.bf16.gmra.mrb[12].mxu1 %v5978_v40  ;;  %v6011_v40 = vcombine.high %v334_v29, %v338_v30  ;;  %v6373_v43 = vcombine.high %v3321_v35, %v3325_v37  ;;  %v8897_v10 = vsub.s32 0, %v7973_v9  ;;  %v8048_v8 = vld [vmem:[#allocation7 + $0x4c8] sm:$0xff] }
 0x184   : > { %2628 = vmatprep.mubr.bf16.mxu0 %v5987_v44  ;;  %3080 = vmatprep.mubr.bf16.mxu1 %v5987_v44  ;;  %v6375_v44 = vcombine.high %v3322_v38, %v3326_v39 }
 0x185   : > { %4808 = vmatpush1.bf16.msra.mxu0 %v6316_v45  ;;  %5034 = vmatpush1.bf16.msra.mxu1 %v6318_v46  ;;  %v6372_v45 = vcombine.low %v3321_v35, %v3325_v37  ;;  %v6374_v46 = vcombine.low %v3322_v38, %v3326_v39 }
 0x186   : > { %4809 = vmatprep.subr.bf16.mxu0 %v6325_v47  ;;  %5035 = vmatprep.subr.bf16.mxu1 %v6327_v48  ;;  %v6010_v47 = vcombine.low %v334_v29, %v338_v30  ;;  %v3329_v48 = vld [vmem:[#allocation7 + $0x380] sm:$0xff] }
 0x187   : > { %v6381_v51 = vcombine.high %v3329_v48, %v3333_v49  ;;  %v6380_v53 = vcombine.low %v3329_v48, %v3333_v49  ;;  %v8024_v48 = vld [vmem:[#allocation7 + $0x488] sm:$0xff] }
 0x188   : > { %v8026_v49 = vld [vmem:[#allocation7 + $0x4a8] sm:$0xff] }
 0x189   : > { %4810 = vmatpush1.bf16.msra.mxu0 %v6324_v55  ;;  %5036 = vmatpush1.bf16.msra.mxu1 %v6326_v56  ;;  %v6383_v55 = vcombine.high %v3330_v50, %v3334_v52  ;;  %v3337_v56 = vld [vmem:[#allocation7 + $0x3c0] sm:$0xff] }
 0x18a   : > { %4811 = vmatprep.subr.bf16.mxu0 %v6333_v57  ;;  %5037 = vmatprep.subr.bf16.mxu1 %v6335_v58  ;;  %v3341_v57 = vld [vmem:[#allocation7 + $0x3e0] sm:$0xff]  ;;  %v3338_v58 = vld [vmem:[#allocation7 + $0x3c8] sm:$0xff] }
 0x18b   : > { %2629 = vmatmul.mubr.bf16.gmra.mrb[16].mxu0 %v5986_v60  ;;  %3081 = vmatmul.mubr.bf16.gmra.mrb[16].mxu1 %v5986_v60  ;;  %v6389_v59 = vcombine.high %v3337_v56, %v3341_v57  ;;  %v3342_v60 = vld [vmem:[#allocation7 + $0x3e8] sm:$0xff]  ;;  %v6388_v61 = vcombine.low %v3337_v56, %v3341_v57 }
 0x18c   : > { %2638 = vmatprep.mubr.bf16.mxu0 %v5995_v0  ;;  %3090 = vmatprep.mubr.bf16.mxu1 %v5995_v0  ;;  %v6390_v62 = vcombine.low %v3338_v58, %v3342_v60  ;;  %v6391_v63 = vcombine.high %v3338_v58, %v3342_v60  ;;  %v7957_v0 = vld [vmem:[#allocation7 + $0x400] sm:$0xff]  ;;  %v6407_v58 = vcombine.high %v8004_v27, %v8006_v28 }
 0x18d   : > { %4812 = vmatpush1.bf16.msra.mxu0 %v6332_v1  ;;  %5038 = vmatpush1.bf16.msra.mxu1 %v6334_v2  ;;  %v7959_v1 = vld [vmem:[#allocation7 + $0x420] sm:$0xff]  ;;  %v7961_v2 = vld [vmem:[#allocation7 + $0x408] sm:$0xff] }
 0x18e   : > { %4813 = vmatprep.subr.bf16.mxu0 %v6341_v3  ;;  %5039 = vmatprep.subr.bf16.mxu1 %v6343_v4  ;;  %v6397_v3 = vcombine.high %v7957_v0, %v7959_v1  ;;  %v7965_v4 = vld [vmem:[#allocation7 + $0x428] sm:$0xff]  ;;  %v6396_v5 = vcombine.low %v7957_v0, %v7959_v1 }
 0x18f   : > { %v6398_v6 = vcombine.low %v7961_v2, %v7965_v4  ;;  %v6399_v7 = vcombine.high %v7961_v2, %v7965_v4  ;;  %v8086_v0 = vld [vmem:[#allocation7 + $0x528] sm:$0xff] }
 0x191   : > { %4814 = vmatpush1.bf16.msra.mxu0 %v6340_v11  ;;  %5040 = vmatpush1.bf16.msra.mxu1 %v6342_v12  ;;  %v8896_v11 = vsub.s32 2, %v7973_v9  ;;  %v595_v12 = vld [vmem:[%s8887_s2] sm:$0xf] }
 0x192   : > { %4815 = vmatprep.subr.bf16.mxu0 %v6349_v13  ;;  %5041 = vmatprep.subr.bf16.mxu1 %v6351_v14  ;;  %v8895_v13 = vsub.s32 1, %v7973_v9  ;;  %v8894_v14 = vsub.s32 3, %v7973_v9  ;;  %v7984_v15 = vrot.slane %v595_v12, %v8897_v10 }
 0x193   : > { %2639 = vmatmul.mubr.bf16.gmra.mrb[20].mxu0 %v5994_v16  ;;  %3091 = vmatmul.mubr.bf16.gmra.mrb[20].mxu1 %v5994_v16  ;;  %v7988_v16 = vrot.slane %v595_v12, %v8896_v11 }
 0x194   : > { %2648 = vmatprep.mubr.bf16.mxu0 %v6003_v20  ;;  %3100 = vmatprep.mubr.bf16.mxu1 %v6003_v20  ;;  %v7992_v17 = vrot.slane %v595_v12, %v8895_v13  ;;  %v7996_v18 = vrot.slane %v595_v12, %v8894_v14  ;;  %v8050_v12 = vld [vmem:[#allocation7 + $0x4e8] sm:$0xff]  ;;  %v3465_v13 = vld [vmem:[#allocation7 + $0x7c0] sm:$0xff] }
 0x195   : > { %4816 = vmatpush1.bf16.msra.mxu0 %v6348_v21  ;;  %5042 = vmatpush1.bf16.msra.mxu1 %v6350_v22  ;;  %v7998_v21 = vld [vmem:[#allocation7 + $0x440] sm:$0xff] }
 0x196   : > { %4817 = vmatprep.subr.bf16.mxu0 %v6357_v23  ;;  %5043 = vmatprep.subr.bf16.mxu1 %v6359_v24  ;;  %v8000_v22 = vld [vmem:[#allocation7 + $0x460] sm:$0xff] }
 0x197   : > { %v6405_v37 = vcombine.high %v7998_v21, %v8000_v22 }
 0x199   : > { %4818 = vmatpush1.bf16.msra.mxu0 %v6356_v31  ;;  %5044 = vmatpush1.bf16.msra.mxu1 %v6358_v32 }
 0x19a   : > { %4819 = vmatprep.subr.bf16.mxu0 %v6365_v33  ;;  %5045 = vmatprep.subr.bf16.mxu1 %v6367_v34 }
 0x19b   : > { %2649 = vmatmul.mubr.bf16.gmra.mrb[24].mxu0 %v6002_v36  ;;  %3101 = vmatmul.mubr.bf16.gmra.mrb[24].mxu1 %v6002_v36 }
 0x19c   : > { %2658 = vmatprep.mubr.bf16.mxu0 %v6011_v40  ;;  %3110 = vmatprep.mubr.bf16.mxu1 %v6011_v40  ;;  %v6404_v40 = vcombine.low %v7998_v21, %v8000_v22  ;;  %v8119_v22 = vld [vmem:[#allocation7 + $0x548] sm:$0xff] }
 0x19d   : > { %4820 = vmatpush1.bf16.msra.mxu0 %v6364_v41  ;;  %5046 = vmatpush1.bf16.msra.mxu1 %v6366_v42  ;;  %v6406_v41 = vcombine.low %v8004_v27, %v8006_v28  ;;  %v8020_v42 = vld [vmem:[#allocation7 + $0x480] sm:$0xff]  ;;  %v8121_v27 = vld [vmem:[#allocation7 + $0x568] sm:$0xff] }
 0x19e   : > { %4821 = vmatprep.subr.bf16.mxu0 %v6373_v43  ;;  %5047 = vmatprep.subr.bf16.mxu1 %v6375_v44  ;;  %v8022_v43 = vld [vmem:[#allocation7 + $0x4a0] sm:$0xff] }
 0x1a1   : > { %4822 = vmatpush1.bf16.msra.mxu0 %v6372_v45  ;;  %5048 = vmatpush1.bf16.msra.mxu1 %v6374_v46 }
 0x1a2   : > { %4823 = vmatprep.subr.bf16.mxu0 %v6381_v51  ;;  %5049 = vmatprep.subr.bf16.mxu1 %v6383_v55  ;;  %v8030_v55 = vld [vmem:[#allocation7 + $0x4e0] sm:$0xff] }
 0x1a3   : > { %2659 = vmatmul.mubr.bf16.gmra.mrb[28].mxu0 %v6010_v47  ;;  %3111 = vmatmul.mubr.bf16.gmra.mrb[28].mxu1 %v6010_v47 }
 0x1a5   : > { %4824 = vmatpush1.bf16.msra.mxu0 %v6380_v53  ;;  %5050 = vmatpush1.bf16.msra.mxu1 %v6382_v54  ;;  %v8028_v54 = vld [vmem:[#allocation7 + $0x4c0] sm:$0xff] }
 0x1a6   : > { %4825 = vmatprep.subr.bf16.mxu0 %v6389_v59  ;;  %5051 = vmatprep.subr.bf16.mxu1 %v6391_v63  ;;  %v6413_v59 = vcombine.high %v8020_v42, %v8022_v43 }
 0x1a9   : > { %4826 = vmatpush1.bf16.msra.mxu0 %v6388_v61  ;;  %5052 = vmatpush1.bf16.msra.mxu1 %v6390_v62 }
 0x1aa   : > { %4908 = vmatprep.subr.bf16.mxu0 %v6397_v3  ;;  %5134 = vmatprep.subr.bf16.mxu1 %v6399_v7  ;;  %v6412_v3 = vcombine.low %v8020_v42, %v8022_v43  ;;  %v6414_v7 = vcombine.low %v8024_v48, %v8026_v49 }
 0x23e   : > { %v2590_v19 = vpop.f32.mrb[0].mxu0  ;;  %v3042_v20 = vpop.f32.mrb[0].mxu1 }
 0x23f   : > { %v6534_v23 = vadd.f32 %v2590_v19, %v7984_v15  ;;  %v6566_v24 = vadd.f32 %v3042_v20, %v7988_v16  ;;  %v2592_v25 = vpop.f32.mrb[1].mxu0  ;;  %v3044_v26 = vpop.f32.mrb[1].mxu1 }
 0x240   : > { %v6535_v29 = vadd.f32 %v2592_v25, %v7992_v17  ;;  %v6567_v30 = vadd.f32 %v3044_v26, %v7996_v18  ;;  %v2594_v31 = vpop.f32.mrb[2].mxu0  ;;  %v3046_v32 = vpop.f32.mrb[2].mxu1  ;;  %v6415_v25 = vcombine.high %v8024_v48, %v8026_v49  ;;  %v6421_v26 = vcombine.high %v8028_v54, %v8030_v55 }
 0x241   : > { %v6536_v33 = vadd.f32 %v2594_v31, %v7984_v15  ;;  %v6568_v34 = vadd.f32 %v3046_v32, %v7988_v16  ;;  %v2596_v35 = vpop.f32.mrb[3].mxu0  ;;  %v3048_v36 = vpop.f32.mrb[3].mxu1  ;;  %v3121_v44 = vmax.f32 %v6534_v23, 0.0  ;;  %v3123_v45 = vmax.f32 %v6566_v24, 0.0 }
 0x242   : > { %v6537_v38 = vadd.f32 %v2596_v35, %v7992_v17  ;;  %v6569_v39 = vadd.f32 %v3048_v36, %v7996_v18  ;;  %v3122_v50 = vmax.f32 %v6535_v29, 0.0  ;;  %v3124_v51 = vmax.f32 %v6567_v30, 0.0 }
 0x243   : > { %v3125_v46 = vmax.f32 %v6536_v33, 0.0  ;;  %v3127_v47 = vmax.f32 %v6568_v34, 0.0  ;;  %v6420_v33 = vcombine.low %v8028_v54, %v8030_v55 }
 0x244   : > { %v3126_v52 = vmax.f32 %v6537_v38, 0.0  ;;  %v3128_v53 = vmax.f32 %v6569_v39, 0.0  ;;  %v6422_v39 = vcombine.low %v8048_v8, %v8050_v12 }
 0x245   : > { %v8032_v56 = vpack.c.bf16 %v3125_v46, %v3121_v44  ;;  %v8034_v57 = vpack.c.bf16 %v3127_v47, %v3123_v45  ;;  %v6423_v46 = vcombine.high %v8048_v8, %v8050_v12  ;;  %v8080_v47 = vld [vmem:[#allocation7 + $0x500] sm:$0xff] }
 0x246   : > { %v8040_v60 = vpack.c.bf16 %v3126_v52, %v3122_v50  ;;  %v8042_v61 = vpack.c.bf16 %v3128_v53, %v3124_v51  ;;  %v2600_v62 = vpop.f32.mrb[4].mxu0  ;;  %v3052_v63 = vpop.f32.mrb[4].mxu1  ;;  %v8082_v50 = vld [vmem:[#allocation7 + $0x520] sm:$0xff] }
 0x247   : > { %v6538_v19 = vadd.f32 %v2600_v62, %v7984_v15  ;;  %v6570_v20 = vadd.f32 %v3052_v63, %v7988_v16  ;;  %v2602_v23 = vpop.f32.mrb[5].mxu0  ;;  %v3054_v24 = vpop.f32.mrb[5].mxu1  ;;  %v8084_v63 = vld [vmem:[#allocation7 + $0x508] sm:$0xff] }
 0x248   : > { %v6539_v29 = vadd.f32 %v2602_v23, %v7992_v17  ;;  %v6571_v30 = vadd.f32 %v3054_v24, %v7996_v18  ;;  %v2604_v31 = vpop.f32.mrb[6].mxu0  ;;  %v3056_v32 = vpop.f32.mrb[6].mxu1  ;;  %4827 = vmatprep.mubr.bf16.mxu0 %v8040_v60  ;;  %5053 = vmatprep.mubr.bf16.mxu1 %v8040_v60  ;;  %v6431_v21 = vcombine.high %v8084_v63, %v8086_v0 }
 0x249   : > { %v6540_v34 = vadd.f32 %v2604_v31, %v7984_v15  ;;  %v6572_v35 = vadd.f32 %v3056_v32, %v7988_v16  ;;  %v2606_v36 = vpop.f32.mrb[7].mxu0  ;;  %v3058_v38 = vpop.f32.mrb[7].mxu1  ;;  %4828 = vmatmul.mubr.bf16.vlgmr.msra.gmra.mrb[32].mxu0 %v8032_v56  ;;  %5054 = vmatmul.mubr.bf16.vlgmr.msra.gmra.mrb[32].mxu1 %v8032_v56  ;;  %v3129_v51 = vmax.f32 %v6538_v19, 0.0  ;;  %v3131_v52 = vmax.f32 %v6570_v20, 0.0 }
 0x24a   : > { %v6541_v44 = vadd.f32 %v2606_v36, %v7992_v17  ;;  %v6573_v45 = vadd.f32 %v3058_v38, %v7996_v18  ;;  %4909 = vmatpush1.bf16.msra.mxu0 %v6396_v5  ;;  %5135 = vmatpush1.bf16.msra.mxu1 %v6398_v6  ;;  %v3130_v1 = vmax.f32 %v6539_v29, 0.0  ;;  %v3132_v2 = vmax.f32 %v6571_v30, 0.0 }
 0x24b   : > { %v3133_v53 = vmax.f32 %v6540_v34, 0.0  ;;  %v3135_v62 = vmax.f32 %v6572_v35, 0.0  ;;  %4910 = vmatprep.subr.bf16.mxu0 %v6405_v37  ;;  %5136 = vmatprep.subr.bf16.mxu1 %v6407_v58  ;;  %v6428_v19 = vcombine.low %v8080_v47, %v8082_v50  ;;  %v6429_v20 = vcombine.high %v8080_v47, %v8082_v50  ;;  %v8096_v37 = vld [vmem:[#allocation7 + $0x540] sm:$0xff] }
 0x24c   : > { %v3134_v4 = vmax.f32 %v6541_v44, 0.0  ;;  %v3136_v5 = vmax.f32 %v6573_v45, 0.0  ;;  %v8098_v58 = vld [vmem:[#allocation7 + $0x560] sm:$0xff]  ;;  %v6430_v32 = vcombine.low %v8084_v63, %v8086_v0 }
 0x24d   : > { %v8088_v6 = vpack.c.bf16 %v3133_v53, %v3129_v51  ;;  %v8090_v23 = vpack.c.bf16 %v3135_v62, %v3131_v52  ;;  %v6436_v53 = vcombine.low %v8096_v37, %v8098_v58  ;;  %v8216_v47 = vld [vmem:[#allocation7 + $0x600] sm:$0xff] }
 0x24e   : > { %v8100_v24 = vpack.c.bf16 %v3134_v4, %v3130_v1  ;;  %v8102_v29 = vpack.c.bf16 %v3136_v5, %v3132_v2  ;;  %v2610_v30 = vpop.f32.mrb[8].mxu0  ;;  %v3062_v31 = vpop.f32.mrb[8].mxu1  ;;  %4911 = vmatpush1.bf16.msra.mxu0 %v6404_v40  ;;  %5137 = vmatpush1.bf16.msra.mxu1 %v6406_v41  ;;  %v6438_v2 = vcombine.low %v8119_v22, %v8121_v27  ;;  %v8145_v4 = vld [vmem:[#allocation7 + $0x580] sm:$0xff] }
 0x24f   : > { %v6542_v34 = vadd.f32 %v2610_v30, %v7984_v15  ;;  %v6574_v35 = vadd.f32 %v3062_v31, %v7988_v16  ;;  %v2612_v36 = vpop.f32.mrb[9].mxu0  ;;  %v3064_v38 = vpop.f32.mrb[9].mxu1  ;;  %4912 = vmatprep.subr.bf16.mxu0 %v6413_v59  ;;  %5138 = vmatprep.subr.bf16.mxu1 %v6415_v25  ;;  %v6437_v59 = vcombine.high %v8096_v37, %v8098_v58  ;;  %v8147_v5 = vld [vmem:[#allocation7 + $0x5a0] sm:$0xff] }
 0x250   : > { %v6543_v28 = vadd.f32 %v2612_v36, %v7992_v17  ;;  %v6575_v40 = vadd.f32 %v3064_v38, %v7996_v18  ;;  %v2614_v41 = vpop.f32.mrb[10].mxu0  ;;  %v3066_v44 = vpop.f32.mrb[10].mxu1  ;;  %4837 = vmatprep.mubr.bf16.mxu0 %v8100_v24  ;;  %5063 = vmatprep.mubr.bf16.mxu1 %v8100_v24  ;;  %v8218_v50 = vld [vmem:[#allocation7 + $0x620] sm:$0xff] }
 0x251   : > { %v6544_v25 = vadd.f32 %v2614_v41, %v7984_v15  ;;  %v6576_v45 = vadd.f32 %v3066_v44, %v7988_v16  ;;  %v2616_v51 = vpop.f32.mrb[11].mxu0  ;;  %v3068_v52 = vpop.f32.mrb[11].mxu1  ;;  %4838 = vmatmul.mubr.bf16.gmra.mrb[36].mxu0 %v8088_v6  ;;  %5064 = vmatmul.mubr.bf16.gmra.mrb[36].mxu1 %v8088_v6  ;;  %v3137_v30 = vmax.f32 %v6542_v34, 0.0  ;;  %v3139_v31 = vmax.f32 %v6574_v35, 0.0  ;;  %v8251_v58 = vld [vmem:[#allocation7 + $0x640] sm:$0xff] }
 0x252   : > { %v6545_v62 = vadd.f32 %v2616_v51, %v7992_v17  ;;  %v6577_v1 = vadd.f32 %v3068_v52, %v7996_v18  ;;  %4913 = vmatpush1.bf16.msra.mxu0 %v6412_v3  ;;  %5139 = vmatpush1.bf16.msra.mxu1 %v6414_v7  ;;  %v3138_v42 = vmax.f32 %v6543_v28, 0.0  ;;  %v3140_v43 = vmax.f32 %v6575_v40, 0.0  ;;  %v8152_v3 = vld [vmem:[#allocation7 + $0x588] sm:$0xff]  ;;  %v8178_v51 = vld [vmem:[#allocation7 + $0x5e0] sm:$0xff] }
 0x253   : > { %v3141_v36 = vmax.f32 %v6544_v25, 0.0  ;;  %v3143_v38 = vmax.f32 %v6576_v45, 0.0  ;;  %4914 = vmatprep.subr.bf16.mxu0 %v6421_v26  ;;  %5140 = vmatprep.subr.bf16.mxu1 %v6423_v46  ;;  %v8154_v7 = vld [vmem:[#allocation7 + $0x5a8] sm:$0xff]  ;;  %v6439_v34 = vcombine.high %v8119_v22, %v8121_v27  ;;  %v6445_v35 = vcombine.high %v8145_v4, %v8147_v5  ;;  %v8176_v45 = vld [vmem:[#allocation7 + $0x5c0] sm:$0xff] }
 0x254   : > { %v3142_v48 = vmax.f32 %v6545_v62, 0.0  ;;  %v3144_v49 = vmax.f32 %v6577_v1, 0.0  ;;  %v6444_v25 = vcombine.low %v8145_v4, %v8147_v5  ;;  %v6446_v54 = vcombine.low %v8152_v3, %v8154_v7  ;;  %v8253_v22 = vld [vmem:[#allocation7 + $0x660] sm:$0xff] }
 0x255   : > { %v8156_v41 = vpack.c.bf16 %v3141_v36, %v3137_v30  ;;  %v8158_v44 = vpack.c.bf16 %v3143_v38, %v3139_v31  ;;  %v6453_v38 = vcombine.high %v8176_v45, %v8178_v51  ;;  %v6460_v37 = vcombine.low %v8216_v47, %v8218_v50 }
 0x256   : > { %v8164_v26 = vpack.c.bf16 %v3142_v48, %v3138_v42  ;;  %v8166_v46 = vpack.c.bf16 %v3144_v49, %v3140_v43  ;;  %v2620_v28 = vpop.f32.mrb[12].mxu0  ;;  %v3072_v40 = vpop.f32.mrb[12].mxu1  ;;  %4915 = vmatpush1.bf16.msra.mxu0 %v6420_v33  ;;  %5141 = vmatpush1.bf16.msra.mxu1 %v6422_v39  ;;  %v6447_v39 = vcombine.high %v8152_v3, %v8154_v7  ;;  %v8209_v49 = vld [vmem:[#allocation7 + $0x5c8] sm:$0xff] }
 0x257   : > { %v6546_v52 = vadd.f32 %v2620_v28, %v7984_v15  ;;  %v6578_v62 = vadd.f32 %v3072_v40, %v7988_v16  ;;  %v2622_v1 = vpop.f32.mrb[13].mxu0  ;;  %v3074_v30 = vpop.f32.mrb[13].mxu1  ;;  %4916 = vmatprep.subr.bf16.mxu0 %v6429_v20  ;;  %5142 = vmatprep.subr.bf16.mxu1 %v6431_v21  ;;  %v6452_v48 = vcombine.low %v8176_v45, %v8178_v51  ;;  %v8211_v28 = vld [vmem:[#allocation7 + $0x5e8] sm:$0xff] }
 0x258   : > { %v6547_v55 = vadd.f32 %v2622_v1, %v7992_v17  ;;  %v6579_v8 = vadd.f32 %v3074_v30, %v7996_v18  ;;  %v2624_v12 = vpop.f32.mrb[14].mxu0  ;;  %v3076_v33 = vpop.f32.mrb[14].mxu1  ;;  %4847 = vmatprep.mubr.bf16.mxu0 %v8164_v26  ;;  %5073 = vmatprep.mubr.bf16.mxu1 %v8164_v26 }
 0x259   : > { %v6548_v31 = vadd.f32 %v2624_v12, %v7984_v15  ;;  %v6580_v20 = vadd.f32 %v3076_v33, %v7988_v16  ;;  %v2626_v21 = vpop.f32.mrb[15].mxu0  ;;  %v3078_v36 = vpop.f32.mrb[15].mxu1  ;;  %4848 = vmatmul.mubr.bf16.gmra.mrb[40].mxu0 %v8156_v41  ;;  %5074 = vmatmul.mubr.bf16.gmra.mrb[40].mxu1 %v8156_v41  ;;  %v3145_v40 = vmax.f32 %v6546_v52, 0.0  ;;  %v3147_v1 = vmax.f32 %v6578_v62, 0.0 }
 0x25a   : > { %v6549_v42 = vadd.f32 %v2626_v21, %v7992_v17  ;;  %v6581_v43 = vadd.f32 %v3078_v36, %v7996_v18  ;;  %4917 = vmatpush1.bf16.msra.mxu0 %v6428_v19  ;;  %5143 = vmatpush1.bf16.msra.mxu1 %v6430_v32  ;;  %v3146_v63 = vmax.f32 %v6547_v55, 0.0  ;;  %v3148_v0 = vmax.f32 %v6579_v8, 0.0 }
 0x25b   : > { %v3149_v30 = vmax.f32 %v6548_v31, 0.0  ;;  %v3151_v12 = vmax.f32 %v6580_v20, 0.0  ;;  %4918 = vmatprep.subr.bf16.mxu0 %v6437_v59  ;;  %5144 = vmatprep.subr.bf16.mxu1 %v6439_v34  ;;  %v6454_v52 = vcombine.low %v8209_v49, %v8211_v28  ;;  %v6455_v62 = vcombine.high %v8209_v49, %v8211_v28  ;;  %v8228_v59 = vld [vmem:[#allocation7 + $0x608] sm:$0xff] }
 0x25c   : > { %v3150_v19 = vmax.f32 %v6549_v42, 0.0  ;;  %v3152_v32 = vmax.f32 %v6581_v43, 0.0  ;;  %v8230_v34 = vld [vmem:[#allocation7 + $0x628] sm:$0xff]  ;;  %v6461_v36 = vcombine.high %v8216_v47, %v8218_v50 }
 0x25d   : > { %v8220_v33 = vpack.c.bf16 %v3149_v30, %v3145_v40  ;;  %v8222_v21 = vpack.c.bf16 %v3151_v12, %v3147_v1  ;;  %v8341_v47 = vld [vmem:[#allocation7 + $0x6e8] sm:$0xff] }
 0x25e   : > { %v8232_v31 = vpack.c.bf16 %v3150_v19, %v3146_v63  ;;  %v8234_v55 = vpack.c.bf16 %v3152_v32, %v3148_v0  ;;  %v2630_v8 = vpop.f32.mrb[16].mxu0  ;;  %v3082_v20 = vpop.f32.mrb[16].mxu1  ;;  %4919 = vmatpush1.bf16.msra.mxu0 %v6436_v53  ;;  %5145 = vmatpush1.bf16.msra.mxu1 %v6438_v2  ;;  %v6463_v63 = vcombine.high %v8228_v59, %v8230_v34 }
 0x25f   : > { %v6550_v42 = vadd.f32 %v2630_v8, %v7984_v15  ;;  %v6582_v43 = vadd.f32 %v3082_v20, %v7988_v16  ;;  %v2632_v49 = vpop.f32.mrb[17].mxu0  ;;  %v3084_v28 = vpop.f32.mrb[17].mxu1  ;;  %4920 = vmatprep.subr.bf16.mxu0 %v6445_v35  ;;  %5146 = vmatprep.subr.bf16.mxu1 %v6447_v39  ;;  %v6462_v35 = vcombine.low %v8228_v59, %v8230_v34  ;;  %v8277_v8 = vld [vmem:[#allocation7 + $0x648] sm:$0xff] }
 0x260   : > { %v6551_v27 = vadd.f32 %v2632_v49, %v7992_v17  ;;  %v6583_v53 = vadd.f32 %v3084_v28, %v7996_v18  ;;  %v2634_v2 = vpop.f32.mrb[18].mxu0  ;;  %v3086_v40 = vpop.f32.mrb[18].mxu1  ;;  %4857 = vmatprep.mubr.bf16.mxu0 %v8232_v31  ;;  %5083 = vmatprep.mubr.bf16.mxu1 %v8232_v31  ;;  %v6469_v32 = vcombine.high %v8251_v58, %v8253_v22  ;;  %v8279_v20 = vld [vmem:[#allocation7 + $0x668] sm:$0xff] }
 0x261   : > { %v6552_v39 = vadd.f32 %v2634_v2, %v7984_v15  ;;  %v6584_v1 = vadd.f32 %v3086_v40, %v7988_v16  ;;  %v2636_v30 = vpop.f32.mrb[19].mxu0  ;;  %v3088_v12 = vpop.f32.mrb[19].mxu1  ;;  %4858 = vmatmul.mubr.bf16.gmra.mrb[44].mxu0 %v8220_v33  ;;  %5084 = vmatmul.mubr.bf16.gmra.mrb[44].mxu1 %v8220_v33  ;;  %v3153_v49 = vmax.f32 %v6550_v42, 0.0  ;;  %v3155_v28 = vmax.f32 %v6582_v43, 0.0 }
 0x262   : > { %v6553_v0 = vadd.f32 %v2636_v30, %v7992_v17  ;;  %v6585_v19 = vadd.f32 %v3088_v12, %v7996_v18  ;;  %4921 = vmatpush1.bf16.msra.mxu0 %v6444_v25  ;;  %5147 = vmatpush1.bf16.msra.mxu1 %v6446_v54  ;;  %v3154_v4 = vmax.f32 %v6551_v27, 0.0  ;;  %v3156_v5 = vmax.f32 %v6583_v53, 0.0  ;;  %v8284_v25 = vld [vmem:[#allocation7 + $0x680] sm:$0xff] }
 0x263   : > { %v3157_v2 = vmax.f32 %v6552_v39, 0.0  ;;  %v3159_v40 = vmax.f32 %v6584_v1, 0.0  ;;  %4922 = vmatprep.subr.bf16.mxu0 %v6453_v38  ;;  %5148 = vmatprep.subr.bf16.mxu1 %v6455_v62  ;;  %v8286_v54 = vld [vmem:[#allocation7 + $0x6a0] sm:$0xff]  ;;  %v6468_v42 = vcombine.low %v8251_v58, %v8253_v22  ;;  %v6470_v43 = vcombine.low %v8277_v8, %v8279_v20  ;;  %v8305_v1 = vld [vmem:[#allocation7 + $0x688] sm:$0xff] }
 0x264   : > { %v3158_v3 = vmax.f32 %v6553_v0, 0.0  ;;  %v3160_v7 = vmax.f32 %v6585_v19, 0.0  ;;  %v6471_v39 = vcombine.high %v8277_v8, %v8279_v20  ;;  %v8307_v58 = vld [vmem:[#allocation7 + $0x6a8] sm:$0xff]  ;;  %v6477_v45 = vcombine.high %v8284_v25, %v8286_v54 }
 0x265   : > { %v8288_v30 = vpack.c.bf16 %v3157_v2, %v3153_v49  ;;  %v8290_v12 = vpack.c.bf16 %v3159_v40, %v3155_v28  ;;  %v6476_v20 = vcombine.low %v8284_v25, %v8286_v54  ;;  %v6478_v40 = vcombine.low %v8305_v1, %v8307_v58  ;;  %v3450_v25 = vld [vmem:[#allocation7 + $0x748] sm:$0xff] }
 0x266   : > { %v8296_v38 = vpack.c.bf16 %v3158_v3, %v3154_v4  ;;  %v8298_v62 = vpack.c.bf16 %v3160_v7, %v3156_v5  ;;  %v2640_v27 = vpop.f32.mrb[20].mxu0  ;;  %v3092_v53 = vpop.f32.mrb[20].mxu1  ;;  %4923 = vmatpush1.bf16.msra.mxu0 %v6452_v48  ;;  %5149 = vmatpush1.bf16.msra.mxu1 %v6454_v52  ;;  %v6479_v3 = vcombine.high %v8305_v1, %v8307_v58  ;;  %v8335_v7 = vld [vmem:[#allocation7 + $0x6c0] sm:$0xff]  ;;  %v3454_v54 = vld [vmem:[#allocation7 + $0x768] sm:$0xff] }
 0x267   : > { %v6554_v22 = vadd.f32 %v2640_v27, %v7984_v15  ;;  %v6586_v0 = vadd.f32 %v3092_v53, %v7988_v16  ;;  %v2642_v19 = vpop.f32.mrb[21].mxu0  ;;  %v3094_v49 = vpop.f32.mrb[21].mxu1  ;;  %4924 = vmatprep.subr.bf16.mxu0 %v6461_v36  ;;  %5150 = vmatprep.subr.bf16.mxu1 %v6463_v63  ;;  %v8337_v27 = vld [vmem:[#allocation7 + $0x6e0] sm:$0xff] }
 0x268   : > { %v6555_v51 = vadd.f32 %v2642_v19, %v7992_v17  ;;  %v6587_v48 = vadd.f32 %v3094_v49, %v7996_v18  ;;  %v2644_v52 = vpop.f32.mrb[22].mxu0  ;;  %v3096_v8 = vpop.f32.mrb[22].mxu1  ;;  %4867 = vmatprep.mubr.bf16.mxu0 %v8296_v38  ;;  %5093 = vmatprep.mubr.bf16.mxu1 %v8296_v38  ;;  %v6484_v58 = vcombine.low %v8335_v7, %v8337_v27 }
 0x269   : > { %v6556_v28 = vadd.f32 %v2644_v52, %v7984_v15  ;;  %v6588_v36 = vadd.f32 %v3096_v8, %v7988_v16  ;;  %v2646_v63 = vpop.f32.mrb[23].mxu0  ;;  %v3098_v2 = vpop.f32.mrb[23].mxu1  ;;  %4868 = vmatmul.mubr.bf16.gmra.mrb[48].mxu0 %v8288_v30  ;;  %5094 = vmatmul.mubr.bf16.gmra.mrb[48].mxu1 %v8288_v30  ;;  %v3161_v53 = vmax.f32 %v6554_v22, 0.0  ;;  %v3163_v19 = vmax.f32 %v6586_v0, 0.0  ;;  %v8339_v8 = vld [vmem:[#allocation7 + $0x6c8] sm:$0xff] }
 0x26a   : > { %v6557_v4 = vadd.f32 %v2646_v63, %v7992_v17  ;;  %v6589_v5 = vadd.f32 %v3098_v2, %v7996_v18  ;;  %4925 = vmatpush1.bf16.msra.mxu0 %v6460_v37  ;;  %5151 = vmatpush1.bf16.msra.mxu1 %v6462_v35  ;;  %v3162_v50 = vmax.f32 %v6555_v51, 0.0  ;;  %v3164_v59 = vmax.f32 %v6587_v48, 0.0 }
 0x26b   : > { %v3165_v49 = vmax.f32 %v6556_v28, 0.0  ;;  %v3167_v52 = vmax.f32 %v6588_v36, 0.0  ;;  %4926 = vmatprep.subr.bf16.mxu0 %v6469_v32  ;;  %5152 = vmatprep.subr.bf16.mxu1 %v6471_v39  ;;  %v6485_v22 = vcombine.high %v8335_v7, %v8337_v27  ;;  %v8351_v32 = vld [vmem:[#allocation7 + $0x700] sm:$0xff]  ;;  %v6486_v36 = vcombine.low %v8339_v8, %v8341_v47  ;;  %v8365_v27 = vld [vmem:[#allocation7 + $0x708] sm:$0xff] }
 0x26c   : > { %v3166_v34 = vmax.f32 %v6557_v4, 0.0  ;;  %v3168_v37 = vmax.f32 %v6589_v5, 0.0  ;;  %v8353_v39 = vld [vmem:[#allocation7 + $0x720] sm:$0xff]  ;;  %v6487_v7 = vcombine.high %v8339_v8, %v8341_v47 }
 0x26d   : > { %v8343_v35 = vpack.c.bf16 %v3165_v49, %v3161_v53  ;;  %v8345_v1 = vpack.c.bf16 %v3167_v52, %v3163_v19  ;;  %v8367_v53 = vld [vmem:[#allocation7 + $0x728] sm:$0xff] }
 0x26e   : > { %v8355_v0 = vpack.c.bf16 %v3166_v34, %v3162_v50  ;;  %v8357_v51 = vpack.c.bf16 %v3168_v37, %v3164_v59  ;;  %v2650_v48 = vpop.f32.mrb[24].mxu0  ;;  %v3102_v28 = vpop.f32.mrb[24].mxu1  ;;  %4927 = vmatpush1.bf16.msra.mxu0 %v6468_v42  ;;  %5153 = vmatpush1.bf16.msra.mxu1 %v6470_v43  ;;  %v6492_v50 = vcombine.low %v8351_v32, %v8353_v39 }
 0x26f   : > { %v6558_v63 = vadd.f32 %v2650_v48, %v7984_v15  ;;  %v6590_v2 = vadd.f32 %v3102_v28, %v7988_v16  ;;  %v2652_v4 = vpop.f32.mrb[25].mxu0  ;;  %v3104_v5 = vpop.f32.mrb[25].mxu1  ;;  %4928 = vmatprep.subr.bf16.mxu0 %v6477_v45  ;;  %5154 = vmatprep.subr.bf16.mxu1 %v6479_v3  ;;  %v6493_v45 = vcombine.high %v8351_v32, %v8353_v39  ;;  %v8388_v48 = vld [vmem:[#allocation7 + $0x740] sm:$0xff] }
 0x270   : > { %v6559_v42 = vadd.f32 %v2652_v4, %v7992_v17  ;;  %v6591_v43 = vadd.f32 %v3104_v5, %v7996_v18  ;;  %v2654_v19 = vpop.f32.mrb[26].mxu0  ;;  %v3106_v49 = vpop.f32.mrb[26].mxu1  ;;  %4877 = vmatprep.mubr.bf16.mxu0 %v8355_v0  ;;  %5103 = vmatprep.mubr.bf16.mxu1 %v8355_v0  ;;  %v6495_v37 = vcombine.high %v8365_v27, %v8367_v53  ;;  %v8390_v28 = vld [vmem:[#allocation7 + $0x760] sm:$0xff] }
 0x271   : > { %v6560_v3 = vadd.f32 %v2654_v19, %v7984_v15  ;;  %v6592_v52 = vadd.f32 %v3106_v49, %v7988_v16  ;;  %v2656_v8 = vpop.f32.mrb[27].mxu0  ;;  %v3108_v47 = vpop.f32.mrb[27].mxu1  ;;  %4878 = vmatmul.mubr.bf16.gmra.mrb[52].mxu0 %v8343_v35  ;;  %5104 = vmatmul.mubr.bf16.gmra.mrb[52].mxu1 %v8343_v35  ;;  %v3169_v4 = vmax.f32 %v6558_v63, 0.0  ;;  %v3171_v5 = vmax.f32 %v6590_v2, 0.0 }
 0x272   : > { %v6561_v59 = vadd.f32 %v2656_v8, %v7992_v17  ;;  %v6593_v34 = vadd.f32 %v3108_v47, %v7996_v18  ;;  %4929 = vmatpush1.bf16.msra.mxu0 %v6476_v20  ;;  %5155 = vmatpush1.bf16.msra.mxu1 %v6478_v40  ;;  %v3170_v39 = vmax.f32 %v6559_v42, 0.0  ;;  %v3172_v49 = vmax.f32 %v6591_v43, 0.0 }
 0x273   : > { %v3173_v19 = vmax.f32 %v6560_v3, 0.0  ;;  %v3175_v32 = vmax.f32 %v6592_v52, 0.0  ;;  %4930 = vmatprep.subr.bf16.mxu0 %v6485_v22  ;;  %5156 = vmatprep.subr.bf16.mxu1 %v6487_v7  ;;  %v6494_v14 = vcombine.low %v8365_v27, %v8367_v53  ;;  %v6501_v63 = vcombine.high %v8388_v48, %v8390_v28  ;;  %v8406_v3 = vld [vmem:[#allocation7 + $0x780] sm:$0xff] }
 0x274   : > { %v3174_v8 = vmax.f32 %v6561_v59, 0.0  ;;  %v3176_v47 = vmax.f32 %v6593_v34, 0.0  ;;  %v6500_v43 = vcombine.low %v8388_v48, %v8390_v28  ;;  %v8408_v52 = vld [vmem:[#allocation7 + $0x7a0] sm:$0xff] }
 0x275   : > { %v8392_v20 = vpack.c.bf16 %v3173_v19, %v3169_v4  ;;  %v8394_v40 = vpack.c.bf16 %v3175_v32, %v3171_v5  ;;  %v6503_v4 = vcombine.high %v3450_v25, %v3454_v54  ;;  %v3458_v5 = vld [vmem:[#allocation7 + $0x788] sm:$0xff]  ;;  %v6502_v32 = vcombine.low %v3450_v25, %v3454_v54 }
 0x276   : > { %v8400_v2 = vpack.c.bf16 %v3174_v8, %v3170_v39  ;;  %v8402_v22 = vpack.c.bf16 %v3176_v47, %v3172_v49  ;;  %v2660_v7 = vpop.f32.mrb[28].mxu0  ;;  %v3112_v42 = vpop.f32.mrb[28].mxu1  ;;  %4931 = vmatpush1.bf16.msra.mxu0 %v6484_v58  ;;  %5157 = vmatpush1.bf16.msra.mxu1 %v6486_v36  ;;  %v3462_v19 = vld [vmem:[#allocation7 + $0x7a8] sm:$0xff]  ;;  %v6509_v8 = vcombine.high %v8406_v3, %v8408_v52 }
 0x277   : > { %v6562_v27 = vadd.f32 %v2660_v7, %v7984_v15  ;;  %v6594_v53 = vadd.f32 %v3112_v42, %v7988_v16  ;;  %v2662_v59 = vpop.f32.mrb[29].mxu0  ;;  %v3114_v34 = vpop.f32.mrb[29].mxu1  ;;  %4932 = vmatprep.subr.bf16.mxu0 %v6493_v45  ;;  %5158 = vmatprep.subr.bf16.mxu1 %v6495_v37  ;;  %v6511_v25 = vcombine.high %v3458_v5, %v3462_v19 }
 0x278   : > { %v6563_v58 = vadd.f32 %v2662_v59, %v7992_v17  ;;  %v6595_v36 = vadd.f32 %v3114_v34, %v7996_v18  ;;  %v2664_v48 = vpop.f32.mrb[30].mxu0  ;;  %v3116_v28 = vpop.f32.mrb[30].mxu1  ;;  %4887 = vmatprep.mubr.bf16.mxu0 %v8400_v2  ;;  %5113 = vmatprep.mubr.bf16.mxu1 %v8400_v2 }
 0x279   : > { %v6564_v39 = vadd.f32 %v2664_v48, %v7984_v15  ;;  %v6596_v49 = vadd.f32 %v3116_v28, %v7988_v16  ;;  %v2666_v45 = vpop.f32.mrb[31].mxu0  ;;  %v3118_v37 = vpop.f32.mrb[31].mxu1  ;;  %4888 = vmatmul.mubr.bf16.gmra.mrb[56].mxu0 %v8392_v20  ;;  %5114 = vmatmul.mubr.bf16.gmra.mrb[56].mxu1 %v8392_v20  ;;  %v3177_v54 = vmax.f32 %v6562_v27, 0.0  ;;  %v3179_v15 = vmax.f32 %v6594_v53, 0.0 }
 0x27a   : > { %v6565_v47 = vadd.f32 %v2666_v45, %v7992_v17  ;;  %v6597_v7 = vadd.f32 %v3118_v37, %v7996_v18  ;;  %4933 = vmatpush1.bf16.msra.mxu0 %v6492_v50  ;;  %5159 = vmatpush1.bf16.msra.mxu1 %v6494_v14  ;;  %v3178_v59 = vmax.f32 %v6563_v58, 0.0  ;;  %v3180_v34 = vmax.f32 %v6595_v36, 0.0  ;;  %v3469_v17 = vld [vmem:[#allocation7 + $0x7e0] sm:$0xff]  ;;  %v3466_v18 = vld [vmem:[#allocation7 + $0x7c8] sm:$0xff]  ;;  %v3219_v36 = vld [vmem:[#allocation7 + $0x10] sm:$0xff] }
 0x27b   : > { %v3181_v42 = vmax.f32 %v6564_v39, 0.0  ;;  %v3183_v16 = vmax.f32 %v6596_v49, 0.0  ;;  %4934 = vmatprep.subr.bf16.mxu0 %v6501_v63  ;;  %5160 = vmatprep.subr.bf16.mxu1 %v6503_v4  ;;  %v3470_v50 = vld [vmem:[#allocation7 + $0x7e8] sm:$0xff]  ;;  %v6508_v63 = vcombine.low %v8406_v3, %v8408_v52  ;;  %v6510_v53 = vcombine.low %v3458_v5, %v3462_v19  ;;  %v3223_v39 = vld [vmem:[#allocation7 + $0x30] sm:$0xff]  ;;  %v3228_v37 = vld [vmem:[#allocation7 + $0x58] sm:$0xff] }
 0x27c   : > { %v3182_v48 = vmax.f32 %v6565_v47, 0.0  ;;  %v3184_v28 = vmax.f32 %v6597_v7, 0.0  ;;  %v6517_v4 = vcombine.high %v3465_v13, %v3469_v17  ;;  %v6519_v58 = vcombine.high %v3466_v18, %v3470_v50  ;;  %v3227_v49 = vld [vmem:[#allocation7 + $0x50] sm:$0xff] }
 0x27d   : > { %v8424_v11 = vpack.c.bf16 %v3181_v42, %v3177_v54  ;;  %v8426_v10 = vpack.c.bf16 %v3183_v16, %v3179_v15  ;;  %v6516_v3 = vcombine.low %v3465_v13, %v3469_v17  ;;  %v6518_v52 = vcombine.low %v3466_v18, %v3470_v50  ;;  %v3231_v45 = vld [vmem:[#allocation7 + $0x70] sm:$0xff]  ;;  %v3236_v42 = vld [vmem:[#allocation7 + $0x98] sm:$0xff] }
 0x27e   : > { %v8428_v14 = vpack.c.bf16 %v3182_v48, %v3178_v59  ;;  %v8430_v27 = vpack.c.bf16 %v3184_v28, %v3180_v34  ;;  %4935 = vmatpush1.bf16.msra.mxu0 %v6500_v43  ;;  %5161 = vmatpush1.bf16.msra.mxu1 %v6502_v32  ;;  %v3220_v43 = vld [vmem:[#allocation7 + $0x18] sm:$0xff]  ;;  %v6273_v5 = vcombine.high %v3219_v36, %v3223_v39  ;;  %v3235_v54 = vld [vmem:[#allocation7 + $0x90] sm:$0xff] }
 0x27f   : > { %4936 = vmatprep.subr.bf16.mxu0 %v6509_v8  ;;  %5162 = vmatprep.subr.bf16.mxu1 %v6511_v25  ;;  %v3224_v32 = vld [vmem:[#allocation7 + $0x38] sm:$0xff]  ;;  %v6272_v47 = vcombine.low %v3219_v36, %v3223_v39  ;;  %v6281_v25 = vcombine.high %v3227_v49, %v3231_v45  ;;  %v3239_v15 = vld [vmem:[#allocation7 + $0xb0] sm:$0xff]  ;;  %v6280_v59 = vcombine.low %v3227_v49, %v3231_v45 }
 0x280   : > { %4897 = vmatprep.mubr.bf16.mxu0 %v8428_v14  ;;  %5123 = vmatprep.mubr.bf16.mxu1 %v8428_v14  ;;  %v6275_v19 = vcombine.high %v3220_v43, %v3224_v32  ;;  %v3232_v8 = vld [vmem:[#allocation7 + $0x78] sm:$0xff]  ;;  %v6274_v7 = vcombine.low %v3220_v43, %v3224_v32  ;;  %v6289_v48 = vcombine.high %v3235_v54, %v3239_v15  ;;  %v3243_v17 = vld [vmem:[#allocation7 + $0xd0] sm:$0xff] }
 0x281   : > { %4898 = vmatmul.mubr.bf16.gmra.mrb[60].mxu0 %v8424_v11  ;;  %5124 = vmatmul.mubr.bf16.gmra.mrb[60].mxu1 %v8424_v11  ;;  %v6283_v13 = vcombine.high %v3228_v37, %v3232_v8  ;;  %v3240_v16 = vld [vmem:[#allocation7 + $0xb8] sm:$0xff]  ;;  %v6282_v34 = vcombine.low %v3228_v37, %v3232_v8  ;;  %v3247_v18 = vld [vmem:[#allocation7 + $0xf0] sm:$0xff] }
 0x282   : > { %4937 = vmatpush1.bf16.msra.mxu0 %v6508_v63  ;;  %4940 = vmatprep.mubr.bf16.mxu0 %v8042_v61  ;;  %v6291_v28 = vcombine.high %v3236_v42, %v3240_v16  ;;  %v3244_v50 = vld [vmem:[#allocation7 + $0xd8] sm:$0xff]  ;;  %v3251_v39 = vld [vmem:[#allocation7 + $0x110] sm:$0xff] }
 0x283   : > { %5163 = vmatpush1.bf16.msra.mxu1 %v6510_v53  ;;  %5166 = vmatprep.mubr.bf16.mxu1 %v8042_v61  ;;  %v3248_v63 = vld [vmem:[#allocation7 + $0xf8] sm:$0xff]  ;;  %v6288_v53 = vcombine.low %v3235_v54, %v3239_v15  ;;  %v3255_v43 = vld [vmem:[#allocation7 + $0x130] sm:$0xff] }
 0x284   : > { %4938 = vmatprep.subr.bf16.mxu0 %v6517_v4  ;;  %5164 = vmatprep.subr.bf16.mxu1 %v6519_v58  ;;  %v6290_v4 = vcombine.low %v3236_v42, %v3240_v16  ;;  %v6297_v58 = vcombine.high %v3243_v17, %v3247_v18  ;;  %v6299_v36 = vcombine.high %v3244_v50, %v3248_v63  ;;  %v3252_v32 = vld [vmem:[#allocation7 + $0x118] sm:$0xff]  ;;  %v3259_v45 = vld [vmem:[#allocation7 + $0x150] sm:$0xff] }
 0x285   : > { %v3263_v37 = vld [vmem:[#allocation7 + $0x170] sm:$0xff]  ;;  %v3260_v8 = vld [vmem:[#allocation7 + $0x158] sm:$0xff] }
 0x286   : > { %4939 = vmatpush1.bf16.msra.mxu0 %v6516_v3  ;;  %v3256_v3 = vld [vmem:[#allocation7 + $0x138] sm:$0xff]  ;;  %v3267_v15 = vld [vmem:[#allocation7 + $0x190] sm:$0xff] }
 0x287   : > { %5165 = vmatpush1.bf16.msra.mxu1 %v6518_v52  ;;  %5247 = vmatprep.subr.bf16.mxu0 %v6273_v5  ;;  %v6296_v52 = vcombine.low %v3243_v17, %v3247_v18  ;;  %v6298_v5 = vcombine.low %v3244_v50, %v3248_v63  ;;  %v6307_v49 = vcombine.high %v3252_v32, %v3256_v3  ;;  %v3271_v42 = vld [vmem:[#allocation7 + $0x1b0] sm:$0xff]  ;;  %v3268_v16 = vld [vmem:[#allocation7 + $0x198] sm:$0xff] }
 0x288   : > { %5473 = vmatprep.subr.bf16.mxu1 %v6275_v19  ;;  %v6305_v19 = vcombine.high %v3251_v39, %v3255_v43  ;;  %v3275_v18 = vld [vmem:[#allocation7 + $0x1d0] sm:$0xff]  ;;  %v3276_v63 = vld [vmem:[#allocation7 + $0x1d8] sm:$0xff] }
 0x289   : > { %4941 = vmatmul.mubr.bf16.vlgmr.msra.gmra.mrb[32].mxu0 %v8034_v57  ;;  %v3279_v50 = vld [vmem:[#allocation7 + $0x1f0] sm:$0xff] }
 0x28a   : > { %5167 = vmatmul.mubr.bf16.vlgmr.msra.gmra.mrb[32].mxu1 %v8034_v57  ;;  %4950 = vmatprep.mubr.bf16.mxu0 %v8102_v29 }
 0x28b   : > { %5176 = vmatprep.mubr.bf16.mxu1 %v8102_v29  ;;  %5248 = vmatpush1.bf16.msra.mxu0 %v6272_v47  ;;  %v3264_v47 = vld [vmem:[#allocation7 + $0x178] sm:$0xff] }
 0x28c   : > { %5474 = vmatpush1.bf16.msra.mxu1 %v6274_v7  ;;  %5249 = vmatprep.subr.bf16.mxu0 %v6281_v25  ;;  %v6304_v7 = vcombine.low %v3251_v39, %v3255_v43  ;;  %v6306_v25 = vcombine.low %v3252_v32, %v3256_v3  ;;  %v6315_v54 = vcombine.high %v3260_v8, %v3264_v47  ;;  %v3283_v43 = vld [vmem:[#allocation7 + $0x210] sm:$0xff]  ;;  %v3284_v3 = vld [vmem:[#allocation7 + $0x218] sm:$0xff] }
 0x28d   : > { %5475 = vmatprep.subr.bf16.mxu1 %v6283_v13  ;;  %v6313_v13 = vcombine.high %v3259_v45, %v3263_v37  ;;  %v3287_v32 = vld [vmem:[#allocation7 + $0x230] sm:$0xff] }
 0x28f   : > { %5250 = vmatpush1.bf16.msra.mxu0 %v6280_v59  ;;  %v3272_v59 = vld [vmem:[#allocation7 + $0x1b8] sm:$0xff] }
 0x290   : > { %5476 = vmatpush1.bf16.msra.mxu1 %v6282_v34  ;;  %5251 = vmatprep.subr.bf16.mxu0 %v6289_v48  ;;  %v6312_v34 = vcombine.low %v3259_v45, %v3263_v37  ;;  %v6314_v48 = vcombine.low %v3260_v8, %v3264_v47  ;;  %v6323_v17 = vcombine.high %v3268_v16, %v3272_v59  ;;  %v3291_v37 = vld [vmem:[#allocation7 + $0x250] sm:$0xff]  ;;  %v3292_v47 = vld [vmem:[#allocation7 + $0x258] sm:$0xff] }
 0x291   : > { %4951 = vmatmul.mubr.bf16.gmra.mrb[36].mxu0 %v8090_v23  ;;  %5477 = vmatprep.subr.bf16.mxu1 %v6291_v28  ;;  %v6321_v28 = vcombine.high %v3267_v15, %v3271_v42  ;;  %v3295_v8 = vld [vmem:[#allocation7 + $0x270] sm:$0xff] }
 0x292   : > { %5177 = vmatmul.mubr.bf16.gmra.mrb[36].mxu1 %v8090_v23  ;;  %4960 = vmatprep.mubr.bf16.mxu0 %v8166_v46 }
 0x293   : > { %5186 = vmatprep.mubr.bf16.mxu1 %v8166_v46  ;;  %5252 = vmatpush1.bf16.msra.mxu0 %v6288_v53  ;;  %v3280_v53 = vld [vmem:[#allocation7 + $0x1f8] sm:$0xff] }
 0x294   : > { %5478 = vmatpush1.bf16.msra.mxu1 %v6290_v4  ;;  %5253 = vmatprep.subr.bf16.mxu0 %v6297_v58  ;;  %v6320_v4 = vcombine.low %v3267_v15, %v3271_v42  ;;  %v6322_v58 = vcombine.low %v3268_v16, %v3272_v59  ;;  %v6331_v39 = vcombine.high %v3276_v63, %v3280_v53  ;;  %v3299_v42 = vld [vmem:[#allocation7 + $0x290] sm:$0xff]  ;;  %v3300_v59 = vld [vmem:[#allocation7 + $0x298] sm:$0xff] }
 0x295   : > { %5479 = vmatprep.subr.bf16.mxu1 %v6299_v36  ;;  %v6329_v36 = vcombine.high %v3275_v18, %v3279_v50  ;;  %v3303_v16 = vld [vmem:[#allocation7 + $0x2b0] sm:$0xff] }
 0x297   : > { %5254 = vmatpush1.bf16.msra.mxu0 %v6296_v52  ;;  %v3288_v52 = vld [vmem:[#allocation7 + $0x238] sm:$0xff] }
 0x298   : > { %5480 = vmatpush1.bf16.msra.mxu1 %v6298_v5  ;;  %5255 = vmatprep.subr.bf16.mxu0 %v6305_v19  ;;  %v6328_v5 = vcombine.low %v3275_v18, %v3279_v50  ;;  %v6330_v19 = vcombine.low %v3276_v63, %v3280_v53  ;;  %v6339_v45 = vcombine.high %v3284_v3, %v3288_v52  ;;  %v3307_v50 = vld [vmem:[#allocation7 + $0x2d0] sm:$0xff]  ;;  %v3308_v53 = vld [vmem:[#allocation7 + $0x2d8] sm:$0xff] }
 0x299   : > { %4961 = vmatmul.mubr.bf16.gmra.mrb[40].mxu0 %v8158_v44  ;;  %5481 = vmatprep.subr.bf16.mxu1 %v6307_v49  ;;  %v6337_v49 = vcombine.high %v3283_v43, %v3287_v32  ;;  %v3311_v63 = vld [vmem:[#allocation7 + $0x2f0] sm:$0xff] }
 0x29a   : > { %5187 = vmatmul.mubr.bf16.gmra.mrb[40].mxu1 %v8158_v44  ;;  %4970 = vmatprep.mubr.bf16.mxu0 %v8234_v55 }
 0x29b   : > { %5196 = vmatprep.mubr.bf16.mxu1 %v8234_v55  ;;  %5256 = vmatpush1.bf16.msra.mxu0 %v6304_v7  ;;  %v3296_v7 = vld [vmem:[#allocation7 + $0x278] sm:$0xff] }
 0x29c   : > { %5482 = vmatpush1.bf16.msra.mxu1 %v6306_v25  ;;  %5257 = vmatprep.subr.bf16.mxu0 %v6313_v13  ;;  %v6336_v25 = vcombine.low %v3283_v43, %v3287_v32  ;;  %v6338_v13 = vcombine.low %v3284_v3, %v3288_v52  ;;  %v6347_v15 = vcombine.high %v3292_v47, %v3296_v7  ;;  %v3315_v32 = vld [vmem:[#allocation7 + $0x310] sm:$0xff]  ;;  %v3316_v52 = vld [vmem:[#allocation7 + $0x318] sm:$0xff] }
 0x29d   : > { %5483 = vmatprep.subr.bf16.mxu1 %v6315_v54  ;;  %v6345_v54 = vcombine.high %v3291_v37, %v3295_v8  ;;  %v3319_v3 = vld [vmem:[#allocation7 + $0x330] sm:$0xff] }
 0x29f   : > { %5258 = vmatpush1.bf16.msra.mxu0 %v6312_v34  ;;  %v3304_v34 = vld [vmem:[#allocation7 + $0x2b8] sm:$0xff] }
 0x2a0   : > { %5484 = vmatpush1.bf16.msra.mxu1 %v6314_v48  ;;  %5259 = vmatprep.subr.bf16.mxu0 %v6321_v28  ;;  %v6344_v48 = vcombine.low %v3291_v37, %v3295_v8  ;;  %v6346_v28 = vcombine.low %v3292_v47, %v3296_v7  ;;  %v6355_v18 = vcombine.high %v3300_v59, %v3304_v34  ;;  %v3323_v8 = vld [vmem:[#allocation7 + $0x350] sm:$0xff]  ;;  %v3324_v7 = vld [vmem:[#allocation7 + $0x358] sm:$0xff] }
 0x2a1   : > { %4971 = vmatmul.mubr.bf16.gmra.mrb[44].mxu0 %v8222_v21  ;;  %5485 = vmatprep.subr.bf16.mxu1 %v6323_v17  ;;  %v6353_v17 = vcombine.high %v3299_v42, %v3303_v16  ;;  %v3327_v47 = vld [vmem:[#allocation7 + $0x370] sm:$0xff] }
 0x2a2   : > { %5197 = vmatmul.mubr.bf16.gmra.mrb[44].mxu1 %v8222_v21  ;;  %4980 = vmatprep.mubr.bf16.mxu0 %v8298_v62 }
 0x2a3   : > { %5206 = vmatprep.mubr.bf16.mxu1 %v8298_v62  ;;  %5260 = vmatpush1.bf16.msra.mxu0 %v6320_v4  ;;  %v3312_v4 = vld [vmem:[#allocation7 + $0x2f8] sm:$0xff] }
 0x2a4   : > { %5486 = vmatpush1.bf16.msra.mxu1 %v6322_v58  ;;  %5261 = vmatprep.subr.bf16.mxu0 %v6329_v36  ;;  %v6352_v58 = vcombine.low %v3299_v42, %v3303_v16  ;;  %v6354_v36 = vcombine.low %v3300_v59, %v3304_v34  ;;  %v6363_v43 = vcombine.high %v3308_v53, %v3312_v4  ;;  %v3331_v16 = vld [vmem:[#allocation7 + $0x390] sm:$0xff]  ;;  %v3332_v34 = vld [vmem:[#allocation7 + $0x398] sm:$0xff] }
 0x2a5   : > { %5487 = vmatprep.subr.bf16.mxu1 %v6331_v39  ;;  %v6361_v39 = vcombine.high %v3307_v50, %v3311_v63  ;;  %v3335_v59 = vld [vmem:[#allocation7 + $0x3b0] sm:$0xff] }
 0x2a7   : > { %5262 = vmatpush1.bf16.msra.mxu0 %v6328_v5  ;;  %v3320_v5 = vld [vmem:[#allocation7 + $0x338] sm:$0xff] }
 0x2a8   : > { %5488 = vmatpush1.bf16.msra.mxu1 %v6330_v19  ;;  %5263 = vmatprep.subr.bf16.mxu0 %v6337_v49  ;;  %v6360_v19 = vcombine.low %v3307_v50, %v3311_v63  ;;  %v6362_v49 = vcombine.low %v3308_v53, %v3312_v4  ;;  %v6371_v37 = vcombine.high %v3316_v52, %v3320_v5  ;;  %v3339_v63 = vld [vmem:[#allocation7 + $0x3d0] sm:$0xff]  ;;  %v3340_v4 = vld [vmem:[#allocation7 + $0x3d8] sm:$0xff] }
 0x2a9   : > { %4981 = vmatmul.mubr.bf16.gmra.mrb[48].mxu0 %v8290_v12  ;;  %5489 = vmatprep.subr.bf16.mxu1 %v6339_v45  ;;  %v6369_v45 = vcombine.high %v3315_v32, %v3319_v3  ;;  %v3343_v53 = vld [vmem:[#allocation7 + $0x3f0] sm:$0xff] }
 0x2aa   : > { %5207 = vmatmul.mubr.bf16.gmra.mrb[48].mxu1 %v8290_v12  ;;  %4990 = vmatprep.mubr.bf16.mxu0 %v8357_v51 }
 0x2ab   : > { %5216 = vmatprep.mubr.bf16.mxu1 %v8357_v51  ;;  %5264 = vmatpush1.bf16.msra.mxu0 %v6336_v25  ;;  %v3328_v25 = vld [vmem:[#allocation7 + $0x378] sm:$0xff] }
 0x2ac   : > { %5490 = vmatpush1.bf16.msra.mxu1 %v6338_v13  ;;  %5265 = vmatprep.subr.bf16.mxu0 %v6345_v54  ;;  %v6368_v13 = vcombine.low %v3315_v32, %v3319_v3  ;;  %v6370_v54 = vcombine.low %v3316_v52, %v3320_v5  ;;  %v6379_v42 = vcombine.high %v3324_v7, %v3328_v25  ;;  %v3347_v3 = vld [vmem:[#allocation7 + $0x410] sm:$0xff]  ;;  %v3348_v5 = vld [vmem:[#allocation7 + $0x418] sm:$0xff] }
 0x2ad   : > { %5491 = vmatprep.subr.bf16.mxu1 %v6347_v15  ;;  %v6377_v15 = vcombine.high %v3323_v8, %v3327_v47  ;;  %v3351_v52 = vld [vmem:[#allocation7 + $0x430] sm:$0xff] }
 0x2af   : > { %5266 = vmatpush1.bf16.msra.mxu0 %v6344_v48  ;;  %v3336_v48 = vld [vmem:[#allocation7 + $0x3b8] sm:$0xff] }
 0x2b0   : > { %5492 = vmatpush1.bf16.msra.mxu1 %v6346_v28  ;;  %5267 = vmatprep.subr.bf16.mxu0 %v6353_v17  ;;  %v6376_v28 = vcombine.low %v3323_v8, %v3327_v47  ;;  %v6378_v17 = vcombine.low %v3324_v7, %v3328_v25  ;;  %v6387_v50 = vcombine.high %v3332_v34, %v3336_v48  ;;  %v3355_v47 = vld [vmem:[#allocation7 + $0x450] sm:$0xff]  ;;  %v3356_v25 = vld [vmem:[#allocation7 + $0x458] sm:$0xff] }
 0x2b1   : > { %4991 = vmatmul.mubr.bf16.gmra.mrb[52].mxu0 %v8345_v1  ;;  %5493 = vmatprep.subr.bf16.mxu1 %v6355_v18  ;;  %v6385_v18 = vcombine.high %v3331_v16, %v3335_v59  ;;  %v3359_v7 = vld [vmem:[#allocation7 + $0x470] sm:$0xff] }
 0x2b2   : > { %5217 = vmatmul.mubr.bf16.gmra.mrb[52].mxu1 %v8345_v1  ;;  %5000 = vmatprep.mubr.bf16.mxu0 %v8402_v22 }
 0x2b3   : > { %5226 = vmatprep.mubr.bf16.mxu1 %v8402_v22  ;;  %5268 = vmatpush1.bf16.msra.mxu0 %v6352_v58  ;;  %v3344_v58 = vld [vmem:[#allocation7 + $0x3f8] sm:$0xff] }
 0x2b4   : > { %5494 = vmatpush1.bf16.msra.mxu1 %v6354_v36  ;;  %5269 = vmatprep.subr.bf16.mxu0 %v6361_v39  ;;  %v6384_v36 = vcombine.low %v3331_v16, %v3335_v59  ;;  %v6386_v39 = vcombine.low %v3332_v34, %v3336_v48  ;;  %v6395_v32 = vcombine.high %v3340_v4, %v3344_v58  ;;  %v3363_v16 = vld [vmem:[#allocation7 + $0x490] sm:$0xff]  ;;  %v3364_v34 = vld [vmem:[#allocation7 + $0x498] sm:$0xff] }
 0x2b5   : > { %5495 = vmatprep.subr.bf16.mxu1 %v6363_v43  ;;  %v6393_v43 = vcombine.high %v3339_v63, %v3343_v53  ;;  %v3367_v59 = vld [vmem:[#allocation7 + $0x4b0] sm:$0xff]  ;;  %v3368_v48 = vld [vmem:[#allocation7 + $0x4b8] sm:$0xff] }
 0x2b7   : > { %5270 = vmatpush1.bf16.msra.mxu0 %v6360_v19  ;;  %v3352_v19 = vld [vmem:[#allocation7 + $0x438] sm:$0xff] }
 0x2b8   : > { %5496 = vmatpush1.bf16.msra.mxu1 %v6362_v49  ;;  %5271 = vmatprep.subr.bf16.mxu0 %v6369_v45  ;;  %v6392_v49 = vcombine.low %v3339_v63, %v3343_v53  ;;  %v6394_v45 = vcombine.low %v3340_v4, %v3344_v58  ;;  %v6403_v8 = vcombine.high %v3348_v5, %v3352_v19  ;;  %v3371_v63 = vld [vmem:[#allocation7 + $0x4d0] sm:$0xff]  ;;  %v3372_v4 = vld [vmem:[#allocation7 + $0x4d8] sm:$0xff] }
 0x2b9   : > { %5001 = vmatmul.mubr.bf16.gmra.mrb[56].mxu0 %v8394_v40  ;;  %5497 = vmatprep.subr.bf16.mxu1 %v6371_v37  ;;  %v6401_v37 = vcombine.high %v3347_v3, %v3351_v52  ;;  %v3375_v53 = vld [vmem:[#allocation7 + $0x4f0] sm:$0xff]  ;;  %v3376_v58 = vld [vmem:[#allocation7 + $0x4f8] sm:$0xff] }
 0x2ba   : > { %5227 = vmatmul.mubr.bf16.gmra.mrb[56].mxu1 %v8394_v40  ;;  %5010 = vmatprep.mubr.bf16.mxu0 %v8430_v27 }
 0x2bb   : > { %5236 = vmatprep.mubr.bf16.mxu1 %v8430_v27  ;;  %5272 = vmatpush1.bf16.msra.mxu0 %v6368_v13  ;;  %v3360_v13 = vld [vmem:[#allocation7 + $0x478] sm:$0xff] }
 0x2bc   : > { %5498 = vmatpush1.bf16.msra.mxu1 %v6370_v54  ;;  %5273 = vmatprep.subr.bf16.mxu0 %v6377_v15  ;;  %v6400_v54 = vcombine.low %v3347_v3, %v3351_v52  ;;  %v6402_v15 = vcombine.low %v3348_v5, %v3352_v19  ;;  %v3380_v3 = vld [vmem:[#allocation7 + $0x518] sm:$0xff]  ;;  %v6424_v5 = vcombine.low %v3371_v63, %v3375_v53 }
 0x2bd   : > { %5499 = vmatprep.subr.bf16.mxu1 %v6379_v42  ;;  %v6409_v42 = vcombine.high %v3355_v47, %v3359_v7  ;;  %v3384_v52 = vld [vmem:[#allocation7 + $0x538] sm:$0xff]  ;;  %v6426_v19 = vcombine.low %v3372_v4, %v3376_v58 }
 0x2bf   : > { %5274 = vmatpush1.bf16.msra.mxu0 %v6376_v28  ;;  %v6408_v28 = vcombine.low %v3355_v47, %v3359_v7  ;;  %v3388_v47 = vld [vmem:[#allocation7 + $0x558] sm:$0xff] }
 0x2c0   : > { %5500 = vmatpush1.bf16.msra.mxu1 %v6378_v17  ;;  %5275 = vmatprep.subr.bf16.mxu0 %v6385_v18  ;;  %v6410_v17 = vcombine.low %v3356_v25, %v3360_v13  ;;  %v6417_v18 = vcombine.high %v3363_v16, %v3367_v59  ;;  %v3392_v7 = vld [vmem:[#allocation7 + $0x578] sm:$0xff] }
 0x2c1   : > { %5011 = vmatmul.mubr.bf16.gmra.mrb[60].mxu0 %v8426_v10  ;;  %5501 = vmatprep.subr.bf16.mxu1 %v6387_v50  ;;  %v6419_v50 = vcombine.high %v3364_v34, %v3368_v48 }
 0x2c2   : > { %5237 = vmatmul.mubr.bf16.gmra.mrb[60].mxu1 %v8426_v10  ;;  %5279 = vmatprep.mubr.bf16.mxu0 %v8040_v60 }
 0x2c3   : > { %5276 = vmatpush1.bf16.msra.mxu0 %v6384_v36  ;;  %5505 = vmatprep.mubr.bf16.mxu1 %v8040_v60  ;;  %v6411_v60 = vcombine.high %v3356_v25, %v3360_v13  ;;  %v6418_v36 = vcombine.low %v3364_v34, %v3368_v48  ;;  %v6434_v25 = vcombine.low %v3380_v3, %v3384_v52 }
 0x2c4   : > { %5502 = vmatpush1.bf16.msra.mxu1 %v6386_v39  ;;  %5277 = vmatprep.subr.bf16.mxu0 %v6393_v43  ;;  %v6425_v39 = vcombine.high %v3371_v63, %v3375_v53  ;;  %v3379_v43 = vld [vmem:[#allocation7 + $0x510] sm:$0xff] }
 0x2c5   : > { %5503 = vmatprep.subr.bf16.mxu1 %v6395_v32  ;;  %v3383_v32 = vld [vmem:[#allocation7 + $0x530] sm:$0xff] }
 0x2c7   : > { %5278 = vmatpush1.bf16.msra.mxu0 %v6392_v49  ;;  %v6433_v49 = vcombine.high %v3379_v43, %v3383_v32 }
 0x2c8   : > { %5504 = vmatpush1.bf16.msra.mxu1 %v6394_v45  ;;  %5360 = vmatprep.subr.bf16.mxu0 %v6401_v37  ;;  %v6435_v45 = vcombine.high %v3380_v3, %v3384_v52  ;;  %v3387_v37 = vld [vmem:[#allocation7 + $0x550] sm:$0xff] }
 0x2c9   : > { %5586 = vmatprep.subr.bf16.mxu1 %v6403_v8  ;;  %v3391_v8 = vld [vmem:[#allocation7 + $0x570] sm:$0xff] }
 0x2ca   : > { %5280 = vmatmul.mubr.bf16.vlgmr.msra.gmra.mrb[64].mxu0 %v8032_v56  ;;  %v6441_v13 = vcombine.high %v3387_v37, %v3391_v8  ;;  %v3419_v3 = vld [vmem:[#allocation7 + $0x650] sm:$0xff] }
 0x2cb   : > { %5506 = vmatmul.mubr.bf16.vlgmr.msra.gmra.mrb[64].mxu1 %v8032_v56  ;;  %5289 = vmatprep.mubr.bf16.mxu0 %v8100_v24  ;;  %v6416_v56 = vcombine.low %v3363_v16, %v3367_v59  ;;  %v6440_v16 = vcombine.low %v3387_v37, %v3391_v8  ;;  %v6442_v59 = vcombine.low %v3388_v47, %v3392_v7  ;;  %v3423_v52 = vld [vmem:[#allocation7 + $0x670] sm:$0xff] }
 0x2cc   : > { %5361 = vmatpush1.bf16.msra.mxu0 %v6400_v54  ;;  %5515 = vmatprep.mubr.bf16.mxu1 %v8100_v24  ;;  %v6427_v24 = vcombine.high %v3372_v4, %v3376_v58  ;;  %v3395_v54 = vld [vmem:[#allocation7 + $0x590] sm:$0xff] }
 0x2cd   : > { %5587 = vmatpush1.bf16.msra.mxu1 %v6402_v15  ;;  %5362 = vmatprep.subr.bf16.mxu0 %v6409_v42  ;;  %v3399_v15 = vld [vmem:[#allocation7 + $0x5b0] sm:$0xff]  ;;  %v3396_v42 = vld [vmem:[#allocation7 + $0x598] sm:$0xff] }
 0x2ce   : > { %5588 = vmatprep.subr.bf16.mxu1 %v6411_v60  ;;  %v3400_v60 = vld [vmem:[#allocation7 + $0x5b8] sm:$0xff]  ;;  %v6449_v34 = vcombine.high %v3395_v54, %v3399_v15  ;;  %v3411_v4 = vld [vmem:[#allocation7 + $0x610] sm:$0xff] }
 0x2cf   : > { %v6451_v48 = vcombine.high %v3396_v42, %v3400_v60  ;;  %v6450_v63 = vcombine.low %v3396_v42, %v3400_v60  ;;  %v3415_v58 = vld [vmem:[#allocation7 + $0x630] sm:$0xff]  ;;  %v3436_v42 = vld [vmem:[#allocation7 + $0x6d8] sm:$0xff] }
 0x2d0   : > { %5363 = vmatpush1.bf16.msra.mxu0 %v6408_v28  ;;  %v3403_v28 = vld [vmem:[#allocation7 + $0x5d0] sm:$0xff]  ;;  %v3440_v60 = vld [vmem:[#allocation7 + $0x6f8] sm:$0xff] }
 0x2d1   : > { %5589 = vmatpush1.bf16.msra.mxu1 %v6410_v17  ;;  %5364 = vmatprep.subr.bf16.mxu0 %v6417_v18  ;;  %v3407_v17 = vld [vmem:[#allocation7 + $0x5f0] sm:$0xff]  ;;  %v3404_v18 = vld [vmem:[#allocation7 + $0x5d8] sm:$0xff] }
 0x2d2   : > { %5290 = vmatmul.mubr.bf16.gmra.mrb[68].mxu0 %v8088_v6  ;;  %5590 = vmatprep.subr.bf16.mxu1 %v6419_v50  ;;  %v3408_v50 = vld [vmem:[#allocation7 + $0x5f8] sm:$0xff]  ;;  %v6457_v53 = vcombine.high %v3403_v28, %v3407_v17  ;;  %v3427_v37 = vld [vmem:[#allocation7 + $0x690] sm:$0xff] }
 0x2d3   : > { %5516 = vmatmul.mubr.bf16.gmra.mrb[68].mxu1 %v8088_v6  ;;  %5299 = vmatprep.mubr.bf16.mxu0 %v8164_v26  ;;  %v6432_v6 = vcombine.low %v3379_v43, %v3383_v32  ;;  %v6465_v43 = vcombine.high %v3411_v4, %v3415_v58  ;;  %v3431_v8 = vld [vmem:[#allocation7 + $0x6b0] sm:$0xff] }
 0x2d4   : > { %5365 = vmatpush1.bf16.msra.mxu0 %v6416_v56  ;;  %5525 = vmatprep.mubr.bf16.mxu1 %v8164_v26  ;;  %v6443_v26 = vcombine.high %v3388_v47, %v3392_v7  ;;  %v3412_v56 = vld [vmem:[#allocation7 + $0x618] sm:$0xff] }
 0x2d5   : > { %5591 = vmatpush1.bf16.msra.mxu1 %v6418_v36  ;;  %5366 = vmatprep.subr.bf16.mxu0 %v6425_v39  ;;  %v3416_v36 = vld [vmem:[#allocation7 + $0x638] sm:$0xff]  ;;  %v6456_v39 = vcombine.low %v3403_v28, %v3407_v17 }
 0x2d6   : > { %5592 = vmatprep.subr.bf16.mxu1 %v6427_v24  ;;  %v6458_v24 = vcombine.low %v3404_v18, %v3408_v50  ;;  %v6467_v32 = vcombine.high %v3412_v56, %v3416_v36  ;;  %v3428_v47 = vld [vmem:[#allocation7 + $0x698] sm:$0xff] }
 0x2d7   : > { %v3432_v7 = vld [vmem:[#allocation7 + $0x6b8] sm:$0xff] }
 0x2d8   : > { %5367 = vmatpush1.bf16.msra.mxu0 %v6424_v5  ;;  %v3420_v5 = vld [vmem:[#allocation7 + $0x658] sm:$0xff] }
 0x2d9   : > { %5593 = vmatpush1.bf16.msra.mxu1 %v6426_v19  ;;  %5368 = vmatprep.subr.bf16.mxu0 %v6433_v49  ;;  %v3424_v19 = vld [vmem:[#allocation7 + $0x678] sm:$0xff]  ;;  %v6466_v49 = vcombine.low %v3412_v56, %v3416_v36 }
 0x2da   : > { %5300 = vmatmul.mubr.bf16.gmra.mrb[72].mxu0 %v8156_v41  ;;  %5594 = vmatprep.subr.bf16.mxu1 %v6435_v45  ;;  %v6473_v45 = vcombine.high %v3419_v3, %v3423_v52  ;;  %v3444_v28 = vld [vmem:[#allocation7 + $0x718] sm:$0xff] }
 0x2db   : > { %5526 = vmatmul.mubr.bf16.gmra.mrb[72].mxu1 %v8156_v41  ;;  %5309 = vmatprep.mubr.bf16.mxu0 %v8232_v31  ;;  %v6448_v41 = vcombine.low %v3395_v54, %v3399_v15  ;;  %v3435_v54 = vld [vmem:[#allocation7 + $0x6d0] sm:$0xff]  ;;  %v3448_v17 = vld [vmem:[#allocation7 + $0x738] sm:$0xff] }
 0x2dc   : > { %5369 = vmatpush1.bf16.msra.mxu0 %v6432_v6  ;;  %5535 = vmatprep.mubr.bf16.mxu1 %v8232_v31  ;;  %v6459_v31 = vcombine.high %v3404_v18, %v3408_v50  ;;  %v6472_v6 = vcombine.low %v3419_v3, %v3423_v52  ;;  %v3439_v15 = vld [vmem:[#allocation7 + $0x6f0] sm:$0xff]  ;;  %v6490_v50 = vcombine.low %v3436_v42, %v3440_v60 }
 0x2dd   : > { %5595 = vmatpush1.bf16.msra.mxu1 %v6434_v25  ;;  %5370 = vmatprep.subr.bf16.mxu0 %v6441_v13  ;;  %v6474_v25 = vcombine.low %v3420_v5, %v3424_v19  ;;  %v6481_v13 = vcombine.high %v3427_v37, %v3431_v8  ;;  %v6488_v18 = vcombine.low %v3435_v54, %v3439_v15 }
 0x2de   : > { %5596 = vmatprep.subr.bf16.mxu1 %v6443_v26  ;;  %v6483_v26 = vcombine.high %v3428_v47, %v3432_v7  ;;  %v6498_v56 = vcombine.low %v3444_v28, %v3448_v17 }
 0x2e0   : > { %5371 = vmatpush1.bf16.msra.mxu0 %v6440_v16  ;;  %v6482_v16 = vcombine.low %v3428_v47, %v3432_v7 }
 0x2e1   : > { %5597 = vmatpush1.bf16.msra.mxu1 %v6442_v59  ;;  %5372 = vmatprep.subr.bf16.mxu0 %v6449_v34  ;;  %v6489_v59 = vcombine.high %v3435_v54, %v3439_v15  ;;  %v3443_v34 = vld [vmem:[#allocation7 + $0x710] sm:$0xff] }
 0x2e2   : > { %5310 = vmatmul.mubr.bf16.gmra.mrb[76].mxu0 %v8220_v33  ;;  %5598 = vmatprep.subr.bf16.mxu1 %v6451_v48  ;;  %v3447_v48 = vld [vmem:[#allocation7 + $0x730] sm:$0xff] }
 0x2e3   : > { %5536 = vmatmul.mubr.bf16.gmra.mrb[76].mxu1 %v8220_v33  ;;  %5319 = vmatprep.mubr.bf16.mxu0 %v8296_v38  ;;  %v6464_v33 = vcombine.low %v3411_v4, %v3415_v58  ;;  %v3452_v4 = vld [vmem:[#allocation7 + $0x758] sm:$0xff] }
 0x2e4   : > { %5373 = vmatpush1.bf16.msra.mxu0 %v6448_v41  ;;  %5545 = vmatprep.mubr.bf16.mxu1 %v8296_v38  ;;  %v6475_v38 = vcombine.high %v3420_v5, %v3424_v19  ;;  %v6497_v41 = vcombine.high %v3443_v34, %v3447_v48  ;;  %v3456_v58 = vld [vmem:[#allocation7 + $0x778] sm:$0xff] }
 0x2e5   : > { %5599 = vmatpush1.bf16.msra.mxu1 %v6450_v63  ;;  %5374 = vmatprep.subr.bf16.mxu0 %v6457_v53  ;;  %v6499_v63 = vcombine.high %v3444_v28, %v3448_v17  ;;  %v3451_v53 = vld [vmem:[#allocation7 + $0x750] sm:$0xff]  ;;  %v6506_v52 = vcombine.low %v3452_v4, %v3456_v58 }
 0x2e6   : > { %5600 = vmatprep.subr.bf16.mxu1 %v6459_v31  ;;  %v3455_v31 = vld [vmem:[#allocation7 + $0x770] sm:$0xff] }
 0x2e7   : > { %v6505_v36 = vcombine.high %v3451_v53, %v3455_v31  ;;  %v6504_v3 = vcombine.low %v3451_v53, %v3455_v31 }
 0x2e8   : > { %5375 = vmatpush1.bf16.msra.mxu0 %v6456_v39  ;;  %v3459_v39 = vld [vmem:[#allocation7 + $0x790] sm:$0xff] }
 0x2e9   : > { %5601 = vmatpush1.bf16.msra.mxu1 %v6458_v24  ;;  %5376 = vmatprep.subr.bf16.mxu0 %v6465_v43  ;;  %v3463_v24 = vld [vmem:[#allocation7 + $0x7b0] sm:$0xff]  ;;  %v3460_v43 = vld [vmem:[#allocation7 + $0x798] sm:$0xff] }
 0x2ea   : > { %5320 = vmatmul.mubr.bf16.gmra.mrb[80].mxu0 %v8288_v30  ;;  %5602 = vmatprep.subr.bf16.mxu1 %v6467_v32  ;;  %v3464_v32 = vld [vmem:[#allocation7 + $0x7b8] sm:$0xff]  ;;  %v6513_v5 = vcombine.high %v3459_v39, %v3463_v24 }
 0x2eb   : > { %5546 = vmatmul.mubr.bf16.gmra.mrb[80].mxu1 %v8288_v30  ;;  %5329 = vmatprep.mubr.bf16.mxu0 %v8355_v0  ;;  %v6480_v30 = vcombine.low %v3427_v37, %v3431_v8  ;;  %v6515_v19 = vcombine.high %v3460_v43, %v3464_v32  ;;  %v6514_v37 = vcombine.low %v3460_v43, %v3464_v32 }
 0x2ec   : > { %5377 = vmatpush1.bf16.msra.mxu0 %v6464_v33  ;;  %5555 = vmatprep.mubr.bf16.mxu1 %v8355_v0  ;;  %v6491_v0 = vcombine.high %v3436_v42, %v3440_v60  ;;  %v3467_v33 = vld [vmem:[#allocation7 + $0x7d0] sm:$0xff] }
 0x2ed   : > { %5603 = vmatpush1.bf16.msra.mxu1 %v6466_v49  ;;  %5378 = vmatprep.subr.bf16.mxu0 %v6473_v45  ;;  %v3471_v49 = vld [vmem:[#allocation7 + $0x7f0] sm:$0xff]  ;;  %v3468_v45 = vld [vmem:[#allocation7 + $0x7d8] sm:$0xff] }
 0x2ee   : > { %5604 = vmatprep.subr.bf16.mxu1 %v6475_v38  ;;  %v3472_v38 = vld [vmem:[#allocation7 + $0x7f8] sm:$0xff]  ;;  %v6521_v8 = vcombine.high %v3467_v33, %v3471_v49  ;;  %v6520_v47 = vcombine.low %v3467_v33, %v3471_v49 }
 0x2ef   : > { %v6522_v7 = vcombine.low %v3468_v45, %v3472_v38 }
 0x2f0   : > { %5379 = vmatpush1.bf16.msra.mxu0 %v6472_v6 }
 0x2f1   : > { %5605 = vmatpush1.bf16.msra.mxu1 %v6474_v25  ;;  %5380 = vmatprep.subr.bf16.mxu0 %v6481_v13 }
 0x2f2   : > { %5330 = vmatmul.mubr.bf16.gmra.mrb[84].mxu0 %v8343_v35  ;;  %5606 = vmatprep.subr.bf16.mxu1 %v6483_v26 }
 0x2f3   : > { %5556 = vmatmul.mubr.bf16.gmra.mrb[84].mxu1 %v8343_v35  ;;  %5339 = vmatprep.mubr.bf16.mxu0 %v8400_v2  ;;  %v6496_v35 = vcombine.low %v3443_v34, %v3447_v48 }
 0x2f4   : > { %5381 = vmatpush1.bf16.msra.mxu0 %v6480_v30  ;;  %5565 = vmatprep.mubr.bf16.mxu1 %v8400_v2  ;;  %v6507_v2 = vcombine.high %v3452_v4, %v3456_v58 }
 0x2f5   : > { %5607 = vmatpush1.bf16.msra.mxu1 %v6482_v16  ;;  %5382 = vmatprep.subr.bf16.mxu0 %v6489_v59 }
 0x2f6   : > { %5608 = vmatprep.subr.bf16.mxu1 %v6491_v0 }
 0x2f8   : > { %5383 = vmatpush1.bf16.msra.mxu0 %v6488_v18 }
 0x2f9   : > { %5609 = vmatpush1.bf16.msra.mxu1 %v6490_v50  ;;  %5384 = vmatprep.subr.bf16.mxu0 %v6497_v41 }
 0x2fa   : > { %5340 = vmatmul.mubr.bf16.gmra.mrb[88].mxu0 %v8392_v20  ;;  %5610 = vmatprep.subr.bf16.mxu1 %v6499_v63 }
 0x2fb   : > { %5566 = vmatmul.mubr.bf16.gmra.mrb[88].mxu1 %v8392_v20  ;;  %5349 = vmatprep.mubr.bf16.mxu0 %v8428_v14  ;;  %v6512_v20 = vcombine.low %v3459_v39, %v3463_v24 }
 0x2fc   : > { %5385 = vmatpush1.bf16.msra.mxu0 %v6496_v35  ;;  %5575 = vmatprep.mubr.bf16.mxu1 %v8428_v14  ;;  %v6523_v14 = vcombine.high %v3468_v45, %v3472_v38 }
 0x2fd   : > { %5611 = vmatpush1.bf16.msra.mxu1 %v6498_v56  ;;  %5386 = vmatprep.subr.bf16.mxu0 %v6505_v36 }
 0x2fe   : > { %5612 = vmatprep.subr.bf16.mxu1 %v6507_v2 }
 0x300   : > { %5387 = vmatpush1.bf16.msra.mxu0 %v6504_v3 }
 0x301   : > { %5613 = vmatpush1.bf16.msra.mxu1 %v6506_v52  ;;  %5388 = vmatprep.subr.bf16.mxu0 %v6513_v5 }
 0x302   : > { %5350 = vmatmul.mubr.bf16.gmra.mrb[92].mxu0 %v8424_v11  ;;  %5614 = vmatprep.subr.bf16.mxu1 %v6515_v19 }
 0x303   : > { %5576 = vmatmul.mubr.bf16.gmra.mrb[92].mxu1 %v8424_v11  ;;  %5392 = vmatprep.mubr.bf16.mxu0 %v8042_v61  ;;  %v8537_v11 = vld [vmem:[%s8889_s4] sm:$0xff] }
 0x304   : > { %5389 = vmatpush1.bf16.msra.mxu0 %v6512_v20  ;;  %5618 = vmatprep.mubr.bf16.mxu1 %v8042_v61 }
 0x305   : > { %5615 = vmatpush1.bf16.msra.mxu1 %v6514_v37  ;;  %5390 = vmatprep.subr.bf16.mxu0 %v6521_v8 }
 0x306   : > { %5616 = vmatprep.subr.bf16.mxu1 %v6523_v14 }
 0x308   : > { %5391 = vmatpush1.bf16.msra.mxu0 %v6520_v47 }
 0x309   : > { %5617 = vmatpush1.bf16.msra.mxu1 %v6522_v7 }
 0x30b   : > { %5393 = vmatmul.mubr.bf16.vlgmr.msra.gmra.mrb[64].mxu0 %v8034_v57 }
 0x30c   : > { %5619 = vmatmul.mubr.bf16.vlgmr.msra.gmra.mrb[64].mxu1 %v8034_v57  ;;  %5402 = vmatprep.mubr.bf16.mxu0 %v8102_v29  ;;  %v8908_v57 = vsub.s32 0, %v7973_v9 }
 0x30d   : > { %5628 = vmatprep.mubr.bf16.mxu1 %v8102_v29 }
 0x30e   : > { %v8543_v61 = vrot.slane %v8537_v11, %v8908_v57 }
 0x313   : > { %5403 = vmatmul.mubr.bf16.gmra.mrb[68].mxu0 %v8090_v23 }
 0x314   : > { %5629 = vmatmul.mubr.bf16.gmra.mrb[68].mxu1 %v8090_v23  ;;  %5412 = vmatprep.mubr.bf16.mxu0 %v8166_v46  ;;  %v8909_v23 = vsub.s32 2, %v7973_v9 }
 0x315   : > { %5638 = vmatprep.mubr.bf16.mxu1 %v8166_v46  ;;  %v8911_v46 = vsub.s32 3, %v7973_v9 }
 0x316   : > { %v8548_v29 = vrot.slane %v8537_v11, %v8909_v23 }
 0x31b   : > { %5413 = vmatmul.mubr.bf16.gmra.mrb[72].mxu0 %v8158_v44 }
 0x31c   : > { %5639 = vmatmul.mubr.bf16.gmra.mrb[72].mxu1 %v8158_v44  ;;  %5422 = vmatprep.mubr.bf16.mxu0 %v8234_v55  ;;  %v8910_v44 = vsub.s32 1, %v7973_v9 }
 0x31d   : > { %5648 = vmatprep.mubr.bf16.mxu1 %v8234_v55 }
 0x323   : > { %5423 = vmatmul.mubr.bf16.gmra.mrb[76].mxu0 %v8222_v21 }
 0x324   : > { %5649 = vmatmul.mubr.bf16.gmra.mrb[76].mxu1 %v8222_v21  ;;  %5432 = vmatprep.mubr.bf16.mxu0 %v8298_v62  ;;  %v8558_v21 = vrot.slane %v8537_v11, %v8911_v46 }
 0x325   : > { %5658 = vmatprep.mubr.bf16.mxu1 %v8298_v62 }
 0x32b   : > { %5433 = vmatmul.mubr.bf16.gmra.mrb[80].mxu0 %v8290_v12 }
 0x32c   : > { %5659 = vmatmul.mubr.bf16.gmra.mrb[80].mxu1 %v8290_v12  ;;  %5442 = vmatprep.mubr.bf16.mxu0 %v8357_v51 }
 0x32d   : > { %5668 = vmatprep.mubr.bf16.mxu1 %v8357_v51 }
 0x333   : > { %5443 = vmatmul.mubr.bf16.gmra.mrb[84].mxu0 %v8345_v1 }
 0x334   : > { %5669 = vmatmul.mubr.bf16.gmra.mrb[84].mxu1 %v8345_v1  ;;  %5452 = vmatprep.mubr.bf16.mxu0 %v8402_v22 }
 0x335   : > { %5678 = vmatprep.mubr.bf16.mxu1 %v8402_v22 }
 0x33b   : > { %5453 = vmatmul.mubr.bf16.gmra.mrb[88].mxu0 %v8394_v40 }
 0x33c   : > { %5679 = vmatmul.mubr.bf16.gmra.mrb[88].mxu1 %v8394_v40  ;;  %5462 = vmatprep.mubr.bf16.mxu0 %v8430_v27 }
 0x33d   : > { %5688 = vmatprep.mubr.bf16.mxu1 %v8430_v27 }
 0x343   : > { %5463 = vmatmul.mubr.bf16.gmra.mrb[92].mxu0 %v8426_v10 }
 0x344   : > { %5689 = vmatmul.mubr.bf16.gmra.mrb[92].mxu1 %v8426_v10  ;;  %v8553_v10 = vrot.slane %v8537_v11, %v8910_v44 }
 0x35c   : > { %v4942_v55 = vpop.f32.mrb[32].mxu0 }
 0x35d   : > { %v6598_v12 = vadd.f32 %v4942_v55, %v8543_v61  ;;  %v5168_v62 = vpop.f32.mrb[32].mxu1  ;;  %v4944_v1 = vpop.f32.mrb[33].mxu0 }
 0x35e   : > { %v6630_v51 = vadd.f32 %v5168_v62, %v8548_v29  ;;  %v6599_v40 = vadd.f32 %v4944_v1, %v8553_v10  ;;  %v5170_v22 = vpop.f32.mrb[33].mxu1  ;;  %v4946_v27 = vpop.f32.mrb[34].mxu0 }
 0x35f   : > { %5699 = vst [vmem:[%s8563_s28] sm:$0xff] %v6598_v12  ;;  %v6631_v6 = vadd.f32 %v5170_v22, %v8558_v21  ;;  %v6600_v25 = vadd.f32 %v4946_v27, %v8543_v61  ;;  %v5172_v13 = vpop.f32.mrb[34].mxu1  ;;  %v4948_v26 = vpop.f32.mrb[35].mxu0 }
 0x360   : > { %5701 = vst [vmem:[%s8563_s28 + $0x10] sm:$0xff] %v6630_v51  ;;  %5700 = vst [vmem:[%s8563_s28 + $0x8] sm:$0xff] %v6599_v40  ;;  %v6632_v54 = vadd.f32 %v5172_v13, %v8548_v29  ;;  %v6601_v15 = vadd.f32 %v4948_v26, %v8553_v10  ;;  %v5174_v42 = vpop.f32.mrb[35].mxu1 }
 0x361   : > { %5702 = vst [vmem:[%s8563_s28 + $0x18] sm:$0xff] %v6631_v6  ;;  %5707 = vst [vmem:[%s8563_s28 + $0x40] sm:$0xff] %v6600_v25  ;;  %v6633_v60 = vadd.f32 %v5174_v42, %v8558_v21 }
 0x362   : > { %5709 = vst [vmem:[%s8563_s28 + $0x50] sm:$0xff] %v6632_v54  ;;  %5708 = vst [vmem:[%s8563_s28 + $0x48] sm:$0xff] %v6601_v15 }
 0x363   : > { %5710 = vst [vmem:[%s8563_s28 + $0x58] sm:$0xff] %v6633_v60 }
 0x364   : > { %v4952_v30 = vpop.f32.mrb[36].mxu0 }
 0x365   : > { %v6602_v16 = vadd.f32 %v4952_v30, %v8543_v61  ;;  %v5178_v59 = vpop.f32.mrb[36].mxu1  ;;  %v4954_v0 = vpop.f32.mrb[37].mxu0 }
 0x366   : > { %v6634_v34 = vadd.f32 %v5178_v59, %v8548_v29  ;;  %v6603_v48 = vadd.f32 %v4954_v0, %v8553_v10  ;;  %v5180_v28 = vpop.f32.mrb[37].mxu1  ;;  %v4956_v17 = vpop.f32.mrb[38].mxu0 }
 0x367   : > { %5715 = vst [vmem:[%s8563_s28 + $0x80] sm:$0xff] %v6602_v16  ;;  %v6635_v18 = vadd.f32 %v5180_v28, %v8558_v21  ;;  %v6604_v50 = vadd.f32 %v4956_v17, %v8543_v61  ;;  %v5182_v41 = vpop.f32.mrb[38].mxu1  ;;  %v4958_v63 = vpop.f32.mrb[39].mxu0 }
 0x368   : > { %5717 = vst [vmem:[%s8563_s28 + $0x90] sm:$0xff] %v6634_v34  ;;  %5716 = vst [vmem:[%s8563_s28 + $0x88] sm:$0xff] %v6603_v48  ;;  %v6636_v53 = vadd.f32 %v5182_v41, %v8548_v29  ;;  %v6605_v31 = vadd.f32 %v4958_v63, %v8553_v10  ;;  %v5184_v4 = vpop.f32.mrb[39].mxu1 }
 0x369   : > { %5718 = vst [vmem:[%s8563_s28 + $0x98] sm:$0xff] %v6635_v18  ;;  %5723 = vst [vmem:[%s8563_s28 + $0xc0] sm:$0xff] %v6604_v50  ;;  %v6637_v58 = vadd.f32 %v5184_v4, %v8558_v21 }
 0x36a   : > { %5725 = vst [vmem:[%s8563_s28 + $0xd0] sm:$0xff] %v6636_v53  ;;  %5724 = vst [vmem:[%s8563_s28 + $0xc8] sm:$0xff] %v6605_v31 }
 0x36b   : > { %5726 = vst [vmem:[%s8563_s28 + $0xd8] sm:$0xff] %v6637_v58 }
 0x36c   : > { %v4962_v35 = vpop.f32.mrb[40].mxu0 }
 0x36d   : > { %v6606_v56 = vadd.f32 %v4962_v35, %v8543_v61  ;;  %v5188_v36 = vpop.f32.mrb[40].mxu1  ;;  %v4964_v2 = vpop.f32.mrb[41].mxu0 }
 0x36e   : > { %v6638_v39 = vadd.f32 %v5188_v36, %v8548_v29  ;;  %v6607_v24 = vadd.f32 %v4964_v2, %v8553_v10  ;;  %v5190_v43 = vpop.f32.mrb[41].mxu1  ;;  %v4966_v32 = vpop.f32.mrb[42].mxu0 }
 0x36f   : > { %5731 = vst [vmem:[%s8563_s28 + $0x100] sm:$0xff] %v6606_v56  ;;  %v6639_v3 = vadd.f32 %v5190_v43, %v8558_v21  ;;  %v6608_v52 = vadd.f32 %v4966_v32, %v8543_v61  ;;  %v5192_v5 = vpop.f32.mrb[42].mxu1  ;;  %v4968_v19 = vpop.f32.mrb[43].mxu0 }
 0x370   : > { %5733 = vst [vmem:[%s8563_s28 + $0x110] sm:$0xff] %v6638_v39  ;;  %5732 = vst [vmem:[%s8563_s28 + $0x108] sm:$0xff] %v6607_v24  ;;  %v6640_v33 = vadd.f32 %v5192_v5, %v8548_v29  ;;  %v6609_v49 = vadd.f32 %v4968_v19, %v8553_v10  ;;  %v5194_v45 = vpop.f32.mrb[43].mxu1 }
 0x371   : > { %5734 = vst [vmem:[%s8563_s28 + $0x118] sm:$0xff] %v6639_v3  ;;  %5739 = vst [vmem:[%s8563_s28 + $0x140] sm:$0xff] %v6608_v52  ;;  %v6641_v38 = vadd.f32 %v5194_v45, %v8558_v21 }
 0x372   : > { %5741 = vst [vmem:[%s8563_s28 + $0x150] sm:$0xff] %v6640_v33  ;;  %5740 = vst [vmem:[%s8563_s28 + $0x148] sm:$0xff] %v6609_v49 }
 0x373   : > { %5742 = vst [vmem:[%s8563_s28 + $0x158] sm:$0xff] %v6641_v38 }
 0x374   : > { %v4972_v20 = vpop.f32.mrb[44].mxu0 }
 0x375   : > { %v6610_v37 = vadd.f32 %v4972_v20, %v8543_v61  ;;  %v5198_v8 = vpop.f32.mrb[44].mxu1  ;;  %v4974_v14 = vpop.f32.mrb[45].mxu0 }
 0x376   : > { %v6642_v47 = vadd.f32 %v5198_v8, %v8548_v29  ;;  %v6611_v7 = vadd.f32 %v4974_v14, %v8553_v10  ;;  %v5200_v57 = vpop.f32.mrb[45].mxu1  ;;  %v4976_v23 = vpop.f32.mrb[46].mxu0 }
 0x377   : > { %5747 = vst [vmem:[%s8563_s28 + $0x180] sm:$0xff] %v6610_v37  ;;  %v6643_v44 = vadd.f32 %v5200_v57, %v8558_v21  ;;  %v6612_v46 = vadd.f32 %v4976_v23, %v8543_v61  ;;  %v5202_v55 = vpop.f32.mrb[46].mxu1  ;;  %v4978_v12 = vpop.f32.mrb[47].mxu0 }
 0x378   : > { %5749 = vst [vmem:[%s8563_s28 + $0x190] sm:$0xff] %v6642_v47  ;;  %5748 = vst [vmem:[%s8563_s28 + $0x188] sm:$0xff] %v6611_v7  ;;  %v6644_v62 = vadd.f32 %v5202_v55, %v8548_v29  ;;  %v6613_v1 = vadd.f32 %v4978_v12, %v8553_v10  ;;  %v5204_v51 = vpop.f32.mrb[47].mxu1 }
 0x379   : > { %5750 = vst [vmem:[%s8563_s28 + $0x198] sm:$0xff] %v6643_v44  ;;  %5755 = vst [vmem:[%s8563_s28 + $0x1c0] sm:$0xff] %v6612_v46  ;;  %v6645_v40 = vadd.f32 %v5204_v51, %v8558_v21 }
 0x37a   : > { %5757 = vst [vmem:[%s8563_s28 + $0x1d0] sm:$0xff] %v6644_v62  ;;  %5756 = vst [vmem:[%s8563_s28 + $0x1c8] sm:$0xff] %v6613_v1 }
 0x37b   : > { %5758 = vst [vmem:[%s8563_s28 + $0x1d8] sm:$0xff] %v6645_v40 }
 0x37c   : > { %v4982_v22 = vpop.f32.mrb[48].mxu0 }
 0x37d   : > { %v6614_v27 = vadd.f32 %v4982_v22, %v8543_v61  ;;  %v5208_v6 = vpop.f32.mrb[48].mxu1  ;;  %v4984_v25 = vpop.f32.mrb[49].mxu0 }
 0x37e   : > { %v6646_v13 = vadd.f32 %v5208_v6, %v8548_v29  ;;  %v6615_v26 = vadd.f32 %v4984_v25, %v8553_v10  ;;  %v5210_v54 = vpop.f32.mrb[49].mxu1  ;;  %v4986_v15 = vpop.f32.mrb[50].mxu0 }
 0x37f   : > { %5763 = vst [vmem:[%s8563_s28 + $0x200] sm:$0xff] %v6614_v27  ;;  %v6647_v42 = vadd.f32 %v5210_v54, %v8558_v21  ;;  %v6616_v60 = vadd.f32 %v4986_v15, %v8543_v61  ;;  %v5212_v30 = vpop.f32.mrb[50].mxu1  ;;  %v4988_v16 = vpop.f32.mrb[51].mxu0  ;;  %v3493_v54 = vsub.s32 4, %v7973_v9  ;;  %v3497_v15 = vsub.s32 5, %v7973_v9 }
 0x380   : > { %5765 = vst [vmem:[%s8563_s28 + $0x210] sm:$0xff] %v6646_v13  ;;  %5764 = vst [vmem:[%s8563_s28 + $0x208] sm:$0xff] %v6615_v26  ;;  %v6648_v59 = vadd.f32 %v5212_v30, %v8548_v29  ;;  %v6617_v0 = vadd.f32 %v4988_v16, %v8553_v10  ;;  %v5214_v34 = vpop.f32.mrb[51].mxu1 }
 0x381   : > { %5766 = vst [vmem:[%s8563_s28 + $0x218] sm:$0xff] %v6647_v42  ;;  %5771 = vst [vmem:[%s8563_s28 + $0x240] sm:$0xff] %v6616_v60  ;;  %v6649_v48 = vadd.f32 %v5214_v34, %v8558_v21  ;;  %v3505_v42 = vsub.s32 7, %v7973_v9 }
 0x382   : > { %5773 = vst [vmem:[%s8563_s28 + $0x250] sm:$0xff] %v6648_v59  ;;  %5772 = vst [vmem:[%s8563_s28 + $0x248] sm:$0xff] %v6617_v0 }
 0x383   : > { %5774 = vst [vmem:[%s8563_s28 + $0x258] sm:$0xff] %v6649_v48  ;;  %v8704_v60 = vrot.slane %v8537_v11, %v3505_v42 }
 0x384   : > { %v4992_v28 = vpop.f32.mrb[52].mxu0 }
 0x385   : > { %v6618_v17 = vadd.f32 %v4992_v28, %v8543_v61  ;;  %v5218_v18 = vpop.f32.mrb[52].mxu1  ;;  %v4994_v50 = vpop.f32.mrb[53].mxu0 }
 0x386   : > { %v6650_v41 = vadd.f32 %v5218_v18, %v8548_v29  ;;  %v6619_v63 = vadd.f32 %v4994_v50, %v8553_v10  ;;  %v5220_v53 = vpop.f32.mrb[53].mxu1  ;;  %v4996_v31 = vpop.f32.mrb[54].mxu0 }
 0x387   : > { %5779 = vst [vmem:[%s8563_s28 + $0x280] sm:$0xff] %v6618_v17  ;;  %v6651_v4 = vadd.f32 %v5220_v53, %v8558_v21  ;;  %v6620_v58 = vadd.f32 %v4996_v31, %v8543_v61  ;;  %v5222_v35 = vpop.f32.mrb[54].mxu1  ;;  %v4998_v56 = vpop.f32.mrb[55].mxu0 }
 0x388   : > { %5781 = vst [vmem:[%s8563_s28 + $0x290] sm:$0xff] %v6650_v41  ;;  %5780 = vst [vmem:[%s8563_s28 + $0x288] sm:$0xff] %v6619_v63  ;;  %v6652_v36 = vadd.f32 %v5222_v35, %v8548_v29  ;;  %v6621_v2 = vadd.f32 %v4998_v56, %v8553_v10  ;;  %v5224_v39 = vpop.f32.mrb[55].mxu1 }
 0x389   : > { %5782 = vst [vmem:[%s8563_s28 + $0x298] sm:$0xff] %v6651_v4  ;;  %5787 = vst [vmem:[%s8563_s28 + $0x2c0] sm:$0xff] %v6620_v58  ;;  %v6653_v24 = vadd.f32 %v5224_v39, %v8558_v21 }
 0x38a   : > { %5789 = vst [vmem:[%s8563_s28 + $0x2d0] sm:$0xff] %v6652_v36  ;;  %5788 = vst [vmem:[%s8563_s28 + $0x2c8] sm:$0xff] %v6621_v2 }
 0x38b   : > { %5790 = vst [vmem:[%s8563_s28 + $0x2d8] sm:$0xff] %v6653_v24 }
 0x38c   : > { %v5002_v43 = vpop.f32.mrb[56].mxu0 }
 0x38d   : > { %v6622_v32 = vadd.f32 %v5002_v43, %v8543_v61  ;;  %v5228_v3 = vpop.f32.mrb[56].mxu1  ;;  %v5004_v52 = vpop.f32.mrb[57].mxu0 }
 0x38e   : > { %v6654_v5 = vadd.f32 %v5228_v3, %v8548_v29  ;;  %v6623_v19 = vadd.f32 %v5004_v52, %v8553_v10  ;;  %v5230_v33 = vpop.f32.mrb[57].mxu1  ;;  %v5006_v49 = vpop.f32.mrb[58].mxu0 }
 0x38f   : > { %5795 = vst [vmem:[%s8563_s28 + $0x300] sm:$0xff] %v6622_v32  ;;  %v6655_v45 = vadd.f32 %v5230_v33, %v8558_v21  ;;  %v6624_v38 = vadd.f32 %v5006_v49, %v8543_v61  ;;  %v5232_v20 = vpop.f32.mrb[58].mxu1  ;;  %v5008_v37 = vpop.f32.mrb[59].mxu0 }
 0x390   : > { %5797 = vst [vmem:[%s8563_s28 + $0x310] sm:$0xff] %v6654_v5  ;;  %5796 = vst [vmem:[%s8563_s28 + $0x308] sm:$0xff] %v6623_v19  ;;  %v6656_v8 = vadd.f32 %v5232_v20, %v8548_v29  ;;  %v6625_v14 = vadd.f32 %v5008_v37, %v8553_v10  ;;  %v5234_v47 = vpop.f32.mrb[59].mxu1 }
 0x391   : > { %5798 = vst [vmem:[%s8563_s28 + $0x318] sm:$0xff] %v6655_v45  ;;  %5803 = vst [vmem:[%s8563_s28 + $0x340] sm:$0xff] %v6624_v38  ;;  %v6657_v7 = vadd.f32 %v5234_v47, %v8558_v21 }
 0x392   : > { %5805 = vst [vmem:[%s8563_s28 + $0x350] sm:$0xff] %v6656_v8  ;;  %5804 = vst [vmem:[%s8563_s28 + $0x348] sm:$0xff] %v6625_v14 }
 0x393   : > { %5806 = vst [vmem:[%s8563_s28 + $0x358] sm:$0xff] %v6657_v7 }
 0x394   : > { %v5012_v57 = vpop.f32.mrb[60].mxu0 }
 0x395   : > { %v6626_v23 = vadd.f32 %v5012_v57, %v8543_v61  ;;  %v5238_v44 = vpop.f32.mrb[60].mxu1  ;;  %v5014_v46 = vpop.f32.mrb[61].mxu0 }
 0x396   : > { %v6658_v55 = vadd.f32 %v5238_v44, %v8548_v29  ;;  %v6627_v12 = vadd.f32 %v5014_v46, %v8553_v10  ;;  %v5240_v62 = vpop.f32.mrb[61].mxu1  ;;  %v5016_v1 = vpop.f32.mrb[62].mxu0 }
 0x397   : > { %5811 = vst [vmem:[%s8563_s28 + $0x380] sm:$0xff] %v6626_v23  ;;  %v6659_v51 = vadd.f32 %v5240_v62, %v8558_v21  ;;  %v6628_v40 = vadd.f32 %v5016_v1, %v8543_v61  ;;  %v5242_v22 = vpop.f32.mrb[62].mxu1  ;;  %v5018_v27 = vpop.f32.mrb[63].mxu0  ;;  %v3501_v61 = vsub.s32 6, %v7973_v9 }
 0x398   : > { %5813 = vst [vmem:[%s8563_s28 + $0x390] sm:$0xff] %v6658_v55  ;;  %5812 = vst [vmem:[%s8563_s28 + $0x388] sm:$0xff] %v6627_v12  ;;  %v6660_v6 = vadd.f32 %v5242_v22, %v8548_v29  ;;  %v6629_v25 = vadd.f32 %v5018_v27, %v8553_v10  ;;  %v5244_v13 = vpop.f32.mrb[63].mxu1  ;;  %v8695_v29 = vrot.slane %v8537_v11, %v3493_v54 }
 0x399   : > { %5814 = vst [vmem:[%s8563_s28 + $0x398] sm:$0xff] %v6659_v51  ;;  %5819 = vst [vmem:[%s8563_s28 + $0x3c0] sm:$0xff] %v6628_v40  ;;  %v6661_v26 = vadd.f32 %v5244_v13, %v8558_v21  ;;  %v8698_v10 = vrot.slane %v8537_v11, %v3501_v61  ;;  %v8701_v21 = vrot.slane %v8537_v11, %v3497_v15 }
 0x39a   : > { %5821 = vst [vmem:[%s8563_s28 + $0x3d0] sm:$0xff] %v6660_v6  ;;  %5820 = vst [vmem:[%s8563_s28 + $0x3c8] sm:$0xff] %v6629_v25 }
 0x39b   : > { %5822 = vst [vmem:[%s8563_s28 + $0x3d8] sm:$0xff] %v6661_v26 }
 0x3de   : > { %v5394_v30 = vpop.f32.mrb[64].mxu0 }
 0x3df   : > { %v6662_v16 = vadd.f32 %v5394_v30, %v8695_v29  ;;  %v5620_v59 = vpop.f32.mrb[64].mxu1  ;;  %v5396_v9 = vpop.f32.mrb[65].mxu0 }
 0x3e0   : > { %v6694_v0 = vadd.f32 %v5620_v59, %v8698_v10  ;;  %v6663_v34 = vadd.f32 %v5396_v9, %v8701_v21  ;;  %v5622_v48 = vpop.f32.mrb[65].mxu1  ;;  %v5398_v28 = vpop.f32.mrb[66].mxu0 }
 0x3e1   : > { %5703 = vst [vmem:[%s8563_s28 + $0x20] sm:$0xff] %v6662_v16  ;;  %v6695_v11 = vadd.f32 %v5622_v48, %v8704_v60  ;;  %v6664_v17 = vadd.f32 %v5398_v28, %v8695_v29  ;;  %v5624_v18 = vpop.f32.mrb[66].mxu1  ;;  %v5400_v50 = vpop.f32.mrb[67].mxu0 }
 0x3e2   : > { %5705 = vst [vmem:[%s8563_s28 + $0x30] sm:$0xff] %v6694_v0  ;;  %5704 = vst [vmem:[%s8563_s28 + $0x28] sm:$0xff] %v6663_v34  ;;  %v6696_v41 = vadd.f32 %v5624_v18, %v8698_v10  ;;  %v6665_v63 = vadd.f32 %v5400_v50, %v8701_v21  ;;  %v5626_v53 = vpop.f32.mrb[67].mxu1 }
 0x3e3   : > { %5706 = vst [vmem:[%s8563_s28 + $0x38] sm:$0xff] %v6695_v11  ;;  %5711 = vst [vmem:[%s8563_s28 + $0x60] sm:$0xff] %v6664_v17  ;;  %v6697_v31 = vadd.f32 %v5626_v53, %v8704_v60 }
 0x3e4   : > { %5713 = vst [vmem:[%s8563_s28 + $0x70] sm:$0xff] %v6696_v41  ;;  %5712 = vst [vmem:[%s8563_s28 + $0x68] sm:$0xff] %v6665_v63 }
 0x3e5   : > { %5714 = vst [vmem:[%s8563_s28 + $0x78] sm:$0xff] %v6697_v31 }
 0x3e6   : > { %v5404_v4 = vpop.f32.mrb[68].mxu0 }
 0x3e7   : > { %v6666_v58 = vadd.f32 %v5404_v4, %v8695_v29  ;;  %v5630_v35 = vpop.f32.mrb[68].mxu1  ;;  %v5406_v56 = vpop.f32.mrb[69].mxu0 }
 0x3e8   : > { %v6698_v36 = vadd.f32 %v5630_v35, %v8698_v10  ;;  %v6667_v2 = vadd.f32 %v5406_v56, %v8701_v21  ;;  %v5632_v39 = vpop.f32.mrb[69].mxu1  ;;  %v5408_v24 = vpop.f32.mrb[70].mxu0 }
 0x3e9   : > { %5719 = vst [vmem:[%s8563_s28 + $0xa0] sm:$0xff] %v6666_v58  ;;  %v6699_v43 = vadd.f32 %v5632_v39, %v8704_v60  ;;  %v6668_v32 = vadd.f32 %v5408_v24, %v8695_v29  ;;  %v5634_v3 = vpop.f32.mrb[70].mxu1  ;;  %v5410_v52 = vpop.f32.mrb[71].mxu0 }
 0x3ea   : > { %5721 = vst [vmem:[%s8563_s28 + $0xb0] sm:$0xff] %v6698_v36  ;;  %5720 = vst [vmem:[%s8563_s28 + $0xa8] sm:$0xff] %v6667_v2  ;;  %v6700_v5 = vadd.f32 %v5634_v3, %v8698_v10  ;;  %v6669_v19 = vadd.f32 %v5410_v52, %v8701_v21  ;;  %v5636_v33 = vpop.f32.mrb[71].mxu1 }
 0x3eb   : > { %5722 = vst [vmem:[%s8563_s28 + $0xb8] sm:$0xff] %v6699_v43  ;;  %5727 = vst [vmem:[%s8563_s28 + $0xe0] sm:$0xff] %v6668_v32  ;;  %v6701_v49 = vadd.f32 %v5636_v33, %v8704_v60 }
 0x3ec   : > { %5729 = vst [vmem:[%s8563_s28 + $0xf0] sm:$0xff] %v6700_v5  ;;  %5728 = vst [vmem:[%s8563_s28 + $0xe8] sm:$0xff] %v6669_v19 }
 0x3ed   : > { %5730 = vst [vmem:[%s8563_s28 + $0xf8] sm:$0xff] %v6701_v49 }
 0x3ee   : > { %v5414_v45 = vpop.f32.mrb[72].mxu0 }
 0x3ef   : > { %v6670_v38 = vadd.f32 %v5414_v45, %v8695_v29  ;;  %v5640_v20 = vpop.f32.mrb[72].mxu1  ;;  %v5416_v37 = vpop.f32.mrb[73].mxu0 }
 0x3f0   : > { %v6702_v8 = vadd.f32 %v5640_v20, %v8698_v10  ;;  %v6671_v14 = vadd.f32 %v5416_v37, %v8701_v21  ;;  %v5642_v47 = vpop.f32.mrb[73].mxu1  ;;  %v5418_v7 = vpop.f32.mrb[74].mxu0 }
 0x3f1   : > { %5735 = vst [vmem:[%s8563_s28 + $0x120] sm:$0xff] %v6670_v38  ;;  %v6703_v57 = vadd.f32 %v5642_v47, %v8704_v60  ;;  %v6672_v23 = vadd.f32 %v5418_v7, %v8695_v29  ;;  %v5644_v44 = vpop.f32.mrb[74].mxu1  ;;  %v5420_v46 = vpop.f32.mrb[75].mxu0 }
 0x3f2   : > { %5737 = vst [vmem:[%s8563_s28 + $0x130] sm:$0xff] %v6702_v8  ;;  %5736 = vst [vmem:[%s8563_s28 + $0x128] sm:$0xff] %v6671_v14  ;;  %v6704_v55 = vadd.f32 %v5644_v44, %v8698_v10  ;;  %v6673_v12 = vadd.f32 %v5420_v46, %v8701_v21  ;;  %v5646_v62 = vpop.f32.mrb[75].mxu1 }
 0x3f3   : > { %5738 = vst [vmem:[%s8563_s28 + $0x138] sm:$0xff] %v6703_v57  ;;  %5743 = vst [vmem:[%s8563_s28 + $0x160] sm:$0xff] %v6672_v23  ;;  %v6705_v1 = vadd.f32 %v5646_v62, %v8704_v60 }
 0x3f4   : > { %5745 = vst [vmem:[%s8563_s28 + $0x170] sm:$0xff] %v6704_v55  ;;  %5744 = vst [vmem:[%s8563_s28 + $0x168] sm:$0xff] %v6673_v12 }
 0x3f5   : > { %5746 = vst [vmem:[%s8563_s28 + $0x178] sm:$0xff] %v6705_v1 }
 0x3f6   : > { %v5424_v51 = vpop.f32.mrb[76].mxu0 }
 0x3f7   : > { %v6674_v40 = vadd.f32 %v5424_v51, %v8695_v29  ;;  %v5650_v22 = vpop.f32.mrb[76].mxu1  ;;  %v5426_v27 = vpop.f32.mrb[77].mxu0 }
 0x3f8   : > { %v6706_v6 = vadd.f32 %v5650_v22, %v8698_v10  ;;  %v6675_v25 = vadd.f32 %v5426_v27, %v8701_v21  ;;  %v5652_v13 = vpop.f32.mrb[77].mxu1  ;;  %v5428_v26 = vpop.f32.mrb[78].mxu0 }
 0x3f9   : > { %5751 = vst [vmem:[%s8563_s28 + $0x1a0] sm:$0xff] %v6674_v40  ;;  %v6707_v54 = vadd.f32 %v5652_v13, %v8704_v60  ;;  %v6676_v61 = vadd.f32 %v5428_v26, %v8695_v29  ;;  %v5654_v15 = vpop.f32.mrb[78].mxu1  ;;  %v5430_v42 = vpop.f32.mrb[79].mxu0 }
 0x3fa   : > { %5753 = vst [vmem:[%s8563_s28 + $0x1b0] sm:$0xff] %v6706_v6  ;;  %5752 = vst [vmem:[%s8563_s28 + $0x1a8] sm:$0xff] %v6675_v25  ;;  %v6708_v30 = vadd.f32 %v5654_v15, %v8698_v10  ;;  %v6677_v16 = vadd.f32 %v5430_v42, %v8701_v21  ;;  %v5656_v59 = vpop.f32.mrb[79].mxu1 }
 0x3fb   : > { %5754 = vst [vmem:[%s8563_s28 + $0x1b8] sm:$0xff] %v6707_v54  ;;  %5759 = vst [vmem:[%s8563_s28 + $0x1e0] sm:$0xff] %v6676_v61  ;;  %v6709_v9 = vadd.f32 %v5656_v59, %v8704_v60 }
 0x3fc   : > { %5761 = vst [vmem:[%s8563_s28 + $0x1f0] sm:$0xff] %v6708_v30  ;;  %5760 = vst [vmem:[%s8563_s28 + $0x1e8] sm:$0xff] %v6677_v16 }
 0x3fd   : > { %5762 = vst [vmem:[%s8563_s28 + $0x1f8] sm:$0xff] %v6709_v9 }
 0x3fe   : > { %v5434_v0 = vpop.f32.mrb[80].mxu0 }
 0x3ff   : > { %v6678_v34 = vadd.f32 %v5434_v0, %v8695_v29  ;;  %v5660_v48 = vpop.f32.mrb[80].mxu1  ;;  %v5436_v28 = vpop.f32.mrb[81].mxu0 }
 0x400   : > { %v6710_v11 = vadd.f32 %v5660_v48, %v8698_v10  ;;  %v6679_v17 = vadd.f32 %v5436_v28, %v8701_v21  ;;  %v5662_v18 = vpop.f32.mrb[81].mxu1  ;;  %v5438_v50 = vpop.f32.mrb[82].mxu0 }
 0x401   : > { %5767 = vst [vmem:[%s8563_s28 + $0x220] sm:$0xff] %v6678_v34  ;;  %v6711_v41 = vadd.f32 %v5662_v18, %v8704_v60  ;;  %v6680_v63 = vadd.f32 %v5438_v50, %v8695_v29  ;;  %v5664_v53 = vpop.f32.mrb[82].mxu1  ;;  %v5440_v31 = vpop.f32.mrb[83].mxu0 }
 0x402   : > { %5769 = vst [vmem:[%s8563_s28 + $0x230] sm:$0xff] %v6710_v11  ;;  %5768 = vst [vmem:[%s8563_s28 + $0x228] sm:$0xff] %v6679_v17  ;;  %v6712_v4 = vadd.f32 %v5664_v53, %v8698_v10  ;;  %v6681_v58 = vadd.f32 %v5440_v31, %v8701_v21  ;;  %v5666_v35 = vpop.f32.mrb[83].mxu1 }
 0x403   : > { %5770 = vst [vmem:[%s8563_s28 + $0x238] sm:$0xff] %v6711_v41  ;;  %5775 = vst [vmem:[%s8563_s28 + $0x260] sm:$0xff] %v6680_v63  ;;  %v6713_v56 = vadd.f32 %v5666_v35, %v8704_v60 }
 0x404   : > { %5777 = vst [vmem:[%s8563_s28 + $0x270] sm:$0xff] %v6712_v4  ;;  %5776 = vst [vmem:[%s8563_s28 + $0x268] sm:$0xff] %v6681_v58 }
 0x405   : > { %5778 = vst [vmem:[%s8563_s28 + $0x278] sm:$0xff] %v6713_v56 }
 0x406   : > { %v5444_v36 = vpop.f32.mrb[84].mxu0 }
 0x407   : > { %v6682_v2 = vadd.f32 %v5444_v36, %v8695_v29  ;;  %v5670_v39 = vpop.f32.mrb[84].mxu1  ;;  %v5446_v24 = vpop.f32.mrb[85].mxu0 }
 0x408   : > { %v6714_v43 = vadd.f32 %v5670_v39, %v8698_v10  ;;  %v6683_v32 = vadd.f32 %v5446_v24, %v8701_v21  ;;  %v5672_v3 = vpop.f32.mrb[85].mxu1  ;;  %v5448_v52 = vpop.f32.mrb[86].mxu0 }
 0x409   : > { %5783 = vst [vmem:[%s8563_s28 + $0x2a0] sm:$0xff] %v6682_v2  ;;  %v6715_v5 = vadd.f32 %v5672_v3, %v8704_v60  ;;  %v6684_v19 = vadd.f32 %v5448_v52, %v8695_v29  ;;  %v5674_v33 = vpop.f32.mrb[86].mxu1  ;;  %v5450_v49 = vpop.f32.mrb[87].mxu0 }
 0x40a   : > { %5785 = vst [vmem:[%s8563_s28 + $0x2b0] sm:$0xff] %v6714_v43  ;;  %5784 = vst [vmem:[%s8563_s28 + $0x2a8] sm:$0xff] %v6683_v32  ;;  %v6716_v45 = vadd.f32 %v5674_v33, %v8698_v10  ;;  %v6685_v38 = vadd.f32 %v5450_v49, %v8701_v21  ;;  %v5676_v20 = vpop.f32.mrb[87].mxu1 }
 0x40b   : > { %5786 = vst [vmem:[%s8563_s28 + $0x2b8] sm:$0xff] %v6715_v5  ;;  %5791 = vst [vmem:[%s8563_s28 + $0x2e0] sm:$0xff] %v6684_v19  ;;  %v6717_v37 = vadd.f32 %v5676_v20, %v8704_v60 }
 0x40c   : > { %5793 = vst [vmem:[%s8563_s28 + $0x2f0] sm:$0xff] %v6716_v45  ;;  %5792 = vst [vmem:[%s8563_s28 + $0x2e8] sm:$0xff] %v6685_v38 }
 0x40d   : > { %5794 = vst [vmem:[%s8563_s28 + $0x2f8] sm:$0xff] %v6717_v37 }
 0x40e   : > { %v5454_v8 = vpop.f32.mrb[88].mxu0 }
 0x40f   : > { %v6686_v14 = vadd.f32 %v5454_v8, %v8695_v29  ;;  %v5680_v47 = vpop.f32.mrb[88].mxu1  ;;  %v5456_v7 = vpop.f32.mrb[89].mxu0 }
 0x410   : > { %v6718_v57 = vadd.f32 %v5680_v47, %v8698_v10  ;;  %v6687_v23 = vadd.f32 %v5456_v7, %v8701_v21  ;;  %v5682_v44 = vpop.f32.mrb[89].mxu1  ;;  %v5458_v46 = vpop.f32.mrb[90].mxu0 }
 0x411   : > { %5799 = vst [vmem:[%s8563_s28 + $0x320] sm:$0xff] %v6686_v14  ;;  %v6719_v55 = vadd.f32 %v5682_v44, %v8704_v60  ;;  %v6688_v12 = vadd.f32 %v5458_v46, %v8695_v29  ;;  %v5684_v62 = vpop.f32.mrb[90].mxu1  ;;  %v5460_v1 = vpop.f32.mrb[91].mxu0 }
 0x412   : > { %5801 = vst [vmem:[%s8563_s28 + $0x330] sm:$0xff] %v6718_v57  ;;  %5800 = vst [vmem:[%s8563_s28 + $0x328] sm:$0xff] %v6687_v23  ;;  %v6720_v51 = vadd.f32 %v5684_v62, %v8698_v10  ;;  %v6689_v40 = vadd.f32 %v5460_v1, %v8701_v21  ;;  %v5686_v22 = vpop.f32.mrb[91].mxu1 }
 0x413   : > { %5802 = vst [vmem:[%s8563_s28 + $0x338] sm:$0xff] %v6719_v55  ;;  %5807 = vst [vmem:[%s8563_s28 + $0x360] sm:$0xff] %v6688_v12  ;;  %v6721_v27 = vadd.f32 %v5686_v22, %v8704_v60 }
 0x414   : > { %5809 = vst [vmem:[%s8563_s28 + $0x370] sm:$0xff] %v6720_v51  ;;  %5808 = vst [vmem:[%s8563_s28 + $0x368] sm:$0xff] %v6689_v40 }
 0x415   : > { %5810 = vst [vmem:[%s8563_s28 + $0x378] sm:$0xff] %v6721_v27 }
 0x416   : > { %v5464_v6 = vpop.f32.mrb[92].mxu0 }
 0x417   : > { %v6690_v25 = vadd.f32 %v5464_v6, %v8695_v29  ;;  %v5690_v13 = vpop.f32.mrb[92].mxu1  ;;  %v5466_v26 = vpop.f32.mrb[93].mxu0 }
 0x418   : > { %v6722_v54 = vadd.f32 %v5690_v13, %v8698_v10  ;;  %v6691_v61 = vadd.f32 %v5466_v26, %v8701_v21  ;;  %v5692_v15 = vpop.f32.mrb[93].mxu1  ;;  %v5468_v42 = vpop.f32.mrb[94].mxu0 }
 0x419   : > { %5815 = vst [vmem:[%s8563_s28 + $0x3a0] sm:$0xff] %v6690_v25  ;;  %v6723_v30 = vadd.f32 %v5692_v15, %v8704_v60  ;;  %v6692_v16 = vadd.f32 %v5468_v42, %v8695_v29  ;;  %v5694_v59 = vpop.f32.mrb[94].mxu1  ;;  %v5470_v9 = vpop.f32.mrb[95].mxu0 }
 0x41a   : > { %5817 = vst [vmem:[%s8563_s28 + $0x3b0] sm:$0xff] %v6722_v54  ;;  %5816 = vst [vmem:[%s8563_s28 + $0x3a8] sm:$0xff] %v6691_v61  ;;  %v6724_v0 = vadd.f32 %v5694_v59, %v8698_v10  ;;  %v6693_v34 = vadd.f32 %v5470_v9, %v8701_v21  ;;  %v5696_v48 = vpop.f32.mrb[95].mxu1 }
 0x41b   : > { %5818 = vst [vmem:[%s8563_s28 + $0x3b8] sm:$0xff] %v6723_v30  ;;  %5823 = vst [vmem:[%s8563_s28 + $0x3e0] sm:$0xff] %v6692_v16  ;;  %v6725_v29 = vadd.f32 %v5696_v48, %v8704_v60 }
 0x41c   : > { %5825 = vst [vmem:[%s8563_s28 + $0x3f0] sm:$0xff] %v6724_v0  ;;  %5824 = vst [vmem:[%s8563_s28 + $0x3e8] sm:$0xff] %v6693_v34 }
 0x41d   : > { %5826 = vst [vmem:[%s8563_s28 + $0x3f8] sm:$0xff] %v6725_v29 }
 0x41e   : > { %7602 = shalt.err (!%p7599_p2)
}
 0x41f   : > { %s7603_s24 = scalar_lea.hbm %s8833_s11, 16384  ;;  %s7607_s13 = scalar_lea.hbm %s8890_s5, 32768 }
 0x420   : > { %p7604_p13 = scmp.ne.s32.totalorder %s8833_s11, %s7603_s24  ;;  %p7608_p4 = scmp.lt.u32.totalorder %s8833_s11, %s8890_s5 }
 0x421   : > { %p7609_p7 = scmp.lt.u32.totalorder %s7607_s13, %s7603_s24  ;;  %p7611_p11 = scmp.lt.u32.totalorder %s7603_s24, %s8833_s11 }
 0x422   : > { %p7605_p6 = pnand %p7604_p13, %p8912_p0 }
 0x423   : > { %p7610_p8 = por %p7609_p7, %p7608_p4 }
 0x424   : > { %p7606_p10 = pneg %p7605_p6 }
 0x425   : > { %p7612_p1 = por %p7611_p11, %p7610_p8 }
 0x427   : > { %p7613_p3 = pnand %p7612_p1, %p7606_p10 }
 0x429   : > { %7616 = shalt.err (!%p7613_p3)
}
 0x42a   : > { %s7669_s14 = smov 1024   ;;  %s7670_s22 = smov 64  }
 0x42b   : > { %7056 = dma.vmem_to_hbm [thread:$0]  (%p8912_p0), %s8835_s15, 16384, %s8833_s11, %s5828_s23, %s7669_s14, %s7669_s14, %s7670_s22  }
 0x42c PF: > { %s5857_s30 = sand.u32 1, %s7647_s18   ;;  %p8913_p5 = scmp.ne.s32.totalorder %s8899_s25, 0 }
 0x42d   : > { %p8914_p9 = scmp.ge.s32.totalorder %s7659_s21, 2  ;;  %s5858_s7 = scalar_lea.sflag [#allocation4], %s5857_s30 }
 0x42f   : > { %p7070_p12 = pnand %p8914_p9, %p8913_p5 }
 0x431   : > { %7642 = dma.done.wait (!%p7070_p12), %s5858_s7, 16384  }
 0x432   : > { %7644 = vsyncadd (!%p7070_p12), %s5858_s7, 4294950912  ;;  %p19_p2 = scmp.ge.s32.totalorder %s7814_s16, 4   ;;  %s8915_s18 = smov %s7651_s19 }
 0x433   : > { %s8916_s19 = smov %s7655_s20  ;;  %s8917_s20 = smov %s7823_s27 }
 0x434   : > { %s8918_s21 = smov %s7814_s16  ;;  %21 = sbr.rel (!%p19_p2) target bundleno = 6 (0x6), region = 93 }
 0x43b   :  { %5863 = vsyncpa [#allocation3], 1 }
 0x43c   :  { %5865 = vsyncpa [#allocation3 + $0x1], 1 }
 0x43d   :  { %5866 = vsyncpa [#allocation6], 1 }
 0x43e   :  { %5867 = vsyncpa [#allocation4], 1 }
 0x43f   :  { %5869 = vsyncpa [#allocation4 + $0x1], 1 }

</bundles_post_ra>
